<compile_context>
chip_gen: v7x
topology: tpu7x:2x2x1
jax: 0.10.0
libtpu: 0.0.40
codegen_flags: <defaults>
</compile_context>

<pallas_src>
import functools
import math

import jax
import jax.numpy as jnp
from jax.experimental import pallas as pl
from jax.experimental.pallas import tpu as pltpu


# =============================================================================
# Kernel 1: fused down/up projections + RMSNorm + RoPE, lane-dense outputs
# =============================================================================
def mla_proj_kernel(x_ref, cos_ref, sin_ref,
                    w_kvd_ref, b_kvd_ref, kvn_ref,
                    w_kvu_ref, b_kvu_ref,
                    w_qd_ref, b_qd_ref, qn_ref,
                    w_qu_ref, b_qu_ref,
                    q_ref, k_ref, v_ref,
                    *, nhead, head_dim, rope_dim, dqk_pad, kv_cdim, eps):
    rope_half = rope_dim // 2
    n_nope = nhead * head_dim
    pad = dqk_pad - head_dim - rope_dim
    x = x_ref[0]                                            # (tm, d_model), f32
    tm = x.shape[0]

    # ---- KV path -------------------------------------------------------------
    ckv = jnp.dot(x, w_kvd_ref[...], preferred_element_type=jnp.float32) + b_kvd_ref[...]
    c_kv = ckv[:, :kv_cdim]
    k_rope = ckv[:, kv_cdim:]                               # (tm, rope_dim), half-split order

    ms = jnp.mean(c_kv * c_kv, axis=-1, keepdims=True)
    c_kv = c_kv * jax.lax.rsqrt(ms + eps) * kvn_ref[...]    # RMSNorm

    # layout (after wrapper column permutation): [k_nope all heads | v all heads]
    kv = jnp.dot(c_kv, w_kvu_ref[...], preferred_element_type=jnp.float32) + b_kvu_ref[...]

    # ---- Q path --------------------------------------------------------------
    cq = jnp.dot(x, w_qd_ref[...], preferred_element_type=jnp.float32) + b_qd_ref[...]
    msq = jnp.mean(cq * cq, axis=-1, keepdims=True)
    cq = cq * jax.lax.rsqrt(msq + eps) * qn_ref[...]        # RMSNorm
    # layout: [q_nope all heads | q_rope all heads (half-split per head)]
    qf = jnp.dot(cq, w_qu_ref[...], preferred_element_type=jnp.float32) + b_qu_ref[...]

    cos = cos_ref[...]                                      # (tm, rope_half)
    sin = sin_ref[...]

    # RoPE on k_rope (shared across heads). Half-split layout:
    #   out1 = x1*cos - x2*sin ; out2 = x2*cos + x1*sin
    kr1 = k_rope[:, :rope_half]
    kr2 = k_rope[:, rope_half:]
    k_rot1 = kr1 * cos - kr2 * sin
    k_rot2 = kr2 * cos + kr1 * sin

    zpad = jnp.zeros((tm, pad), jnp.float32) if pad else None

    # One full-width (dqk_pad-lane) store per head for Q and K (lane-dense).
    for h in range(nhead):
        k_parts = [kv[:, h * head_dim:(h + 1) * head_dim], k_rot1, k_rot2]
        qr = qf[:, n_nope + h * rope_dim:n_nope + (h + 1) * rope_dim]
        qr1 = qr[:, :rope_half]
        qr2 = qr[:, rope_half:]
        q_parts = [qf[:, h * head_dim:(h + 1) * head_dim],
                   qr1 * cos - qr2 * sin,
                   qr2 * cos + qr1 * sin]
        if zpad is not None:
            k_parts.append(zpad)
            q_parts.append(zpad)
        k_ref[0, :, h * dqk_pad:(h + 1) * dqk_pad] = (
            jnp.concatenate(k_parts, axis=-1).astype(k_ref.dtype))
        q_ref[0, :, h * dqk_pad:(h + 1) * dqk_pad] = (
            jnp.concatenate(q_parts, axis=-1).astype(q_ref.dtype))
        v_ref[0, h] = kv[:, n_nope + h * head_dim:
                         n_nope + (h + 1) * head_dim].astype(v_ref.dtype)


# =============================================================================
# Kernel 2: flash attention (online softmax over the kv axis)
# =============================================================================
def mla_attn_kernel(q_ref, k_ref, v_ref, o_ref, m_sc, l_sc, acc_sc, *, scale):
    ki = pl.program_id(2)

    @pl.when(ki == 0)
    def _():
        m_sc[...] = jnp.full(m_sc.shape, -jnp.inf, dtype=jnp.float32)
        l_sc[...] = jnp.zeros(l_sc.shape, dtype=jnp.float32)
        acc_sc[...] = jnp.zeros(acc_sc.shape, dtype=jnp.float32)

    q = q_ref[0]                                           # (tq, dqk_pad)
    k = k_ref[0]                                           # (tk, dqk_pad)
    v = v_ref[0, 0]                                        # (tk, head_dim)

    # Padding columns are zero in both q and k, so scores are exact.
    s = jax.lax.dot_general(q, k, (((1,), (1,)), ((), ())),
                            preferred_element_type=jnp.float32) * scale

    m_prev = m_sc[...]
    m_new = jnp.maximum(m_prev, jnp.max(s, axis=-1, keepdims=True))
    alpha = jnp.exp(m_prev - m_new)
    p = jnp.exp(s - m_new)
    l_sc[...] = alpha * l_sc[...] + jnp.sum(p, axis=-1, keepdims=True)
    acc_sc[...] = alpha * acc_sc[...] + jnp.dot(
        p.astype(v.dtype), v, preferred_element_type=jnp.float32)
    m_sc[...] = m_new

    @pl.when(ki == pl.num_programs(2) - 1)
    def _():
        inv_l = pl.reciprocal(l_sc[...], approx=True)
        o_ref[0, 0] = (acc_sc[...] * inv_l).astype(o_ref.dtype)


# =============================================================================
# Kernel 3: output projection — single full-contraction matmul, lane-dense store
# =============================================================================
def mla_out_proj_kernel(attn_ref, w_o_ref, b_o_ref, o_ref, *, nhead):
    a = jnp.concatenate([attn_ref[0, h] for h in range(nhead)], axis=-1)  # (tm, d_model)
    a = a.astype(w_o_ref.dtype)
    y = jnp.dot(a, w_o_ref[...], preferred_element_type=jnp.float32) + b_o_ref[...]
    o_ref[0] = y.astype(o_ref.dtype)


# =============================================================================
# Wrapper
# =============================================================================
def _half_split_perm(rope_dim):
    # interleaved (re, im, re, im, ...) -> (re..., im...)
    return jnp.concatenate([jnp.arange(0, rope_dim, 2, dtype=jnp.int32),
                            jnp.arange(1, rope_dim, 2, dtype=jnp.int32)])


def mla_forward(x, params, cos, sin, *, nhead, rope_dim, kv_cdim, q_cdim,
                mask=None, compute_dtype=jnp.bfloat16,
                tm=128, tq=256, tk=256, eps=1e-6):
    assert mask is None  # TODO(synk): attention mask path not implemented
    B, S, d_model = x.shape
    head_dim = d_model // nhead
    rope_half = rope_dim // 2
    dqk = head_dim + rope_dim
    dqk_pad = ((dqk + 127) // 128) * 128   # lane-dense / MXU-aligned Q,K feature dim
    tm = min(tm, S)
    tq = min(tq, S)
    tk = min(tk, S)
    assert S % tm == 0 and S % tq == 0 and S % tk == 0

    # ---- One-time weight layout permutations (outside the kernels) ----------
    perm_rope = _half_split_perm(rope_dim)

    # kv_down: permute the trailing rope columns into half-split order.
    idx_kvd = jnp.concatenate([jnp.arange(kv_cdim, dtype=jnp.int32), kv_cdim + perm_rope])
    w_kvd = params['w_kvd'][:, idx_kvd]
    b_kvd = params['b_kvd'][idx_kvd].reshape(1, -1)

    # kv_up: per-head [k | v] -> [k_all_heads | v_all_heads] (head-major).
    cols_kv = jnp.arange(nhead * 2 * head_dim, dtype=jnp.int32).reshape(nhead, 2 * head_dim)
    idx_kvu = jnp.concatenate([cols_kv[:, :head_dim].reshape(-1),
                               cols_kv[:, head_dim:].reshape(-1)])
    w_kvu = params['w_kvu'][:, idx_kvu]
    b_kvu = params['b_kvu'][idx_kvu].reshape(1, -1)

    # q_up: per-head [nope | rope(interleaved)] -> [nope_all | rope_all(half-split)].
    cols_q = jnp.arange(nhead * dqk, dtype=jnp.int32).reshape(nhead, dqk)
    rope_cols = cols_q[:, head_dim:][:, perm_rope]
    idx_qu = jnp.concatenate([cols_q[:, :head_dim].reshape(-1), rope_cols.reshape(-1)])
    w_qu = params['w_qu'][:, idx_qu]
    b_qu = params['b_qu'][idx_qu].reshape(1, -1)

    w_qd = params['w_qd']
    b_qd = params['b_qd'].reshape(1, -1)
    kvn = params['kv_norm_w'].reshape(1, -1)
    qn = params['q_norm_w'].reshape(1, -1)
    w_o = params['w_o']
    b_o = params['b_o'].reshape(1, -1)

    # ---- Kernel 1: projections + RMSNorm + RoPE ------------------------------
    q, k, v = pl.pallas_call(
        functools.partial(mla_proj_kernel, nhead=nhead, head_dim=head_dim,
                          rope_dim=rope_dim, dqk_pad=dqk_pad, kv_cdim=kv_cdim, eps=eps),
        out_shape=(
            jax.ShapeDtypeStruct((B, S, nhead * dqk_pad), compute_dtype),   # Q (lane-dense)
            jax.ShapeDtypeStruct((B, S, nhead * dqk_pad), compute_dtype),   # K (lane-dense)
            jax.ShapeDtypeStruct((B, nhead, S, head_dim), compute_dtype),   # V
        ),
        grid_spec=pltpu.PrefetchScalarGridSpec(
            num_scalar_prefetch=0,
            grid=(B, S // tm),
            in_specs=[
                pl.BlockSpec((1, tm, d_model), lambda b, s: (b, s, 0)),            # x
                pl.BlockSpec((tm, rope_half), lambda b, s: (s, 0)),                # cos
                pl.BlockSpec((tm, rope_half), lambda b, s: (s, 0)),                # sin
                pl.BlockSpec((d_model, kv_cdim + rope_dim), lambda b, s: (0, 0)),  # W_kv_down
                pl.BlockSpec((1, kv_cdim + rope_dim), lambda b, s: (0, 0)),
                pl.BlockSpec((1, kv_cdim), lambda b, s: (0, 0)),                   # kv_norm w
                pl.BlockSpec((kv_cdim, 2 * nhead * head_dim), lambda b, s: (0, 0)),  # W_kv_up
                pl.BlockSpec((1, 2 * nhead * head_dim), lambda b, s: (0, 0)),
                pl.BlockSpec((d_model, q_cdim), lambda b, s: (0, 0)),              # W_q_down
                pl.BlockSpec((1, q_cdim), lambda b, s: (0, 0)),
                pl.BlockSpec((1, q_cdim), lambda b, s: (0, 0)),                    # q_norm w
                pl.BlockSpec((q_cdim, nhead * dqk), lambda b, s: (0, 0)),          # W_q_up
                pl.BlockSpec((1, nhead * dqk), lambda b, s: (0, 0)),
            ],
            out_specs=(
                pl.BlockSpec((1, tm, nhead * dqk_pad), lambda b, s: (b, s, 0)),
                pl.BlockSpec((1, tm, nhead * dqk_pad), lambda b, s: (b, s, 0)),
                pl.BlockSpec((1, nhead, tm, head_dim), lambda b, s: (b, 0, s, 0)),
            ),
        ),
        compiler_params=pltpu.CompilerParams(
            dimension_semantics=("parallel", "parallel")),
    )(x, cos, sin, w_kvd, b_kvd, kvn, w_kvu, b_kvu, w_qd, b_qd, qn, w_qu, b_qu)

    # ---- Kernel 2: flash attention -------------------------------------------
    BH = B * nhead
    scale = 1.0 / math.sqrt(dqk)          # padding is zero, keep the true scale
    itemsize = jnp.dtype(compute_dtype).itemsize
    n_q_tiles = S // tq
    cost = pl.CostEstimate(
        flops=2 * BH * S * S * (dqk_pad + head_dim),
        transcendentals=BH * S * S,
        bytes_accessed=int(itemsize * (q.size + n_q_tiles * (k.size + v.size)
                                       + BH * S * head_dim)),
    )

    attn = pl.pallas_call(
        functools.partial(mla_attn_kernel, scale=scale),
        out_shape=jax.ShapeDtypeStruct((B, nhead, S, head_dim), compute_dtype),
        grid_spec=pltpu.PrefetchScalarGridSpec(
            num_scalar_prefetch=0,
            grid=(BH, S // tq, S // tk),
            in_specs=[
                pl.BlockSpec((1, tq, dqk_pad),
                             lambda bh, qi, ki: (bh // nhead, qi, bh % nhead)),
                pl.BlockSpec((1, tk, dqk_pad),
                             lambda bh, qi, ki: (bh // nhead, ki, bh % nhead)),
                pl.BlockSpec((1, 1, tk, head_dim),
                             lambda bh, qi, ki: (bh // nhead, bh % nhead, ki, 0)),
            ],
            out_specs=pl.BlockSpec((1, 1, tq, head_dim),
                                   lambda bh, qi, ki: (bh // nhead, bh % nhead, qi, 0)),
            scratch_shapes=[
                pltpu.VMEM((tq, 1), jnp.float32),            # m
                pltpu.VMEM((tq, 1), jnp.float32),            # l
                pltpu.VMEM((tq, head_dim), jnp.float32),     # acc
            ],
        ),
        compiler_params=pltpu.CompilerParams(
            dimension_semantics=("parallel", "parallel", "arbitrary")),
        cost_estimate=cost,
    )(q, k, v)

    # ---- Kernel 3: output projection (single full-K matmul) ------------------
    out = pl.pallas_call(
        functools.partial(mla_out_proj_kernel, nhead=nhead),
        out_shape=jax.ShapeDtypeStruct((B, S, d_model), x.dtype),
        grid_spec=pltpu.PrefetchScalarGridSpec(
            num_scalar_prefetch=0,
            grid=(B, S // tm),
            in_specs=[
                pl.BlockSpec((1, nhead, tm, head_dim), lambda b, s: (b, 0, s, 0)),
                pl.BlockSpec((d_model, d_model), lambda b, s: (0, 0)),
                pl.BlockSpec((1, d_model), lambda b, s: (0, 0)),
            ],
            out_specs=pl.BlockSpec((1, tm, d_model), lambda b, s: (b, s, 0)),
        ),
        compiler_params=pltpu.CompilerParams(
            dimension_semantics=("parallel", "parallel")),
    )(attn, w_o, b_o)

    # TODO(synk): training-mode dropout not applied (eval-mode identity).
    return out


# =============================================================================
# Pure-JAX reference (mirrors the PyTorch module, interleaved RoPE)
# =============================================================================
def _rms_norm_ref(x, w, eps):
    ms = jnp.mean(x * x, axis=-1, keepdims=True)
    return x * jax.lax.rsqrt(ms + eps) * w


def _apply_rotary_ref(x, cos, sin):
    # x: [B, S, H, rope_dim] with interleaved (re, im) pairs; cos/sin: [S, rope_dim//2]
    B, S, H, R = x.shape
    xr = x.reshape(B, S, H, R // 2, 2)
    x0, x1 = xr[..., 0], xr[..., 1]
    c = cos[None, :, None, :]
    s = sin[None, :, None, :]
    y0 = x0 * c - x1 * s
    y1 = x0 * s + x1 * c
    return jnp.stack([y0, y1], axis=-1).reshape(B, S, H, R)


def mla_reference(x, p, cos, sin, *, nhead, rope_dim, kv_cdim, q_cdim, eps):
    B, S, d_model = x.shape
    head_dim = d_model // nhead
    ckv = x @ p['w_kvd'] + p['b_kvd']
    c_kv, k_rope = ckv[..., :kv_cdim], ckv[..., kv_cdim:]
    kv = _rms_norm_ref(c_kv, p['kv_norm_w'], eps) @ p['w_kvu'] + p['b_kvu']
    kv = kv.reshape(B, S, nhead, 2 * head_dim).transpose(0, 2, 1, 3)    # [B,H,S,2hd]
    k, v = kv[..., :head_dim], kv[..., head_dim:]
    cq = _rms_norm_ref(x @ p['w_qd'] + p['b_qd'], p['q_norm_w'], eps)
    q = (cq @ p['w_qu'] + p['b_qu']).reshape(B, S, nhead, head_dim + rope_dim).transpose(0, 2, 1, 3)
    q, q_rope = q[..., :head_dim], q[..., head_dim:]
    k_rope = jnp.tile(k_rope[:, :, None, :], (1, 1, nhead, 1))          # [B,S,H,R]
    k_rope = _apply_rotary_ref(k_rope, cos, sin).transpose(0, 2, 1, 3)  # [B,H,S,R]
    q_rope = _apply_rotary_ref(q_rope.transpose(0, 2, 1, 3), cos, sin).transpose(0, 2, 1, 3)
    k = jnp.concatenate([k, k_rope], axis=-1)
    q = jnp.concatenate([q, q_rope], axis=-1)
    a = jnp.einsum('bhqd,bhkd->bhqk', q, k) / math.sqrt(head_dim + rope_dim)
    a = jax.nn.softmax(a, axis=-1)
    attn = jnp.einsum('bhqk,bhkd->bhqd', a, v)
    attn = attn.transpose(0, 2, 1, 3).reshape(B, S, d_model)
    return attn @ p['w_o'] + p['b_o']


if __name__ == "__main__":
    # Small config with lane-friendly dims: d_model=256, 4 heads of 64,
    # kv/q compression 128, rope 32, batch 2, seq 128.
    B, S = 2, 128
    d_model, nhead = 256, 4
    head_dim = d_model // nhead
    kv_cdim, q_cdim, rope_dim = 128, 128, 32
    rope_half = rope_dim // 2
    eps = float(jnp.finfo(jnp.float32).eps)   # PyTorch nn.RMSNorm default (eps=None)

    key = jax.random.PRNGKey(0)
    ks = jax.random.split(key, 13)

    def init(k, shape, scale=0.05):
        return jax.random.normal(k, shape, dtype=jnp.float32) * scale

    params = {
        'w_kvd': init(ks[0], (d_model, kv_cdim + rope_dim)),
        'b_kvd': init(ks[1], (kv_cdim + rope_dim,)),
        'w_kvu': init(ks[2], (kv_cdim, nhead * 2 * head_dim)),
        'b_kvu': init(ks[3], (nhead * 2 * head_dim,)),
        'w_qd': init(ks[4], (d_model, q_cdim)),
        'b_qd': init(ks[5], (q_cdim,)),
        'w_qu': init(ks[6], (q_cdim, nhead * (head_dim + rope_dim))),
        'b_qu': init(ks[7], (nhead * (head_dim + rope_dim),)),
        'w_o': init(ks[8], (d_model, d_model)),
        'b_o': init(ks[9], (d_model,)),
        'kv_norm_w': 1.0 + 0.1 * jax.random.normal(ks[10], (kv_cdim,), dtype=jnp.float32),
        'q_norm_w': 1.0 + 0.1 * jax.random.normal(ks[11], (q_cdim,), dtype=jnp.float32),
    }
    x = jax.random.normal(ks[12], (B, S, d_model), dtype=jnp.float32)

    # RoPE tables (freqs_cis equivalent): cos/sin of shape (S, rope_dim//2).
    inv_freq = 1.0 / (10000.0 ** (jnp.arange(rope_half, dtype=jnp.float32) / rope_half))
    angles = jnp.arange(S, dtype=jnp.float32)[:, None] * inv_freq[None, :]
    cos, sin = jnp.cos(angles), jnp.sin(angles)

    ref = mla_reference(x, params, cos, sin, nhead=nhead, rope_dim=rope_dim,
                        kv_cdim=kv_cdim, q_cdim=q_cdim, eps=eps)

    # f32 compute path: tight correctness check.
    out_f32 = mla_forward(x, params, cos, sin, nhead=nhead, rope_dim=rope_dim,
                          kv_cdim=kv_cdim, q_cdim=q_cdim, eps=eps,
                          compute_dtype=jnp.float32)
    out_f32 = jax.block_until_ready(out_f32)
    assert out_f32.shape == (B, S, d_model)
    err_f32 = float(jnp.max(jnp.abs(out_f32 - ref)))
    assert jnp.allclose(out_f32, ref, atol=2e-3, rtol=2e-3), \
        f"f32 mismatch vs reference, max_err={err_f32}"

    # bf16 Q/K/V compute path (perf configuration on v6e/v7x): looser tolerance.
    out_bf16 = mla_forward(x, params, cos, sin, nhead=nhead, rope_dim=rope_dim,
                           kv_cdim=kv_cdim, q_cdim=q_cdim, eps=eps,
                           compute_dtype=jnp.bfloat16)
    out_bf16 = jax.block_until_ready(out_bf16)
    err_bf16 = float(jnp.max(jnp.abs(out_bf16 - ref)))
    assert jnp.allclose(out_bf16, ref, atol=2.5e-2, rtol=2.5e-2), \
        f"bf16 mismatch vs reference, max_err={err_bf16}"

    print("KERNEL_OK")
</pallas_src>

<mosaic_0001>
module attributes {stable_mosaic.version = 11 : i64} {
  func.func @mla_proj_kernel(%arg0: i32, %arg1: i32, %arg2: memref<1x128x256xf32, #tpu.memory_space<vmem>>, %arg3: memref<128x16xf32, #tpu.memory_space<vmem>>, %arg4: memref<128x16xf32, #tpu.memory_space<vmem>>, %arg5: memref<256x160xf32, #tpu.memory_space<vmem>>, %arg6: memref<1x160xf32, #tpu.memory_space<vmem>>, %arg7: memref<1x128xf32, #tpu.memory_space<vmem>>, %arg8: memref<128x512xf32, #tpu.memory_space<vmem>>, %arg9: memref<1x512xf32, #tpu.memory_space<vmem>>, %arg10: memref<256x128xf32, #tpu.memory_space<vmem>>, %arg11: memref<1x128xf32, #tpu.memory_space<vmem>>, %arg12: memref<1x128xf32, #tpu.memory_space<vmem>>, %arg13: memref<128x384xf32, #tpu.memory_space<vmem>>, %arg14: memref<1x384xf32, #tpu.memory_space<vmem>>, %arg15: memref<1x128x512xf32, #tpu.memory_space<vmem>>, %arg16: memref<1x128x512xf32, #tpu.memory_space<vmem>>, %arg17: memref<1x4x128x64xf32, #tpu.memory_space<vmem>>) attributes {dimension_semantics = [#tpu.dimension_semantics<parallel>, #tpu.dimension_semantics<parallel>], iteration_bounds = array<i64: 2, 1>, scalar_prefetch = 0 : i64, scratch_operands = 0 : i64, tpu.core_type = #tpu.core_type<tc>, window_params = [{transform_indices = @transform_0, window_bounds = array<i64: 1, 128, 256>}, {transform_indices = @transform_1, window_bounds = array<i64: 128, 16>}, {transform_indices = @transform_2, window_bounds = array<i64: 128, 16>}, {pipeline_mode = #tpu.pipeline_mode<synchronous>, transform_indices = @transform_3, window_bounds = array<i64: 256, 160>}, {pipeline_mode = #tpu.pipeline_mode<synchronous>, transform_indices = @transform_4, window_bounds = array<i64: 1, 160>}, {pipeline_mode = #tpu.pipeline_mode<synchronous>, transform_indices = @transform_5, window_bounds = array<i64: 1, 128>}, {pipeline_mode = #tpu.pipeline_mode<synchronous>, transform_indices = @transform_6, window_bounds = array<i64: 128, 512>}, {pipeline_mode = #tpu.pipeline_mode<synchronous>, transform_indices = @transform_7, window_bounds = array<i64: 1, 512>}, {pipeline_mode = #tpu.pipeline_mode<synchronous>, transform_indices = @transform_8, window_bounds = array<i64: 256, 128>}, {pipeline_mode = #tpu.pipeline_mode<synchronous>, transform_indices = @transform_9, window_bounds = array<i64: 1, 128>}, {pipeline_mode = #tpu.pipeline_mode<synchronous>, transform_indices = @transform_10, window_bounds = array<i64: 1, 128>}, {pipeline_mode = #tpu.pipeline_mode<synchronous>, transform_indices = @transform_11, window_bounds = array<i64: 128, 384>}, {pipeline_mode = #tpu.pipeline_mode<synchronous>, transform_indices = @transform_12, window_bounds = array<i64: 1, 384>}, {transform_indices = @transform_13, window_bounds = array<i64: 1, 128, 512>}, {transform_indices = @transform_14, window_bounds = array<i64: 1, 128, 512>}, {transform_indices = @transform_15, window_bounds = array<i64: 1, 4, 128, 64>}]} {
    %c0 = arith.constant 0 : index
    %c0_0 = arith.constant 0 : index
    %c0_1 = arith.constant 0 : index
    %0 = vector.load %arg2[%c0, %c0_0, %c0_1] : memref<1x128x256xf32, #tpu.memory_space<vmem>>, vector<1x128x256xf32>
    %1 = vector.shape_cast %0 : vector<1x128x256xf32> to vector<128x256xf32>
    %c0_2 = arith.constant 0 : index
    %c0_3 = arith.constant 0 : index
    %2 = vector.load %arg5[%c0_2, %c0_3] : memref<256x160xf32, #tpu.memory_space<vmem>>, vector<256x160xf32>
    %cst = arith.constant dense<0.000000e+00> : vector<128x160xf32>
    %3 = tpu.matmul %1, %2, %cst {dimension_numbers = #tpu.dot_dimension_numbers<[1], [0], [0], [1], [0, 0, 1, 1], [], []>} : vector<128x256xf32>, vector<256x160xf32>, vector<128x160xf32> -> vector<128x160xf32>
    %c0_4 = arith.constant 0 : index
    %c0_5 = arith.constant 0 : index
    %4 = vector.load %arg6[%c0_4, %c0_5] : memref<1x160xf32, #tpu.memory_space<vmem>>, vector<1x160xf32>
    %5 = vector.broadcast %4 : vector<1x160xf32> to vector<128x160xf32>
    %6 = arith.addf %3, %5 : vector<128x160xf32>
    %7 = vector.extract_strided_slice %6 {offsets = [0, 0], sizes = [128, 128], strides = [1, 1]} : vector<128x160xf32> to vector<128x128xf32>
    %8 = vector.extract_strided_slice %6 {offsets = [0, 128], sizes = [128, 32], strides = [1, 1]} : vector<128x160xf32> to vector<128x32xf32>
    %9 = arith.mulf %7, %7 : vector<128x128xf32>
    %cst_6 = arith.constant dense<0.000000e+00> : vector<128xf32>
    %10 = vector.multi_reduction <add>, %9, %cst_6 [1] : vector<128x128xf32> to vector<128xf32>
    %11 = vector.shape_cast %10 : vector<128xf32> to vector<128x1xf32>
    %cst_7 = arith.constant 1.280000e+02 : f32
    %12 = vector.broadcast %cst_7 : f32 to vector<128x1xf32>
    %13 = arith.divf %11, %12 : vector<128x1xf32>
    %cst_8 = arith.constant 1.1920929E-7 : f32
    %14 = vector.broadcast %cst_8 : f32 to vector<128x1xf32>
    %15 = arith.addf %13, %14 : vector<128x1xf32>
    %16 = math.rsqrt %15 : vector<128x1xf32>
    %17 = vector.broadcast %16 : vector<128x1xf32> to vector<128x128xf32>
    %18 = arith.mulf %7, %17 : vector<128x128xf32>
    %c0_9 = arith.constant 0 : index
    %c0_10 = arith.constant 0 : index
    %19 = vector.load %arg7[%c0_9, %c0_10] : memref<1x128xf32, #tpu.memory_space<vmem>>, vector<1x128xf32>
    %20 = vector.broadcast %19 : vector<1x128xf32> to vector<128x128xf32>
    %21 = arith.mulf %18, %20 : vector<128x128xf32>
    %c0_11 = arith.constant 0 : index
    %c0_12 = arith.constant 0 : index
    %22 = vector.load %arg8[%c0_11, %c0_12] : memref<128x512xf32, #tpu.memory_space<vmem>>, vector<128x512xf32>
    %cst_13 = arith.constant dense<0.000000e+00> : vector<128x512xf32>
    %23 = tpu.matmul %21, %22, %cst_13 {dimension_numbers = #tpu.dot_dimension_numbers<[1], [0], [0], [1], [0, 0, 1, 1], [], []>} : vector<128x128xf32>, vector<128x512xf32>, vector<128x512xf32> -> vector<128x512xf32>
    %c0_14 = arith.constant 0 : index
    %c0_15 = arith.constant 0 : index
    %24 = vector.load %arg9[%c0_14, %c0_15] : memref<1x512xf32, #tpu.memory_space<vmem>>, vector<1x512xf32>
    %25 = vector.broadcast %24 : vector<1x512xf32> to vector<128x512xf32>
    %26 = arith.addf %23, %25 : vector<128x512xf32>
    %c0_16 = arith.constant 0 : index
    %c0_17 = arith.constant 0 : index
    %27 = vector.load %arg10[%c0_16, %c0_17] : memref<256x128xf32, #tpu.memory_space<vmem>>, vector<256x128xf32>
    %cst_18 = arith.constant dense<0.000000e+00> : vector<128x128xf32>
    %28 = tpu.matmul %1, %27, %cst_18 {dimension_numbers = #tpu.dot_dimension_numbers<[1], [0], [0], [1], [0, 0, 1, 1], [], []>} : vector<128x256xf32>, vector<256x128xf32>, vector<128x128xf32> -> vector<128x128xf32>
    %c0_19 = arith.constant 0 : index
    %c0_20 = arith.constant 0 : index
    %29 = vector.load %arg11[%c0_19, %c0_20] : memref<1x128xf32, #tpu.memory_space<vmem>>, vector<1x128xf32>
    %30 = vector.broadcast %29 : vector<1x128xf32> to vector<128x128xf32>
    %31 = arith.addf %28, %30 : vector<128x128xf32>
    %32 = arith.mulf %31, %31 : vector<128x128xf32>
    %cst_21 = arith.constant dense<0.000000e+00> : vector<128xf32>
    %33 = vector.multi_reduction <add>, %32, %cst_21 [1] : vector<128x128xf32> to vector<128xf32>
    %34 = vector.shape_cast %33 : vector<128xf32> to vector<128x1xf32>
    %cst_22 = arith.constant 1.280000e+02 : f32
    %35 = vector.broadcast %cst_22 : f32 to vector<128x1xf32>
    %36 = arith.divf %34, %35 : vector<128x1xf32>
    %cst_23 = arith.constant 1.1920929E-7 : f32
    %37 = vector.broadcast %cst_23 : f32 to vector<128x1xf32>
    %38 = arith.addf %36, %37 : vector<128x1xf32>
    %39 = math.rsqrt %38 : vector<128x1xf32>
    %40 = vector.broadcast %39 : vector<128x1xf32> to vector<128x128xf32>
    %41 = arith.mulf %31, %40 : vector<128x128xf32>
    %c0_24 = arith.constant 0 : index
    %c0_25 = arith.constant 0 : index
    %42 = vector.load %arg12[%c0_24, %c0_25] : memref<1x128xf32, #tpu.memory_space<vmem>>, vector<1x128xf32>
    %43 = vector.broadcast %42 : vector<1x128xf32> to vector<128x128xf32>
    %44 = arith.mulf %41, %43 : vector<128x128xf32>
    %c0_26 = arith.constant 0 : index
    %c0_27 = arith.constant 0 : index
    %45 = vector.load %arg13[%c0_26, %c0_27] : memref<128x384xf32, #tpu.memory_space<vmem>>, vector<128x384xf32>
    %cst_28 = arith.constant dense<0.000000e+00> : vector<128x384xf32>
    %46 = tpu.matmul %44, %45, %cst_28 {dimension_numbers = #tpu.dot_dimension_numbers<[1], [0], [0], [1], [0, 0, 1, 1], [], []>} : vector<128x128xf32>, vector<128x384xf32>, vector<128x384xf32> -> vector<128x384xf32>
    %c0_29 = arith.constant 0 : index
    %c0_30 = arith.constant 0 : index
    %47 = vector.load %arg14[%c0_29, %c0_30] : memref<1x384xf32, #tpu.memory_space<vmem>>, vector<1x384xf32>
    %48 = vector.broadcast %47 : vector<1x384xf32> to vector<128x384xf32>
    %49 = arith.addf %46, %48 : vector<128x384xf32>
    %c0_31 = arith.constant 0 : index
    %c0_32 = arith.constant 0 : index
    %50 = vector.load %arg3[%c0_31, %c0_32] : memref<128x16xf32, #tpu.memory_space<vmem>>, vector<128x16xf32>
    %c0_33 = arith.constant 0 : index
    %c0_34 = arith.constant 0 : index
    %51 = vector.load %arg4[%c0_33, %c0_34] : memref<128x16xf32, #tpu.memory_space<vmem>>, vector<128x16xf32>
    %52 = vector.extract_strided_slice %8 {offsets = [0, 0], sizes = [128, 16], strides = [1, 1]} : vector<128x32xf32> to vector<128x16xf32>
    %53 = vector.extract_strided_slice %8 {offsets = [0, 16], sizes = [128, 16], strides = [1, 1]} : vector<128x32xf32> to vector<128x16xf32>
    %54 = arith.mulf %52, %50 : vector<128x16xf32>
    %55 = arith.mulf %53, %51 : vector<128x16xf32>
    %56 = arith.subf %54, %55 : vector<128x16xf32>
    %57 = arith.mulf %53, %50 : vector<128x16xf32>
    %58 = arith.mulf %52, %51 : vector<128x16xf32>
    %59 = arith.addf %57, %58 : vector<128x16xf32>
    %cst_35 = arith.constant 0.000000e+00 : f32
    %60 = vector.broadcast %cst_35 : f32 to vector<128x32xf32>
    %61 = vector.extract_strided_slice %26 {offsets = [0, 0], sizes = [128, 64], strides = [1, 1]} : vector<128x512xf32> to vector<128x64xf32>
    %62 = vector.extract_strided_slice %49 {offsets = [0, 256], sizes = [128, 32], strides = [1, 1]} : vector<128x384xf32> to vector<128x32xf32>
    %63 = vector.extract_strided_slice %62 {offsets = [0, 0], sizes = [128, 16], strides = [1, 1]} : vector<128x32xf32> to vector<128x16xf32>
    %64 = vector.extract_strided_slice %62 {offsets = [0, 16], sizes = [128, 16], strides = [1, 1]} : vector<128x32xf32> to vector<128x16xf32>
    %65 = vector.extract_strided_slice %49 {offsets = [0, 0], sizes = [128, 64], strides = [1, 1]} : vector<128x384xf32> to vector<128x64xf32>
    %66 = arith.mulf %63, %50 : vector<128x16xf32>
    %67 = arith.mulf %64, %51 : vector<128x16xf32>
    %68 = arith.subf %66, %67 : vector<128x16xf32>
    %69 = arith.mulf %64, %50 : vector<128x16xf32>
    %70 = arith.mulf %63, %51 : vector<128x16xf32>
    %71 = arith.addf %69, %70 : vector<128x16xf32>
    %72 = tpu.concatenate %61, %56, %59, %60 in 1 : vector<128x64xf32>, vector<128x16xf32>, vector<128x16xf32>, vector<128x32xf32> -> vector<128x128xf32>
    %c0_36 = arith.constant 0 : index
    %c0_37 = arith.constant 0 : index
    %c0_38 = arith.constant 0 : index
    %73 = vector.load %arg16[%c0_36, %c0_37, %c0_38] : memref<1x128x512xf32, #tpu.memory_space<vmem>>, vector<1x128x128xf32>
    %74 = vector.shape_cast %73 : vector<1x128x128xf32> to vector<128x128xf32>
    %75 = vector.shape_cast %72 : vector<128x128xf32> to vector<1x128x128xf32>
    tpu.vector_store %arg16[%c0_36, %c0_37, %c0_38], %75 {strides = array<i32>} : memref<1x128x512xf32, #tpu.memory_space<vmem>>, vector<1x128x128xf32>,
    %76 = tpu.concatenate %65, %68, %71, %60 in 1 : vector<128x64xf32>, vector<128x16xf32>, vector<128x16xf32>, vector<128x32xf32> -> vector<128x128xf32>
    %c0_39 = arith.constant 0 : index
    %c0_40 = arith.constant 0 : index
    %c0_41 = arith.constant 0 : index
    %77 = vector.load %arg15[%c0_39, %c0_40, %c0_41] : memref<1x128x512xf32, #tpu.memory_space<vmem>>, vector<1x128x128xf32>
    %78 = vector.shape_cast %77 : vector<1x128x128xf32> to vector<128x128xf32>
    %79 = vector.shape_cast %76 : vector<128x128xf32> to vector<1x128x128xf32>
    tpu.vector_store %arg15[%c0_39, %c0_40, %c0_41], %79 {strides = array<i32>} : memref<1x128x512xf32, #tpu.memory_space<vmem>>, vector<1x128x128xf32>,
    %80 = vector.extract_strided_slice %26 {offsets = [0, 256], sizes = [128, 64], strides = [1, 1]} : vector<128x512xf32> to vector<128x64xf32>
    %c0_42 = arith.constant 0 : index
    %c0_43 = arith.constant 0 : index
    %c0_44 = arith.constant 0 : index
    %c0_45 = arith.constant 0 : index
    %81 = vector.load %arg17[%c0_42, %c0_43, %c0_44, %c0_45] : memref<1x4x128x64xf32, #tpu.memory_space<vmem>>, vector<1x1x128x64xf32>
    %82 = vector.shape_cast %81 : vector<1x1x128x64xf32> to vector<128x64xf32>
    %83 = vector.shape_cast %80 : vector<128x64xf32> to vector<1x1x128x64xf32>
    tpu.vector_store %arg17[%c0_42, %c0_43, %c0_44, %c0_45], %83 {strides = array<i32>} : memref<1x4x128x64xf32, #tpu.memory_space<vmem>>, vector<1x1x128x64xf32>,
    %84 = vector.extract_strided_slice %26 {offsets = [0, 64], sizes = [128, 64], strides = [1, 1]} : vector<128x512xf32> to vector<128x64xf32>
    %85 = vector.extract_strided_slice %49 {offsets = [0, 288], sizes = [128, 32], strides = [1, 1]} : vector<128x384xf32> to vector<128x32xf32>
    %86 = vector.extract_strided_slice %85 {offsets = [0, 0], sizes = [128, 16], strides = [1, 1]} : vector<128x32xf32> to vector<128x16xf32>
    %87 = vector.extract_strided_slice %85 {offsets = [0, 16], sizes = [128, 16], strides = [1, 1]} : vector<128x32xf32> to vector<128x16xf32>
    %88 = vector.extract_strided_slice %49 {offsets = [0, 64], sizes = [128, 64], strides = [1, 1]} : vector<128x384xf32> to vector<128x64xf32>
    %89 = arith.mulf %86, %50 : vector<128x16xf32>
    %90 = arith.mulf %87, %51 : vector<128x16xf32>
    %91 = arith.subf %89, %90 : vector<128x16xf32>
    %92 = arith.mulf %87, %50 : vector<128x16xf32>
    %93 = arith.mulf %86, %51 : vector<128x16xf32>
    %94 = arith.addf %92, %93 : vector<128x16xf32>
    %95 = tpu.concatenate %84, %56, %59, %60 in 1 : vector<128x64xf32>, vector<128x16xf32>, vector<128x16xf32>, vector<128x32xf32> -> vector<128x128xf32>
    %c0_46 = arith.constant 0 : index
    %c0_47 = arith.constant 0 : index
    %c128 = arith.constant 128 : index
    %96 = vector.load %arg16[%c0_46, %c0_47, %c128] : memref<1x128x512xf32, #tpu.memory_space<vmem>>, vector<1x128x128xf32>
    %97 = vector.shape_cast %96 : vector<1x128x128xf32> to vector<128x128xf32>
    %98 = vector.shape_cast %95 : vector<128x128xf32> to vector<1x128x128xf32>
    tpu.vector_store %arg16[%c0_46, %c0_47, %c128], %98 {strides = array<i32>} : memref<1x128x512xf32, #tpu.memory_space<vmem>>, vector<1x128x128xf32>,
    %99 = tpu.concatenate %88, %91, %94, %60 in 1 : vector<128x64xf32>, vector<128x16xf32>, vector<128x16xf32>, vector<128x32xf32> -> vector<128x128xf32>
    %c0_48 = arith.constant 0 : index
    %c0_49 = arith.constant 0 : index
    %c128_50 = arith.constant 128 : index
    %100 = vector.load %arg15[%c0_48, %c0_49, %c128_50] : memref<1x128x512xf32, #tpu.memory_space<vmem>>, vector<1x128x128xf32>
    %101 = vector.shape_cast %100 : vector<1x128x128xf32> to vector<128x128xf32>
    %102 = vector.shape_cast %99 : vector<128x128xf32> to vector<1x128x128xf32>
    tpu.vector_store %arg15[%c0_48, %c0_49, %c128_50], %102 {strides = array<i32>} : memref<1x128x512xf32, #tpu.memory_space<vmem>>, vector<1x128x128xf32>,
    %103 = vector.extract_strided_slice %26 {offsets = [0, 320], sizes = [128, 64], strides = [1, 1]} : vector<128x512xf32> to vector<128x64xf32>
    %c0_51 = arith.constant 0 : index
    %c1 = arith.constant 1 : index
    %c0_52 = arith.constant 0 : index
    %c0_53 = arith.constant 0 : index
    %104 = vector.load %arg17[%c0_51, %c1, %c0_52, %c0_53] : memref<1x4x128x64xf32, #tpu.memory_space<vmem>>, vector<1x1x128x64xf32>
    %105 = vector.shape_cast %104 : vector<1x1x128x64xf32> to vector<128x64xf32>
    %106 = vector.shape_cast %103 : vector<128x64xf32> to vector<1x1x128x64xf32>
    tpu.vector_store %arg17[%c0_51, %c1, %c0_52, %c0_53], %106 {strides = array<i32>} : memref<1x4x128x64xf32, #tpu.memory_space<vmem>>, vector<1x1x128x64xf32>,
    %107 = vector.extract_strided_slice %26 {offsets = [0, 128], sizes = [128, 64], strides = [1, 1]} : vector<128x512xf32> to vector<128x64xf32>
    %108 = vector.extract_strided_slice %49 {offsets = [0, 320], sizes = [128, 32], strides = [1, 1]} : vector<128x384xf32> to vector<128x32xf32>
    %109 = vector.extract_strided_slice %108 {offsets = [0, 0], sizes = [128, 16], strides = [1, 1]} : vector<128x32xf32> to vector<128x16xf32>
    %110 = vector.extract_strided_slice %108 {offsets = [0, 16], sizes = [128, 16], strides = [1, 1]} : vector<128x32xf32> to vector<128x16xf32>
    %111 = vector.extract_strided_slice %49 {offsets = [0, 128], sizes = [128, 64], strides = [1, 1]} : vector<128x384xf32> to vector<128x64xf32>
    %112 = arith.mulf %109, %50 : vector<128x16xf32>
    %113 = arith.mulf %110, %51 : vector<128x16xf32>
    %114 = arith.subf %112, %113 : vector<128x16xf32>
    %115 = arith.mulf %110, %50 : vector<128x16xf32>
    %116 = arith.mulf %109, %51 : vector<128x16xf32>
    %117 = arith.addf %115, %116 : vector<128x16xf32>
    %118 = tpu.concatenate %107, %56, %59, %60 in 1 : vector<128x64xf32>, vector<128x16xf32>, vector<128x16xf32>, vector<128x32xf32> -> vector<128x128xf32>
    %c0_54 = arith.constant 0 : index
    %c0_55 = arith.constant 0 : index
    %c256 = arith.constant 256 : index
    %119 = vector.load %arg16[%c0_54, %c0_55, %c256] : memref<1x128x512xf32, #tpu.memory_space<vmem>>, vector<1x128x128xf32>
    %120 = vector.shape_cast %119 : vector<1x128x128xf32> to vector<128x128xf32>
    %121 = vector.shape_cast %118 : vector<128x128xf32> to vector<1x128x128xf32>
    tpu.vector_store %arg16[%c0_54, %c0_55, %c256], %121 {strides = array<i32>} : memref<1x128x512xf32, #tpu.memory_space<vmem>>, vector<1x128x128xf32>,
    %122 = tpu.concatenate %111, %114, %117, %60 in 1 : vector<128x64xf32>, vector<128x16xf32>, vector<128x16xf32>, vector<128x32xf32> -> vector<128x128xf32>
    %c0_56 = arith.constant 0 : index
    %c0_57 = arith.constant 0 : index
    %c256_58 = arith.constant 256 : index
    %123 = vector.load %arg15[%c0_56, %c0_57, %c256_58] : memref<1x128x512xf32, #tpu.memory_space<vmem>>, vector<1x128x128xf32>
    %124 = vector.shape_cast %123 : vector<1x128x128xf32> to vector<128x128xf32>
    %125 = vector.shape_cast %122 : vector<128x128xf32> to vector<1x128x128xf32>
    tpu.vector_store %arg15[%c0_56, %c0_57, %c256_58], %125 {strides = array<i32>} : memref<1x128x512xf32, #tpu.memory_space<vmem>>, vector<1x128x128xf32>,
    %126 = vector.extract_strided_slice %26 {offsets = [0, 384], sizes = [128, 64], strides = [1, 1]} : vector<128x512xf32> to vector<128x64xf32>
    %c0_59 = arith.constant 0 : index
    %c2 = arith.constant 2 : index
    %c0_60 = arith.constant 0 : index
    %c0_61 = arith.constant 0 : index
    %127 = vector.load %arg17[%c0_59, %c2, %c0_60, %c0_61] : memref<1x4x128x64xf32, #tpu.memory_space<vmem>>, vector<1x1x128x64xf32>
    %128 = vector.shape_cast %127 : vector<1x1x128x64xf32> to vector<128x64xf32>
    %129 = vector.shape_cast %126 : vector<128x64xf32> to vector<1x1x128x64xf32>
    tpu.vector_store %arg17[%c0_59, %c2, %c0_60, %c0_61], %129 {strides = array<i32>} : memref<1x4x128x64xf32, #tpu.memory_space<vmem>>, vector<1x1x128x64xf32>,
    %130 = vector.extract_strided_slice %26 {offsets = [0, 192], sizes = [128, 64], strides = [1, 1]} : vector<128x512xf32> to vector<128x64xf32>
    %131 = vector.extract_strided_slice %49 {offsets = [0, 352], sizes = [128, 32], strides = [1, 1]} : vector<128x384xf32> to vector<128x32xf32>
    %132 = vector.extract_strided_slice %131 {offsets = [0, 0], sizes = [128, 16], strides = [1, 1]} : vector<128x32xf32> to vector<128x16xf32>
    %133 = vector.extract_strided_slice %131 {offsets = [0, 16], sizes = [128, 16], strides = [1, 1]} : vector<128x32xf32> to vector<128x16xf32>
    %134 = vector.extract_strided_slice %49 {offsets = [0, 192], sizes = [128, 64], strides = [1, 1]} : vector<128x384xf32> to vector<128x64xf32>
    %135 = arith.mulf %132, %50 : vector<128x16xf32>
    %136 = arith.mulf %133, %51 : vector<128x16xf32>
    %137 = arith.subf %135, %136 : vector<128x16xf32>
    %138 = arith.mulf %133, %50 : vector<128x16xf32>
    %139 = arith.mulf %132, %51 : vector<128x16xf32>
    %140 = arith.addf %138, %139 : vector<128x16xf32>
    %141 = tpu.concatenate %130, %56, %59, %60 in 1 : vector<128x64xf32>, vector<128x16xf32>, vector<128x16xf32>, vector<128x32xf32> -> vector<128x128xf32>
    %c0_62 = arith.constant 0 : index
    %c0_63 = arith.constant 0 : index
    %c384 = arith.constant 384 : index
    %142 = vector.load %arg16[%c0_62, %c0_63, %c384] : memref<1x128x512xf32, #tpu.memory_space<vmem>>, vector<1x128x128xf32>
    %143 = vector.shape_cast %142 : vector<1x128x128xf32> to vector<128x128xf32>
    %144 = vector.shape_cast %141 : vector<128x128xf32> to vector<1x128x128xf32>
    tpu.vector_store %arg16[%c0_62, %c0_63, %c384], %144 {strides = array<i32>} : memref<1x128x512xf32, #tpu.memory_space<vmem>>, vector<1x128x128xf32>,
    %145 = tpu.concatenate %134, %137, %140, %60 in 1 : vector<128x64xf32>, vector<128x16xf32>, vector<128x16xf32>, vector<128x32xf32> -> vector<128x128xf32>
    %c0_64 = arith.constant 0 : index
    %c0_65 = arith.constant 0 : index
    %c384_66 = arith.constant 384 : index
    %146 = vector.load %arg15[%c0_64, %c0_65, %c384_66] : memref<1x128x512xf32, #tpu.memory_space<vmem>>, vector<1x128x128xf32>
    %147 = vector.shape_cast %146 : vector<1x128x128xf32> to vector<128x128xf32>
    %148 = vector.shape_cast %145 : vector<128x128xf32> to vector<1x128x128xf32>
    tpu.vector_store %arg15[%c0_64, %c0_65, %c384_66], %148 {strides = array<i32>} : memref<1x128x512xf32, #tpu.memory_space<vmem>>, vector<1x128x128xf32>,
    %149 = vector.extract_strided_slice %26 {offsets = [0, 448], sizes = [128, 64], strides = [1, 1]} : vector<128x512xf32> to vector<128x64xf32>
    %c0_67 = arith.constant 0 : index
    %c3 = arith.constant 3 : index
    %c0_68 = arith.constant 0 : index
    %c0_69 = arith.constant 0 : index
    %150 = vector.load %arg17[%c0_67, %c3, %c0_68, %c0_69] : memref<1x4x128x64xf32, #tpu.memory_space<vmem>>, vector<1x1x128x64xf32>
    %151 = vector.shape_cast %150 : vector<1x1x128x64xf32> to vector<128x64xf32>
    %152 = vector.shape_cast %149 : vector<128x64xf32> to vector<1x1x128x64xf32>
    tpu.vector_store %arg17[%c0_67, %c3, %c0_68, %c0_69], %152 {strides = array<i32>} : memref<1x4x128x64xf32, #tpu.memory_space<vmem>>, vector<1x1x128x64xf32>,
    return
  }
  func.func @transform_0(%arg0: i32, %arg1: i32) -> (i32, i32, i32) {
    %c0_i32 = arith.constant 0 : i32
    %c0_i32_0 = arith.constant 0 : i32
    return %arg0, %arg1, %c0_i32 : i32, i32, i32
  }
  func.func @transform_1(%arg0: i32, %arg1: i32) -> (i32, i32) {
    %c0_i32 = arith.constant 0 : i32
    %c0_i32_0 = arith.constant 0 : i32
    return %arg1, %c0_i32 : i32, i32
  }
  func.func @transform_2(%arg0: i32, %arg1: i32) -> (i32, i32) {
    %c0_i32 = arith.constant 0 : i32
    %c0_i32_0 = arith.constant 0 : i32
    return %arg1, %c0_i32 : i32, i32
  }
  func.func @transform_3(%arg0: i32, %arg1: i32) -> (i32, i32) {
    %c0_i32 = arith.constant 0 : i32
    %c0_i32_0 = arith.constant 0 : i32
    %c0_i32_1 = arith.constant 0 : i32
    return %c0_i32, %c0_i32_0 : i32, i32
  }
  func.func @transform_4(%arg0: i32, %arg1: i32) -> (i32, i32) {
    %c0_i32 = arith.constant 0 : i32
    %c0_i32_0 = arith.constant 0 : i32
    %c0_i32_1 = arith.constant 0 : i32
    return %c0_i32, %c0_i32_0 : i32, i32
  }
  func.func @transform_5(%arg0: i32, %arg1: i32) -> (i32, i32) {
    %c0_i32 = arith.constant 0 : i32
    %c0_i32_0 = arith.constant 0 : i32
    %c0_i32_1 = arith.constant 0 : i32
    return %c0_i32, %c0_i32_0 : i32, i32
  }
  func.func @transform_6(%arg0: i32, %arg1: i32) -> (i32, i32) {
    %c0_i32 = arith.constant 0 : i32
    %c0_i32_0 = arith.constant 0 : i32
    %c0_i32_1 = arith.constant 0 : i32
    return %c0_i32, %c0_i32_0 : i32, i32
  }
  func.func @transform_7(%arg0: i32, %arg1: i32) -> (i32, i32) {
    %c0_i32 = arith.constant 0 : i32
    %c0_i32_0 = arith.constant 0 : i32
    %c0_i32_1 = arith.constant 0 : i32
    return %c0_i32, %c0_i32_0 : i32, i32
  }
  func.func @transform_8(%arg0: i32, %arg1: i32) -> (i32, i32) {
    %c0_i32 = arith.constant 0 : i32
    %c0_i32_0 = arith.constant 0 : i32
    %c0_i32_1 = arith.constant 0 : i32
    return %c0_i32, %c0_i32_0 : i32, i32
  }
  func.func @transform_9(%arg0: i32, %arg1: i32) -> (i32, i32) {
    %c0_i32 = arith.constant 0 : i32
    %c0_i32_0 = arith.constant 0 : i32
    %c0_i32_1 = arith.constant 0 : i32
    return %c0_i32, %c0_i32_0 : i32, i32
  }
  func.func @transform_10(%arg0: i32, %arg1: i32) -> (i32, i32) {
    %c0_i32 = arith.constant 0 : i32
    %c0_i32_0 = arith.constant 0 : i32
    %c0_i32_1 = arith.constant 0 : i32
    return %c0_i32, %c0_i32_0 : i32, i32
  }
  func.func @transform_11(%arg0: i32, %arg1: i32) -> (i32, i32) {
    %c0_i32 = arith.constant 0 : i32
    %c0_i32_0 = arith.constant 0 : i32
    %c0_i32_1 = arith.constant 0 : i32
    return %c0_i32, %c0_i32_0 : i32, i32
  }
  func.func @transform_12(%arg0: i32, %arg1: i32) -> (i32, i32) {
    %c0_i32 = arith.constant 0 : i32
    %c0_i32_0 = arith.constant 0 : i32
    %c0_i32_1 = arith.constant 0 : i32
    return %c0_i32, %c0_i32_0 : i32, i32
  }
  func.func @transform_13(%arg0: i32, %arg1: i32) -> (i32, i32, i32) {
    %c0_i32 = arith.constant 0 : i32
    %c0_i32_0 = arith.constant 0 : i32
    return %arg0, %arg1, %c0_i32 : i32, i32, i32
  }
  func.func @transform_14(%arg0: i32, %arg1: i32) -> (i32, i32, i32) {
    %c0_i32 = arith.constant 0 : i32
    %c0_i32_0 = arith.constant 0 : i32
    return %arg0, %arg1, %c0_i32 : i32, i32, i32
  }
  func.func @transform_15(%arg0: i32, %arg1: i32) -> (i32, i32, i32, i32) {
    %c0_i32 = arith.constant 0 : i32
    %c0_i32_0 = arith.constant 0 : i32
    %c0_i32_1 = arith.constant 0 : i32
    return %arg0, %c0_i32, %arg1, %c0_i32_0 : i32, i32, i32, i32
  }
}

</mosaic_0001>

<bundles_post_ra>
// kernel: tpu_custom_call.1
= control target key start
LH: loop header
LB: loop body
LE: loop exit
PB: predicated region body
PF: predicated region fallthrough
CT: control target
= control target key end

     0   :  { %s12429_s0 = inlined_call_operand.vmem [shape: f32[2,128,256], index: 0, kind: input, shape index: {}]   ;;  %s12430_s1 = inlined_call_operand.vmem [shape: f32[128,16], index: 1, kind: input, shape index: {}]   ;;  %s12431_s2 = inlined_call_operand.vmem [shape: f32[128,16], index: 2, kind: input, shape index: {}]   ;;  %s12432_s3 = inlined_call_operand.vmem [shape: f32[256,160], index: 3, kind: input, shape index: {}]   ;;  %s12433_s4 = inlined_call_operand.vmem [shape: f32[1,160], index: 4, kind: input, shape index: {}]   ;;  %s12434_s5 = inlined_call_operand.vmem [shape: f32[1,128], index: 5, kind: input, shape index: {}]   ;;  %s12435_s6 = inlined_call_operand.vmem [shape: f32[128,512], index: 6, kind: input, shape index: {}]   ;;  %s12436_s7 = inlined_call_operand.vmem [shape: f32[1,512], index: 7, kind: input, shape index: {}]   ;;  %s12437_s8 = inlined_call_operand.hbm [shape: f32[256,128], index: 8, kind: input, shape index: {}]   ;;  %s12438_s9 = inlined_call_operand.vmem [shape: f32[1,128], index: 9, kind: input, shape index: {}]   ;;  %s12439_s10 = inlined_call_operand.vmem [shape: f32[1,128], index: 10, kind: input, shape index: {}]   ;;  %s12440_s11 = inlined_call_operand.hbm [shape: f32[128,384], index: 11, kind: input, shape index: {}]   ;;  %s12441_s12 = inlined_call_operand.vmem [shape: f32[1,384], index: 12, kind: input, shape index: {}]   ;;  %s12442_s13 = inlined_call_operand.hbm [shape: f32[2,128,512], index: 13, kind: output, shape index: {0}]   ;;  %s12443_s14 = inlined_call_operand.hbm [shape: f32[2,128,512], index: 14, kind: output, shape index: {1}]   ;;  %s12444_s15 = inlined_call_operand.vmem [shape: f32[2,4,128,64], index: 15, kind: output, shape index: {2}]  }
   0x1   :  { %12649 = sst [smem:[#allocation251_spill]] %s12429_s0 }
   0x2   :  { %12650 = sst [smem:[#allocation252_spill]] %s12430_s1 }
   0x3   :  { %12651 = sst [smem:[#allocation253_spill]] %s12441_s12 }
   0x4   :  { %12652 = sst [smem:[#allocation254_spill]] %s12442_s13 }
   0x5   :  { %12653 = sst [smem:[#allocation255_spill]] %s12443_s14 }
   0x6   :  { %21 = vsyncpa [#allocation3], 0 }
   0x7   :  { %22 = vsyncpa [#allocation6], 0 }
   0x8   :  { %23 = vsyncpa [#allocation4], 0 }
   0x9   :  { %25 = vsyncpa [#allocation4 + $0x1], 0 }
   0xa   :  { %26 = vsyncpa [#allocation9], 0 }
   0xb   :  { %28 = vsyncpa [#allocation9 + $0x1], 0  ;;  %s6739_s18 = smov 0   ;;  %s6741_s19 = smov 0  }
   0xc   :  { %s6743_s20 = smov 0   ;;  %s6745_s21 = smov 0  }
   0xd   :  { %s6747_s22 = smov 0   ;;  %s6749_s23 = smov 0  }
   0xe LB: > { %12654 = sst [smem:[#allocation14_spill]] %s6620_s18  ;;  %s5735_s24 = sadd.s32 4294967295, %s6640_s23   ;;  %s6640_s23 = sphi %s6749_s23, %s34_s23   ;;  %s6636_s22 = sphi %s6747_s22, %s13481_s22   ;;  %s6632_s21 = sphi %s6745_s21, %s13480_s21   ;;  %s6628_s20 = sphi %s6743_s20, %s13479_s20   ;;  %s6624_s19 = sphi %s6741_s19, %s13483_s19   ;;  %s6620_s18 = sphi %s6739_s18, %s13482_s18  }
   0xf   : > { %12655 = sst [smem:[#allocation15_spill]] %s6628_s20  ;;  %s5736_s25 = sadd.s32 4294967294, %s6640_s23  }
  0x10   : > { %12656 = sst [smem:[#allocation16_spill]] %s6636_s22  ;;  %s46_s26 = sadd.s32 1, %s6636_s22 }
  0x11   : > { %12657 = sst [smem:[#allocation17_spill]] %s6640_s23  ;;  %s345_s27 = sadd.s32 1, %s6628_s20 }
  0x12   : > { %p48_p0 = scmp.ge.s32.totalorder %s46_s26, 2  ;;  %p355_p1 = scmp.ne.s32.totalorder %s6628_s20, %s6624_s19 }
  0x13   : > { %p356_p2 = scmp.eq.s32.totalorder %s5735_s24, 1  ;;  %p361_p3 = scmp.ne.s32.totalorder %s6624_s19, %s6620_s18 }
  0x14   : > { %s13485_s26 = smov (%p48_p0, %s46_s26), 0  ;;  %p362_p5 = scmp.eq.s32.totalorder %s5736_s25, 1 }
  0x15   : > { %12658 = sst [smem:[#allocation18_spill]] %s13485_s26  ;;  %p6779_p4 = por %p356_p2, %p355_p1 }
  0x16   : > { %s340_s29 = ssub.s32 %s6636_s22, %s13485_s26  ;;  %p5737_p6 = scmp.ge.s32.totalorder %s6640_s23, 1 }
  0x17   : > { %s12659_s28 = scalar_select %p6779_p4, 1, 0 }
  0x18   : > { %p343_p7 = scmp.eq.s32.totalorder %s340_s29, 0  ;;  %p6786_p8 = por %p362_p5, %p361_p3 }
  0x19   : > { %12660 = sst [smem:[#allocation19_spill]] %s12659_s28  ;;  %p425_p9 = scmp.lt.s32.totalorder %s6640_s23, 3 }
  0x1a   : > { %s12661_s30 = scalar_select %p6786_p8, 1, 0 }
  0x1b   : > { %s6792_s16 = scalar_select %p343_p7, %s6628_s20, %s345_s27  }
  0x1c   : > { %12662 = sst [smem:[#allocation20_spill]] %s12661_s30  ;;  %p6794_p10 = pnand %p5737_p6, %p425_p9 }
  0x1d   : > { %12663 = sst [smem:[#allocation21_spill]] %s6792_s16  ;;  %p6798_p11 = scmp.eq.s32.totalorder %s5735_s24, 0 }
  0x1e   : > { %s12664_s17 = scalar_select %p6794_p10, 1, 0 }
  0x1f   : > { %s12665_s18 = scalar_select %p6798_p11, 1, 0 }
  0x20   : > { %p6219_p12 = pneg %p6794_p10  ;;  %s6642_s25 = smov [#allocation2]  }
  0x21   : > { %s470_s29 = sshll.u32 %s6642_s25, 4  ;;  %s6643_s27 = smov [#allocation5]   ;;  %s471_s29 = int_to_ptr.vmem [resolvable:$true] %s470_s29 }
  0x22   : > { %p6806_p13 = pnand %p6798_p11, %p6219_p12  ;;  %s489_s22 = sshll.u32 %s6643_s27, 4  ;;  %s6810_s22 = int_to_ptr.vmem [resolvable:$true] %s489_s22 }
  0x23   : > { %s6466_s20 = scalar_lea.hbm %s12437_s8, 4096 }
  0x24   : > { %p6467_p0 = scmp.ne.s32.totalorder %s12437_s8, %s6466_s20  ;;  %p6468_p1 = pneg %p6806_p13 }
  0x25   : > { %p6473_p5 = scmp.lt.u32.totalorder %s6466_s20, %s12437_s8 }
  0x26   : > { %p6469_p2 = pnand %p6468_p1, %p6467_p0 }
  0x28   : > { %p6470_p3 = pneg %p6469_p2 }
  0x2a   : > { %p6475_p6 = pnand %p6473_p5, %p6470_p3 }
  0x2c   : > { %6478 = shalt.err (!%p6475_p6)
}
  0x2d   : > { %s6479_s27 = scalar_lea.vmem %s471_s29, 4096  ;;  %p6487_p8 = scmp.lt.s32.totalorder %s471_s29, %s471_s29 }
  0x2e   : > { %p6480_p7 = scmp.ne.s32.totalorder %s471_s29, %s6479_s27  ;;  %p6488_p4 = scmp.lt.s32.totalorder %s6479_s27, %s6479_s27 }
  0x30   : > { %p6482_p9 = pnand %p6480_p7, %p6468_p1  ;;  %p6489_p11 = por %p6488_p4, %p6487_p8 }
  0x32   : > { %p6483_p12 = pneg %p6482_p9 }
  0x34   : > { %p6490_p10 = pnand %p6489_p11, %p6483_p12 }
  0x36   : > { %6493 = shalt.err (!%p6490_p10)
}
  0x37   : > { %s6644_s23 = smov 128   ;;  %s6645_s30 = smov 8  }
  0x38   : > { %6222 = dma.hbm_to_vmem [thread:$0]  (!%p6806_p13), %s12437_s8, 4096, %s471_s29, [#allocation3], %s6644_s23, %s6644_s23, %s6645_s30  }
  0x39   : > { %s6494_s25 = scalar_lea.hbm %s12440_s11, 6144 }
  0x3a   : > { %p6495_p0 = scmp.ne.s32.totalorder %s12440_s11, %s6494_s25  ;;  %p6501_p10 = scmp.lt.u32.totalorder %s6494_s25, %s12440_s11 }
  0x3c   : > { %p6497_p4 = pnand %p6495_p0, %p6468_p1 }
  0x3e   : > { %p6498_p8 = pneg %p6497_p4 }
  0x40   : > { %p6503_p11 = pnand %p6501_p10, %p6498_p8 }
  0x42   : > { %6506 = shalt.err (!%p6503_p11)
}
  0x43   : > { %s6507_s29 = scalar_lea.vmem %s6810_s22, 6144  ;;  %p6515_p6 = scmp.lt.s32.totalorder %s6810_s22, %s6810_s22 }
  0x44   : > { %p6508_p2 = scmp.ne.s32.totalorder %s6810_s22, %s6507_s29  ;;  %p6516_p7 = scmp.lt.s32.totalorder %s6507_s29, %s6507_s29 }
  0x46   : > { %p6510_p3 = pnand %p6508_p2, %p6468_p1  ;;  %p6517_p9 = por %p6516_p7, %p6515_p6 }
  0x48   : > { %p6511_p5 = pneg %p6510_p3 }
  0x4a   : > { %p6518_p12 = pnand %p6517_p9, %p6511_p5 }
  0x4c   : > { %6521 = shalt.err (!%p6518_p12)
}
  0x4d   : > { %s6646_s12 = smov 384   ;;  %s6647_s14 = smov 24  }
  0x4e   : > { %6225 = dma.hbm_to_vmem [thread:$0]  (!%p6806_p13), %s12440_s11, 6144, %s6810_s22, [#allocation6], %s6646_s12, %s6646_s12, %s6647_s14  }
  0x4f   : > { %p12667_p0 = scmp.ne.s32.totalorder %s12664_s17, 0 }
  0x51   : > { %522 = sbr.rel (%p12667_p0) target bundleno = 2368 (0x940), region = 72 }
  0x58   : > { %p12668_p1 = scmp.ne.s32.totalorder %s12665_s18, 0 }
  0x5a   : > { %6603 = dma.done.wait (%p12668_p1), [#allocation3], 4096  }
  0x5b   : > { %6605 = vsyncadd (%p12668_p1), [#allocation3], 4294963200 }
  0x5c   : > { %6607 = dma.done.wait (%p12668_p1), [#allocation6], 6144  }
  0x5d   : > { %6609 = vsyncadd (%p12668_p1), [#allocation6], 4294961152  ;;  %v671_v0 = vld [vmem:[%s12432_s3 + $0x8] sm:$0xff]  ;;  %v673_v1 = vld [vmem:[%s12432_s3 + $0x18] sm:$0xff]  ;;  %s6648_s28 = smov 16   ;;  %p604_p13 = scmp.lt.s32.totalorder %s6632_s21, 1 }
  0x5e   : > { %v670_v2 = vld [vmem:[%s12432_s3] sm:$0xff]  ;;  %v5983_v3 = vpack.c.bf16 %v673_v1, %v671_v0  ;;  %v672_v4 = vld [vmem:[%s12432_s3 + $0x10] sm:$0xff]  ;;  %v675_v5 = vld [vmem:[%s12432_s3 + $0x28] sm:$0xff]  ;;  %s12669_s0 = sld [smem:[#allocation251_spill]]  ;;  %s12670_s1 = sld [smem:[#allocation252_spill]]  ;;  %vm2877_vm0 = vcmask 523264  }
  0x5f   : > { %v677_v6 = vld [vmem:[%s12432_s3 + $0x38] sm:$0xff]  ;;  %v5985_v7 = vpack.c.bf16 %v672_v4, %v670_v2  ;;  %v674_v9 = vld [vmem:[%s12432_s3 + $0x20] sm:$0xff]  ;;  %v676_v10 = vld [vmem:[%s12432_s3 + $0x30] sm:$0xff]  ;;  %s6976_s12 = scalar_select %p604_p13, %s6632_s21, 1  ;;  %vm2894_vm1 = vcmask 654336   ;;  %vm2911_vm2 = vcmask 785408  }
  0x60   : > { %v5987_v8 = vpack.c.bf16 %v677_v6, %v675_v5  ;;  %v679_v11 = vld [vmem:[%s12432_s3 + $0x48] sm:$0xff]  ;;  %5984 = vmatprep.subr.bf16.mxu0 %v5983_v3  ;;  %v681_v12 = vld [vmem:[%s12432_s3 + $0x58] sm:$0xff]  ;;  %v5989_v13 = vpack.c.bf16 %v676_v10, %v674_v9  ;;  %v678_v15 = vld [vmem:[%s12432_s3 + $0x40] sm:$0xff]  ;;  %s12644_s23 = smov 32   ;;  %s6650_s20 = smov 48  }
  0x61   : > { %5986 = vmatpush1.bf16.msra.mxu0 %v5985_v7  ;;  %v5991_v14 = vpack.c.bf16 %v681_v12, %v679_v11  ;;  %v680_v16 = vld [vmem:[%s12432_s3 + $0x50] sm:$0xff]  ;;  %v683_v17 = vld [vmem:[%s12432_s3 + $0x68] sm:$0xff]  ;;  %v685_v18 = vld [vmem:[%s12432_s3 + $0x78] sm:$0xff]  ;;  %s5811_s27 = sshll.u32 %s6976_s12, 8  ;;  %s6652_s16 = smov 80  }
  0x62   : > { %5988 = vmatprep.subr.bf16.mxu0 %v5987_v8  ;;  %v6914_v19 = vld [vmem:[%s12431_s2] sm:$0xff]  ;;  %v5993_v20 = vpack.c.bf16 %v680_v16, %v678_v15  ;;  %v5995_v22 = vpack.c.bf16 %v685_v18, %v683_v17  ;;  %v684_v24 = vld [vmem:[%s12432_s3 + $0x70] sm:$0xff]  ;;  %v687_v25 = vld [vmem:[%s12432_s3 + $0x88] sm:$0xff]  ;;  %s6653_s22 = smov 112   ;;  %s8975_s13 = sand.u32 1, %s6624_s19  }
  0x63   : > { %2205 = vrot.lane.b32.xlu0 %v6914_v19, %s6648_s28  ;;  %v6921_v21 = vld [vmem:[%s12431_s2 + $0x20] sm:$0xff]  ;;  %v689_v26 = vld [vmem:[%s12432_s3 + $0x98] sm:$0xff]  ;;  %v6940_v28 = vld [vmem:[%s12431_s2 + $0x30] sm:$0xff]  ;;  %s5746_s25 = sshll.u32 %s8975_s13, 9  ;;  %s5812_s18 = sshll.u32 %s6976_s12, 9 }
  0x64   : > { %v682_v23 = vld [vmem:[%s12432_s3 + $0x60] sm:$0xff]  ;;  %v5999_v29 = vpack.c.bf16 %v689_v26, %v687_v25  ;;  %v688_v31 = vld [vmem:[%s12432_s3 + $0x90] sm:$0xff]  ;;  %v691_v32 = vld [vmem:[%s12432_s3 + $0xa8] sm:$0xff]  ;;  %s7026_s24 = scalar_lea.vmem %s12669_s0, %s5811_s27  ;;  %s9047_s14 = scalar_lea.vmem %s12444_s15, %s5812_s18 }
  0x65   : > { %5990 = vmatpush1.bf16.msra.mxu0 %v5989_v13  ;;  %v5997_v27 = vpack.c.bf16 %v684_v24, %v682_v23  ;;  %v686_v30 = vld [vmem:[%s12432_s3 + $0x80] sm:$0xff]  ;;  %v693_v33 = vld [vmem:[%s12432_s3 + $0xb8] sm:$0xff]  ;;  %v6965_v36 = vld [vmem:[%s12431_s2 + $0x8] sm:$0xff]  ;;  %s9058_s30 = scalar_lea.vmem [#allocation8], %s5746_s25  ;;  %s12985_s12 = sld [smem:[#allocation253_spill]] }
  0x66   : > { %5992 = vmatprep.subr.bf16.mxu0 %v5991_v14  ;;  %v6001_v34 = vpack.c.bf16 %v688_v31, %v686_v30  ;;  %v6960_v35 = vld [vmem:[%s12431_s2 + $0x40] sm:$0xff]  ;;  %v6003_v37 = vpack.c.bf16 %v693_v33, %v691_v32  ;;  %v692_v39 = vld [vmem:[%s12432_s3 + $0xb0] sm:$0xff]  ;;  %2207 = vrot.lane.b32.xlu1 %v6965_v36, %s6648_s28  ;;  %v695_v40 = vld [vmem:[%s12432_s3 + $0xc8] sm:$0xff]  ;;  %s6655_s29 = smov 96  }
  0x67   : > { %2213 = vrot.lane.b32.xlu0 %v6921_v21, %s6648_s28  ;;  %v690_v38 = vld [vmem:[%s12432_s3 + $0xa0] sm:$0xff]  ;;  %v697_v41 = vld [vmem:[%s12432_s3 + $0xd8] sm:$0xff]  ;;  %v6987_v42 = vld [vmem:[%s12431_s2 + $0x10] sm:$0xff] }
  0x68   : > { %v6005_v43 = vpack.c.bf16 %v692_v39, %v690_v38  ;;  %v6994_v44 = vld [vmem:[%s12431_s2 + $0x50] sm:$0xff]  ;;  %v6007_v45 = vpack.c.bf16 %v697_v41, %v695_v40  ;;  %v694_v46 = vld [vmem:[%s12432_s3 + $0xc0] sm:$0xff]  ;;  %v699_v48 = vld [vmem:[%s12432_s3 + $0xe8] sm:$0xff] }
  0x69   : > { %5994 = vmatpush1.bf16.msra.mxu0 %v5993_v20  ;;  %v696_v47 = vld [vmem:[%s12432_s3 + $0xd0] sm:$0xff]  ;;  %v701_v49 = vld [vmem:[%s12432_s3 + $0xf8] sm:$0xff]  ;;  %v7021_v52 = vld [vmem:[%s12431_s2 + $0x60] sm:$0xff] }
  0x6a   : > { %5996 = vmatprep.subr.bf16.mxu0 %v5995_v22  ;;  %2209 = vrot.lane.b32.xlu1 %v6987_v42, %s6648_s28  ;;  %v7014_v50 = vld [vmem:[%s12431_s2 + $0x18] sm:$0xff]  ;;  %v6009_v51 = vpack.c.bf16 %v696_v47, %v694_v46  ;;  %v6011_v53 = vpack.c.bf16 %v701_v49, %v699_v48  ;;  %v698_v54 = vld [vmem:[%s12432_s3 + $0xe0] sm:$0xff]  ;;  %v700_v55 = vld [vmem:[%s12432_s3 + $0xf0] sm:$0xff] }
  0x6b   : > { %2217 = vrot.lane.b32.xlu0 %v6940_v28, %s6648_s28  ;;  %v703_v56 = vld [vmem:[%s12432_s3 + $0x108] sm:$0xff]  ;;  %v705_v57 = vld [vmem:[%s12432_s3 + $0x118] sm:$0xff]  ;;  %v6013_v60 = vpack.c.bf16 %v700_v55, %v698_v54  ;;  %v7055_v61 = vld [vmem:[%s12431_s2 + $0x70] sm:$0xff] }
  0x6c   : > { %v7045_v58 = vld [vmem:[%s12431_s2 + $0x28] sm:$0xff]  ;;  %v6015_v62 = vpack.c.bf16 %v705_v57, %v703_v56  ;;  %v702_v63 = vld [vmem:[%s12432_s3 + $0x100] sm:$0xff]  ;;  %v704_v0 = vld [vmem:[%s12432_s3 + $0x110] sm:$0xff] }
  0x6d   : > { %5998 = vmatpush1.bf16.msra.mxu0 %v5997_v27  ;;  %v7050_v59 = vld [vmem:[%s7026_s24 + $0x8] sm:$0xff]  ;;  %v709_v2 = vld [vmem:[%s12432_s3 + $0x138] sm:$0xff]  ;;  %v6017_v4 = vpack.c.bf16 %v704_v0, %v702_v63  ;;  %v7082_v5 = vld [vmem:[%s12670_s1] sm:$0xff] }
  0x6e   : > { %6000 = vmatprep.subr.bf16.mxu0 %v5999_v29  ;;  %2211 = vrot.lane.b32.xlu1 %v7014_v50, %s6648_s28  ;;  %v707_v1 = vld [vmem:[%s12432_s3 + $0x128] sm:$0xff]  ;;  %v7075_v3 = vld [vmem:[%s12431_s2 + $0x38] sm:$0xff]  ;;  %v706_v7 = vld [vmem:[%s12432_s3 + $0x120] sm:$0xff] }
  0x6f   : > { %2221 = vrot.lane.b32.xlu0 %v6960_v35, %s6648_s28  ;;  %810 = vmatprep.mubr.f32.mxu0 %v7050_v59  ;;  %v6019_v6 = vpack.c.bf16 %v709_v2, %v707_v1  ;;  %v708_v8 = vld [vmem:[%s12432_s3 + $0x130] sm:$0xff]  ;;  %v711_v9 = vld [vmem:[%s12432_s3 + $0x148] sm:$0xff]  ;;  %v713_v10 = vld [vmem:[%s12432_s3 + $0x158] sm:$0xff] }
  0x70   : > { %v7101_v11 = vld [vmem:[%s12431_s2 + $0x48] sm:$0xff]  ;;  %v6021_v12 = vpack.c.bf16 %v708_v8, %v706_v7  ;;  %v7108_v13 = vld [vmem:[%s12670_s1 + $0x10] sm:$0xff]  ;;  %v6023_v14 = vpack.c.bf16 %v713_v10, %v711_v9  ;;  %v710_v15 = vld [vmem:[%s12432_s3 + $0x140] sm:$0xff] }
  0x71   : > { %6002 = vmatpush1.bf16.msra.mxu0 %v6001_v34  ;;  %v712_v16 = vld [vmem:[%s12432_s3 + $0x150] sm:$0xff]  ;;  %v715_v17 = vld [vmem:[%s12432_s3 + $0x168] sm:$0xff]  ;;  %v717_v18 = vld [vmem:[%s12432_s3 + $0x178] sm:$0xff] }
  0x72   : > { %6004 = vmatprep.subr.bf16.mxu0 %v6003_v37  ;;  %2215 = vrot.lane.b32.xlu1 %v7045_v58, %s6648_s28  ;;  %v7127_v20 = vld [vmem:[%s12431_s2 + $0x58] sm:$0xff]  ;;  %v6025_v22 = vpack.c.bf16 %v712_v16, %v710_v15  ;;  %v7134_v23 = vld [vmem:[%s12670_s1 + $0x20] sm:$0xff]  ;;  %v6027_v24 = vpack.c.bf16 %v717_v18, %v715_v17  ;;  %v716_v26 = vld [vmem:[%s12432_s3 + $0x170] sm:$0xff] }
  0x73   : > { %2225 = vrot.lane.b32.xlu0 %v6994_v44, %s6648_s28  ;;  %v714_v25 = vld [vmem:[%s12432_s3 + $0x160] sm:$0xff]  ;;  %v719_v27 = vld [vmem:[%s12432_s3 + $0x188] sm:$0xff]  ;;  %v721_v29 = vld [vmem:[%s12432_s3 + $0x198] sm:$0xff] }
  0x74   : > { %v7153_v30 = vld [vmem:[%s12431_s2 + $0x68] sm:$0xff]  ;;  %v6029_v31 = vpack.c.bf16 %v716_v26, %v714_v25  ;;  %v7160_v32 = vld [vmem:[%s12670_s1 + $0x30] sm:$0xff]  ;;  %v6031_v33 = vpack.c.bf16 %v721_v29, %v719_v27  ;;  %v718_v34 = vld [vmem:[%s12432_s3 + $0x180] sm:$0xff] }
  0x75   : > { %6006 = vmatpush1.bf16.msra.mxu0 %v6005_v43  ;;  %v720_v37 = vld [vmem:[%s12432_s3 + $0x190] sm:$0xff]  ;;  %v723_v38 = vld [vmem:[%s12432_s3 + $0x1a8] sm:$0xff]  ;;  %v725_v39 = vld [vmem:[%s12432_s3 + $0x1b8] sm:$0xff] }
  0x76   : > { %6008 = vmatprep.subr.bf16.mxu0 %v6007_v45  ;;  %2219 = vrot.lane.b32.xlu1 %v7075_v3, %s6648_s28  ;;  %v7179_v40 = vld [vmem:[%s12431_s2 + $0x78] sm:$0xff]  ;;  %v6033_v41 = vpack.c.bf16 %v720_v37, %v718_v34  ;;  %v7186_v43 = vld [vmem:[%s12670_s1 + $0x40] sm:$0xff]  ;;  %v6035_v45 = vpack.c.bf16 %v725_v39, %v723_v38  ;;  %v724_v47 = vld [vmem:[%s12432_s3 + $0x1b0] sm:$0xff] }
  0x77   : > { %2229 = vrot.lane.b32.xlu0 %v7021_v52, %s6648_s28  ;;  %v722_v46 = vld [vmem:[%s12432_s3 + $0x1a0] sm:$0xff]  ;;  %v727_v48 = vld [vmem:[%s12432_s3 + $0x1c8] sm:$0xff]  ;;  %v729_v49 = vld [vmem:[%s12432_s3 + $0x1d8] sm:$0xff] }
  0x78   : > { %v7212_v54 = vld [vmem:[%s12670_s1 + $0x50] sm:$0xff]  ;;  %v6039_v55 = vpack.c.bf16 %v729_v49, %v727_v48  ;;  %v726_v56 = vld [vmem:[%s12432_s3 + $0x1c0] sm:$0xff]  ;;  %v7231_v63 = vld [vmem:[%s12670_s1 + $0x18] sm:$0xff] }
  0x79   : > { %6010 = vmatpush1.bf16.msra.mxu0 %v6009_v51  ;;  %v7205_v51 = vld [vmem:[%s12670_s1 + $0x8] sm:$0xff]  ;;  %v728_v57 = vld [vmem:[%s12432_s3 + $0x1d0] sm:$0xff]  ;;  %v7238_v1 = vld [vmem:[%s12670_s1 + $0x60] sm:$0xff] }
  0x7a   : > { %6012 = vmatprep.subr.bf16.mxu0 %v6011_v53  ;;  %2223 = vrot.lane.b32.xlu1 %v7101_v11, %s6648_s28  ;;  %v6037_v53 = vpack.c.bf16 %v724_v47, %v722_v46  ;;  %v6041_v0 = vpack.c.bf16 %v728_v57, %v726_v56  ;;  %v7251_v7 = vld [vmem:[%s12670_s1 + $0x28] sm:$0xff]  ;;  %v7258_v9 = vld [vmem:[%s12670_s1 + $0x70] sm:$0xff]  ;;  %v7265_v10 = vld [vmem:[%s12670_s1 + $0x38] sm:$0xff] }
  0x7b   : > { %2233 = vrot.lane.b32.xlu0 %v7055_v61, %s6648_s28  ;;  %v7280_v15 = vld [vmem:[%s12670_s1 + $0x48] sm:$0xff]  ;;  %v7287_v16 = vld [vmem:[%s7026_s24 + $0x10] sm:$0xff]  ;;  %v7297_v18 = vld [vmem:[%s12670_s1 + $0x58] sm:$0xff] }
  0x7c   : > { %v7290_v17 = vld [vmem:[%s7026_s24 + $0x28] sm:$0xff]  ;;  %v7321_v26 = vld [vmem:[%s7026_s24 + $0x30] sm:$0xff]  ;;  %v7331_v29 = vld [vmem:[%s12670_s1 + $0x78] sm:$0xff] }
  0x7d   : > { %6014 = vmatpush1.bf16.msra.mxu0 %v6013_v60  ;;  %v731_v60 = vld [vmem:[%s12432_s3 + $0x1e8] sm:$0xff]  ;;  %v7350_v34 = vld [vmem:[%s7026_s24 + $0x50] sm:$0xff]  ;;  %v7362_v38 = vld [vmem:[%s7026_s24 + $0x60] sm:$0xff] }
  0x7e   : > { %6016 = vmatprep.subr.bf16.mxu0 %v6015_v62  ;;  %2227 = vrot.lane.b32.xlu1 %v7127_v20, %s6648_s28  ;;  %v733_v62 = vld [vmem:[%s12432_s3 + $0x1f8] sm:$0xff]  ;;  %v7314_v25 = vld [vmem:[%s12670_s1 + $0x68] sm:$0xff]  ;;  %v7386_v46 = vld [vmem:[%s7026_s24 + $0x80] sm:$0xff] }
  0x7f   : > { %2365 = vrot.lane.b32.xlu0 %v7082_v5, %s6648_s28  ;;  %v6043_v2 = vpack.c.bf16 %v733_v62, %v731_v60  ;;  %v7324_v27 = vld [vmem:[%s7026_s24 + $0x48] sm:$0xff]  ;;  %v7365_v39 = vld [vmem:[%s7026_s24 + $0x78] sm:$0xff]  ;;  %v7398_v48 = vld [vmem:[%s7026_s24 + $0x90] sm:$0xff] }
  0x80   : > { %v7353_v37 = vld [vmem:[%s7026_s24 + $0x68] sm:$0xff]  ;;  %v7389_v47 = vld [vmem:[%s7026_s24 + $0x98] sm:$0xff]  ;;  %v7422_v56 = vld [vmem:[%s7026_s24 + $0xb0] sm:$0xff] }
  0x81   : > { %6018 = vmatpush1.bf16.msra.mxu0 %v6017_v4  ;;  %v730_v4 = vld [vmem:[%s12432_s3 + $0x1e0] sm:$0xff]  ;;  %v7401_v49 = vld [vmem:[%s7026_s24 + $0xa8] sm:$0xff]  ;;  %12672 = vst [vmem:[#allocation23_spill] sm:$0xff] %v7422_v56  ;;  %v7437_v62 = vld [vmem:[%s7026_s24 + $0xd8] sm:$0xff] }
  0x82   : > { %6020 = vmatprep.subr.bf16.mxu0 %v6019_v6  ;;  %2231 = vrot.lane.b32.xlu1 %v7153_v30, %s6648_s28  ;;  %v732_v6 = vld [vmem:[%s12432_s3 + $0x1f0] sm:$0xff]  ;;  %v7425_v57 = vld [vmem:[%s7026_s24 + $0xc8] sm:$0xff]  ;;  %v7434_v60 = vld [vmem:[%s7026_s24 + $0xc0] sm:$0xff]  ;;  %12675 = vst [vmem:[#allocation26_spill] sm:$0xff] %v7437_v62 }
  0x83   : > { %2369 = vrot.lane.b32.xlu0 %v7108_v13, %s6648_s28  ;;  %v6045_v8 = vpack.c.bf16 %v732_v6, %v730_v4  ;;  %12673 = vst [vmem:[#allocation24_spill] sm:$0xff] %v7425_v57  ;;  %12674 = vst [vmem:[#allocation25_spill] sm:$0xff] %v7434_v60  ;;  %v7458_v4 = vld [vmem:[%s7026_s24 + $0xe0] sm:$0xff]  ;;  %v7461_v6 = vld [vmem:[%s7026_s24 + $0xf8] sm:$0xff] }
  0x84   : > { %12678 = vst [vmem:[#allocation29_spill] sm:$0xff] %v7458_v4  ;;  %12679 = vst [vmem:[#allocation30_spill] sm:$0xff] %v7461_v6 }
  0x85   : > { %6022 = vmatpush1.bf16.msra.mxu0 %v6021_v12  ;;  %v7270_v12 = vld [vmem:[%s7026_s24] sm:$0xff] }
  0x86   : > { %6024 = vmatprep.subr.bf16.mxu0 %v6023_v14  ;;  %2235 = vrot.lane.b32.xlu1 %v7179_v40, %s6648_s28  ;;  %v7273_v14 = vld [vmem:[%s7026_s24 + $0x18] sm:$0xff] }
  0x87   : > { %2373 = vrot.lane.b32.xlu0 %v7134_v23, %s6648_s28 }
  0x89   : > { %6026 = vmatpush1.bf16.msra.mxu0 %v6025_v22  ;;  %v7304_v22 = vld [vmem:[%s7026_s24 + $0x20] sm:$0xff] }
  0x8a   : > { %6028 = vmatprep.subr.bf16.mxu0 %v6027_v24  ;;  %2367 = vrot.lane.b32.xlu1 %v7205_v51, %s6648_s28  ;;  %v7307_v24 = vld [vmem:[%s7026_s24 + $0x38] sm:$0xff] }
  0x8b   : > { %2377 = vrot.lane.b32.xlu0 %v7160_v32, %s6648_s28 }
  0x8d   : > { %6030 = vmatpush1.bf16.msra.mxu0 %v6029_v31  ;;  %v7338_v31 = vld [vmem:[%s7026_s24 + $0x40] sm:$0xff] }
  0x8e   : > { %6032 = vmatprep.subr.bf16.mxu0 %v6031_v33  ;;  %2371 = vrot.lane.b32.xlu1 %v7231_v63, %s6648_s28  ;;  %v7341_v33 = vld [vmem:[%s7026_s24 + $0x58] sm:$0xff] }
  0x8f   : > { %2381 = vrot.lane.b32.xlu0 %v7186_v43, %s6648_s28 }
  0x91   : > { %6034 = vmatpush1.bf16.msra.mxu0 %v6033_v41  ;;  %v7374_v41 = vld [vmem:[%s7026_s24 + $0x70] sm:$0xff] }
  0x92   : > { %6036 = vmatprep.subr.bf16.mxu0 %v6035_v45  ;;  %2375 = vrot.lane.b32.xlu1 %v7251_v7, %s6648_s28  ;;  %v7377_v45 = vld [vmem:[%s7026_s24 + $0x88] sm:$0xff] }
  0x93   : > { %2385 = vrot.lane.b32.xlu0 %v7212_v54, %s6648_s28 }
  0x95   : > { %6038 = vmatpush1.bf16.msra.mxu0 %v6037_v53  ;;  %v7410_v53 = vld [vmem:[%s7026_s24 + $0xa0] sm:$0xff] }
  0x96   : > { %6040 = vmatprep.subr.bf16.mxu0 %v6039_v55  ;;  %2379 = vrot.lane.b32.xlu1 %v7265_v10, %s6648_s28  ;;  %v7413_v55 = vld [vmem:[%s7026_s24 + $0xb8] sm:$0xff] }
  0x97   : > { %2389 = vrot.lane.b32.xlu0 %v7238_v1, %s6648_s28  ;;  %12671 = vst [vmem:[#allocation22_spill] sm:$0xff] %v7413_v55 }
  0x99   : > { %6042 = vmatpush1.bf16.msra.mxu0 %v6041_v0  ;;  %v7446_v0 = vld [vmem:[%s7026_s24 + $0xd0] sm:$0xff] }
  0x9a   : > { %6044 = vmatprep.subr.bf16.mxu0 %v6043_v2  ;;  %2383 = vrot.lane.b32.xlu1 %v7280_v15, %s6648_s28  ;;  %12676 = vst [vmem:[#allocation27_spill] sm:$0xff] %v7446_v0  ;;  %v7449_v2 = vld [vmem:[%s7026_s24 + $0xe8] sm:$0xff] }
  0x9b   : > { %2393 = vrot.lane.b32.xlu0 %v7258_v9, %s6648_s28  ;;  %12677 = vst [vmem:[#allocation28_spill] sm:$0xff] %v7449_v2 }
  0x9d   : > { %6046 = vmatpush1.bf16.msra.mxu0 %v6045_v8 }
  0x9e   : > { %2387 = vrot.lane.b32.xlu1 %v7297_v18, %s6648_s28 }
  0x9f   : > { %3152 = vrot.lane.b32.xlu0 %v7082_v5, %s12644_s23 }
  0xa0   : > { %811 = vmatmul.mubr.f32.vlgmr.msra.gmra.mrb[0].mxu0 %v7270_v12 }
  0xa1   : > { %816 = vmatprep.mubr.f32.mxu0 %v7273_v14 }
  0xa2   : > { %2391 = vrot.lane.b32.xlu1 %v7314_v25, %s6648_s28 }
  0xa3   : > { %3156 = vrot.lane.b32.xlu0 %v7108_v13, %s12644_s23 }
  0xa4   : > { %817 = vmatmul.mubr.f32.gmra.mrb[2].mxu0 %v7287_v16 }
  0xa5   : > { %822 = vmatprep.mubr.f32.mxu0 %v7290_v17 }
  0xa6   : > { %2395 = vrot.lane.b32.xlu1 %v7331_v29, %s6648_s28 }
  0xa7   : > { %3160 = vrot.lane.b32.xlu0 %v7134_v23, %s12644_s23 }
  0xa8   : > { %823 = vmatmul.mubr.f32.gmra.mrb[4].mxu0 %v7304_v22 }
  0xa9   : > { %828 = vmatprep.mubr.f32.mxu0 %v7307_v24 }
  0xaa   : > { %3154 = vrot.lane.b32.xlu1 %v7205_v51, %s12644_s23 }
  0xab   : > { %3164 = vrot.lane.b32.xlu0 %v7160_v32, %s12644_s23 }
  0xac   : > { %829 = vmatmul.mubr.f32.gmra.mrb[6].mxu0 %v7321_v26 }
  0xad   : > { %834 = vmatprep.mubr.f32.mxu0 %v7324_v27 }
  0xae   : > { %3158 = vrot.lane.b32.xlu1 %v7231_v63, %s12644_s23 }
  0xaf   : > { %3168 = vrot.lane.b32.xlu0 %v7186_v43, %s12644_s23 }
  0xb0   : > { %835 = vmatmul.mubr.f32.gmra.mrb[8].mxu0 %v7338_v31 }
  0xb1   : > { %840 = vmatprep.mubr.f32.mxu0 %v7341_v33 }
  0xb2   : > { %3162 = vrot.lane.b32.xlu1 %v7251_v7, %s12644_s23 }
  0xb3   : > { %3172 = vrot.lane.b32.xlu0 %v7212_v54, %s12644_s23 }
  0xb4   : > { %841 = vmatmul.mubr.f32.gmra.mrb[10].mxu0 %v7350_v34 }
  0xb5   : > { %846 = vmatprep.mubr.f32.mxu0 %v7353_v37 }
  0xb6   : > { %3166 = vrot.lane.b32.xlu1 %v7265_v10, %s12644_s23 }
  0xb7   : > { %3176 = vrot.lane.b32.xlu0 %v7238_v1, %s12644_s23 }
  0xb8   : > { %847 = vmatmul.mubr.f32.gmra.mrb[12].mxu0 %v7362_v38 }
  0xb9   : > { %852 = vmatprep.mubr.f32.mxu0 %v7365_v39 }
  0xba   : > { %3170 = vrot.lane.b32.xlu1 %v7280_v15, %s12644_s23 }
  0xbb   : > { %3180 = vrot.lane.b32.xlu0 %v7258_v9, %s12644_s23 }
  0xbc   : > { %853 = vmatmul.mubr.f32.gmra.mrb[14].mxu0 %v7374_v41 }
  0xbd   : > { %858 = vmatprep.mubr.f32.mxu0 %v7377_v45 }
  0xbe   : > { %3174 = vrot.lane.b32.xlu1 %v7297_v18, %s12644_s23 }
  0xbf   : > { %3216 = vrot.lane.b32.xlu0 %v6914_v19, %s6650_s20 }
  0xc0   : > { %859 = vmatmul.mubr.f32.gmra.mrb[16].mxu0 %v7386_v46 }
  0xc1   : > { %864 = vmatprep.mubr.f32.mxu0 %v7389_v47 }
  0xc2   : > { %3178 = vrot.lane.b32.xlu1 %v7314_v25, %s12644_s23 }
  0xc3   : > { %3220 = vrot.lane.b32.xlu0 %v6987_v42, %s6650_s20 }
  0xc4   : > { %865 = vmatmul.mubr.f32.gmra.mrb[18].mxu0 %v7398_v48 }
  0xc5   : > { %870 = vmatprep.mubr.f32.mxu0 %v7401_v49 }
  0xc6   : > { %3182 = vrot.lane.b32.xlu1 %v7331_v29, %s12644_s23 }
  0xc7   : > { %3224 = vrot.lane.b32.xlu0 %v6921_v21, %s6650_s20 }
  0xc8   : > { %871 = vmatmul.mubr.f32.gmra.mrb[20].mxu0 %v7410_v53 }
  0xc9   : > { %876 = vmatprep.mubr.f32.mxu0 %v7413_v55 }
  0xca   : > { %3218 = vrot.lane.b32.xlu1 %v6965_v36, %s6650_s20 }
  0xcb   : > { %3228 = vrot.lane.b32.xlu0 %v6940_v28, %s6650_s20 }
  0xcc   : > { %877 = vmatmul.mubr.f32.gmra.mrb[22].mxu0 %v7422_v56 }
  0xcd   : > { %882 = vmatprep.mubr.f32.mxu0 %v7425_v57 }
  0xce   : > { %3222 = vrot.lane.b32.xlu1 %v7014_v50, %s6650_s20 }
  0xcf   : > { %3232 = vrot.lane.b32.xlu0 %v6960_v35, %s6650_s20 }
  0xd0   : > { %883 = vmatmul.mubr.f32.gmra.mrb[24].mxu0 %v7434_v60 }
  0xd1   : > { %888 = vmatprep.mubr.f32.mxu0 %v7437_v62 }
  0xd2   : > { %3226 = vrot.lane.b32.xlu1 %v7045_v58, %s6650_s20 }
  0xd3   : > { %3236 = vrot.lane.b32.xlu0 %v6994_v44, %s6650_s20 }
  0xd4   : > { %889 = vmatmul.mubr.f32.gmra.mrb[26].mxu0 %v7446_v0  ;;  %v7472_v0 = vld [vmem:[%s7026_s24 + $0xf0] sm:$0xff]  ;;  %s12646_s24 = smov 64  }
  0xd5   : > { %894 = vmatprep.mubr.f32.mxu0 %v7449_v2  ;;  %v7463_v8 = vpop.permute.xlu0 %2205  ;;  %12681 = vst [vmem:[#allocation32_spill] sm:$0xff] %v7472_v0 }
  0xd6   : > { %12680 = vst [vmem:[#allocation31_spill] sm:$0xff] %v7463_v8  ;;  %3230 = vrot.lane.b32.xlu1 %v7075_v3, %s6650_s20 }
  0xd7   : > { %3240 = vrot.lane.b32.xlu0 %v7021_v52, %s6650_s20 }
  0xd8   : > { %895 = vmatmul.mubr.f32.gmra.mrb[28].mxu0 %v7458_v4 }
  0xd9   : > { %900 = vmatprep.mubr.f32.mxu0 %v7461_v6  ;;  %v7474_v62 = vpop.permute.xlu0 %2213  ;;  %v7488_v6 = vpop.permute.xlu1 %2207 }
  0xda   : > { %12682 = vst [vmem:[#allocation33_spill] sm:$0xff] %v7474_v62  ;;  %12684 = vst [vmem:[#allocation35_spill] sm:$0xff] %v7488_v6  ;;  %3234 = vrot.lane.b32.xlu1 %v7101_v11, %s6650_s20 }
  0xdb   : > { %3244 = vrot.lane.b32.xlu0 %v7055_v61, %s6650_s20 }
  0xdc   : > { %901 = vmatmul.mubr.f32.gmra.mrb[30].mxu0 %v7472_v0 }
  0xdd   : > { %1554 = vmatprep.mubr.f32.mxu0 %v7050_v59  ;;  %v7482_v4 = vpop.permute.xlu0 %2217  ;;  %v7496_v0 = vpop.permute.xlu1 %2209 }
  0xde   : > { %12683 = vst [vmem:[#allocation34_spill] sm:$0xff] %v7482_v4  ;;  %12686 = vst [vmem:[#allocation37_spill] sm:$0xff] %v7496_v0  ;;  %3238 = vrot.lane.b32.xlu1 %v7127_v20, %s6650_s20 }
  0xdf   : > { %3360 = vrot.lane.b32.xlu0 %v7082_v5, %s6650_s20 }
  0xe1   : > { %v7490_v2 = vpop.permute.xlu0 %2221  ;;  %v7504_v4 = vpop.permute.xlu1 %2211 }
  0xe2   : > { %12685 = vst [vmem:[#allocation36_spill] sm:$0xff] %v7490_v2  ;;  %12688 = vst [vmem:[#allocation39_spill] sm:$0xff] %v7504_v4  ;;  %3242 = vrot.lane.b32.xlu1 %v7153_v30, %s6650_s20 }
  0xe3   : > { %3364 = vrot.lane.b32.xlu0 %v7108_v13, %s6650_s20 }
  0xe5   : > { %v7498_v59 = vpop.permute.xlu0 %2225  ;;  %v7512_v2 = vpop.permute.xlu1 %2215 }
  0xe6   : > { %12687 = vst [vmem:[#allocation38_spill] sm:$0xff] %v7498_v59  ;;  %12690 = vst [vmem:[#allocation41_spill] sm:$0xff] %v7512_v2  ;;  %3246 = vrot.lane.b32.xlu1 %v7179_v40, %s6650_s20 }
  0xe7   : > { %3368 = vrot.lane.b32.xlu0 %v7134_v23, %s6650_s20 }
  0xe9   : > { %v7506_v60 = vpop.permute.xlu0 %2229  ;;  %v7520_v59 = vpop.permute.xlu1 %2219 }
  0xea   : > { %12689 = vst [vmem:[#allocation40_spill] sm:$0xff] %v7506_v60  ;;  %12692 = vst [vmem:[#allocation43_spill] sm:$0xff] %v7520_v59  ;;  %3362 = vrot.lane.b32.xlu1 %v7205_v51, %s6650_s20 }
  0xeb   : > { %3372 = vrot.lane.b32.xlu0 %v7160_v32, %s6650_s20 }
  0xed   : > { %v7514_v57 = vpop.permute.xlu0 %2233  ;;  %v7528_v60 = vpop.permute.xlu1 %2223 }
  0xee   : > { %12691 = vst [vmem:[#allocation42_spill] sm:$0xff] %v7514_v57  ;;  %12694 = vst [vmem:[#allocation45_spill] sm:$0xff] %v7528_v60  ;;  %3366 = vrot.lane.b32.xlu1 %v7231_v63, %s6650_s20 }
  0xef   : > { %3376 = vrot.lane.b32.xlu0 %v7186_v43, %s6650_s20 }
  0xf1   : > { %v7522_v56 = vpop.permute.xlu0 %2365  ;;  %v7536_v57 = vpop.permute.xlu1 %2227 }
  0xf2   : > { %12693 = vst [vmem:[#allocation44_spill] sm:$0xff] %v7522_v56  ;;  %12696 = vst [vmem:[#allocation47_spill] sm:$0xff] %v7536_v57  ;;  %3370 = vrot.lane.b32.xlu1 %v7251_v7, %s6650_s20 }
  0xf3   : > { %3380 = vrot.lane.b32.xlu0 %v7212_v54, %s6650_s20 }
  0xf5   : > { %v7530_v55 = vpop.permute.xlu0 %2369  ;;  %v7544_v56 = vpop.permute.xlu1 %2231 }
  0xf6   : > { %12695 = vst [vmem:[#allocation46_spill] sm:$0xff] %v7530_v55  ;;  %12698 = vst [vmem:[#allocation49_spill] sm:$0xff] %v7544_v56  ;;  %3374 = vrot.lane.b32.xlu1 %v7265_v10, %s6650_s20 }
  0xf7   : > { %3384 = vrot.lane.b32.xlu0 %v7238_v1, %s6650_s20 }
  0xf9   : > { %v7538_v59 = vpop.permute.xlu0 %2373  ;;  %v7552_v55 = vpop.permute.xlu1 %2235 }
  0xfa   : > { %12697 = vst [vmem:[#allocation48_spill] sm:$0xff] %v7538_v59  ;;  %12700 = vst [vmem:[#allocation51_spill] sm:$0xff] %v7552_v55  ;;  %3378 = vrot.lane.b32.xlu1 %v7280_v15, %s6650_s20 }
  0xfb   : > { %3388 = vrot.lane.b32.xlu0 %v7258_v9, %s6650_s20 }
  0xfd   : > { %v7546_v60 = vpop.permute.xlu0 %2377  ;;  %v7560_v59 = vpop.permute.xlu1 %2367 }
  0xfe   : > { %12699 = vst [vmem:[#allocation50_spill] sm:$0xff] %v7546_v60  ;;  %12702 = vst [vmem:[#allocation53_spill] sm:$0xff] %v7560_v59  ;;  %3382 = vrot.lane.b32.xlu1 %v7297_v18, %s6650_s20 }
  0xff   : > { %3424 = vrot.lane.b32.xlu0 %v6914_v19, %s12644_s23 }
 0x101   : > { %v7554_v57 = vpop.permute.xlu0 %2381  ;;  %v7568_v60 = vpop.permute.xlu1 %2371 }
 0x102   : > { %12701 = vst [vmem:[#allocation52_spill] sm:$0xff] %v7554_v57  ;;  %12704 = vst [vmem:[#allocation55_spill] sm:$0xff] %v7568_v60  ;;  %3386 = vrot.lane.b32.xlu1 %v7314_v25, %s6650_s20 }
 0x103   : > { %3428 = vrot.lane.b32.xlu0 %v6987_v42, %s12644_s23 }
 0x105   : > { %v7562_v56 = vpop.permute.xlu0 %2385  ;;  %v7576_v57 = vpop.permute.xlu1 %2375 }
 0x106   : > { %12703 = vst [vmem:[#allocation54_spill] sm:$0xff] %v7562_v56  ;;  %12706 = vst [vmem:[#allocation57_spill] sm:$0xff] %v7576_v57  ;;  %3390 = vrot.lane.b32.xlu1 %v7331_v29, %s6650_s20  ;;  %s10425_s20 = scalar_lea.vmem [#allocation7], %s5746_s25 }
 0x107   : > { %3432 = vrot.lane.b32.xlu0 %v6921_v21, %s12644_s23 }
 0x109   : > { %v7570_v55 = vpop.permute.xlu0 %2389  ;;  %v7584_v56 = vpop.permute.xlu1 %2379 }
 0x10a   : > { %12705 = vst [vmem:[#allocation56_spill] sm:$0xff] %v7570_v55  ;;  %12708 = vst [vmem:[#allocation59_spill] sm:$0xff] %v7584_v56  ;;  %3426 = vrot.lane.b32.xlu1 %v6965_v36, %s12644_s23  ;;  %v1452_v56 = vld [vmem:[#allocation2 + $0x8] sm:$0xff] }
 0x10b   : > { %3436 = vrot.lane.b32.xlu0 %v6940_v28, %s12644_s23 }
 0x10d   : > { %v7578_v59 = vpop.permute.xlu0 %2393  ;;  %v7592_v55 = vpop.permute.xlu1 %2383 }
 0x10e   : > { %12707 = vst [vmem:[#allocation58_spill] sm:$0xff] %v7578_v59  ;;  %12710 = vst [vmem:[#allocation61_spill] sm:$0xff] %v7592_v55  ;;  %3430 = vrot.lane.b32.xlu1 %v7014_v50, %s12644_s23 }
 0x10f   : > { %3440 = vrot.lane.b32.xlu0 %v6960_v35, %s12644_s23 }
 0x111   : > { %v7586_v60 = vpop.permute.xlu0 %3152  ;;  %v7600_v35 = vpop.permute.xlu1 %2387 }
 0x112   : > { %12709 = vst [vmem:[#allocation60_spill] sm:$0xff] %v7586_v60  ;;  %12712 = vst [vmem:[#allocation63_spill] sm:$0xff] %v7600_v35  ;;  %3434 = vrot.lane.b32.xlu1 %v7045_v58, %s12644_s23 }
 0x113   : > { %3444 = vrot.lane.b32.xlu0 %v6994_v44, %s12644_s23 }
 0x115   : > { %v7594_v57 = vpop.permute.xlu0 %3156  ;;  %v7608_v44 = vpop.permute.xlu1 %2391 }
 0x116   : > { %12711 = vst [vmem:[#allocation62_spill] sm:$0xff] %v7594_v57  ;;  %12714 = vst [vmem:[#allocation65_spill] sm:$0xff] %v7608_v44  ;;  %3438 = vrot.lane.b32.xlu1 %v7075_v3, %s12644_s23 }
 0x117   : > { %3448 = vrot.lane.b32.xlu0 %v7021_v52, %s12644_s23 }
 0x119   : > { %v7602_v59 = vpop.permute.xlu0 %3160  ;;  %v7616_v52 = vpop.permute.xlu1 %2395 }
 0x11a   : > { %12713 = vst [vmem:[#allocation64_spill] sm:$0xff] %v7602_v59  ;;  %12716 = vst [vmem:[#allocation67_spill] sm:$0xff] %v7616_v52  ;;  %3442 = vrot.lane.b32.xlu1 %v7101_v11, %s12644_s23  ;;  %v1468_v52 = vld [vmem:[#allocation2 + $0x88] sm:$0xff] }
 0x11b   : > { %3452 = vrot.lane.b32.xlu0 %v7055_v61, %s12644_s23 }
 0x11d   : > { %v7610_v60 = vpop.permute.xlu0 %3164  ;;  %v7624_v61 = vpop.permute.xlu1 %3154 }
 0x11e   : > { %12715 = vst [vmem:[#allocation66_spill] sm:$0xff] %v7610_v60  ;;  %12718 = vst [vmem:[#allocation69_spill] sm:$0xff] %v7624_v61  ;;  %3446 = vrot.lane.b32.xlu1 %v7127_v20, %s12644_s23  ;;  %v1047_v61 = vld [vmem:[%s12435_s6 + $0x20] sm:$0xff] }
 0x11f   : > { %4033 = vrot.lane.b32.xlu0 %v7082_v5, %s12646_s24 }
 0x121   : > { %v7618_v59 = vpop.permute.xlu0 %3168  ;;  %v7634_v57 = vpop.permute.xlu1 %3158 }
 0x122   : > { %12717 = vst [vmem:[#allocation68_spill] sm:$0xff] %v7618_v59  ;;  %12721 = vst [vmem:[#allocation72_spill] sm:$0xff] %v7634_v57  ;;  %3450 = vrot.lane.b32.xlu1 %v7153_v30, %s12644_s23 }
 0x123   : > { %4037 = vrot.lane.b32.xlu0 %v7108_v13, %s12646_s24 }
 0x125   : > { %v7626_v60 = vpop.permute.xlu0 %3172  ;;  %v7646_v13 = vpop.permute.xlu1 %3162 }
 0x126   : > { %12719 = vst [vmem:[#allocation70_spill] sm:$0xff] %v7626_v60  ;;  %3454 = vrot.lane.b32.xlu1 %v7179_v40, %s12644_s23  ;;  %12723 = vst [vmem:[#allocation74_spill] sm:$0xff] %v7646_v13 }
 0x127   : > { %4041 = vrot.lane.b32.xlu0 %v7134_v23, %s12646_s24 }
 0x129   : > { %v7632_v5 = vpop.permute.xlu0 %3176  ;;  %v7656_v30 = vpop.permute.xlu1 %3166 }
 0x12a   : > { %12720 = vst [vmem:[#allocation71_spill] sm:$0xff] %v7632_v5  ;;  %4035 = vrot.lane.b32.xlu1 %v7205_v51, %s12646_s24  ;;  %12726 = vst [vmem:[#allocation77_spill] sm:$0xff] %v7656_v30 }
 0x12b   : > { %4045 = vrot.lane.b32.xlu0 %v7160_v32, %s12646_s24 }
 0x12d   : > { %v7640_v11 = vpop.permute.xlu0 %3180  ;;  %v7668_v40 = vpop.permute.xlu1 %3170 }
 0x12e   : > { %12722 = vst [vmem:[#allocation73_spill] sm:$0xff] %v7640_v11  ;;  %4039 = vrot.lane.b32.xlu1 %v7231_v63, %s12646_s24  ;;  %12728 = vst [vmem:[#allocation79_spill] sm:$0xff] %v7668_v40 }
 0x12f   : > { %4049 = vrot.lane.b32.xlu0 %v7186_v43, %s12646_s24 }
 0x131   : > { %v7648_v20 = vpop.permute.xlu0 %3216  ;;  %v7676_v51 = vpop.permute.xlu1 %3174 }
 0x132   : > { %12724 = vst [vmem:[#allocation75_spill] sm:$0xff] %v7648_v20  ;;  %4043 = vrot.lane.b32.xlu1 %v7251_v7, %s12646_s24  ;;  %12730 = vst [vmem:[#allocation81_spill] sm:$0xff] %v7676_v51 }
 0x133   : > { %4053 = vrot.lane.b32.xlu0 %v7212_v54, %s12646_s24 }
 0x135   : > { %v7654_v23 = vpop.permute.xlu0 %3220  ;;  %v7688_v63 = vpop.permute.xlu1 %3178 }
 0x136   : > { %12725 = vst [vmem:[#allocation76_spill] sm:$0xff] %v7654_v23  ;;  %4047 = vrot.lane.b32.xlu1 %v7265_v10, %s12646_s24  ;;  %12732 = vst [vmem:[#allocation83_spill] sm:$0xff] %v7688_v63  ;;  %v1084_v23 = vld [vmem:[%s12435_s6 + $0x148] sm:$0xff] }
 0x137   : > { %4057 = vrot.lane.b32.xlu0 %v7238_v1, %s12646_s24 }
 0x139   : > { %v7664_v32 = vpop.permute.xlu0 %3224  ;;  %v7696_v7 = vpop.permute.xlu1 %3182 }
 0x13a   : > { %12727 = vst [vmem:[#allocation78_spill] sm:$0xff] %v7664_v32  ;;  %4051 = vrot.lane.b32.xlu1 %v7280_v15, %s12646_s24  ;;  %12734 = vst [vmem:[#allocation85_spill] sm:$0xff] %v7696_v7 }
 0x13b   : > { %4061 = vrot.lane.b32.xlu0 %v7258_v9, %s12646_s24 }
 0x13d   : > { %v7674_v43 = vpop.permute.xlu0 %3228 }
 0x13e   : > { %12729 = vst [vmem:[#allocation80_spill] sm:$0xff] %v7674_v43  ;;  %4055 = vrot.lane.b32.xlu1 %v7297_v18, %s12646_s24  ;;  %v736_v18 = vlaneseq }
 0x13f   : > { %4097 = vrot.lane.b32.xlu0 %v6914_v19, %s6652_s16 }
 0x141   : > { %v7684_v54 = vpop.permute.xlu0 %3232 }
 0x142   : > { %12731 = vst [vmem:[#allocation82_spill] sm:$0xff] %v7684_v54  ;;  %4059 = vrot.lane.b32.xlu1 %v7314_v25, %s12646_s24 }
 0x143   : > { %4101 = vrot.lane.b32.xlu0 %v6987_v42, %s6652_s16 }
 0x145   : > { %v7694_v1 = vpop.permute.xlu0 %3236 }
 0x146   : > { %12733 = vst [vmem:[#allocation84_spill] sm:$0xff] %v7694_v1  ;;  %4063 = vrot.lane.b32.xlu1 %v7331_v29, %s12646_s24  ;;  %v1055_v1 = vld [vmem:[%s12435_s6 + $0x60] sm:$0xff] }
 0x147   : > { %4105 = vrot.lane.b32.xlu0 %v6921_v21, %s6652_s16  ;;  %v7704_v21 = vpop.permute.xlu1 %3218 }
 0x148   : > { %12736 = vst [vmem:[#allocation87_spill] sm:$0xff] %v7704_v21 }
 0x149   : > { %v7702_v42 = vpop.permute.xlu0 %3240 }
 0x14a   : > { %4099 = vrot.lane.b32.xlu1 %v6965_v36, %s6652_s16  ;;  %12735 = vst [vmem:[#allocation86_spill] sm:$0xff] %v7702_v42 }
 0x14b   : > { %4109 = vrot.lane.b32.xlu0 %v6940_v28, %s6652_s16  ;;  %v7710_v28 = vpop.permute.xlu1 %3222 }
 0x14c   : > { %12738 = vst [vmem:[#allocation89_spill] sm:$0xff] %v7710_v28 }
 0x14d   : > { %v7708_v9 = vpop.permute.xlu0 %3244 }
 0x14e   : > { %4103 = vrot.lane.b32.xlu1 %v7014_v50, %s6652_s16  ;;  %12737 = vst [vmem:[#allocation88_spill] sm:$0xff] %v7708_v9  ;;  %v7724_v50 = vshrl.u32 %v736_v18, 7  ;;  %v1052_v9 = vld [vmem:[%s12435_s6 + $0x48] sm:$0xff] }
 0x14f   : > { %v7718_v15 = vpop.permute.xlu1 %3226 }
 0x150   : > { %12740 = vst [vmem:[#allocation91_spill] sm:$0xff] %v7718_v15  ;;  %12743 = vst [vmem:[#allocation94_spill] sm:$0xff] %v7724_v50  ;;  %v7744_v60 = vsub.s32 1, %v7724_v50 }
 0x151   : > { %v7716_v10 = vpop.permute.xlu0 %3360 }
 0x152   : > { %4107 = vrot.lane.b32.xlu1 %v7045_v58, %s6652_s16  ;;  %12739 = vst [vmem:[#allocation90_spill] sm:$0xff] %v7716_v10  ;;  %v7731_v58 = vsub.s32 0, %v7724_v50  ;;  %12749 = vst [vmem:[#allocation100_spill] sm:$0xff] %v7744_v60  ;;  %v1043_v10 = vld [vmem:[%s12435_s6] sm:$0xff] }
 0x153   : > { %v7722_v29 = vpop.permute.xlu1 %3230  ;;  %v1103_v50 = vld [vmem:[%s12435_s6 + $0x1e0] sm:$0xff] }
 0x154   : > { %12742 = vst [vmem:[#allocation93_spill] sm:$0xff] %v7722_v29  ;;  %12746 = vst [vmem:[#allocation97_spill] sm:$0xff] %v7731_v58 }
 0x155   : > { %v7720_v25 = vpop.permute.xlu0 %3364 }
 0x156   : > { %4111 = vrot.lane.b32.xlu1 %v7075_v3, %s6652_s16  ;;  %12741 = vst [vmem:[#allocation92_spill] sm:$0xff] %v7720_v25  ;;  %v734_v3 = vld [vmem:[%s12433_s4] sm:$0x3] }
 0x157   : > { %v7728_v11 = vpop.permute.xlu1 %3234  ;;  %v7737_v63 = vrot.slane %v734_v3, %v7731_v58  ;;  %v7762_v25 = vrot.slane %v734_v3, %v7744_v60  ;;  %v6049_v3 = vpack.c.bf16 %v1047_v61, %v1043_v10  ;;  %v1467_v58 = vld [vmem:[#allocation2 + $0x80] sm:$0xff] }
 0x158   : > { %12745 = vst [vmem:[#allocation96_spill] sm:$0xff] %v7728_v11  ;;  %v6111_v55 = vpack.c.bf16 %v1468_v52, %v1467_v58 }
 0x159   : > { %v7726_v7 = vpop.permute.xlu0 %3368 }
 0x15a   : > { %12744 = vst [vmem:[#allocation95_spill] sm:$0xff] %v7726_v7  ;;  %v1044_v7 = vld [vmem:[%s12435_s6 + $0x8] sm:$0xff]  ;;  %6112 = vmatprep.subr.bf16.mxu0 %v6111_v55 }
 0x15b   : > { %v7741_v51 = vpop.permute.xlu1 %3238 }
 0x15c   : > { %12748 = vst [vmem:[#allocation99_spill] sm:$0xff] %v7741_v51 }
 0x15d   : > { %v7739_v5 = vpop.permute.xlu0 %3372 }
 0x15e   : > { %12747 = vst [vmem:[#allocation98_spill] sm:$0xff] %v7739_v5  ;;  %v1048_v5 = vld [vmem:[%s12435_s6 + $0x28] sm:$0xff] }
 0x15f   : > { %v6047_v57 = vpack.c.bf16 %v1048_v5, %v1044_v7  ;;  %v7775_v42 = vpop.permute.xlu1 %3242  ;;  %v1056_v5 = vld [vmem:[%s12435_s6 + $0x68] sm:$0xff]  ;;  %v1051_v7 = vld [vmem:[%s12435_s6 + $0x40] sm:$0xff] }
 0x160   : > { %12751 = vst [vmem:[#allocation102_spill] sm:$0xff] %v7775_v42  ;;  %v6051_v42 = vpack.c.bf16 %v1056_v5, %v1052_v9 }
 0x161   : > { %v7759_v13 = vpop.permute.xlu0 %3376  ;;  %6048 = vmatprep.subr.bf16.mxu1 %v6047_v57 }
 0x162   : > { %12750 = vst [vmem:[#allocation101_spill] sm:$0xff] %v7759_v13  ;;  %6050 = vmatpush1.bf16.msra.mxu1 %v6049_v3  ;;  %v1059_v3 = vld [vmem:[%s12435_s6 + $0x80] sm:$0xff] }
 0x163   : > { %6052 = vmatprep.subr.bf16.mxu1 %v6051_v42  ;;  %v1064_v42 = vld [vmem:[%s12435_s6 + $0xa8] sm:$0xff] }
 0x165   : > { %v7793_v11 = vpop.permute.xlu0 %3380 }
 0x166   : > { %12753 = vst [vmem:[#allocation104_spill] sm:$0xff] %v7793_v11 }
 0x173   : > { %v812_v18 = vpop.f32.mrb[0].mxu0 }
 0x174   : > { %v7747_v40 = vadd.f32 %v812_v18, %v7737_v63  ;;  %v7749_v59 = vpop.f32.mrb[1].mxu0 }
 0x176   : > { %v907_v30 = vmul.f32 %v7747_v40, %v7747_v40 }
 0x177   : > { %v7764_v18 = vpop.f32.mrb[2].mxu0 }
 0x178   : > { %v820_v13 = vpop.f32.mrb[3].mxu0  ;;  %923 = vadd.xlane.f32.xlu0 %v907_v30  ;;  %v6053_v30 = vpack.c.bf16 %v1055_v1, %v1051_v7  ;;  %v1060_v1 = vld [vmem:[%s12435_s6 + $0x88] sm:$0xff] }
 0x179   : > { %v7787_v51 = vadd.f32 %v820_v13, %v7762_v25  ;;  %v7801_v13 = vpop.permute.xlu1 %3246 }
 0x17a   : > { %12755 = vst [vmem:[#allocation106_spill] sm:$0xff] %v7801_v13  ;;  %6054 = vmatpush1.bf16.msra.mxu1 %v6053_v30  ;;  %v1068_v30 = vld [vmem:[%s12435_s6 + $0xc8] sm:$0xff] }
 0x17b   : > { %12752 = vst [vmem:[#allocation103_spill] sm:$0xff] %v7787_v51  ;;  %v7789_v61 = vpop.f32.mrb[4].mxu0  ;;  %v2254_v10 = vmul.f32 %v7488_v6, %v7787_v51  ;;  %v2430_v57 = vmul.f32 %v6965_v36, %v7787_v51  ;;  %v1063_v36 = vld [vmem:[%s12435_s6 + $0xa0] sm:$0xff] }
 0x17c   : > { %v826_v54 = vpop.f32.mrb[5].mxu0  ;;  %v6057_v7 = vpack.c.bf16 %v1063_v36, %v1059_v3  ;;  %v1067_v3 = vld [vmem:[%s12435_s6 + $0xc0] sm:$0xff] }
 0x17d   : > { %v7796_v43 = vadd.f32 %v826_v54, %v7762_v25  ;;  %2287 = vrot.lane.b32.xlu1 %v2254_v10, %s6653_s22  ;;  %v6055_v54 = vpack.c.bf16 %v1064_v42, %v1060_v1  ;;  %v1072_v10 = vld [vmem:[%s12435_s6 + $0xe8] sm:$0xff]  ;;  %v7826_v1 = vpop.permute.xlu0 %3384  ;;  %v1099_v6 = vld [vmem:[%s12435_s6 + $0x1c0] sm:$0xff] }
 0x17e   : > { %12756 = vst [vmem:[#allocation107_spill] sm:$0xff] %v7826_v1  ;;  %v6059_v11 = vpack.c.bf16 %v1072_v10, %v1068_v30  ;;  %v1076_v30 = vld [vmem:[%s12435_s6 + $0x108] sm:$0xff] }
 0x17f   : > { %12754 = vst [vmem:[#allocation105_spill] sm:$0xff] %v7796_v43  ;;  %v7809_v9 = vpop.f32.mrb[6].mxu0  ;;  %6056 = vmatprep.subr.bf16.mxu1 %v6055_v54  ;;  %v7834_v54 = vpop.permute.xlu1 %3362  ;;  %v1080_v10 = vld [vmem:[%s12435_s6 + $0x128] sm:$0xff] }
 0x180   : > { %v7817_v5 = vpop.f32.mrb[7].mxu0  ;;  %6058 = vmatpush1.bf16.msra.mxu1 %v6057_v7  ;;  %12757 = vst [vmem:[#allocation108_spill] sm:$0xff] %v7834_v54  ;;  %v6063_v54 = vpack.c.bf16 %v1080_v10, %v1076_v30 }
 0x181   : > { %2463 = vrot.lane.b32.xlu1 %v2430_v57, %s6648_s28  ;;  %v1071_v57 = vld [vmem:[%s12435_s6 + $0xe0] sm:$0xff]  ;;  %6060 = vmatprep.subr.bf16.mxu1 %v6059_v11  ;;  %v7856_v11 = vadd.f32 %v7749_v59, %v7762_v25  ;;  %v7861_v29 = vpop.permute.xlu0 %3388  ;;  %v1088_v59 = vld [vmem:[%s12435_s6 + $0x168] sm:$0xff] }
 0x182   : > { %v6061_v13 = vpack.c.bf16 %v1071_v57, %v1067_v3  ;;  %v1079_v3 = vld [vmem:[%s12435_s6 + $0x120] sm:$0xff]  ;;  %12760 = vst [vmem:[#allocation111_spill] sm:$0xff] %v7861_v29  ;;  %v6067_v15 = vpack.c.bf16 %v1088_v59, %v1084_v23  ;;  %v1092_v59 = vld [vmem:[%s12435_s6 + $0x188] sm:$0xff] }
 0x183   : > { %v836_v42 = vpop.f32.mrb[8].mxu0  ;;  %12759 = vst [vmem:[#allocation110_spill] sm:$0xff] %v7856_v11  ;;  %v7866_v10 = vpop.permute.xlu1 %3366 }
 0x184   : > { %v7837_v36 = vadd.f32 %v836_v42, %v7737_v63  ;;  %v838_v7 = vpop.f32.mrb[9].mxu0  ;;  %6062 = vmatpush1.bf16.msra.mxu1 %v6061_v13  ;;  %v1075_v42 = vld [vmem:[%s12435_s6 + $0x100] sm:$0xff]  ;;  %12761 = vst [vmem:[#allocation112_spill] sm:$0xff] %v7866_v10 }
 0x185   : > { %v7840_v32 = vadd.f32 %v838_v7, %v7762_v25  ;;  %v6065_v7 = vpack.c.bf16 %v1079_v3, %v1075_v42  ;;  %6064 = vmatprep.subr.bf16.mxu1 %v6063_v54  ;;  %v2253_v54 = vmul.f32 %v7463_v8, %v7856_v11  ;;  %v1091_v10 = vld [vmem:[%s12435_s6 + $0x180] sm:$0xff]  ;;  %v7898_v20 = vpop.permute.xlu0 %3424  ;;  %v12496_v8 = vmov 0.0  }
 0x186   : > { %12763 = vst [vmem:[#allocation114_spill] sm:$0xff] %v7898_v20  ;;  %1193 = vmatprep.mubr.f32.mxu1 %v12496_v8 }
 0x187   : > { %12758 = vst [vmem:[#allocation109_spill] sm:$0xff] %v7840_v32  ;;  %v842_v1 = vpop.f32.mrb[10].mxu0  ;;  %v7910_v28 = vpop.permute.xlu1 %3370 }
 0x188   : > { %v7859_v13 = vadd.f32 %v842_v1, %v7737_v63  ;;  %v844_v57 = vpop.f32.mrb[11].mxu0  ;;  %6066 = vmatpush1.bf16.msra.mxu1 %v6065_v7  ;;  %v1087_v7 = vld [vmem:[%s12435_s6 + $0x160] sm:$0xff]  ;;  %12764 = vst [vmem:[#allocation115_spill] sm:$0xff] %v7910_v28  ;;  %v6077_v28 = vpack.c.bf16 %v1103_v50, %v1099_v6 }
 0x189   : > { %v7864_v30 = vadd.f32 %v844_v57, %v7762_v25  ;;  %v1083_v57 = vld [vmem:[%s12435_s6 + $0x140] sm:$0xff]  ;;  %6068 = vmatprep.subr.bf16.mxu1 %v6067_v15 }
 0x18a   : > { %v6069_v23 = vpack.c.bf16 %v1087_v7, %v1083_v57  ;;  %v1100_v57 = vld [vmem:[%s12435_s6 + $0x1c8] sm:$0xff] }
 0x18b   : > { %v848_v1 = vpop.f32.mrb[12].mxu0  ;;  %v1104_v7 = vld [vmem:[%s12435_s6 + $0x1e8] sm:$0xff] }
 0x18c   : > { %v7875_v42 = vadd.f32 %v848_v1, %v7737_v63  ;;  %v850_v3 = vpop.f32.mrb[13].mxu0  ;;  %v1096_v1 = vld [vmem:[%s12435_s6 + $0x1a8] sm:$0xff]  ;;  %6070 = vmatpush1.bf16.msra.mxu1 %v6069_v23  ;;  %v6075_v21 = vpack.c.bf16 %v1104_v7, %v1100_v57  ;;  %v7935_v7 = vpop.permute.xlu1 %3374 }
 0x18d   : > { %v7886_v29 = vadd.f32 %v850_v3, %v7762_v25  ;;  %v6071_v15 = vpack.c.bf16 %v1096_v1, %v1092_v59  ;;  %v2429_v1 = vmul.f32 %v6914_v19, %v7856_v11  ;;  %12767 = vst [vmem:[#allocation118_spill] sm:$0xff] %v7935_v7  ;;  %v7952_v7 = vadd.f32 %v7789_v61, %v7737_v63 }
 0x18e   : > { %2285 = vrot.lane.b32.xlu0 %v2253_v54, %s6653_s22  ;;  %v1095_v54 = vld [vmem:[%s12435_s6 + $0x1a0] sm:$0xff] }
 0x18f   : > { %12762 = vst [vmem:[#allocation113_spill] sm:$0xff] %v7886_v29  ;;  %v854_v3 = vpop.f32.mrb[14].mxu0  ;;  %v6073_v20 = vpack.c.bf16 %v1095_v54, %v1091_v10  ;;  %6072 = vmatprep.subr.bf16.mxu1 %v6071_v15  ;;  %v7930_v54 = vpop.permute.xlu0 %3428 }
 0x190   : > { %v7913_v23 = vadd.f32 %v854_v3, %v7737_v63  ;;  %v856_v59 = vpop.f32.mrb[15].mxu0  ;;  %12765 = vst [vmem:[#allocation116_spill] sm:$0xff] %v7930_v54 }
 0x191   : > { %v7924_v8 = vadd.f32 %v856_v59, %v7762_v25  ;;  %6074 = vmatpush1.bf16.msra.mxu1 %v6073_v20 }
 0x192   : > { %2461 = vrot.lane.b32.xlu0 %v2429_v1, %s6648_s28  ;;  %6076 = vmatprep.subr.bf16.mxu1 %v6075_v21  ;;  %v7945_v21 = vpop.permute.xlu1 %3378 }
 0x193   : > { %v860_v3 = vpop.f32.mrb[16].mxu0  ;;  %v7943_v20 = vpop.permute.xlu0 %3432  ;;  %12769 = vst [vmem:[#allocation120_spill] sm:$0xff] %v7945_v21 }
 0x194   : > { %v7928_v19 = vadd.f32 %v860_v3, %v7737_v63  ;;  %v862_v10 = vpop.f32.mrb[17].mxu0  ;;  %12768 = vst [vmem:[#allocation119_spill] sm:$0xff] %v7943_v20  ;;  %v909_v20 = vmul.f32 %v7952_v7, %v7952_v7 }
 0x195   : > { %v7933_v57 = vadd.f32 %v862_v10, %v7762_v25  ;;  %6078 = vmatpush1.bf16.msra.mxu1 %v6077_v28 }
 0x196   : > { %v7971_v60 = vpop.permute.xlu1 %3382 }
 0x197   : > { %12766 = vst [vmem:[#allocation117_spill] sm:$0xff] %v7933_v57  ;;  %v866_v59 = vpop.f32.mrb[18].mxu0  ;;  %v7966_v21 = vpop.permute.xlu0 %3436  ;;  %12773 = vst [vmem:[#allocation124_spill] sm:$0xff] %v7971_v60 }
 0x198   : > { %v7938_v15 = vadd.f32 %v866_v59, %v7737_v63  ;;  %v868_v1 = vpop.f32.mrb[19].mxu0  ;;  %12771 = vst [vmem:[#allocation122_spill] sm:$0xff] %v7966_v21 }
 0x199   : > { %v7941_v6 = vadd.f32 %v868_v1, %v7762_v25 }
 0x19a   : > { %v7983_v51 = vpop.permute.xlu1 %3386 }
 0x19b   : > { %v872_v50 = vpop.f32.mrb[20].mxu0  ;;  %v7981_v60 = vpop.permute.xlu0 %3440  ;;  %12777 = vst [vmem:[#allocation128_spill] sm:$0xff] %v7983_v51 }
 0x19c   : > { %v7948_v3 = vadd.f32 %v872_v50, %v7737_v63  ;;  %v874_v10 = vpop.f32.mrb[21].mxu0  ;;  %v7964_v50 = vadd.f32 %v7809_v9, %v7737_v63  ;;  %12776 = vst [vmem:[#allocation127_spill] sm:$0xff] %v7981_v60 }
 0x19d   : > { %v7955_v28 = vadd.f32 %v874_v10, %v7762_v25 }
 0x19e   : > { %v910_v9 = vmul.f32 %v7964_v50, %v7964_v50 }
 0x19f   : > { %12770 = vst [vmem:[#allocation121_spill] sm:$0xff] %v7955_v28  ;;  %v878_v59 = vpop.f32.mrb[22].mxu0  ;;  %v7998_v51 = vpop.permute.xlu0 %3444 }
 0x1a0   : > { %v7958_v1 = vadd.f32 %v878_v59, %v7737_v63  ;;  %v880_v54 = vpop.f32.mrb[23].mxu0  ;;  %v1451_v59 = vld [vmem:[#allocation2] sm:$0xff]  ;;  %12780 = vst [vmem:[#allocation131_spill] sm:$0xff] %v7998_v51 }
 0x1a1   : > { %v7969_v61 = vadd.f32 %v880_v54, %v7762_v25  ;;  %v6113_v54 = vpack.c.bf16 %v1452_v56, %v1451_v59  ;;  %v1469_v59 = vld [vmem:[#allocation2 + $0x90] sm:$0xff] }
 0x1a3   : > { %12772 = vst [vmem:[#allocation123_spill] sm:$0xff] %v7969_v61  ;;  %v884_v10 = vpop.f32.mrb[24].mxu0  ;;  %6114 = vmatpush3.bf16.msra.mxu0 %v6113_v54  ;;  %v1470_v54 = vld [vmem:[#allocation2 + $0x98] sm:$0xff]  ;;  %v8013_v51 = vpop.permute.xlu0 %3448 }
 0x1a4   : > { %v7974_v44 = vadd.f32 %v884_v10, %v7737_v63  ;;  %v886_v35 = vpop.f32.mrb[25].mxu0  ;;  %v6115_v60 = vpack.c.bf16 %v1470_v54, %v1469_v59  ;;  %12784 = vst [vmem:[#allocation135_spill] sm:$0xff] %v8013_v51  ;;  %v8017_v59 = vadd.f32 %v7817_v5, %v7762_v25  ;;  %v1455_v5 = vld [vmem:[#allocation2 + $0x20] sm:$0xff] }
 0x1a5   : > { %v7979_v21 = vadd.f32 %v886_v35, %v7762_v25  ;;  %927 = vadd.xlane.f32.xlu1 %v909_v20  ;;  %v7993_v35 = vadd.f32 %v7764_v18, %v7737_v63 }
 0x1a6   : > { %12774 = vst [vmem:[#allocation125_spill] sm:$0xff] %v7974_v44  ;;  %6116 = vmatprep.subr.bf16.mxu0 %v6115_v60  ;;  %v2256_v60 = vmul.f32 %v7504_v4, %v8017_v59  ;;  %v1457_v4 = vld [vmem:[#allocation2 + $0x30] sm:$0xff] }
 0x1a7   : > { %12775 = vst [vmem:[#allocation126_spill] sm:$0xff] %v7979_v21  ;;  %v890_v11 = vpop.f32.mrb[26].mxu0 }
 0x1a8   : > { %v7986_v10 = vadd.f32 %v890_v11, %v7737_v63  ;;  %v892_v52 = vpop.f32.mrb[27].mxu0 }
 0x1a9   : > { %v7989_v58 = vadd.f32 %v892_v52, %v7762_v25  ;;  %929 = vadd.xlane.f32.xlu1 %v910_v9  ;;  %v8003_v52 = vpop.permute.xlu1 %3390  ;;  %v908_v9 = vmul.f32 %v7993_v35, %v7993_v35 }
 0x1aa   : > { %12782 = vst [vmem:[#allocation133_spill] sm:$0xff] %v8003_v52 }
 0x1ab   : > { %12778 = vst [vmem:[#allocation129_spill] sm:$0xff] %v7989_v58  ;;  %v896_v56 = vpop.f32.mrb[28].mxu0  ;;  %v1454_v58 = vld [vmem:[#allocation2 + $0x18] sm:$0xff] }
 0x1ac   : > { %v7996_v55 = vadd.f32 %v896_v56, %v7737_v63  ;;  %v898_v20 = vpop.f32.mrb[29].mxu0 }
 0x1ad   : > { %v8001_v11 = vadd.f32 %v898_v20, %v7762_v25  ;;  %v8019_v54 = vpop.permute.xlu1 %3426 }
 0x1ae   : > { %12779 = vst [vmem:[#allocation130_spill] sm:$0xff] %v7996_v55  ;;  %v1453_v55 = vld [vmem:[#allocation2 + $0x10] sm:$0xff]  ;;  %12785 = vst [vmem:[#allocation136_spill] sm:$0xff] %v8019_v54 }
 0x1af   : > { %12781 = vst [vmem:[#allocation132_spill] sm:$0xff] %v8001_v11  ;;  %v902_v18 = vpop.f32.mrb[30].mxu0  ;;  %v6117_v20 = vpack.c.bf16 %v1454_v58, %v1453_v55  ;;  %v6365_v58 = vld [vmem:[%s12431_s2 + $0x18] sm:$0xff] }
 0x1b0   : > { %v8008_v21 = vadd.f32 %v902_v18, %v7737_v63  ;;  %v904_v56 = vpop.f32.mrb[31].mxu0  ;;  %v8023_v63 = vpop.permute.xlu0 %3452  ;;  %v2432_v55 = vmul.f32 %v6365_v58, %v8017_v59  ;;  %v1458_v11 = vld [vmem:[#allocation2 + $0x38] sm:$0xff] }
 0x1b1   : > { %v8011_v44 = vadd.f32 %v904_v56, %v7762_v25  ;;  %925 = vadd.xlane.f32.xlu0 %v908_v9  ;;  %6118 = vmatpush3.bf16.msra.mxu0 %v6117_v20  ;;  %12786 = vst [vmem:[#allocation137_spill] sm:$0xff] %v8023_v63  ;;  %v8025_v18 = vpop.permute.xlu1 %3430  ;;  %v1471_v9 = vld [vmem:[#allocation2 + $0xa0] sm:$0xff]  ;;  %v1472_v25 = vld [vmem:[#allocation2 + $0xa8] sm:$0xff] }
 0x1b2   : > { %12787 = vst [vmem:[#allocation138_spill] sm:$0xff] %v8025_v18  ;;  %v6119_v56 = vpack.c.bf16 %v1472_v25, %v1471_v9  ;;  %v1456_v20 = vld [vmem:[#allocation2 + $0x28] sm:$0xff]  ;;  %v1474_v18 = vld [vmem:[#allocation2 + $0xb8] sm:$0xff]  ;;  %v2255_v9 = vmul.f32 %v7496_v0, %v7796_v43  ;;  %v6125_v25 = vpack.c.bf16 %v1458_v11, %v1457_v4 }
 0x1b3   : > { %12783 = vst [vmem:[#allocation134_spill] sm:$0xff] %v8011_v44  ;;  %v6121_v52 = vpack.c.bf16 %v1456_v20, %v1455_v5 }
 0x1b4   : > { %6120 = vmatprep.subr.bf16.mxu0 %v6119_v56  ;;  %v8033_v63 = vpop.permute.xlu0 %4033  ;;  %v1459_v56 = vld [vmem:[#allocation2 + $0x40] sm:$0xff] }
 0x1b5   : > { %12788 = vst [vmem:[#allocation139_spill] sm:$0xff] %v8033_v63  ;;  %6122 = vmatpush3.bf16.msra.mxu0 %v6121_v52  ;;  %v8035_v51 = vpop.permute.xlu1 %3434  ;;  %v1475_v52 = vld [vmem:[#allocation2 + $0xc0] sm:$0xff]  ;;  %v1460_v63 = vld [vmem:[#allocation2 + $0x48] sm:$0xff] }
 0x1b6   : > { %12789 = vst [vmem:[#allocation140_spill] sm:$0xff] %v8035_v51  ;;  %v1477_v51 = vld [vmem:[#allocation2 + $0xd0] sm:$0xff]  ;;  %v6129_v4 = vpack.c.bf16 %v1460_v63, %v1459_v56  ;;  %v1480_v63 = vld [vmem:[#allocation2 + $0xe8] sm:$0xff] }
 0x1b8   : > { %v8037_v58 = vpop.permute.xlu0 %4037 }
 0x1b9   : > { %12790 = vst [vmem:[#allocation141_spill] sm:$0xff] %v8037_v58  ;;  %v8041_v5 = vpop.permute.xlu1 %3438 }
 0x1ba   : > { %2291 = vrot.lane.b32.xlu1 %v2256_v60, %s6653_s22  ;;  %v1473_v60 = vld [vmem:[#allocation2 + $0xb0] sm:$0xff]  ;;  %12791 = vst [vmem:[#allocation142_spill] sm:$0xff] %v8041_v5 }
 0x1bb   : > { %v6123_v54 = vpack.c.bf16 %v1474_v18, %v1473_v60  ;;  %v1478_v18 = vld [vmem:[#allocation2 + $0xd8] sm:$0xff]  ;;  %v6366_v60 = vld [vmem:[%s12431_s2 + $0x10] sm:$0xff] }
 0x1bc   : > { %v2431_v58 = vmul.f32 %v6366_v60, %v7796_v43  ;;  %v6131_v11 = vpack.c.bf16 %v1478_v18, %v1477_v51  ;;  %v1461_v5 = vld [vmem:[#allocation2 + $0x50] sm:$0xff]  ;;  %v1479_v60 = vld [vmem:[#allocation2 + $0xe0] sm:$0xff]  ;;  %v1464_v18 = vld [vmem:[#allocation2 + $0x68] sm:$0xff] }
 0x1bd   : > { %6124 = vmatprep.subr.bf16.mxu0 %v6123_v54  ;;  %v1462_v54 = vld [vmem:[#allocation2 + $0x58] sm:$0xff]  ;;  %v6135_v56 = vpack.c.bf16 %v1480_v63, %v1479_v60 }
 0x1be   : > { %2467 = vrot.lane.b32.xlu1 %v2432_v55, %s6648_s28  ;;  %6126 = vmatpush3.bf16.msra.mxu0 %v6125_v25  ;;  %v1476_v55 = vld [vmem:[#allocation2 + $0xc8] sm:$0xff]  ;;  %v6133_v25 = vpack.c.bf16 %v1462_v54, %v1461_v5  ;;  %v1481_v5 = vld [vmem:[#allocation2 + $0xf0] sm:$0xff] }
 0x1bf   : > { %v6127_v20 = vpack.c.bf16 %v1476_v55, %v1475_v52  ;;  %v8051_v52 = vpop.permute.xlu1 %3442  ;;  %v1465_v54 = vld [vmem:[#allocation2 + $0x70] sm:$0xff] }
 0x1c0   : > { %12793 = vst [vmem:[#allocation144_spill] sm:$0xff] %v8051_v52  ;;  %v912_v52 = vmul.f32 %v7859_v13, %v7859_v13 }
 0x1c1   : > { %6128 = vmatprep.subr.bf16.mxu0 %v6127_v20  ;;  %v1463_v20 = vld [vmem:[#allocation2 + $0x60] sm:$0xff] }
 0x1c2   : > { %6130 = vmatpush3.bf16.msra.mxu0 %v6129_v4  ;;  %v1482_v4 = vld [vmem:[#allocation2 + $0xf8] sm:$0xff] }
 0x1c3   : > { %6132 = vmatprep.subr.bf16.mxu0 %v6131_v11  ;;  %v8055_v0 = vpop.permute.xlu1 %3446  ;;  %v6139_v11 = vpack.c.bf16 %v1482_v4, %v1481_v5  ;;  %v12817_v4 = vld [vmem:[#allocation25_spill] sm:$0xff] }
 0x1c4   : > { %12795 = vst [vmem:[#allocation146_spill] sm:$0xff] %v8055_v0 }
 0x1c6   : > { %6134 = vmatpush3.bf16.msra.mxu0 %v6133_v25  ;;  %v1466_v25 = vld [vmem:[#allocation2 + $0x78] sm:$0xff] }
 0x1c7   : > { %2289 = vrot.lane.b32.xlu0 %v2255_v9, %s6653_s22  ;;  %v8048_v9 = vpop.permute.xlu0 %4041  ;;  %6136 = vmatprep.subr.bf16.mxu0 %v6135_v56  ;;  %v6141_v0 = vpack.c.bf16 %v1466_v25, %v1465_v54  ;;  %v911_v56 = vmul.f32 %v7837_v36, %v7837_v36  ;;  %v8144_v54 = vld [vmem:[%s12434_s5] ss:$0 sm:$0xff]  ;;  %v12820_v25 = vld [vmem:[#allocation27_spill] sm:$0xff] }
 0x1c8   : > { %12792 = vst [vmem:[#allocation143_spill] sm:$0xff] %v8048_v9  ;;  %v8059_v9 = vpop.permute.xlu1 %3450 }
 0x1c9   : > { %12797 = vst [vmem:[#allocation148_spill] sm:$0xff] %v8059_v9 }
 0x1cb   : > { %2465 = vrot.lane.b32.xlu0 %v2431_v58, %s6648_s28  ;;  %v8053_v55 = vpop.permute.xlu0 %4045  ;;  %v6137_v58 = vpack.c.bf16 %v1464_v18, %v1463_v20 }
 0x1cc   : > { %12794 = vst [vmem:[#allocation145_spill] sm:$0xff] %v8053_v55 }
 0x1cd   : > { %6138 = vmatpush3.bf16.msra.mxu0 %v6137_v58  ;;  %v12813_v58 = vld [vmem:[#allocation22_spill] sm:$0xff] }
 0x1ce   : > { %6140 = vmatprep.subr.bf16.mxu0 %v6139_v11  ;;  %v12818_v11 = vld [vmem:[#allocation26_spill] sm:$0xff] }
 0x1cf   : > { %v8057_v51 = vpop.permute.xlu0 %4049 }
 0x1d0   : > { %12796 = vst [vmem:[#allocation147_spill] sm:$0xff] %v8057_v51  ;;  %v8065_v51 = vpop.permute.xlu1 %3454 }
 0x1d1   : > { %12799 = vst [vmem:[#allocation150_spill] sm:$0xff] %v8065_v51  ;;  %6142 = vmatpush3.bf16.msra.mxu0 %v6141_v0 }
 0x1d3   : > { %v8061_v55 = vpop.permute.xlu0 %4053 }
 0x1d4   : > { %12798 = vst [vmem:[#allocation149_spill] sm:$0xff] %v8061_v55  ;;  %1555 = vmatmul.mubr.f32.vlgmr.msra.gmra.mrb[32].mxu0 %v7270_v12  ;;  %v8071_v63 = vpop.permute.xlu1 %4035 }
 0x1d5   : > { %1559 = vmatprep.mubr.f32.mxu0 %v7273_v14  ;;  %12801 = vst [vmem:[#allocation152_spill] sm:$0xff] %v8071_v63 }
 0x1d7   : > { %v8068_v60 = vpop.permute.xlu0 %4057 }
 0x1d8   : > { %12800 = vst [vmem:[#allocation151_spill] sm:$0xff] %v8068_v60  ;;  %1560 = vmatmul.mubr.f32.gmra.mrb[34].mxu0 %v7287_v16  ;;  %v8079_v18 = vpop.permute.xlu1 %4039  ;;  %v2258_v16 = vmul.f32 %v7512_v2, %v7864_v30  ;;  %v8334_v2 = vld [vmem:[%s12431_s2 + $0x60] sm:$0xff] }
 0x1d9   : > { %1564 = vmatprep.mubr.f32.mxu0 %v7290_v17  ;;  %12803 = vst [vmem:[#allocation154_spill] sm:$0xff] %v8079_v18  ;;  %v6367_v17 = vld [vmem:[%s12431_s2 + $0x28] sm:$0xff]  ;;  %v918_v18 = vmul.f32 %v7958_v1, %v7958_v1 }
 0x1db   : > { %v8077_v20 = vpop.permute.xlu0 %4061 }
 0x1dc   : > { %12802 = vst [vmem:[#allocation153_spill] sm:$0xff] %v8077_v20  ;;  %1565 = vmatmul.mubr.f32.gmra.mrb[36].mxu0 %v7304_v22  ;;  %v8087_v14 = vpop.permute.xlu1 %4043  ;;  %v2434_v22 = vmul.f32 %v6367_v17, %v7864_v30  ;;  %v12821_v17 = vld [vmem:[#allocation28_spill] sm:$0xff] }
 0x1dd   : > { %1569 = vmatprep.mubr.f32.mxu0 %v7307_v24  ;;  %12805 = vst [vmem:[#allocation156_spill] sm:$0xff] %v8087_v14 }
 0x1df   : > { %v8084_v12 = vpop.permute.xlu0 %4097 }
 0x1e0   : > { %1570 = vmatmul.mubr.f32.gmra.mrb[38].mxu0 %v7321_v26  ;;  %12804 = vst [vmem:[#allocation155_spill] sm:$0xff] %v8084_v12  ;;  %v8100_v26 = vpop.permute.xlu1 %4047 }
 0x1e1   : > { %1574 = vmatprep.mubr.f32.mxu0 %v7324_v27  ;;  %12807 = vst [vmem:[#allocation158_spill] sm:$0xff] %v8100_v26 }
 0x1e2   : > { %933 = vadd.xlane.f32.xlu1 %v912_v52 }
 0x1e3   : > { %v8098_v24 = vpop.permute.xlu0 %4101 }
 0x1e4   : > { %1575 = vmatmul.mubr.f32.gmra.mrb[40].mxu0 %v7338_v31  ;;  %12806 = vst [vmem:[#allocation157_spill] sm:$0xff] %v8098_v24  ;;  %v8109_v31 = vpop.permute.xlu1 %4051 }
 0x1e5   : > { %1579 = vmatprep.mubr.f32.mxu0 %v7341_v33  ;;  %12809 = vst [vmem:[#allocation160_spill] sm:$0xff] %v8109_v31  ;;  %v2257_v33 = vmul.f32 %v7474_v62, %v7840_v32  ;;  %v916_v31 = vmul.f32 %v7938_v15, %v7938_v15 }
 0x1e7   : > { %v8106_v27 = vpop.permute.xlu0 %4105 }
 0x1e8   : > { %1580 = vmatmul.mubr.f32.gmra.mrb[42].mxu0 %v7350_v34  ;;  %12808 = vst [vmem:[#allocation159_spill] sm:$0xff] %v8106_v27 }
 0x1e9   : > { %1584 = vmatprep.mubr.f32.mxu0 %v7353_v37  ;;  %v8118_v37 = vpop.permute.xlu1 %4055 }
 0x1ea   : > { %931 = vadd.xlane.f32.xlu0 %v911_v56  ;;  %12811 = vst [vmem:[#allocation162_spill] sm:$0xff] %v8118_v37  ;;  %v914_v56 = vmul.f32 %v7913_v23, %v7913_v23 }
 0x1eb   : > { %v8116_v34 = vpop.permute.xlu0 %4109 }
 0x1ec   : > { %1585 = vmatmul.mubr.f32.gmra.mrb[44].mxu0 %v7362_v38  ;;  %12810 = vst [vmem:[#allocation161_spill] sm:$0xff] %v8116_v34  ;;  %v6368_v38 = vld [vmem:[%s12431_s2 + $0x20] sm:$0xff] }
 0x1ed   : > { %1589 = vmatprep.mubr.f32.mxu0 %v7365_v39  ;;  %v2433_v39 = vmul.f32 %v6368_v38, %v7840_v32  ;;  %v8129_v0 = vpop.permute.xlu1 %4059  ;;  %v12824_v38 = vld [vmem:[#allocation29_spill] sm:$0xff] }
 0x1ee   : > { %12812 = vst [vmem:[#allocation163_spill] sm:$0xff] %v8129_v0 }
 0x1f0   : > { %1590 = vmatmul.mubr.f32.gmra.mrb[46].mxu0 %v7374_v41 }
 0x1f1   : > { %1594 = vmatprep.mubr.f32.mxu0 %v7377_v45  ;;  %v8133_v5 = vpop.permute.xlu1 %4063 }
 0x1f2   : > { %12814 = vst [vmem:[#allocation22_spill] sm:$0xff] %v8133_v5 }
 0x1f3   : > { %2295 = vrot.lane.b32.xlu1 %v2258_v16, %s6653_s22 }
 0x1f4   : > { %1595 = vmatmul.mubr.f32.gmra.mrb[48].mxu0 %v7386_v46  ;;  %v12815_v46 = vld [vmem:[#allocation23_spill] sm:$0xff] }
 0x1f5   : > { %1599 = vmatprep.mubr.f32.mxu0 %v7389_v47  ;;  %v12816_v47 = vld [vmem:[#allocation24_spill] sm:$0xff] }
 0x1f7   : > { %2471 = vrot.lane.b32.xlu1 %v2434_v22, %s6648_s28 }
 0x1f8   : > { %1600 = vmatmul.mubr.f32.gmra.mrb[50].mxu0 %v7398_v48 }
 0x1f9   : > { %1604 = vmatprep.mubr.f32.mxu0 %v7401_v49  ;;  %v8139_v49 = vpop.permute.xlu1 %4099 }
 0x1fa   : > { %12819 = vst [vmem:[#allocation23_spill] sm:$0xff] %v8139_v49 }
 0x1fc   : > { %1605 = vmatmul.mubr.f32.gmra.mrb[52].mxu0 %v7410_v53 }
 0x1fd   : > { %1609 = vmatprep.mubr.f32.mxu0 %v12813_v58  ;;  %v8155_v22 = vpop.permute.xlu1 %4103  ;;  %v12829_v58 = vld [vmem:[#allocation43_spill] sm:$0xff] }
 0x1fe   : > { %12822 = vst [vmem:[#allocation24_spill] sm:$0xff] %v8155_v22 }
 0x200   : > { %2293 = vrot.lane.b32.xlu0 %v2257_v33, %s6653_s22  ;;  %1610 = vmatmul.mubr.f32.gmra.mrb[54].mxu0 %v12815_v46  ;;  %v12823_v33 = vmov 0.0   ;;  %v2260_v46 = vmul.f32 %v12829_v58, %v7924_v8 }
 0x201   : > { %1614 = vmatprep.mubr.f32.mxu0 %v12816_v47 }
 0x204   : > { %2469 = vrot.lane.b32.xlu0 %v2433_v39, %s6648_s28  ;;  %1615 = vmatmul.mubr.f32.gmra.mrb[56].mxu0 %v12817_v4  ;;  %v12826_v39 = vld [vmem:[#allocation32_spill] sm:$0xff]  ;;  %v6369_v4 = vld [vmem:[%s12431_s2 + $0x38] sm:$0xff] }
 0x205   : > { %v924_v41 = vpop.xlane.xlu0 %923  ;;  %1619 = vmatprep.mubr.f32.mxu0 %v12818_v11  ;;  %v2436_v11 = vmul.f32 %v6369_v4, %v7924_v8 }
 0x206   : > { %v956_v45 = vmul.f32 0.0078125, %v924_v41  ;;  %v913_v41 = vmul.f32 %v7875_v42, %v7875_v42 }
 0x208   : > { %v972_v52 = vadd.f32 1.1920929e-07, %v956_v45  ;;  %1620 = vmatmul.mubr.f32.gmra.mrb[58].mxu0 %v12820_v25  ;;  %v8163_v45 = vpop.permute.xlu1 %4107 }
 0x209   : > { %1624 = vmatprep.mubr.f32.mxu0 %v12821_v17  ;;  %12827 = vst [vmem:[#allocation25_spill] sm:$0xff] %v8163_v45 }
 0x20a   : > { %6301 = vrsqrt.f32 %v972_v52 }
 0x20c   : > { %1625 = vmatmul.mubr.f32.gmra.mrb[60].mxu0 %v12824_v38  ;;  %v8165_v52 = vpop.permute.xlu1 %4111 }
 0x20d   : > { %12828 = vst [vmem:[#allocation26_spill] sm:$0xff] %v8165_v52 }
 0x210   : > { %v8169_v47 = vpop.permute.xlu1 %2287 }
 0x214   : > { %v6302_v48 = vpop.eup %6301 }
 0x215   : > { %v1004_v53 = vmul.f32 %v6302_v48, %v7747_v40  ;;  %v12825_v40 = vld [vmem:[#allocation30_spill] sm:$0xff]  ;;  %v8177_v48 = vpop.permute.xlu1 %2463 }
 0x216   : > { %1629 = vmatprep.mubr.f32.mxu0 %v12825_v40 }
 0x217   : > { %v8151_v16 = vmul.f32 %v8144_v54, %v1004_v53  ;;  %1630 = vmatmul.mubr.f32.gmra.mrb[62].mxu0 %v12826_v39  ;;  %v8179_v53 = vpop.permute.xlu0 %2285  ;;  %v6370_v39 = vld [vmem:[%s12431_s2 + $0x30] sm:$0xff] }
 0x219   : > { %1194 = vmatmul.mubr.f32.vlgmr.msra.gmra.mrb[0].mxu1 %v8151_v16 }
 0x21a   : > { %1199 = vmatprep.mubr.f32.mxu1 %v12823_v33 }
 0x21b   : > { %937 = vadd.xlane.f32.xlu1 %v914_v56  ;;  %v12830_v56 = vld [vmem:[#allocation34_spill] sm:$0xff]  ;;  %v8184_v38 = vpop.permute.xlu0 %2461 }
 0x21c   : > { %v2259_v17 = vmul.f32 %v12830_v56, %v7886_v29 }
 0x223   : > { %935 = vadd.xlane.f32.xlu0 %v913_v41  ;;  %v2435_v41 = vmul.f32 %v6370_v39, %v7886_v29 }
 0x22c   : > { %2299 = vrot.lane.b32.xlu1 %v2260_v46, %s6653_s22 }
 0x230   : > { %2475 = vrot.lane.b32.xlu1 %v2436_v11, %s6648_s28 }
 0x232   : > { %v928_v25 = vpop.xlane.xlu1 %927 }
 0x233   : > { %v958_v40 = vmul.f32 0.0078125, %v928_v25 }
 0x235   : > { %v974_v4 = vadd.f32 1.1920929e-07, %v958_v40 }
 0x236   : > { %v930_v46 = vpop.xlane.xlu1 %929 }
 0x237   : > { %v959_v5 = vmul.f32 0.0078125, %v930_v46  ;;  %6303 = vrsqrt.f32 %v974_v4 }
 0x239   : > { %2297 = vrot.lane.b32.xlu0 %v2259_v17, %s6653_s22  ;;  %v975_v37 = vadd.f32 1.1920929e-07, %v959_v5 }
 0x23a   : > { %v8223_v5 = vpop.permute.xlu1 %2291 }
 0x23d   : > { %2473 = vrot.lane.b32.xlu0 %v2435_v41, %s6648_s28 }
 0x23e   : > { %v926_v11 = vpop.xlane.xlu0 %925  ;;  %v8226_v46 = vpop.permute.xlu1 %2467 }
 0x23f   : > { %v957_v0 = vmul.f32 0.0078125, %v926_v11 }
 0x241   : > { %v973_v20 = vadd.f32 1.1920929e-07, %v957_v0  ;;  %v6304_v17 = vpop.eup %6303 }
 0x242   : > { %v1006_v40 = vmul.f32 %v6304_v17, %v7952_v7  ;;  %v8228_v4 = vpop.permute.xlu0 %2289  ;;  %v12833_v17 = vld [vmem:[#allocation36_spill] sm:$0xff] }
 0x243   : > { %6305 = vrsqrt.f32 %v973_v20  ;;  %12832 = vst [vmem:[#allocation27_spill] sm:$0xff] %v8228_v4 }
 0x244   : > { %6307 = vrsqrt.f32 %v975_v37  ;;  %v8201_v20 = vmul.f32 %v8144_v54, %v1006_v40 }
 0x246   : > { %v8233_v40 = vpop.permute.xlu0 %2465 }
 0x247   : > { %12834 = vst [vmem:[#allocation28_spill] sm:$0xff] %v8233_v40 }
 0x24d   : > { %v6306_v25 = vpop.eup %6305 }
 0x24e   : > { %v1005_v60 = vmul.f32 %v6306_v25, %v7993_v35  ;;  %v6308_v41 = vpop.eup %6307  ;;  %v915_v35 = vmul.f32 %v7928_v19, %v7928_v19  ;;  %v2261_v25 = vmul.f32 %v12833_v17, %v7933_v57 }
 0x24f   : > { %v1007_v37 = vmul.f32 %v6308_v41, %v7964_v50  ;;  %v8219_v50 = vld [vmem:[%s12431_s2 + $0x48] sm:$0xff] }
 0x250   : > { %v8195_v39 = vmul.f32 %v8144_v54, %v1005_v60  ;;  %v12831_v60 = vld [vmem:[#allocation45_spill] sm:$0xff]  ;;  %v2438_v0 = vmul.f32 %v8219_v50, %v7941_v6 }
 0x251   : > { %v8209_v7 = vmul.f32 %v8144_v54, %v1007_v37  ;;  %v8238_v37 = vld [vmem:[%s12431_s2 + $0x40] sm:$0xff] }
 0x252   : > { %1200 = vmatmul.mubr.f32.gmra.mrb[2].mxu1 %v8195_v39 }
 0x253   : > { %1205 = vmatprep.mubr.f32.mxu1 %v12823_v33 }
 0x254   : > { %941 = vadd.xlane.f32.xlu1 %v916_v31  ;;  %v2262_v31 = vmul.f32 %v12831_v60, %v7941_v6 }
 0x256   : > { %1206 = vmatmul.mubr.f32.gmra.mrb[4].mxu1 %v8201_v20 }
 0x257   : > { %1211 = vmatprep.mubr.f32.mxu1 %v12823_v33 }
 0x25a   : > { %1212 = vmatmul.mubr.f32.gmra.mrb[6].mxu1 %v8209_v7 }
 0x25b   : > { %1217 = vmatprep.mubr.f32.mxu1 %v12823_v33 }
 0x25c   : > { %939 = vadd.xlane.f32.xlu0 %v915_v35  ;;  %v2437_v35 = vmul.f32 %v8238_v37, %v7933_v57 }
 0x265   : > { %2303 = vrot.lane.b32.xlu1 %v2262_v31, %s6653_s22 }
 0x269   : > { %2479 = vrot.lane.b32.xlu1 %v2438_v0, %s6648_s28 }
 0x26f   : > { %v934_v11 = vpop.xlane.xlu1 %933 }
 0x270   : > { %v961_v41 = vmul.f32 0.0078125, %v934_v11 }
 0x272   : > { %2301 = vrot.lane.b32.xlu0 %v2261_v25, %s6653_s22  ;;  %v977_v31 = vadd.f32 1.1920929e-07, %v961_v41 }
 0x274   : > { %6309 = vrsqrt.f32 %v977_v31 }
 0x276   : > { %2477 = vrot.lane.b32.xlu0 %v2437_v35, %s6648_s28 }
 0x277   : > { %v932_v0 = vpop.xlane.xlu0 %931 }
 0x278   : > { %v960_v55 = vmul.f32 0.0078125, %v932_v0  ;;  %v12837_v0 = vld [vmem:[#allocation38_spill] sm:$0xff] }
 0x27a   : > { %v976_v26 = vadd.f32 1.1920929e-07, %v960_v55 }
 0x27b   : > { %v8274_v35 = vpop.permute.xlu0 %2293 }
 0x27c   : > { %6311 = vrsqrt.f32 %v976_v26  ;;  %12836 = vst [vmem:[#allocation29_spill] sm:$0xff] %v8274_v35 }
 0x27e   : > { %v6310_v25 = vpop.eup %6309 }
 0x27f   : > { %v1009_v51 = vmul.f32 %v6310_v25, %v7859_v13  ;;  %v8265_v13 = vld [vmem:[%s12431_s2 + $0x58] sm:$0xff]  ;;  %v2263_v25 = vmul.f32 %v12837_v0, %v7955_v28 }
 0x281   : > { %v8253_v55 = vmul.f32 %v8144_v54, %v1009_v51  ;;  %v2440_v51 = vmul.f32 %v8265_v13, %v7969_v61 }
 0x286   : > { %v6312_v14 = vpop.eup %6311 }
 0x287   : > { %v1008_v11 = vmul.f32 %v6312_v14, %v7837_v36  ;;  %v917_v36 = vmul.f32 %v7948_v3, %v7948_v3  ;;  %v12835_v14 = vld [vmem:[#allocation47_spill] sm:$0xff] }
 0x288   : > { %v2264_v26 = vmul.f32 %v12835_v14, %v7969_v61 }
 0x289   : > { %v8247_v63 = vmul.f32 %v8144_v54, %v1008_v11  ;;  %v8279_v11 = vpop.permute.xlu0 %2469 }
 0x28a   : > { %12838 = vst [vmem:[#allocation30_spill] sm:$0xff] %v8279_v11 }
 0x28b   : > { %1218 = vmatmul.mubr.f32.gmra.mrb[8].mxu1 %v8247_v63 }
 0x28c   : > { %1223 = vmatprep.mubr.f32.mxu1 %v12823_v33 }
 0x28d   : > { %945 = vadd.xlane.f32.xlu1 %v918_v18  ;;  %v8269_v18 = vpop.permute.xlu1 %2295 }
 0x28f   : > { %1224 = vmatmul.mubr.f32.gmra.mrb[10].mxu1 %v8253_v55 }
 0x290   : > { %1229 = vmatprep.mubr.f32.mxu1 %v12823_v33 }
 0x291   : > { %v8272_v41 = vpop.permute.xlu1 %2471 }
 0x295   : > { %943 = vadd.xlane.f32.xlu0 %v917_v36 }
 0x29e   : > { %2307 = vrot.lane.b32.xlu1 %v2264_v26, %s6653_s22  ;;  %v8284_v26 = vld [vmem:[%s12431_s2 + $0x50] sm:$0xff] }
 0x2a2   : > { %2483 = vrot.lane.b32.xlu1 %v2440_v51, %s6648_s28  ;;  %v2439_v51 = vmul.f32 %v8284_v26, %v7955_v28 }
 0x2a8   : > { %v938_v31 = vpop.xlane.xlu1 %937 }
 0x2a9   : > { %v963_v36 = vmul.f32 0.0078125, %v938_v31 }
 0x2ab   : > { %2305 = vrot.lane.b32.xlu0 %v2263_v25, %s6653_s22  ;;  %v979_v9 = vadd.f32 1.1920929e-07, %v963_v36  ;;  %v5847_v25 = vpop.f32.mrb[32].mxu0  ;;  %v920_v36 = vmul.f32 %v7986_v10, %v7986_v10 }
 0x2ac   : > { %v5848_v0 = vpop.f32.mrb[33].mxu0 }
 0x2ad   : > { %6313 = vrsqrt.f32 %v979_v9  ;;  %v8289_v34 = vadd.f32 %v5848_v0, %v5847_v25  ;;  %v5850_v31 = vpop.f32.mrb[34].mxu0  ;;  %v8319_v0 = vpop.permute.xlu1 %2299 }
 0x2ae   : > { %v5851_v56 = vpop.f32.mrb[35].mxu0 }
 0x2af   : > { %2481 = vrot.lane.b32.xlu0 %v2439_v51, %s6648_s28  ;;  %v8291_v27 = vadd.f32 %v5851_v56, %v5850_v31 }
 0x2b0   : > { %v936_v14 = vpop.xlane.xlu0 %935 }
 0x2b1   : > { %v962_v17 = vmul.f32 0.0078125, %v936_v14  ;;  %v8322_v51 = vpop.permute.xlu1 %2475 }
 0x2b3   : > { %v978_v60 = vadd.f32 1.1920929e-07, %v962_v17 }
 0x2b4   : > { %v8324_v25 = vpop.permute.xlu0 %2297 }
 0x2b5   : > { %6315 = vrsqrt.f32 %v978_v60  ;;  %v12841_v60 = vld [vmem:[#allocation49_spill] sm:$0xff]  ;;  %12842 = vst [vmem:[#allocation32_spill] sm:$0xff] %v8324_v25 }
 0x2b7   : > { %v6314_v52 = vpop.eup %6313 }
 0x2b8   : > { %v1011_v9 = vmul.f32 %v6314_v52, %v7913_v23  ;;  %v8315_v23 = vld [vmem:[%s12431_s2 + $0x68] sm:$0xff] }
 0x2ba   : > { %v8303_v56 = vmul.f32 %v8144_v54, %v1011_v9  ;;  %v12844_v9 = vld [vmem:[#allocation40_spill] sm:$0xff] }
 0x2bf   : > { %v6316_v62 = vpop.eup %6315 }
 0x2c0   : > { %v1010_v58 = vmul.f32 %v6316_v62, %v7875_v42  ;;  %v12839_v62 = vld [vmem:[#allocation125_spill] sm:$0xff] }
 0x2c1   : > { %v919_v42 = vmul.f32 %v12839_v62, %v12839_v62 }
 0x2c2   : > { %v8297_v14 = vmul.f32 %v8144_v54, %v1010_v58  ;;  %v12840_v58 = vld [vmem:[#allocation129_spill] sm:$0xff] }
 0x2c3   : > { %v2266_v17 = vmul.f32 %v12841_v60, %v12840_v58  ;;  %v2442_v52 = vmul.f32 %v8315_v23, %v12840_v58  ;;  %v8329_v60 = vpop.permute.xlu0 %2473 }
 0x2c4   : > { %1230 = vmatmul.mubr.f32.gmra.mrb[12].mxu1 %v8297_v14  ;;  %12845 = vst [vmem:[#allocation125_spill] sm:$0xff] %v8329_v60 }
 0x2c5   : > { %1235 = vmatprep.mubr.f32.mxu1 %v12823_v33 }
 0x2c6   : > { %949 = vadd.xlane.f32.xlu1 %v920_v36  ;;  %v12843_v36 = vld [vmem:[#allocation126_spill] sm:$0xff] }
 0x2c8   : > { %1236 = vmatmul.mubr.f32.gmra.mrb[14].mxu1 %v8303_v56 }
 0x2c9   : > { %1241 = vmatprep.mubr.f32.mxu1 %v12823_v33 }
 0x2ce   : > { %947 = vadd.xlane.f32.xlu0 %v919_v42  ;;  %v2265_v42 = vmul.f32 %v12844_v9, %v12843_v36 }
 0x2d7   : > { %2311 = vrot.lane.b32.xlu1 %v2266_v17, %s6653_s22  ;;  %v5853_v17 = vpop.f32.mrb[36].mxu0 }
 0x2d8   : > { %v5854_v45 = vpop.f32.mrb[37].mxu0 }
 0x2d9   : > { %v8338_v12 = vadd.f32 %v5854_v45, %v5853_v17  ;;  %v5856_v22 = vpop.f32.mrb[38].mxu0  ;;  %v922_v17 = vmul.f32 %v8008_v21, %v8008_v21 }
 0x2da   : > { %v5857_v49 = vpop.f32.mrb[39].mxu0 }
 0x2db   : > { %2487 = vrot.lane.b32.xlu1 %v2442_v52, %s6648_s28  ;;  %v2441_v52 = vmul.f32 %v8334_v2, %v12843_v36 }
 0x2e1   : > { %v942_v31 = vpop.xlane.xlu1 %941 }
 0x2e2   : > { %v965_v24 = vmul.f32 0.0078125, %v942_v31 }
 0x2e4   : > { %2309 = vrot.lane.b32.xlu0 %v2265_v42, %s6653_s22  ;;  %v8341_v42 = vadd.f32 %v5857_v49, %v5856_v22  ;;  %v981_v9 = vadd.f32 1.1920929e-07, %v965_v24  ;;  %v12849_v22 = vld [vmem:[#allocation51_spill] sm:$0xff] }
 0x2e6   : > { %6317 = vrsqrt.f32 %v981_v9 }
 0x2e8   : > { %2485 = vrot.lane.b32.xlu0 %v2441_v52, %s6648_s28  ;;  %v1045_v52 = vld [vmem:[%s12435_s6 + $0x10] sm:$0xff] }
 0x2e9   : > { %v940_v28 = vpop.xlane.xlu0 %939 }
 0x2ea   : > { %v964_v31 = vmul.f32 0.0078125, %v940_v28 }
 0x2ec   : > { %v980_v57 = vadd.f32 1.1920929e-07, %v964_v31  ;;  %v8343_v60 = vpop.f32.mrb[0].mxu1  ;;  %v1049_v31 = vld [vmem:[%s12435_s6 + $0x30] sm:$0xff] }
 0x2ed   : > { %12846 = vst [vmem:[#allocation164_spill] sm:$0xff] %v8343_v60  ;;  %v8345_v25 = vpop.f32.mrb[1].mxu1  ;;  %v12854_v60 = vld [vmem:[#allocation42_spill] sm:$0xff] }
 0x2ee   : > { %12847 = vst [vmem:[#allocation165_spill] sm:$0xff] %v8345_v25  ;;  %6319 = vrsqrt.f32 %v980_v57  ;;  %v1061_v25 = vld [vmem:[%s12435_s6 + $0x90] sm:$0xff] }
 0x2f0   : > { %v6318_v29 = vpop.eup %6317 }
 0x2f1   : > { %v1013_v24 = vmul.f32 %v6318_v29, %v7938_v15  ;;  %v1046_v29 = vld [vmem:[%s12435_s6 + $0x18] sm:$0xff] }
 0x2f2   : > { %v1050_v15 = vld [vmem:[%s12435_s6 + $0x38] sm:$0xff] }
 0x2f3   : > { %v8357_v28 = vmul.f32 %v8144_v54, %v1013_v24  ;;  %v6079_v9 = vpack.c.bf16 %v1050_v15, %v1046_v29  ;;  %v6081_v24 = vpack.c.bf16 %v1049_v31, %v1045_v52  ;;  %v1054_v29 = vld [vmem:[%s12435_s6 + $0x58] sm:$0xff]  ;;  %v1057_v52 = vld [vmem:[%s12435_s6 + $0x70] sm:$0xff] }
 0x2f4   : > { %v1062_v31 = vld [vmem:[%s12435_s6 + $0x98] sm:$0xff] }
 0x2f5   : > { %6080 = vmatprep.subr.bf16.mxu1 %v6079_v9 }
 0x2f6   : > { %6082 = vmatpush1.bf16.msra.mxu1 %v6081_v24  ;;  %v1066_v24 = vld [vmem:[%s12435_s6 + $0xb8] sm:$0xff] }
 0x2f8   : > { %v6320_v36 = vpop.eup %6319 }
 0x2f9   : > { %v1012_v45 = vmul.f32 %v6320_v36, %v7928_v19  ;;  %v12848_v19 = vld [vmem:[#allocation130_spill] sm:$0xff]  ;;  %v2268_v36 = vmul.f32 %v12849_v22, %v8011_v44  ;;  %v1053_v22 = vld [vmem:[%s12435_s6 + $0x50] sm:$0xff] }
 0x2fa   : > { %v921_v57 = vmul.f32 %v12848_v19, %v12848_v19  ;;  %v6085_v9 = vpack.c.bf16 %v1057_v52, %v1053_v22  ;;  %v1065_v22 = vld [vmem:[%s12435_s6 + $0xb0] sm:$0xff]  ;;  %v1070_v52 = vld [vmem:[%s12435_s6 + $0xd8] sm:$0xff] }
 0x2fb   : > { %v8351_v49 = vmul.f32 %v8144_v54, %v1012_v45  ;;  %v8381_v45 = vld [vmem:[%s12431_s2 + $0x78] sm:$0xff] }
 0x2fd   : > { %1242 = vmatmul.mubr.f32.gmra.mrb[16].mxu1 %v8351_v49 }
 0x2fe   : > { %1247 = vmatprep.mubr.f32.mxu1 %v12823_v33 }
 0x2ff   : > { %953 = vadd.xlane.f32.xlu1 %v922_v17  ;;  %v2444_v17 = vmul.f32 %v8381_v45, %v8011_v44 }
 0x301   : > { %1248 = vmatmul.mubr.f32.gmra.mrb[18].mxu1 %v8357_v28 }
 0x302   : > { %1253 = vmatprep.mubr.f32.mxu1 %v12823_v33 }
 0x307   : > { %951 = vadd.xlane.f32.xlu0 %v921_v57  ;;  %v8385_v57 = vpop.permute.xlu1 %2303 }
 0x308   : > { %12850 = vst [vmem:[#allocation130_spill] sm:$0xff] %v8385_v57  ;;  %v1792_v57 = vld [vmem:[#allocation5 + $0xb0] sm:$0xff] }
 0x310   : > { %2315 = vrot.lane.b32.xlu1 %v2268_v36, %s6653_s22  ;;  %v1058_v36 = vld [vmem:[%s12435_s6 + $0x78] sm:$0xff] }
 0x311   : > { %v6083_v15 = vpack.c.bf16 %v1058_v36, %v1054_v29  ;;  %v8406_v29 = vpop.permute.xlu1 %2479  ;;  %v6087_v36 = vpack.c.bf16 %v1066_v24, %v1062_v31  ;;  %v12853_v24 = vld [vmem:[#allocation132_spill] sm:$0xff] }
 0x312   : > { %12851 = vst [vmem:[#allocation166_spill] sm:$0xff] %v8406_v29  ;;  %v2267_v11 = vmul.f32 %v12854_v60, %v12853_v24 }
 0x313   : > { %6084 = vmatprep.subr.bf16.mxu1 %v6083_v15  ;;  %v6089_v15 = vpack.c.bf16 %v1065_v22, %v1061_v25  ;;  %v1073_v25 = vld [vmem:[%s12435_s6 + $0xf0] sm:$0xff]  ;;  %v1078_v22 = vld [vmem:[%s12435_s6 + $0x118] sm:$0xff] }
 0x314   : > { %2491 = vrot.lane.b32.xlu1 %v2444_v17, %s6648_s28  ;;  %6086 = vmatpush1.bf16.msra.mxu1 %v6085_v9  ;;  %v8414_v17 = vpop.permute.xlu0 %2301  ;;  %v1074_v9 = vld [vmem:[%s12435_s6 + $0xf8] sm:$0xff] }
 0x315   : > { %12852 = vst [vmem:[#allocation167_spill] sm:$0xff] %v8414_v17  ;;  %6088 = vmatprep.subr.bf16.mxu1 %v6087_v36  ;;  %v6091_v35 = vpack.c.bf16 %v1074_v9, %v1070_v52  ;;  %v5859_v52 = vpop.f32.mrb[40].mxu0 }
 0x318   : > { %4115 = vrot.lane.b32.xlu1 %v8219_v50, %s6652_s16  ;;  %6090 = vmatpush1.bf16.msra.mxu1 %v6089_v15  ;;  %v1069_v50 = vld [vmem:[%s12435_s6 + $0xd0] sm:$0xff]  ;;  %v1082_v15 = vld [vmem:[%s12435_s6 + $0x138] sm:$0xff]  ;;  %v8441_v9 = vpop.permute.xlu0 %2477 }
 0x319   : > { %v6093_v36 = vpack.c.bf16 %v1073_v25, %v1069_v50  ;;  %6092 = vmatprep.subr.bf16.mxu1 %v6091_v35  ;;  %12855 = vst [vmem:[#allocation168_spill] sm:$0xff] %v8441_v9  ;;  %v6095_v17 = vpack.c.bf16 %v1082_v15, %v1078_v22  ;;  %v1081_v50 = vld [vmem:[%s12435_s6 + $0x130] sm:$0xff]  ;;  %v5860_v25 = vpop.f32.mrb[41].mxu0  ;;  %v1090_v22 = vld [vmem:[%s12435_s6 + $0x178] sm:$0xff] }
 0x31a   : > { %v946_v31 = vpop.xlane.xlu1 %945  ;;  %v1085_v15 = vld [vmem:[%s12435_s6 + $0x150] sm:$0xff]  ;;  %v5862_v9 = vpop.f32.mrb[42].mxu0 }
 0x31b   : > { %v967_v60 = vmul.f32 0.0078125, %v946_v31  ;;  %v5863_v43 = vpop.f32.mrb[43].mxu0 }
 0x31c   : > { %4119 = vrot.lane.b32.xlu1 %v8265_v13, %s6652_s16  ;;  %6094 = vmatpush1.bf16.msra.mxu1 %v6093_v36  ;;  %v8446_v13 = vld [vmem:[%s12431_s2 + $0x70] sm:$0xff]  ;;  %v1086_v36 = vld [vmem:[%s12435_s6 + $0x158] sm:$0xff]  ;;  %v8471_v44 = vadd.f32 %v5863_v43, %v5862_v9 }
 0x31d   : > { %2313 = vrot.lane.b32.xlu0 %v2267_v11, %s6653_s22  ;;  %v2443_v35 = vmul.f32 %v8446_v13, %v12853_v24  ;;  %v1077_v11 = vld [vmem:[%s12435_s6 + $0x110] sm:$0xff]  ;;  %6096 = vmatprep.subr.bf16.mxu1 %v6095_v17  ;;  %v8466_v24 = vadd.f32 %v5860_v25, %v5859_v52  ;;  %v6099_v17 = vpack.c.bf16 %v1090_v22, %v1086_v36  ;;  %v1106_v25 = vld [vmem:[%s12435_s6 + $0x1f8] sm:$0xff] }
 0x31e   : > { %v6097_v31 = vpack.c.bf16 %v1081_v50, %v1077_v11  ;;  %v1089_v11 = vld [vmem:[%s12435_s6 + $0x170] sm:$0xff]  ;;  %v983_v50 = vadd.f32 1.1920929e-07, %v967_v60  ;;  %v1094_v60 = vld [vmem:[%s12435_s6 + $0x198] sm:$0xff] }
 0x31f   : > { %v6101_v40 = vpack.c.bf16 %v1089_v11, %v1085_v15  ;;  %v1101_v22 = vld [vmem:[%s12435_s6 + $0x1d0] sm:$0xff] }
 0x320   : > { %6098 = vmatpush1.bf16.msra.mxu1 %v6097_v31  ;;  %6321 = vrsqrt.f32 %v983_v50  ;;  %v1105_v15 = vld [vmem:[%s12435_s6 + $0x1f0] sm:$0xff] }
 0x321   : > { %2489 = vrot.lane.b32.xlu0 %v2443_v35, %s6648_s28  ;;  %6100 = vmatprep.subr.bf16.mxu1 %v6099_v17  ;;  %v6109_v17 = vpack.c.bf16 %v1105_v15, %v1101_v22  ;;  %v1775_v22 = vld [vmem:[#allocation5 + $0x28] sm:$0xff] }
 0x322   : > { %v944_v32 = vpop.xlane.xlu0 %943 }
 0x323   : > { %v966_v4 = vmul.f32 0.0078125, %v944_v32  ;;  %v1098_v32 = vld [vmem:[%s12435_s6 + $0x1b8] sm:$0xff] }
 0x324   : > { %6102 = vmatpush1.bf16.msra.mxu1 %v6101_v40  ;;  %v6103_v43 = vpack.c.bf16 %v1098_v32, %v1094_v60 }
 0x325   : > { %v982_v58 = vadd.f32 1.1920929e-07, %v966_v4  ;;  %4113 = vrot.lane.b32.xlu0 %v8238_v37, %s6652_s16  ;;  %v8475_v52 = vpop.f32.mrb[2].mxu1  ;;  %v1093_v4 = vld [vmem:[%s12435_s6 + $0x190] sm:$0xff] }
 0x326   : > { %12856 = vst [vmem:[#allocation169_spill] sm:$0xff] %v8475_v52  ;;  %v8477_v35 = vpop.f32.mrb[3].mxu1  ;;  %v1097_v37 = vld [vmem:[%s12435_s6 + $0x1b0] sm:$0xff]  ;;  %6104 = vmatprep.subr.bf16.mxu1 %v6103_v43  ;;  %v1805_v52 = vld [vmem:[#allocation5 + $0x118] sm:$0xff] }
 0x327   : > { %12857 = vst [vmem:[#allocation170_spill] sm:$0xff] %v8477_v35  ;;  %6323 = vrsqrt.f32 %v982_v58  ;;  %v6105_v9 = vpack.c.bf16 %v1097_v37, %v1093_v4  ;;  %v1102_v58 = vld [vmem:[%s12435_s6 + $0x1d8] sm:$0xff] }
 0x328   : > { %v6107_v36 = vpack.c.bf16 %v1106_v25, %v1102_v58 }
 0x329   : > { %v8491_v40 = vpop.f32.mrb[4].mxu1  ;;  %6106 = vmatpush1.bf16.msra.mxu1 %v6105_v9  ;;  %v8519_v9 = vld [vmem:[%s12438_s9] ss:$0 sm:$0xff] }
 0x32a   : > { %12858 = vst [vmem:[#allocation171_spill] sm:$0xff] %v8491_v40  ;;  %v8493_v31 = vpop.f32.mrb[5].mxu1  ;;  %6108 = vmatprep.subr.bf16.mxu1 %v6107_v36  ;;  %v6322_v60 = vpop.eup %6321  ;;  %v8525_v58 = vadd.f32 %v8291_v27, %v8519_v9  ;;  %v1772_v27 = vld [vmem:[#allocation5 + $0x10] sm:$0xff]  ;;  %v1774_v40 = vld [vmem:[#allocation5 + $0x20] sm:$0xff] }
 0x32b   : > { %12859 = vst [vmem:[#allocation172_spill] sm:$0xff] %v8493_v31  ;;  %v1015_v37 = vmul.f32 %v6322_v60, %v7958_v1  ;;  %v8534_v1 = vadd.f32 %v8289_v34, %v8519_v9  ;;  %v6175_v15 = vpack.c.bf16 %v1775_v22, %v1772_v27  ;;  %v1781_v60 = vld [vmem:[#allocation5 + $0x58] sm:$0xff]  ;;  %v1784_v34 = vld [vmem:[#allocation5 + $0x70] sm:$0xff]  ;;  %v1790_v27 = vld [vmem:[#allocation5 + $0xa0] sm:$0xff] }
 0x32c   : > { %v1636_v25 = vmul.f32 %v8525_v58, %v8525_v58  ;;  %v1793_v22 = vld [vmem:[#allocation5 + $0xb8] sm:$0xff] }
 0x32d   : > { %v8507_v11 = vpop.f32.mrb[6].mxu1  ;;  %6110 = vmatpush1.bf16.msra.mxu1 %v6109_v17  ;;  %v1635_v36 = vmul.f32 %v8534_v1, %v8534_v1  ;;  %6176 = vmatprep.subr.bf16.mxu0 %v6175_v15  ;;  %v1778_v17 = vld [vmem:[#allocation5 + $0x40] sm:$0xff] }
 0x32e   : > { %12860 = vst [vmem:[#allocation173_spill] sm:$0xff] %v8507_v11  ;;  %v8509_v50 = vpop.f32.mrb[7].mxu1  ;;  %6178 = vmatpush3.bf16.msra.mxu0 %v6175_v15  ;;  %v8544_v15 = vpop.permute.xlu0 %2305 }
 0x32f   : > { %12861 = vst [vmem:[#allocation174_spill] sm:$0xff] %v8509_v50  ;;  %12864 = vst [vmem:[#allocation177_spill] sm:$0xff] %v8544_v15  ;;  %v5865_v11 = vpop.f32.mrb[44].mxu0  ;;  %v1802_v15 = vld [vmem:[#allocation5 + $0x100] sm:$0xff] }
 0x331   : > { %v6324_v32 = vpop.eup %6323 }
 0x332   : > { %v1014_v43 = vmul.f32 %v6324_v32, %v7948_v3  ;;  %v8528_v3 = vmul.f32 %v8144_v54, %v1015_v37  ;;  %v6179_v32 = vpack.c.bf16 %v1781_v60, %v1778_v17  ;;  %v1787_v37 = vld [vmem:[#allocation5 + $0x88] sm:$0xff]  ;;  %v6187_v17 = vpack.c.bf16 %v1793_v22, %v1790_v27 }
 0x333   : > { %v6183_v31 = vpack.c.bf16 %v1787_v37, %v1784_v34  ;;  %v1799_v34 = vld [vmem:[#allocation5 + $0xe8] sm:$0xff] }
 0x334   : > { %v8513_v4 = vmul.f32 %v8144_v54, %v1014_v43  ;;  %v8540_v43 = vpop.permute.xlu1 %2307  ;;  %6180 = vmatprep.subr.bf16.mxu0 %v6179_v32 }
 0x335   : > { %12862 = vst [vmem:[#allocation175_spill] sm:$0xff] %v8540_v43  ;;  %6182 = vmatpush3.bf16.msra.mxu0 %v6179_v32  ;;  %v1796_v32 = vld [vmem:[#allocation5 + $0xd0] sm:$0xff] }
 0x336   : > { %1254 = vmatmul.mubr.f32.gmra.mrb[20].mxu1 %v8513_v4  ;;  %6184 = vmatprep.subr.bf16.mxu0 %v6183_v31  ;;  %v6191_v37 = vpack.c.bf16 %v1799_v34, %v1796_v32 }
 0x337   : > { %1259 = vmatprep.mubr.f32.mxu1 %v12823_v33 }
 0x339   : > { %6186 = vmatpush3.bf16.msra.mxu0 %v6183_v31  ;;  %v5866_v31 = vpop.f32.mrb[45].mxu0 }
 0x33a   : > { %1260 = vmatmul.mubr.f32.gmra.mrb[22].mxu1 %v8528_v3  ;;  %6188 = vmatprep.subr.bf16.mxu0 %v6187_v17  ;;  %v5868_v35 = vpop.f32.mrb[46].mxu0  ;;  %v8554_v43 = vadd.f32 %v5866_v31, %v5865_v11  ;;  %v1817_v11 = vld [vmem:[#allocation5 + $0x178] sm:$0xff] }
 0x33b   : > { %1265 = vmatprep.mubr.f32.mxu1 %v12823_v33 }
 0x33d   : > { %6190 = vmatpush3.bf16.msra.mxu0 %v6187_v17 }
 0x33e   : > { %6192 = vmatprep.subr.bf16.mxu0 %v6191_v37 }
 0x340   : > { %1653 = vadd.xlane.f32.xlu1 %v1636_v25  ;;  %v1771_v25 = vld [vmem:[#allocation5 + $0x8] sm:$0xff] }
 0x341   : > { %v6143_v50 = vpack.c.bf16 %v1774_v40, %v1771_v25  ;;  %v8548_v40 = vpop.permute.xlu0 %2481  ;;  %6194 = vmatpush3.bf16.msra.mxu0 %v6191_v37 }
 0x342   : > { %12865 = vst [vmem:[#allocation178_spill] sm:$0xff] %v8548_v40  ;;  %v1811_v40 = vld [vmem:[#allocation5 + $0x148] sm:$0xff] }
 0x343   : > { %6144 = vmatprep.subr.bf16.mxu1 %v6143_v50 }
 0x344   : > { %1651 = vadd.xlane.f32.xlu0 %v1635_v36  ;;  %v8542_v36 = vpop.permute.xlu1 %2483 }
 0x345   : > { %12863 = vst [vmem:[#allocation176_spill] sm:$0xff] %v8542_v36  ;;  %v5869_v36 = vpop.f32.mrb[47].mxu0 }
 0x346   : > { %v8552_v50 = vadd.f32 %v5869_v36, %v5868_v35  ;;  %v5871_v27 = vpop.f32.mrb[48].mxu0 }
 0x347   : > { %v5872_v34 = vpop.f32.mrb[49].mxu0 }
 0x348   : > { %v8556_v37 = vadd.f32 %v5872_v34, %v5871_v27  ;;  %v5874_v61 = vpop.f32.mrb[50].mxu0 }
 0x351   : > { %4123 = vrot.lane.b32.xlu1 %v8315_v23, %s6652_s16  ;;  %v6195_v23 = vpack.c.bf16 %v1805_v52, %v1802_v15 }
 0x353   : > { %v950_v60 = vpop.xlane.xlu1 %949  ;;  %6196 = vmatprep.subr.bf16.mxu0 %v6195_v23 }
 0x354   : > { %v969_v25 = vmul.f32 0.0078125, %v950_v60  ;;  %6198 = vmatpush3.bf16.msra.mxu0 %v6195_v23  ;;  %v1808_v60 = vld [vmem:[#allocation5 + $0x130] sm:$0xff]  ;;  %v1814_v23 = vld [vmem:[#allocation5 + $0x160] sm:$0xff] }
 0x355   : > { %v6199_v52 = vpack.c.bf16 %v1811_v40, %v1808_v60  ;;  %v6203_v27 = vpack.c.bf16 %v1817_v11, %v1814_v23 }
 0x356   : > { %v985_v22 = vadd.f32 1.1920929e-07, %v969_v25 }
 0x357   : > { %6200 = vmatprep.subr.bf16.mxu0 %v6199_v52 }
 0x358   : > { %6325 = vrsqrt.f32 %v985_v22  ;;  %6202 = vmatpush3.bf16.msra.mxu0 %v6199_v52 }
 0x359   : > { %6204 = vmatprep.subr.bf16.mxu0 %v6203_v27 }
 0x35a   : > { %4117 = vrot.lane.b32.xlu0 %v8284_v26, %s6652_s16  ;;  %v5875_v26 = vpop.f32.mrb[51].mxu0 }
 0x35b   : > { %v948_v17 = vpop.xlane.xlu0 %947  ;;  %v8562_v36 = vadd.f32 %v5875_v26, %v5874_v61  ;;  %v5877_v25 = vpop.f32.mrb[52].mxu0 }
 0x35c   : > { %v968_v32 = vmul.f32 0.0078125, %v948_v17  ;;  %v5878_v31 = vpop.f32.mrb[53].mxu0  ;;  %6206 = vmatpush3.bf16.msra.mxu0 %v6203_v27 }
 0x35d   : > { %v8566_v40 = vadd.f32 %v5878_v31, %v5877_v25  ;;  %v8579_v31 = vadd.f32 %v8341_v42, %v8519_v9  ;;  %v8600_v42 = vpop.permute.xlu1 %2311 }
 0x35e   : > { %v984_v15 = vadd.f32 1.1920929e-07, %v968_v32  ;;  %v8558_v29 = vpop.f32.mrb[8].mxu1  ;;  %v5880_v32 = vpop.f32.mrb[54].mxu0  ;;  %12870 = vst [vmem:[#allocation183_spill] sm:$0xff] %v8600_v42 }
 0x35f   : > { %12866 = vst [vmem:[#allocation179_spill] sm:$0xff] %v8558_v29  ;;  %v8560_v35 = vpop.f32.mrb[9].mxu1  ;;  %v5881_v22 = vpop.f32.mrb[55].mxu0 }
 0x360   : > { %12867 = vst [vmem:[#allocation180_spill] sm:$0xff] %v8560_v35  ;;  %6327 = vrsqrt.f32 %v984_v15  ;;  %v8570_v61 = vadd.f32 %v5881_v22, %v5880_v32  ;;  %v5883_v60 = vpop.f32.mrb[56].mxu0 }
 0x361   : > { %v5884_v15 = vpop.f32.mrb[57].mxu0 }
 0x362   : > { %v8564_v17 = vpop.f32.mrb[10].mxu1  ;;  %v8572_v26 = vadd.f32 %v5884_v15, %v5883_v60  ;;  %v5886_v52 = vpop.f32.mrb[58].mxu0 }
 0x363   : > { %12868 = vst [vmem:[#allocation181_spill] sm:$0xff] %v8564_v17  ;;  %v8568_v34 = vpop.f32.mrb[11].mxu1  ;;  %v5887_v35 = vpop.f32.mrb[59].mxu0 }
 0x364   : > { %12869 = vst [vmem:[#allocation182_spill] sm:$0xff] %v8568_v34  ;;  %v6326_v29 = vpop.eup %6325  ;;  %v8574_v23 = vadd.f32 %v5887_v35, %v5886_v52  ;;  %v8589_v35 = vadd.f32 %v8338_v12, %v8519_v9  ;;  %v8604_v12 = vpop.permute.xlu1 %2487 }
 0x365   : > { %v1017_v32 = vmul.f32 %v6326_v29, %v7986_v10  ;;  %12871 = vst [vmem:[#allocation184_spill] sm:$0xff] %v8604_v12  ;;  %v8606_v29 = vpop.permute.xlu0 %2309 }
 0x366   : > { %v1637_v10 = vmul.f32 %v8589_v35, %v8589_v35  ;;  %12872 = vst [vmem:[#allocation185_spill] sm:$0xff] %v8606_v29 }
 0x367   : > { %v8592_v22 = vmul.f32 %v8144_v54, %v1017_v32 }
 0x369   : > { %v8610_v15 = vpop.permute.xlu0 %2485 }
 0x36a   : > { %v6328_v11 = vpop.eup %6327  ;;  %12873 = vst [vmem:[#allocation186_spill] sm:$0xff] %v8610_v15  ;;  %v1782_v15 = vld [vmem:[#allocation5 + $0x60] sm:$0xff] }
 0x36b   : > { %v1016_v25 = vmul.f32 %v6328_v11, %v12839_v62  ;;  %v1638_v62 = vmul.f32 %v8579_v31, %v8579_v31 }
 0x36d   : > { %v8582_v27 = vmul.f32 %v8144_v54, %v1016_v25 }
 0x36f   : > { %1266 = vmatmul.mubr.f32.gmra.mrb[24].mxu1 %v8582_v27 }
 0x370   : > { %1271 = vmatprep.mubr.f32.mxu1 %v12823_v33 }
 0x373   : > { %1272 = vmatmul.mubr.f32.gmra.mrb[26].mxu1 %v8592_v22 }
 0x374   : > { %1277 = vmatprep.mubr.f32.mxu1 %v12823_v33 }
 0x375   : > { %1657 = vadd.xlane.f32.xlu1 %v1638_v62 }
 0x379   : > { %1655 = vadd.xlane.f32.xlu0 %v1637_v10 }
 0x386   : > { %4127 = vrot.lane.b32.xlu1 %v8381_v45, %s6652_s16  ;;  %v5889_v45 = vpop.f32.mrb[60].mxu0 }
 0x387   : > { %v5890_v17 = vpop.f32.mrb[61].mxu0 }
 0x388   : > { %v8618_v12 = vadd.f32 %v5890_v17, %v5889_v45 }
 0x38a   : > { %12877 = vst [vmem:[#allocation190_spill] sm:$0xff] %v8618_v12  ;;  %v1785_v12 = vld [vmem:[#allocation5 + $0x78] sm:$0xff] }
 0x38c   : > { %v954_v60 = vpop.xlane.xlu1 %953 }
 0x38d   : > { %v971_v52 = vmul.f32 0.0078125, %v954_v60 }
 0x38f   : > { %4121 = vrot.lane.b32.xlu0 %v8334_v2, %s6652_s16  ;;  %v987_v11 = vadd.f32 1.1920929e-07, %v971_v52  ;;  %v5892_v2 = vpop.f32.mrb[62].mxu0 }
 0x390   : > { %v5893_v60 = vpop.f32.mrb[63].mxu0 }
 0x391   : > { %6329 = vrsqrt.f32 %v987_v11  ;;  %v8622_v52 = vadd.f32 %v5893_v60, %v5892_v2  ;;  %v1773_v60 = vld [vmem:[#allocation5 + $0x18] sm:$0xff] }
 0x394   : > { %v952_v25 = vpop.xlane.xlu0 %951 }
 0x395   : > { %v970_v32 = vmul.f32 0.0078125, %v952_v25 }
 0x397   : > { %v986_v62 = vadd.f32 1.1920929e-07, %v970_v32  ;;  %v8612_v10 = vpop.f32.mrb[12].mxu1  ;;  %v8626_v32 = vadd.f32 %v8471_v44, %v8519_v9 }
 0x398   : > { %12874 = vst [vmem:[#allocation187_spill] sm:$0xff] %v8612_v10  ;;  %v8614_v34 = vpop.f32.mrb[13].mxu1  ;;  %v1776_v10 = vld [vmem:[#allocation5 + $0x30] sm:$0xff] }
 0x399   : > { %12875 = vst [vmem:[#allocation188_spill] sm:$0xff] %v8614_v34  ;;  %6331 = vrsqrt.f32 %v986_v62  ;;  %v8631_v34 = vadd.f32 %v8466_v24, %v8519_v9  ;;  %v1640_v45 = vmul.f32 %v8626_v32, %v8626_v32  ;;  %v1770_v24 = vld [vmem:[#allocation5] sm:$0xff] }
 0x39b   : > { %v8616_v29 = vpop.f32.mrb[14].mxu1  ;;  %v6330_v25 = vpop.eup %6329  ;;  %12879 = vst [vmem:[#allocation192_spill] sm:$0xff] %v8631_v34 }
 0x39c   : > { %12876 = vst [vmem:[#allocation189_spill] sm:$0xff] %v8616_v29  ;;  %v8620_v42 = vpop.f32.mrb[15].mxu1  ;;  %v1019_v2 = vmul.f32 %v6330_v25, %v8008_v21  ;;  %v6145_v21 = vpack.c.bf16 %v1773_v60, %v1770_v24  ;;  %v1786_v29 = vld [vmem:[#allocation5 + $0x80] sm:$0xff]  ;;  %v1788_v60 = vld [vmem:[#allocation5 + $0x90] sm:$0xff] }
 0x39d   : > { %12878 = vst [vmem:[#allocation191_spill] sm:$0xff] %v8620_v42  ;;  %v1779_v42 = vld [vmem:[#allocation5 + $0x48] sm:$0xff] }
 0x39e   : > { %v8642_v44 = vmul.f32 %v8144_v54, %v1019_v2 }
 0x3a3   : > { %v6332_v11 = vpop.eup %6331 }
 0x3a4   : > { %v1018_v62 = vmul.f32 %v6332_v11, %v12848_v19  ;;  %v1639_v19 = vmul.f32 %v8631_v34, %v8631_v34  ;;  %v1777_v11 = vld [vmem:[#allocation5 + $0x38] sm:$0xff] }
 0x3a5   : > { %v1789_v34 = vld [vmem:[#allocation5 + $0x98] sm:$0xff] }
 0x3a6   : > { %v8634_v17 = vmul.f32 %v8144_v54, %v1018_v62  ;;  %v1780_v62 = vld [vmem:[#allocation5 + $0x50] sm:$0xff]  ;;  %v6149_v54 = vpack.c.bf16 %v1779_v42, %v1776_v10  ;;  %v6155_v24 = vpack.c.bf16 %v1792_v57, %v1789_v34  ;;  %v8653_v42 = vpop.permute.xlu1 %2315  ;;  %v1794_v10 = vld [vmem:[#allocation5 + $0xc0] sm:$0xff]  ;;  %v8659_v57 = vld [vmem:[%s12670_s1 + $0x8] sm:$0xff] }
 0x3a7   : > { %v6147_v25 = vpack.c.bf16 %v1780_v62, %v1777_v11  ;;  %v1795_v11 = vld [vmem:[#allocation5 + $0xc8] sm:$0xff]  ;;  %v1798_v62 = vld [vmem:[#allocation5 + $0xe0] sm:$0xff]  ;;  %v1801_v34 = vld [vmem:[#allocation5 + $0xf8] sm:$0xff] }
 0x3a8   : > { %1278 = vmatmul.mubr.f32.gmra.mrb[28].mxu1 %v8634_v17 }
 0x3a9   : > { %1283 = vmatprep.mubr.f32.mxu1 %v12823_v33 }
 0x3aa   : > { %1661 = vadd.xlane.f32.xlu1 %v1640_v45  ;;  %v1783_v45 = vld [vmem:[#allocation5 + $0x68] sm:$0xff] }
 0x3ab   : > { %v6151_v2 = vpack.c.bf16 %v1786_v29, %v1783_v45  ;;  %v1803_v45 = vld [vmem:[#allocation5 + $0x108] sm:$0xff] }
 0x3ac   : > { %1284 = vmatmul.mubr.f32.gmra.mrb[30].mxu1 %v8642_v44 }
 0x3ad   : > { %1354 = vmatprep.mubr.f32.mxu1 %v12823_v33 }
 0x3ae   : > { %1659 = vadd.xlane.f32.xlu0 %v1639_v19  ;;  %v6153_v19 = vpack.c.bf16 %v1785_v12, %v1782_v15 }
 0x3b0   : > { %1355 = vmatmul.mubr.f32.vlgmr.msra.gmra.mrb[32].mxu1 %v8151_v16  ;;  %v1791_v16 = vld [vmem:[#allocation5 + $0xa8] sm:$0xff] }
 0x3b1   : > { %1360 = vmatprep.mubr.f32.mxu1 %v12823_v33  ;;  %6146 = vmatpush1.bf16.msra.mxu1 %v6145_v21  ;;  %v6157_v29 = vpack.c.bf16 %v1791_v16, %v1788_v60  ;;  %v1797_v21 = vld [vmem:[#allocation5 + $0xd8] sm:$0xff]  ;;  %v1806_v16 = vld [vmem:[#allocation5 + $0x120] sm:$0xff] }
 0x3b2   : > { %6148 = vmatprep.subr.bf16.mxu1 %v6147_v25  ;;  %v6161_v12 = vpack.c.bf16 %v1797_v21, %v1794_v10  ;;  %v1800_v25 = vld [vmem:[#allocation5 + $0xf0] sm:$0xff] }
 0x3b3   : > { %v1812_v21 = vld [vmem:[#allocation5 + $0x150] sm:$0xff] }
 0x3b4   : > { %1361 = vmatmul.mubr.f32.gmra.mrb[34].mxu1 %v8195_v39  ;;  %v6159_v39 = vpack.c.bf16 %v1798_v62, %v1795_v11  ;;  %v1809_v11 = vld [vmem:[#allocation5 + $0x138] sm:$0xff] }
 0x3b5   : > { %1366 = vmatprep.mubr.f32.mxu1 %v12823_v33  ;;  %6150 = vmatpush1.bf16.msra.mxu1 %v6149_v54  ;;  %v8665_v54 = vpop.permute.xlu1 %2491 }
 0x3b6   : > { %6152 = vmatprep.subr.bf16.mxu1 %v6151_v2  ;;  %v1807_v2 = vld [vmem:[#allocation5 + $0x128] sm:$0xff] }
 0x3b8   : > { %1367 = vmatmul.mubr.f32.gmra.mrb[36].mxu1 %v8201_v20  ;;  %v1804_v20 = vld [vmem:[#allocation5 + $0x110] sm:$0xff] }
 0x3b9   : > { %1372 = vmatprep.mubr.f32.mxu1 %v12823_v33  ;;  %6154 = vmatpush1.bf16.msra.mxu1 %v6153_v19  ;;  %v6163_v15 = vpack.c.bf16 %v1804_v20, %v1801_v34  ;;  %v1810_v19 = vld [vmem:[#allocation5 + $0x140] sm:$0xff]  ;;  %v8671_v62 = vpop.permute.xlu1 %4115  ;;  %v1815_v34 = vld [vmem:[#allocation5 + $0x168] sm:$0xff] }
 0x3ba   : > { %6156 = vmatprep.subr.bf16.mxu1 %v6155_v24  ;;  %v8668_v24 = vpop.permute.xlu0 %2313  ;;  %v6167_v60 = vpack.c.bf16 %v1810_v19, %v1807_v2  ;;  %12880 = vst [vmem:[#allocation193_spill] sm:$0xff] %v8671_v62  ;;  %v12950_v62 = vld [vmem:[#allocation186_spill] sm:$0xff] }
 0x3bb   : > { %4243 = vrot.lane.b32.xlu1 %v8659_v57, %s6652_s16 }
 0x3bc   : > { %1373 = vmatmul.mubr.f32.gmra.mrb[38].mxu1 %v8209_v7  ;;  %v6165_v7 = vpack.c.bf16 %v1803_v45, %v1800_v25 }
 0x3bd   : > { %1378 = vmatprep.mubr.f32.mxu1 %v12823_v33  ;;  %6158 = vmatpush1.bf16.msra.mxu1 %v6157_v29  ;;  %v1813_v29 = vld [vmem:[#allocation5 + $0x158] sm:$0xff] }
 0x3be   : > { %6160 = vmatprep.subr.bf16.mxu1 %v6159_v39  ;;  %v1816_v39 = vld [vmem:[#allocation5 + $0x170] sm:$0xff]  ;;  %v8677_v20 = vpop.permute.xlu0 %2489 }
 0x3bf   : > { %v6171_v10 = vpack.c.bf16 %v1816_v39, %v1813_v29 }
 0x3c0   : > { %1379 = vmatmul.mubr.f32.gmra.mrb[40].mxu1 %v8247_v63  ;;  %v6169_v63 = vpack.c.bf16 %v1809_v11, %v1806_v16  ;;  %v8707_v11 = vadd.f32 %v8554_v43, %v8519_v9 }
 0x3c1   : > { %1384 = vmatprep.mubr.f32.mxu1 %v12823_v33  ;;  %6162 = vmatpush1.bf16.msra.mxu1 %v6161_v12  ;;  %v8680_v12 = vpop.permute.xlu1 %4119 }
 0x3c2   : > { %6164 = vmatprep.subr.bf16.mxu1 %v6163_v15  ;;  %12881 = vst [vmem:[#allocation194_spill] sm:$0xff] %v8680_v12 }
 0x3c4   : > { %4125 = vrot.lane.b32.xlu0 %v8446_v13, %s6652_s16  ;;  %1385 = vmatmul.mubr.f32.gmra.mrb[42].mxu1 %v8253_v55  ;;  %v6173_v13 = vpack.c.bf16 %v1815_v34, %v1812_v21  ;;  %v8684_v55 = vpop.permute.xlu0 %4113 }
 0x3c5   : > { %1390 = vmatprep.mubr.f32.mxu1 %v12823_v33  ;;  %6166 = vmatpush1.bf16.msra.mxu1 %v6165_v7  ;;  %12882 = vst [vmem:[#allocation195_spill] sm:$0xff] %v8684_v55 }
 0x3c6   : > { %6168 = vmatprep.subr.bf16.mxu1 %v6167_v60 }
 0x3c8   : > { %1391 = vmatmul.mubr.f32.gmra.mrb[44].mxu1 %v8297_v14 }
 0x3c9   : > { %1396 = vmatprep.mubr.f32.mxu1 %v12823_v33  ;;  %6170 = vmatpush1.bf16.msra.mxu1 %v6169_v63 }
 0x3ca   : > { %6172 = vmatprep.subr.bf16.mxu1 %v6171_v10  ;;  %v8736_v10 = vadd.f32 %v8574_v23, %v8519_v9  ;;  %v12883_v23 = vld [vmem:[#allocation103_spill] sm:$0xff] }
 0x3cc   : > { %1397 = vmatmul.mubr.f32.gmra.mrb[46].mxu1 %v8303_v56 }
 0x3cd   : > { %v1654_v15 = vpop.xlane.xlu1 %1653  ;;  %1402 = vmatprep.mubr.f32.mxu1 %v12823_v33  ;;  %6174 = vmatpush1.bf16.msra.mxu1 %v6173_v13 }
 0x3ce   : > { %v1684_v25 = vmul.f32 0.0078125, %v1654_v15 }
 0x3d0   : > { %v1700_v45 = vadd.f32 1.1920929e-07, %v1684_v25  ;;  %v8687_v2 = vpop.f32.mrb[16].mxu1  ;;  %1403 = vmatmul.mubr.f32.gmra.mrb[48].mxu1 %v8351_v49  ;;  %v8701_v49 = vadd.f32 %v8552_v50, %v8519_v9  ;;  %v1641_v50 = vmul.f32 %v8707_v11, %v8707_v11 }
 0x3d1   : > { %v8690_v14 = vpop.f32.mrb[17].mxu1  ;;  %v1652_v19 = vpop.xlane.xlu0 %1651  ;;  %1408 = vmatprep.mubr.f32.mxu1 %v12823_v33 }
 0x3d2   : > { %v1683_v7 = vmul.f32 0.0078125, %v1652_v19  ;;  %6333 = vrsqrt.f32 %v1700_v45  ;;  %v1642_v29 = vmul.f32 %v8701_v49, %v8701_v49  ;;  %v8763_v25 = vpop.permute.xlu1 %4123 }
 0x3d3   : > { %12885 = vst [vmem:[#allocation103_spill] sm:$0xff] %v8763_v25 }
 0x3d4   : > { %v1699_v56 = vadd.f32 1.1920929e-07, %v1683_v7  ;;  %v8693_v60 = vpop.f32.mrb[18].mxu1  ;;  %1409 = vmatmul.mubr.f32.gmra.mrb[50].mxu1 %v8357_v28  ;;  %v8711_v28 = vadd.f32 %v8562_v36, %v8519_v9 }
 0x3d5   : > { %v8696_v16 = vpop.f32.mrb[19].mxu1  ;;  %1414 = vmatprep.mubr.f32.mxu1 %v12823_v33 }
 0x3d6   : > { %6335 = vrsqrt.f32 %v1699_v56  ;;  %v1644_v43 = vmul.f32 %v8711_v28, %v8711_v28 }
 0x3d8   : > { %1415 = vmatmul.mubr.f32.gmra.mrb[52].mxu1 %v8513_v4  ;;  %v8719_v4 = vadd.f32 %v8570_v61, %v8519_v9  ;;  %v8732_v61 = vld [vmem:[%s12439_s10] ss:$0 sm:$0xff] }
 0x3d9   : > { %1420 = vmatprep.mubr.f32.mxu1 %v12823_v33 }
 0x3dc   : > { %1421 = vmatmul.mubr.f32.gmra.mrb[54].mxu1 %v8528_v3  ;;  %v6334_v39 = vpop.eup %6333 }
 0x3dd   : > { %1426 = vmatprep.mubr.f32.mxu1 %v12823_v33  ;;  %v1732_v63 = vmul.f32 %v6334_v39, %v8525_v58  ;;  %v1646_v58 = vmul.f32 %v8719_v4, %v8719_v4 }
 0x3df   : > { %1665 = vadd.xlane.f32.xlu1 %v1642_v29 }
 0x3e0   : > { %v6336_v36 = vpop.eup %6335  ;;  %1427 = vmatmul.mubr.f32.gmra.mrb[56].mxu1 %v8582_v27  ;;  %v1648_v27 = vmul.f32 %v8736_v10, %v8736_v10 }
 0x3e1   : > { %1432 = vmatprep.mubr.f32.mxu1 %v12823_v33  ;;  %v1731_v3 = vmul.f32 %v6336_v36, %v8534_v1  ;;  %v1755_v1 = vmul.f32 %v8732_v61, %v1732_v63  ;;  %v8778_v63 = vadd.f32 %v8556_v37, %v8519_v9 }
 0x3e3   : > { %1669 = vadd.xlane.f32.xlu1 %v1644_v43  ;;  %1663 = vadd.xlane.f32.xlu0 %v1641_v50  ;;  %v1754_v21 = vmul.f32 %v8732_v61, %v1731_v3  ;;  %v8782_v3 = vadd.f32 %v8566_v40, %v8519_v9 }
 0x3e4   : > { %1433 = vmatmul.mubr.f32.gmra.mrb[58].mxu1 %v8592_v22  ;;  %v2174_v22 = vmul.f32 %v8659_v57, %v12883_v23  ;;  %v8766_v57 = vpop.permute.xlu0 %4117 }
 0x3e5   : > { %5959 = vmatprep.mubr.f32.mxu0 %v1754_v21  ;;  %1438 = vmatprep.mubr.f32.mxu1 %v12823_v33  ;;  %12886 = vst [vmem:[#allocation196_spill] sm:$0xff] %v8766_v57 }
 0x3e6   : > { %5960 = vmatmul.mubr.f32.vlgmr.msra.gmra.mrb[64].mxu0 %v1755_v1  ;;  %v2334_v34 = vsub.f32 %v2174_v22, %v8169_v47  ;;  %v1645_v22 = vmul.f32 %v8782_v3, %v8782_v3 }
 0x3e7   : > { %1673 = vadd.xlane.f32.xlu1 %v1646_v58 }
 0x3e8   : > { %1439 = vmatmul.mubr.f32.gmra.mrb[60].mxu1 %v8634_v17  ;;  %v6380_v17 = vld [vmem:[%s12670_s1] sm:$0xff] }
 0x3e9   : > { %1444 = vmatprep.mubr.f32.mxu1 %v12823_v33 }
 0x3eb   : > { %1677 = vadd.xlane.f32.xlu1 %v1648_v27 }
 0x3ec   : > { %1445 = vmatmul.mubr.f32.gmra.mrb[62].mxu1 %v8642_v44  ;;  %v12884_v44 = vld [vmem:[#allocation53_spill] sm:$0xff] }
 0x3ed   : > { %1899 = vmatprep.mubr.f32.mxu1 %v12823_v33  ;;  %v2414_v13 = vmul.f32 %v12884_v44, %v12883_v23  ;;  %v8790_v23 = vadd.f32 %v8572_v26, %v8519_v9 }
 0x3ef   : > { %v2510_v15 = vadd.f32 %v8177_v48, %v2414_v13  ;;  %v1647_v26 = vmul.f32 %v8790_v23, %v8790_v23  ;;  %v12887_v13 = vld [vmem:[#allocation110_spill] sm:$0xff] }
 0x3f0   : > { %1900 = vmatmul.mubr.f32.vlgmr.msra.gmra.mrb[64].mxu1 %v1754_v21 }
 0x3f1   : > { %1905 = vmatprep.mubr.f32.mxu1 %v12823_v33 }
 0x3f4   : > { %1906 = vmatmul.mubr.f32.gmra.mrb[66].mxu1 %v1755_v1  ;;  %v1643_v1 = vmul.f32 %v8778_v63, %v8778_v63 }
 0x3f5   : > { %1911 = vmatprep.mubr.f32.mxu1 %v12823_v33 }
 0x3f9   : > { %4241 = vrot.lane.b32.xlu0 %v6380_v17, %s6652_s16 }
 0x3fc   : > { %2767 = vrot.lane.b32.xlu1 %v2334_v34, %s12646_s24  ;;  %v8809_v34 = vld [vmem:[%s12670_s1 + $0x18] sm:$0xff] }
 0x400   : > { %2831 = vrot.lane.b32.xlu1 %v2510_v15, %s12646_s24  ;;  %v2173_v15 = vmul.f32 %v6380_v17, %v12887_v13 }
 0x402   : > { %v1658_v45 = vpop.xlane.xlu1 %1657 }
 0x403   : > { %v1686_v19 = vmul.f32 0.0078125, %v1658_v45 }
 0x405   : > { %v1702_v7 = vadd.f32 1.1920929e-07, %v1686_v19 }
 0x406   : > { %v1656_v56 = vpop.xlane.xlu0 %1655  ;;  %v8815_v19 = vpop.permute.xlu1 %4127 }
 0x407   : > { %v1685_v29 = vmul.f32 0.0078125, %v1656_v56  ;;  %6337 = vrsqrt.f32 %v1702_v7  ;;  %12888 = vst [vmem:[#allocation110_spill] sm:$0xff] %v8815_v19  ;;  %v2333_v7 = vsub.f32 %v2173_v15, %v8179_v53  ;;  %v12889_v56 = vld [vmem:[#allocation55_spill] sm:$0xff] }
 0x408   : > { %v8831_v53 = vld [vmem:[%s12670_s1 + $0x28] sm:$0xff] }
 0x409   : > { %v1701_v47 = vadd.f32 1.1920929e-07, %v1685_v29  ;;  %v8768_v39 = vpop.f32.mrb[20].mxu1  ;;  %v2416_v29 = vmul.f32 %v12889_v56, %v8017_v59 }
 0x40a   : > { %v8770_v43 = vpop.f32.mrb[21].mxu1 }
 0x40b   : > { %6339 = vrsqrt.f32 %v1701_v47  ;;  %v12890_v47 = vld [vmem:[#allocation44_spill] sm:$0xff] }
 0x40d   : > { %v8772_v50 = vpop.f32.mrb[22].mxu1 }
 0x40e   : > { %v8774_v48 = vpop.f32.mrb[23].mxu1 }
 0x411   : > { %v6338_v36 = vpop.eup %6337 }
 0x412   : > { %v1734_v58 = vmul.f32 %v6338_v36, %v8579_v31  ;;  %v8799_v31 = vadd.f32 %v8622_v52, %v8519_v9  ;;  %v2176_v52 = vmul.f32 %v8809_v34, %v8017_v59  ;;  %v2413_v36 = vmul.f32 %v12890_v47, %v12887_v13 }
 0x413   : > { %v2178_v59 = vmul.f32 %v8831_v53, %v7864_v30 }
 0x414   : > { %v1757_v40 = vmul.f32 %v8732_v61, %v1734_v58  ;;  %v2336_v45 = vsub.f32 %v2176_v52, %v8223_v5  ;;  %v8825_v58 = vpop.permute.xlu0 %4121  ;;  %v2509_v5 = vadd.f32 %v8184_v38, %v2413_v36  ;;  %v12892_v38 = vld [vmem:[#allocation57_spill] sm:$0xff] }
 0x415   : > { %v6340_v21 = vpop.eup %6339  ;;  %12891 = vst [vmem:[#allocation197_spill] sm:$0xff] %v8825_v58  ;;  %v8845_v52 = vld [vmem:[%s12670_s1 + $0x38] sm:$0xff] }
 0x416   : > { %v1733_v27 = vmul.f32 %v6340_v21, %v8589_v35  ;;  %v1650_v35 = vmul.f32 %v8799_v31, %v8799_v31  ;;  %v2512_v21 = vadd.f32 %v8226_v46, %v2416_v29  ;;  %v2338_v46 = vsub.f32 %v2178_v59, %v8269_v18 }
 0x417   : > { %v2180_v18 = vmul.f32 %v8845_v52, %v7924_v8 }
 0x418   : > { %1667 = vadd.xlane.f32.xlu0 %v1643_v1  ;;  %v1756_v37 = vmul.f32 %v8732_v61, %v1733_v27 }
 0x41a   : > { %1912 = vmatmul.mubr.f32.gmra.mrb[68].mxu1 %v1756_v37  ;;  %5962 = vmatprep.mubr.f32.mxu0 %v1756_v37 }
 0x41b   : > { %5963 = vmatmul.mubr.f32.gmra.mrb[66].mxu0 %v1757_v40  ;;  %1917 = vmatprep.mubr.f32.mxu1 %v12823_v33 }
 0x41c   : > { %1671 = vadd.xlane.f32.xlu0 %v1645_v22 }
 0x41e   : > { %1918 = vmatmul.mubr.f32.gmra.mrb[70].mxu1 %v1757_v40  ;;  %v2418_v40 = vmul.f32 %v12892_v38, %v7864_v30  ;;  %v2340_v30 = vsub.f32 %v2180_v18, %v8319_v0  ;;  %v12898_v18 = vld [vmem:[#allocation123_spill] sm:$0xff] }
 0x41f   : > { %1923 = vmatprep.mubr.f32.mxu1 %v12823_v33 }
 0x420   : > { %1675 = vadd.xlane.f32.xlu0 %v1647_v26 }
 0x424   : > { %1681 = vadd.xlane.f32.xlu1 %v1650_v35  ;;  %v2514_v35 = vadd.f32 %v8272_v41, %v2418_v40 }
 0x435   : > { %2771 = vrot.lane.b32.xlu1 %v2336_v45, %s12646_s24  ;;  %v12893_v45 = vld [vmem:[#allocation59_spill] sm:$0xff] }
 0x436   : > { %2765 = vrot.lane.b32.xlu0 %v2333_v7, %s12646_s24  ;;  %v2420_v41 = vmul.f32 %v12893_v45, %v7924_v8  ;;  %v12924_v45 = vld [vmem:[#allocation32_spill] sm:$0xff] }
 0x437   : > { %v1662_v17 = vpop.xlane.xlu1 %1661 }
 0x438   : > { %v1688_v1 = vmul.f32 0.0078125, %v1662_v17  ;;  %v2516_v36 = vadd.f32 %v8322_v51, %v2420_v41  ;;  %v8866_v17 = vld [vmem:[%s12670_s1 + $0x48] sm:$0xff]  ;;  %v12896_v51 = vld [vmem:[#allocation61_spill] sm:$0xff] }
 0x439   : > { %2835 = vrot.lane.b32.xlu1 %v2512_v21, %s12646_s24  ;;  %v2182_v0 = vmul.f32 %v8866_v17, %v7941_v6 }
 0x43a   : > { %v1704_v27 = vadd.f32 1.1920929e-07, %v1688_v1  ;;  %2829 = vrot.lane.b32.xlu0 %v2509_v5, %s12646_s24  ;;  %v12894_v1 = vld [vmem:[#allocation130_spill] sm:$0xff] }
 0x43b   : > { %v1660_v37 = vpop.xlane.xlu0 %1659  ;;  %v2342_v59 = vsub.f32 %v2182_v0, %v12894_v1  ;;  %v12901_v0 = vld [vmem:[#allocation63_spill] sm:$0xff]  ;;  %v12902_v1 = vld [vmem:[#allocation176_spill] sm:$0xff] }
 0x43c   : > { %v1687_v22 = vmul.f32 0.0078125, %v1660_v37  ;;  %6341 = vrsqrt.f32 %v1704_v27  ;;  %v12895_v27 = vld [vmem:[#allocation192_spill] sm:$0xff]  ;;  %v2422_v37 = vmul.f32 %v12896_v51, %v7941_v6 }
 0x43d   : > { %2775 = vrot.lane.b32.xlu1 %v2338_v46, %s12646_s24 }
 0x43e   : > { %v1703_v26 = vadd.f32 1.1920929e-07, %v1687_v22 }
 0x440   : > { %6343 = vrsqrt.f32 %v1703_v26  ;;  %v12897_v26 = vld [vmem:[#allocation166_spill] sm:$0xff] }
 0x441   : > { %2839 = vrot.lane.b32.xlu1 %v2514_v35, %s12646_s24  ;;  %v2518_v35 = vadd.f32 %v12897_v26, %v2422_v37  ;;  %v12904_v37 = vld [vmem:[#allocation183_spill] sm:$0xff] }
 0x442   : > { %v8850_v13 = vpop.f32.mrb[24].mxu1 }
 0x443   : > { %v8853_v15 = vpop.f32.mrb[25].mxu1 }
 0x445   : > { %2779 = vrot.lane.b32.xlu1 %v2340_v30, %s12646_s24  ;;  %v12899_v30 = vld [vmem:[#allocation190_spill] sm:$0xff] }
 0x446   : > { %v8858_v7 = vpop.f32.mrb[26].mxu1  ;;  %v6342_v29 = vpop.eup %6341  ;;  %v8890_v41 = vadd.f32 %v12899_v30, %v8519_v9  ;;  %v8904_v9 = vld [vmem:[%s12670_s1 + $0x68] sm:$0xff]  ;;  %v12907_v30 = vld [vmem:[#allocation134_spill] sm:$0xff] }
 0x447   : > { %v8861_v21 = vpop.f32.mrb[27].mxu1  ;;  %v1736_v5 = vmul.f32 %v6342_v29, %v8626_v32  ;;  %v8884_v32 = vld [vmem:[%s12670_s1 + $0x58] sm:$0xff]  ;;  %v12900_v29 = vld [vmem:[#allocation175_spill] sm:$0xff] }
 0x448   : > { %v2184_v6 = vmul.f32 %v8884_v32, %v12898_v18 }
 0x449   : > { %2843 = vrot.lane.b32.xlu1 %v2516_v36, %s12646_s24  ;;  %v1759_v40 = vmul.f32 %v8732_v61, %v1736_v5  ;;  %v1649_v5 = vmul.f32 %v8890_v41, %v8890_v41 }
 0x44a   : > { %v6344_v8 = vpop.eup %6343  ;;  %v2344_v36 = vsub.f32 %v2184_v6, %v12900_v29  ;;  %v8917_v6 = vld [vmem:[%s12670_s1 + $0x78] sm:$0xff] }
 0x44b   : > { %v1735_v46 = vmul.f32 %v6344_v8, %v12895_v27  ;;  %v2424_v8 = vmul.f32 %v12901_v0, %v12898_v18  ;;  %v12903_v27 = vld [vmem:[#allocation129_spill] sm:$0xff]  ;;  %v2188_v29 = vmul.f32 %v8917_v6, %v12907_v30  ;;  %v12927_v0 = vld [vmem:[#allocation170_spill] sm:$0xff] }
 0x44d   : > { %2783 = vrot.lane.b32.xlu1 %v2342_v59, %s12646_s24  ;;  %v1758_v22 = vmul.f32 %v8732_v61, %v1735_v46  ;;  %v2520_v59 = vadd.f32 %v12902_v1, %v2424_v8  ;;  %v2186_v46 = vmul.f32 %v8904_v9, %v12903_v27  ;;  %v12908_v8 = vld [vmem:[#allocation67_spill] sm:$0xff] }
 0x44f   : > { %1924 = vmatmul.mubr.f32.gmra.mrb[72].mxu1 %v1758_v22  ;;  %5965 = vmatprep.mubr.f32.mxu0 %v1758_v22  ;;  %v2346_v22 = vsub.f32 %v2186_v46, %v12904_v37  ;;  %v12910_v46 = vld [vmem:[#allocation105_spill] sm:$0xff] }
 0x450   : > { %5966 = vmatmul.mubr.f32.gmra.mrb[68].mxu0 %v1759_v40  ;;  %1929 = vmatprep.mubr.f32.mxu1 %v12823_v33 }
 0x451   : > { %2847 = vrot.lane.b32.xlu1 %v2518_v35, %s12646_s24  ;;  %v12906_v35 = vld [vmem:[#allocation184_spill] sm:$0xff] }
 0x453   : > { %1930 = vmatmul.mubr.f32.gmra.mrb[74].mxu1 %v1759_v40  ;;  %v12905_v40 = vld [vmem:[#allocation65_spill] sm:$0xff] }
 0x454   : > { %1935 = vmatprep.mubr.f32.mxu1 %v12823_v33  ;;  %v2426_v26 = vmul.f32 %v12905_v40, %v12903_v27  ;;  %v8933_v27 = vld [vmem:[%s12670_s1 + $0x10] sm:$0xff]  ;;  %v12923_v40 = vld [vmem:[#allocation94_spill] sm:$0xff] }
 0x455   : > { %2787 = vrot.lane.b32.xlu1 %v2344_v36, %s12646_s24  ;;  %v2348_v36 = vsub.f32 %v2188_v29, %v8653_v42  ;;  %v2175_v37 = vmul.f32 %v8933_v27, %v12910_v46  ;;  %v8937_v42 = vpop.permute.xlu0 %4125  ;;  %v1123_v56 = vsub.s32 3, %v12923_v40 }
 0x456   : > { %v2522_v18 = vadd.f32 %v12906_v35, %v2426_v26  ;;  %12911 = vst [vmem:[#allocation192_spill] sm:$0xff] %v8937_v42  ;;  %v12912_v26 = vld [vmem:[#allocation27_spill] sm:$0xff] }
 0x457   : > { %v2335_v35 = vsub.f32 %v2175_v37, %v12912_v26  ;;  %v12915_v37 = vld [vmem:[#allocation109_spill] sm:$0xff] }
 0x459   : > { %2851 = vrot.lane.b32.xlu1 %v2520_v59, %s12646_s24  ;;  %1679 = vadd.xlane.f32.xlu0 %v1649_v5  ;;  %v2428_v5 = vmul.f32 %v12908_v8, %v12907_v30  ;;  %v8927_v59 = vpop.permute.xlu1 %4243 }
 0x45a   : > { %12909 = vst [vmem:[#allocation130_spill] sm:$0xff] %v8927_v59 }
 0x45b   : > { %v2524_v1 = vadd.f32 %v8665_v54, %v2428_v5  ;;  %v12913_v54 = vld [vmem:[#allocation46_spill] sm:$0xff] }
 0x45c   : > { %v2415_v30 = vmul.f32 %v12913_v54, %v12910_v46  ;;  %v12926_v54 = vld [vmem:[#allocation169_spill] sm:$0xff] }
 0x45d   : > { %2791 = vrot.lane.b32.xlu1 %v2346_v22, %s12646_s24 }
 0x461   : > { %2855 = vrot.lane.b32.xlu1 %v2522_v18, %s12646_s24 }
 0x465   : > { %2795 = vrot.lane.b32.xlu1 %v2348_v36, %s12646_s24 }
 0x469   : > { %2859 = vrot.lane.b32.xlu1 %v2524_v1, %s12646_s24  ;;  %v12914_v1 = vld [vmem:[#allocation28_spill] sm:$0xff] }
 0x46a   : > { %v2511_v59 = vadd.f32 %v12914_v1, %v2415_v30  ;;  %v12918_v1 = vld [vmem:[#allocation30_spill] sm:$0xff] }
 0x46c   : > { %v1666_v22 = vpop.xlane.xlu1 %1665 }
 0x46d   : > { %v1690_v18 = vmul.f32 0.0078125, %v1666_v22  ;;  %4247 = vrot.lane.b32.xlu1 %v8809_v34, %s6652_s16  ;;  %v8953_v34 = vld [vmem:[%s12670_s1 + $0x20] sm:$0xff] }
 0x46e   : > { %v2177_v46 = vmul.f32 %v8953_v34, %v12915_v37 }
 0x46f   : > { %v1706_v29 = vadd.f32 1.1920929e-07, %v1690_v18  ;;  %2769 = vrot.lane.b32.xlu0 %v2335_v35, %s12646_s24  ;;  %v12916_v35 = vld [vmem:[#allocation29_spill] sm:$0xff] }
 0x470   : > { %v8945_v36 = vpop.xlane.xlu1 %1669  ;;  %v1664_v5 = vpop.xlane.xlu0 %1663  ;;  %v2337_v18 = vsub.f32 %v2177_v46, %v12916_v35 }
 0x471   : > { %v1689_v8 = vmul.f32 0.0078125, %v1664_v5  ;;  %4251 = vrot.lane.b32.xlu1 %v8831_v53, %s6652_s16  ;;  %6345 = vrsqrt.f32 %v1706_v29  ;;  %v12917_v53 = vld [vmem:[#allocation48_spill] sm:$0xff] }
 0x472   : > { %v2417_v30 = vmul.f32 %v12917_v53, %v12915_v37 }
 0x473   : > { %v1705_v22 = vadd.f32 1.1920929e-07, %v1689_v8  ;;  %2833 = vrot.lane.b32.xlu0 %v2511_v59, %s12646_s24  ;;  %v1107_v8 = vld [vmem:[%s12436_s7] sm:$0xf]  ;;  %v12919_v59 = vld [vmem:[#allocation113_spill] sm:$0xff] }
 0x474   : > { %v8958_v26 = vpop.xlane.xlu1 %1673  ;;  %v2513_v29 = vadd.f32 %v12918_v1, %v2417_v30 }
 0x475   : > { %4255 = vrot.lane.b32.xlu1 %v8845_v52, %s6652_s16  ;;  %6347 = vrsqrt.f32 %v1705_v22  ;;  %v8980_v52 = vld [vmem:[%s12670_s1 + $0x30] sm:$0xff]  ;;  %v12920_v22 = vld [vmem:[#allocation97_spill] sm:$0xff] }
 0x476   : > { %v2179_v37 = vmul.f32 %v8980_v52, %v12919_v59  ;;  %v8988_v35 = vrot.slane %v1107_v8, %v12920_v22 }
 0x477   : > { %2773 = vrot.lane.b32.xlu0 %v2337_v18, %s12646_s24  ;;  %v12921_v18 = vld [vmem:[#allocation100_spill] sm:$0xff] }
 0x478   : > { %v8966_v5 = vpop.xlane.xlu1 %1677  ;;  %v2339_v38 = vsub.f32 %v2179_v37, %v12924_v45  ;;  %v9007_v44 = vadd.f32 %v12926_v54, %v8988_v35  ;;  %v12929_v45 = vld [vmem:[#allocation125_spill] sm:$0xff] }
 0x479   : > { %4259 = vrot.lane.b32.xlu1 %v8866_v17, %s6652_s16  ;;  %v8991_v17 = vrot.slane %v1107_v8, %v12921_v18 }
 0x47b   : > { %2837 = vrot.lane.b32.xlu0 %v2513_v29, %s12646_s24  ;;  %v8985_v46 = vpop.f32.mrb[28].mxu1  ;;  %v6346_v51 = vpop.eup %6345  ;;  %v12925_v29 = vld [vmem:[#allocation50_spill] sm:$0xff]  ;;  %v9011_v47 = vadd.f32 %v12927_v0, %v8991_v17 }
 0x47c   : > { %v8993_v30 = vpop.permute.xlu1 %2767  ;;  %v8995_v1 = vpop.f32.mrb[29].mxu1  ;;  %v2419_v53 = vmul.f32 %v12925_v29, %v12919_v59 }
 0x47d   : > { %12922 = vst [vmem:[#allocation166_spill] sm:$0xff] %v8993_v30  ;;  %4263 = vrot.lane.b32.xlu1 %v8884_v32, %s6652_s16  ;;  %12928 = vst [vmem:[#allocation123_spill] sm:$0xff] %v9011_v47  ;;  %v2879_v29 = vsel %vm2877_vm0, %v9007_v44, %v8993_v30  ;;  %v4450_v0 = vsel %vm2877_vm0, %v9011_v47, %v8993_v30  ;;  %v9039_v47 = vrot.slane %v1107_v8, %v1123_v56 }
 0x47e   : > { %v2515_v37 = vadd.f32 %v12929_v45, %v2419_v53  ;;  %v1738_v45 = vmul.f32 %v6346_v51, %v8701_v49  ;;  %v9052_v49 = vld [vmem:[%s12670_s1 + $0x40] sm:$0xff]  ;;  %v12932_v51 = vld [vmem:[#allocation117_spill] sm:$0xff] }
 0x47f   : > { %2777 = vrot.lane.b32.xlu0 %v2339_v38, %s12646_s24  ;;  %v9015_v59 = vpop.f32.mrb[30].mxu1  ;;  %v6348_v32 = vpop.eup %6347  ;;  %v12931_v38 = vsub.s32 2, %v12923_v40  ;;  %v2181_v56 = vmul.f32 %v9052_v49, %v12932_v51 }
 0x480   : > { %v9024_v54 = vpop.permute.xlu1 %2831  ;;  %v9026_v42 = vpop.f32.mrb[31].mxu1  ;;  %v1737_v25 = vmul.f32 %v6348_v32, %v8707_v11 }
 0x481   : > { %12930 = vst [vmem:[#allocation190_spill] sm:$0xff] %v9024_v54  ;;  %v9030_v53 = vrot.slane %v1107_v8, %v12931_v38  ;;  %v2896_v19 = vsel %vm2894_vm1, %v2879_v29, %v9024_v54  ;;  %v4466_v58 = vsel %vm2894_vm1, %v4450_v0, %v9024_v54  ;;  %4267 = vrot.lane.b32.xlu1 %v8904_v9, %s6652_s16  ;;  %v12933_v29 = vld [vmem:[#allocation167_spill] sm:$0xff] }
 0x482   : > { %v2913_v57 = vsel %vm2911_vm2, %v2896_v19, 0.0  ;;  %v4482_v38 = vsel %vm2911_vm2, %v4466_v58, 0.0  ;;  %v1760_v19 = vmul.f32 %v8732_v61, %v1737_v25  ;;  %v1761_v8 = vmul.f32 %v8732_v61, %v1738_v45  ;;  %v12935_v25 = vld [vmem:[#allocation52_spill] sm:$0xff] }
 0x483   : > { %2929 = vst [vmem:[%s9058_s30 + $0x20] sm:$0xff] %v2913_v57  ;;  %4498 = vst [vmem:[%s9058_s30 + $0x30] sm:$0xff] %v4482_v38  ;;  %2841 = vrot.lane.b32.xlu0 %v2515_v37, %s12646_s24  ;;  %v1356_v11 = vpop.f32.mrb[32].mxu1  ;;  %v2341_v32 = vsub.f32 %v2181_v56, %v12933_v29  ;;  %v2421_v57 = vmul.f32 %v12935_v25, %v12932_v51  ;;  %v12936_v56 = vld [vmem:[#allocation168_spill] sm:$0xff]  ;;  %v9097_v51 = vld [vmem:[%s12431_s2 + $0x8] sm:$0xff] }
 0x484   : > { %v9065_v58 = vadd.f32 %v1356_v11, %v9030_v53  ;;  %v1358_v9 = vpop.f32.mrb[33].mxu1  ;;  %1936 = vmatmul.mubr.f32.gmra.mrb[76].mxu1 %v1760_v19  ;;  %5968 = vmatprep.mubr.f32.mxu0 %v1760_v19  ;;  %v9105_v19 = vld [vmem:[%s12670_s1 + $0x50] sm:$0xff] }
 0x485   : > { %v9070_v0 = vadd.f32 %v1358_v9, %v9039_v47  ;;  %4271 = vrot.lane.b32.xlu1 %v8917_v6, %s6652_s16  ;;  %5969 = vmatmul.mubr.f32.gmra.mrb[70].mxu0 %v1761_v8  ;;  %v2517_v11 = vadd.f32 %v12936_v56, %v2421_v57  ;;  %v12938_v9 = vld [vmem:[#allocation121_spill] sm:$0xff] }
 0x486   : > { %3136 = vst.msk [vmem:[%s9047_s14] sm:$0xff] %vm2877_vm0, %v9065_v58  ;;  %1941 = vmatprep.mubr.f32.mxu1 %v12823_v33 }
 0x487   : > { %12934 = vst [vmem:[#allocation175_spill] sm:$0xff] %v9070_v0  ;;  %5771 = vst.msk [vmem:[%s9047_s14 + $0x100] sm:$0xff] %vm2877_vm0, %v9070_v0  ;;  %2781 = vrot.lane.b32.xlu0 %v2341_v32, %s12646_s24  ;;  %v1362_v37 = vpop.f32.mrb[34].mxu1  ;;  %v12942_v0 = vld [vmem:[#allocation178_spill] sm:$0xff] }
 0x488   : > { %v9085_v45 = vadd.f32 %v1362_v37, %v9030_v53  ;;  %v1364_v38 = vpop.f32.mrb[35].mxu1  ;;  %1942 = vmatmul.mubr.f32.gmra.mrb[78].mxu1 %v1761_v8  ;;  %v2183_v8 = vmul.f32 %v9105_v19, %v12938_v9  ;;  %v12939_v37 = vld [vmem:[#allocation177_spill] sm:$0xff] }
 0x489   : > { %v9089_v6 = vadd.f32 %v1364_v38, %v9039_v47  ;;  %4307 = vrot.lane.b32.xlu1 %v9097_v51, %s12646_s24  ;;  %1947 = vmatprep.mubr.f32.mxu1 %v12823_v33 }
 0x48a   : > { %3137 = vst.msk [vmem:[%s9047_s14 + $0x8] sm:$0xff] %vm2877_vm0, %v9085_v45  ;;  %v2343_v38 = vsub.f32 %v2183_v8, %v12939_v37 }
 0x48b   : > { %12937 = vst [vmem:[#allocation176_spill] sm:$0xff] %v9089_v6  ;;  %5772 = vst.msk [vmem:[%s9047_s14 + $0x108] sm:$0xff] %vm2877_vm0, %v9089_v6  ;;  %2845 = vrot.lane.b32.xlu0 %v2517_v11, %s12646_s24  ;;  %v1368_v29 = vpop.f32.mrb[36].mxu1  ;;  %v9126_v6 = vld [vmem:[%s12431_s2 + $0x18] sm:$0xff]  ;;  %v12941_v11 = vld [vmem:[#allocation54_spill] sm:$0xff] }
 0x48c   : > { %v9114_v32 = vadd.f32 %v1368_v29, %v9030_v53  ;;  %v1370_v57 = vpop.f32.mrb[37].mxu1  ;;  %v2423_v29 = vmul.f32 %v12941_v11, %v12938_v9  ;;  %v9149_v9 = vld [vmem:[%s12431_s2 + $0x28] sm:$0xff]  ;;  %v12947_v11 = vld [vmem:[#allocation185_spill] sm:$0xff] }
 0x48d   : > { %v9118_v56 = vadd.f32 %v1370_v57, %v9039_v47  ;;  %4311 = vrot.lane.b32.xlu1 %v9126_v6, %s12646_s24  ;;  %12944 = vst [vmem:[#allocation184_spill] sm:$0xff] %v9149_v9 }
 0x48e   : > { %3138 = vst.msk [vmem:[%s9047_s14 + $0x10] sm:$0xff] %vm2877_vm0, %v9114_v32  ;;  %v2519_v25 = vadd.f32 %v12942_v0, %v2423_v29  ;;  %v12945_v0 = vld [vmem:[#allocation126_spill] sm:$0xff] }
 0x48f   : > { %12940 = vst [vmem:[#allocation129_spill] sm:$0xff] %v9118_v56  ;;  %5773 = vst.msk [vmem:[%s9047_s14 + $0x110] sm:$0xff] %vm2877_vm0, %v9118_v56  ;;  %2785 = vrot.lane.b32.xlu0 %v2343_v38, %s12646_s24  ;;  %v1374_v8 = vpop.f32.mrb[38].mxu1  ;;  %v9156_v38 = vld [vmem:[%s12670_s1 + $0x60] sm:$0xff] }
 0x490   : > { %v9137_v57 = vadd.f32 %v1374_v8, %v9030_v53  ;;  %v1376_v37 = vpop.f32.mrb[39].mxu1  ;;  %v2185_v29 = vmul.f32 %v9156_v38, %v12945_v0 }
 0x491   : > { %v9141_v12 = vadd.f32 %v1376_v37, %v9039_v47  ;;  %4315 = vrot.lane.b32.xlu1 %v9149_v9, %s12646_s24 }
 0x492   : > { %3139 = vst.msk [vmem:[%s9047_s14 + $0x18] sm:$0xff] %vm2877_vm0, %v9137_v57  ;;  %v2345_v18 = vsub.f32 %v2185_v29, %v12947_v11 }
 0x493   : > { %12943 = vst [vmem:[#allocation183_spill] sm:$0xff] %v9141_v12  ;;  %5774 = vst.msk [vmem:[%s9047_s14 + $0x118] sm:$0xff] %vm2877_vm0, %v9141_v12  ;;  %2849 = vrot.lane.b32.xlu0 %v2519_v25, %s12646_s24  ;;  %v1380_v8 = vpop.f32.mrb[40].mxu1  ;;  %v6397_v12 = vld [vmem:[%s12431_s2 + $0x38] sm:$0xff]  ;;  %v12949_v25 = vld [vmem:[#allocation56_spill] sm:$0xff] }
 0x494   : > { %v9165_v37 = vadd.f32 %v1380_v8, %v9030_v53  ;;  %v1382_v56 = vpop.f32.mrb[41].mxu1  ;;  %v2425_v8 = vmul.f32 %v12949_v25, %v12945_v0  ;;  %v12952_v0 = vld [vmem:[#allocation132_spill] sm:$0xff]  ;;  %v1692_v25 = vmul.f32 0.0078125, %v8945_v36 }
 0x495   : > { %v9169_v55 = vadd.f32 %v1382_v56, %v9039_v47  ;;  %4319 = vrot.lane.b32.xlu1 %v6397_v12, %s12646_s24  ;;  %v6398_v12 = vld [vmem:[%s12431_s2 + $0x48] sm:$0xff] }
 0x496   : > { %12946 = vst [vmem:[#allocation134_spill] sm:$0xff] %v9165_v37  ;;  %3140 = vst.msk [vmem:[%s9047_s14 + $0x20] sm:$0xff] %vm2877_vm0, %v9165_v37  ;;  %v2521_v37 = vadd.f32 %v12950_v62, %v2425_v8  ;;  %v1708_v54 = vadd.f32 1.1920929e-07, %v1692_v25 }
 0x497   : > { %12948 = vst [vmem:[#allocation105_spill] sm:$0xff] %v9169_v55  ;;  %5775 = vst.msk [vmem:[%s9047_s14 + $0x120] sm:$0xff] %vm2877_vm0, %v9169_v55  ;;  %2789 = vrot.lane.b32.xlu0 %v2345_v18, %s12646_s24  ;;  %v1386_v56 = vpop.f32.mrb[42].mxu1  ;;  %v9201_v18 = vld [vmem:[%s12670_s1 + $0x70] sm:$0xff] }
 0x498   : > { %v9185_v11 = vadd.f32 %v1386_v56, %v9030_v53  ;;  %v1388_v29 = vpop.f32.mrb[43].mxu1  ;;  %v2187_v62 = vmul.f32 %v9201_v18, %v12952_v0  ;;  %6349 = vrsqrt.f32 %v1708_v54 }
 0x499   : > { %v9189_v9 = vadd.f32 %v1388_v29, %v9039_v47  ;;  %4323 = vrot.lane.b32.xlu1 %v6398_v12, %s12646_s24 }
 0x49a   : > { %3141 = vst.msk [vmem:[%s9047_s14 + $0x28] sm:$0xff] %vm2877_vm0, %v9185_v11  ;;  %v2347_v12 = vsub.f32 %v2187_v62, %v8668_v24 }
 0x49b   : > { %12951 = vst [vmem:[#allocation27_spill] sm:$0xff] %v9189_v9  ;;  %5776 = vst.msk [vmem:[%s9047_s14 + $0x128] sm:$0xff] %vm2877_vm0, %v9189_v9  ;;  %2853 = vrot.lane.b32.xlu0 %v2521_v37, %s12646_s24  ;;  %v1392_v8 = vpop.f32.mrb[44].mxu1  ;;  %v6400_v37 = vld [vmem:[%s12431_s2 + $0x58] sm:$0xff] }
 0x49c   : > { %v9210_v56 = vadd.f32 %v1392_v8, %v9030_v53  ;;  %v1394_v29 = vpop.f32.mrb[45].mxu1  ;;  %v12955_v8 = vld [vmem:[#allocation58_spill] sm:$0xff] }
 0x49d   : > { %v9214_v55 = vadd.f32 %v1394_v29, %v9039_v47  ;;  %4327 = vrot.lane.b32.xlu1 %v6400_v37, %s12646_s24  ;;  %v2427_v9 = vmul.f32 %v12955_v8, %v12952_v0  ;;  %v6401_v0 = vld [vmem:[%s12431_s2 + $0x68] sm:$0xff] }
 0x49e   : > { %12953 = vst [vmem:[#allocation28_spill] sm:$0xff] %v9210_v56  ;;  %3142 = vst.msk [vmem:[%s9047_s14 + $0x30] sm:$0xff] %vm2877_vm0, %v9210_v56  ;;  %v9234_v56 = vpop.permute.xlu0 %4241 }
 0x49f   : > { %12954 = vst [vmem:[#allocation109_spill] sm:$0xff] %v9214_v55  ;;  %5777 = vst.msk [vmem:[%s9047_s14 + $0x130] sm:$0xff] %vm2877_vm0, %v9214_v55  ;;  %v1398_v24 = vpop.f32.mrb[46].mxu1  ;;  %2793 = vrot.lane.b32.xlu0 %v2347_v12, %s12646_s24  ;;  %v2523_v29 = vadd.f32 %v8677_v20, %v2427_v9  ;;  %v1694_v12 = vmul.f32 0.0078125, %v8958_v26  ;;  %v6402_v26 = vld [vmem:[%s12431_s2 + $0x78] sm:$0xff] }
 0x4a0   : > { %v9231_v36 = vadd.f32 %v1398_v24, %v9030_v53  ;;  %v1400_v62 = vpop.f32.mrb[47].mxu1  ;;  %12956 = vst [vmem:[#allocation29_spill] sm:$0xff] %v9234_v56 }
 0x4a1   : > { %v9237_v37 = vadd.f32 %v1400_v62, %v9039_v47  ;;  %4331 = vrot.lane.b32.xlu1 %v6401_v0, %s12646_s24  ;;  %v1710_v0 = vadd.f32 1.1920929e-07, %v1694_v12 }
 0x4a2   : > { %3143 = vst.msk [vmem:[%s9047_s14 + $0x38] sm:$0xff] %vm2877_vm0, %v9231_v36 }
 0x4a3   : > { %12957 = vst [vmem:[#allocation30_spill] sm:$0xff] %v9237_v37  ;;  %5778 = vst.msk [vmem:[%s9047_s14 + $0x138] sm:$0xff] %vm2877_vm0, %v9237_v37  ;;  %v1404_v20 = vpop.f32.mrb[48].mxu1  ;;  %2857 = vrot.lane.b32.xlu0 %v2523_v29, %s12646_s24 }
 0x4a4   : > { %v9252_v9 = vadd.f32 %v1404_v20, %v9030_v53  ;;  %v1406_v25 = vpop.f32.mrb[49].mxu1  ;;  %v1696_v20 = vmul.f32 0.0078125, %v8966_v5 }
 0x4a5   : > { %v9255_v24 = vadd.f32 %v1406_v25, %v9039_v47  ;;  %v1668_v62 = vpop.xlane.xlu0 %1667  ;;  %4335 = vrot.lane.b32.xlu1 %v6402_v26, %s12646_s24 }
 0x4a6   : > { %12958 = vst [vmem:[#allocation113_spill] sm:$0xff] %v9252_v9  ;;  %3144 = vst.msk [vmem:[%s9047_s14 + $0x40] sm:$0xff] %vm2877_vm0, %v9252_v9  ;;  %v1691_v29 = vmul.f32 0.0078125, %v1668_v62  ;;  %v9360_v9 = vadd.f32 %v8693_v60, %v8988_v35 }
 0x4a7   : > { %12959 = vst [vmem:[#allocation97_spill] sm:$0xff] %v9255_v24  ;;  %5779 = vst.msk [vmem:[%s9047_s14 + $0x140] sm:$0xff] %vm2877_vm0, %v9255_v24  ;;  %v1410_v25 = vpop.f32.mrb[50].mxu1  ;;  %4245 = vrot.lane.b32.xlu0 %v8933_v27, %s6652_s16  ;;  %v1712_v27 = vadd.f32 1.1920929e-07, %v1696_v20  ;;  %v12972_v24 = vld [vmem:[#allocation189_spill] sm:$0xff] }
 0x4a8   : > { %v1707_v54 = vadd.f32 1.1920929e-07, %v1691_v29  ;;  %v9271_v37 = vadd.f32 %v1410_v25, %v9030_v53  ;;  %v1412_v55 = vpop.f32.mrb[51].mxu1 }
 0x4a9   : > { %v9274_v8 = vadd.f32 %v1412_v55, %v9039_v47  ;;  %v1672_v62 = vpop.xlane.xlu0 %1671  ;;  %3586 = vrot.lane.b32.xlu1 %v9007_v44, %s12646_s24  ;;  %v12962_v55 = vld [vmem:[#allocation173_spill] sm:$0xff] }
 0x4aa   : > { %12960 = vst [vmem:[#allocation94_spill] sm:$0xff] %v9271_v37  ;;  %6351 = vrsqrt.f32 %v1707_v54  ;;  %3145 = vst.msk [vmem:[%s9047_s14 + $0x48] sm:$0xff] %vm2877_vm0, %v9271_v37  ;;  %v1693_v5 = vmul.f32 0.0078125, %v1672_v62  ;;  %v1214_v26 = vadd.f32 %v12962_v55, %v8988_v35  ;;  %v6350_v62 = vpop.eup %6349 }
 0x4ab   : > { %12961 = vst [vmem:[#allocation32_spill] sm:$0xff] %v9274_v8  ;;  %6353 = vrsqrt.f32 %v1710_v0  ;;  %5780 = vst.msk [vmem:[%s9047_s14 + $0x148] sm:$0xff] %vm2877_vm0, %v9274_v8  ;;  %v1416_v12 = vpop.f32.mrb[52].mxu1  ;;  %4249 = vrot.lane.b32.xlu0 %v8953_v34, %s6652_s16 }
 0x4ac   : > { %v1709_v29 = vadd.f32 1.1920929e-07, %v1693_v5  ;;  %v9289_v25 = vadd.f32 %v1416_v12, %v9030_v53  ;;  %v1418_v54 = vpop.f32.mrb[53].mxu1  ;;  %v12965_v5 = vld [vmem:[#allocation181_spill] sm:$0xff] }
 0x4ad   : > { %v9292_v44 = vadd.f32 %v1418_v54, %v9039_v47  ;;  %v1676_v0 = vpop.xlane.xlu0 %1675  ;;  %3590 = vrot.lane.b32.xlu1 %v1214_v26, %s12646_s24  ;;  %v9305_v12 = vadd.f32 %v12965_v5, %v8988_v35  ;;  %v1740_v5 = vmul.f32 %v6350_v62, %v8711_v28 }
 0x4ae   : > { %12963 = vst [vmem:[#allocation169_spill] sm:$0xff] %v9289_v25  ;;  %6355 = vrsqrt.f32 %v1709_v29  ;;  %3146 = vst.msk [vmem:[%s9047_s14 + $0x50] sm:$0xff] %vm2877_vm0, %v9289_v25  ;;  %v1695_v34 = vmul.f32 0.0078125, %v1676_v0 }
 0x4af   : > { %12964 = vst [vmem:[#allocation170_spill] sm:$0xff] %v9292_v44  ;;  %6357 = vrsqrt.f32 %v1712_v27  ;;  %5781 = vst.msk [vmem:[%s9047_s14 + $0x150] sm:$0xff] %vm2877_vm0, %v9292_v44  ;;  %v1422_v20 = vpop.f32.mrb[54].mxu1  ;;  %4253 = vrot.lane.b32.xlu0 %v8980_v52, %s6652_s16  ;;  %v12969_v52 = vld [vmem:[#allocation164_spill] sm:$0xff] }
 0x4b0   : > { %v1711_v55 = vadd.f32 1.1920929e-07, %v1695_v34  ;;  %v9308_v29 = vadd.f32 %v1422_v20, %v9030_v53  ;;  %v1424_v54 = vpop.f32.mrb[55].mxu1  ;;  %v9324_v34 = vadd.f32 %v12969_v52, %v8988_v35  ;;  %v9338_v52 = vadd.f32 %v12972_v24, %v8988_v35  ;;  %v12977_v24 = vld [vmem:[#allocation174_spill] sm:$0xff] }
 0x4b1   : > { %v9311_v27 = vadd.f32 %v1424_v54, %v9039_v47  ;;  %v9313_v0 = vpop.xlane.xlu1 %1681  ;;  %v9315_v8 = vpop.permute.xlu0 %2765  ;;  %3594 = vrot.lane.b32.xlu1 %v9305_v12, %s12646_s24  ;;  %v12970_v54 = vld [vmem:[#allocation165_spill] sm:$0xff] }
 0x4b2   : > { %12966 = vst [vmem:[#allocation125_spill] sm:$0xff] %v9308_v29  ;;  %12968 = vst [vmem:[#allocation167_spill] sm:$0xff] %v9315_v8  ;;  %6359 = vrsqrt.f32 %v1711_v55  ;;  %v9334_v44 = vadd.f32 %v12970_v54, %v8991_v17 }
 0x4b3   : > { %12967 = vst [vmem:[#allocation117_spill] sm:$0xff] %v9311_v27  ;;  %3147 = vst.msk [vmem:[%s9047_s14 + $0x58] sm:$0xff] %vm2877_vm0, %v9308_v29  ;;  %v1428_v20 = vpop.f32.mrb[56].mxu1  ;;  %4257 = vrot.lane.b32.xlu0 %v9052_v49, %s6652_s16  ;;  %v2878_v49 = vsel %vm2877_vm0, %v9324_v34, %v9315_v8 }
 0x4b4   : > { %5782 = vst.msk [vmem:[%s9047_s14 + $0x158] sm:$0xff] %vm2877_vm0, %v9311_v27  ;;  %v6352_v55 = vpop.eup %6351  ;;  %12971 = vst [vmem:[#allocation168_spill] sm:$0xff] %v9334_v44  ;;  %v9341_v56 = vadd.f32 %v1428_v20, %v9030_v53  ;;  %v1430_v27 = vpop.f32.mrb[57].mxu1  ;;  %v9356_v20 = vadd.f32 %v12977_v24, %v8991_v17 }
 0x4b5   : > { %v6354_v29 = vpop.eup %6353  ;;  %v9347_v28 = vadd.f32 %v1430_v27, %v9039_v47  ;;  %v9349_v62 = vpop.permute.xlu1 %2771  ;;  %v1739_v25 = vmul.f32 %v6352_v55, %v8778_v63  ;;  %v4449_v27 = vsel %vm2877_vm0, %v9334_v44, %v9315_v8  ;;  %3598 = vrot.lane.b32.xlu1 %v9338_v52, %s12646_s24 }
 0x4b6   : > { %12973 = vst [vmem:[#allocation121_spill] sm:$0xff] %v9341_v56  ;;  %12975 = vst [vmem:[#allocation178_spill] sm:$0xff] %v9349_v62  ;;  %v9351_v54 = vpop.permute.xlu0 %2829 }
 0x4b7   : > { %12974 = vst [vmem:[#allocation177_spill] sm:$0xff] %v9347_v28  ;;  %12976 = vst [vmem:[#allocation126_spill] sm:$0xff] %v9351_v54  ;;  %v2895_v63 = vsel %vm2894_vm1, %v2878_v49, %v9351_v54  ;;  %v4465_v55 = vsel %vm2894_vm1, %v4449_v27, %v9351_v54  ;;  %v1434_v24 = vpop.f32.mrb[58].mxu1  ;;  %4261 = vrot.lane.b32.xlu0 %v9105_v19, %s6652_s16  ;;  %v1762_v44 = vmul.f32 %v8732_v61, %v1739_v25 }
 0x4b8   : > { %12978 = vst [vmem:[#allocation185_spill] sm:$0xff] %v9356_v20  ;;  %3148 = vst.msk [vmem:[%s9047_s14 + $0x60] sm:$0xff] %vm2877_vm0, %v9341_v56  ;;  %v2912_v60 = vsel %vm2911_vm2, %v2895_v63, 0.0  ;;  %v1763_v56 = vmul.f32 %v8732_v61, %v1740_v5  ;;  %v6356_v37 = vpop.eup %6355  ;;  %v2881_v49 = vsel %vm2877_vm0, %v1214_v26, %v9349_v62  ;;  %v9387_v63 = vadd.f32 %v1434_v24, %v9030_v53  ;;  %v1436_v27 = vpop.f32.mrb[59].mxu1 }
 0x4b9   : > { %5783 = vst.msk [vmem:[%s9047_s14 + $0x160] sm:$0xff] %vm2877_vm0, %v9347_v28  ;;  %2928 = vst [vmem:[%s9058_s30] sm:$0xff] %v2912_v60  ;;  %v4481_v28 = vsel %vm2911_vm2, %v4465_v55, 0.0  ;;  %v1742_v54 = vmul.f32 %v6354_v29, %v8719_v4  ;;  %v6358_v19 = vpop.eup %6357  ;;  %v4452_v25 = vsel %vm2877_vm0, %v9356_v20, %v9349_v62  ;;  %v9395_v5 = vadd.f32 %v1436_v27, %v9039_v47  ;;  %v9397_v26 = vpop.permute.xlu1 %2835 }
 0x4ba   : > { %4497 = vst [vmem:[%s9058_s30 + $0x10] sm:$0xff] %v4481_v28  ;;  %12980 = vst [vmem:[#allocation132_spill] sm:$0xff] %v9397_v26  ;;  %1948 = vmatmul.mubr.f32.gmra.mrb[80].mxu1 %v1762_v44  ;;  %v9399_v60 = vpop.f32.mrb[64].mxu0  ;;  %5971 = vmatprep.mubr.f32.mxu0 %v1762_v44  ;;  %v1741_v55 = vmul.f32 %v6356_v37, %v8782_v3  ;;  %v2898_v4 = vsel %vm2894_vm1, %v2881_v49, %v9397_v26 }
 0x4bb   : > { %12979 = vst [vmem:[#allocation186_spill] sm:$0xff] %v9395_v5  ;;  %3149 = vst.msk [vmem:[%s9047_s14 + $0x68] sm:$0xff] %vm2877_vm0, %v9387_v63  ;;  %v4468_v29 = vsel %vm2894_vm1, %v4452_v25, %v9397_v26  ;;  %3602 = vrot.lane.b32.xlu1 %v9360_v9, %s12646_s24  ;;  %v9411_v28 = vpop.f32.mrb[65].mxu0  ;;  %5972 = vmatmul.mubr.f32.gmra.mrb[72].mxu0 %v1763_v56  ;;  %v2915_v3 = vsel %vm2911_vm2, %v2898_v4, 0.0  ;;  %v1440_v44 = vpop.f32.mrb[60].mxu1  ;;  %v9424_v27 = vadd.f32 %v8772_v50, %v8988_v35 }
 0x4bc   : > { %5784 = vst.msk [vmem:[%s9047_s14 + $0x168] sm:$0xff] %vm2877_vm0, %v9395_v5  ;;  %v4484_v37 = vsel %vm2911_vm2, %v4468_v29, 0.0  ;;  %4265 = vrot.lane.b32.xlu0 %v9156_v38, %s6652_s16  ;;  %1953 = vmatprep.mubr.f32.mxu1 %v12823_v33  ;;  %v1764_v24 = vmul.f32 %v8732_v61, %v1741_v55  ;;  %v6360_v49 = vpop.eup %6359  ;;  %2931 = vst [vmem:[%s9058_s30 + $0x60] sm:$0xff] %v2915_v3  ;;  %v9429_v25 = vadd.f32 %v1440_v44, %v9030_v53  ;;  %v1442_v4 = vpop.f32.mrb[61].mxu1 }
 0x4bd   : > { %4500 = vst [vmem:[%s9058_s30 + $0x70] sm:$0xff] %v4484_v37  ;;  %v1765_v29 = vmul.f32 %v8732_v61, %v1742_v54  ;;  %v1744_v38 = vmul.f32 %v6358_v19, %v8736_v10  ;;  %v9434_v5 = vadd.f32 %v1442_v4, %v9039_v47  ;;  %v9436_v55 = vpop.permute.xlu1 %2775  ;;  %v1743_v50 = vmul.f32 %v6360_v49, %v8790_v23  ;;  %v12983_v54 = vld [vmem:[#allocation182_spill] sm:$0xff] }
 0x4be   : > { %12982 = vst [vmem:[#allocation181_spill] sm:$0xff] %v9436_v55  ;;  %1954 = vmatmul.mubr.f32.gmra.mrb[82].mxu1 %v1763_v56  ;;  %5974 = vmatprep.mubr.f32.mxu0 %v1764_v24  ;;  %3150 = vst.msk [vmem:[%s9047_s14 + $0x70] sm:$0xff] %vm2877_vm0, %v9429_v25  ;;  %v9446_v3 = vadd.f32 %v12983_v54, %v8991_v17  ;;  %v1818_v10 = vld [vmem:[%s12985_s12] sm:$0x7]  ;;  %v9460_v19 = vadd.f32 %v8858_v7, %v8988_v35 }
 0x4bf   : > { %12981 = vst [vmem:[#allocation173_spill] sm:$0xff] %v9434_v5  ;;  %3606 = vrot.lane.b32.xlu1 %v9424_v27, %s12646_s24  ;;  %5975 = vmatmul.mubr.f32.gmra.mrb[74].mxu0 %v1765_v29  ;;  %5785 = vst.msk [vmem:[%s9047_s14 + $0x170] sm:$0xff] %vm2877_vm0, %v9434_v5  ;;  %v1446_v23 = vpop.f32.mrb[62].mxu1  ;;  %v1766_v56 = vmul.f32 %v8732_v61, %v1743_v50  ;;  %v1767_v49 = vmul.f32 %v8732_v61, %v1744_v38  ;;  %v9562_v5 = vld [vmem:[%s12431_s2 + $0x20] sm:$0xff] }
 0x4c0   : > { %12984 = vst [vmem:[#allocation164_spill] sm:$0xff] %v9446_v3  ;;  %4269 = vrot.lane.b32.xlu0 %v9201_v18, %s6652_s16  ;;  %1959 = vmatprep.mubr.f32.mxu1 %v12823_v33  ;;  %v9463_v37 = vadd.f32 %v1446_v23, %v9030_v53  ;;  %v1448_v44 = vpop.f32.mrb[63].mxu1  ;;  %v9467_v4 = vrot.slane %v1818_v10, %v12920_v22  ;;  %v12989_v23 = vsub.s32 2, %v12923_v40  ;;  %s5525_s16 = sshll.u32 %s9058_s30, 4  ;;  %s12196_s16 = int_to_ptr.vmem [resolvable:$true] %s5525_s16 }
 0x4c1   : > { %v2883_v18 = vsel %vm2877_vm0, %v9305_v12, %v9436_v55  ;;  %v4454_v50 = vsel %vm2877_vm0, %v9446_v3, %v9436_v55  ;;  %v9476_v7 = vadd.f32 %v1448_v44, %v9039_v47  ;;  %v9478_v54 = vpop.permute.xlu1 %2839  ;;  %5977 = vmatprep.mubr.f32.mxu0 %v1766_v56  ;;  %v9497_v12 = vld [vmem:[%s12431_s2] sm:$0xff]  ;;  %v9504_v38 = vadd.f32 %v9015_v59, %v8988_v35  ;;  %v12992_v59 = vld [vmem:[#allocation191_spill] sm:$0xff]  ;;  %s6522_s27 = scalar_lea.vmem %s12196_s16, 8192 }
 0x4c2   : > { %12986 = vst [vmem:[#allocation165_spill] sm:$0xff] %v9463_v37  ;;  %12988 = vst [vmem:[#allocation174_spill] sm:$0xff] %v9478_v54  ;;  %1960 = vmatmul.mubr.f32.gmra.mrb[84].mxu1 %v1764_v24  ;;  %v2900_v61 = vsel %vm2894_vm1, %v2883_v18, %v9478_v54  ;;  %v4470_v22 = vsel %vm2894_vm1, %v4454_v50, %v9478_v54  ;;  %v9508_v44 = vrot.slane %v1818_v10, %v12989_v23  ;;  %v9529_v10 = vld [vmem:[%s12431_s2 + $0x10] sm:$0xff]  ;;  %p6523_p4 = scmp.ne.s32.totalorder %s12196_s16, %s6522_s27 }
 0x4c3   : > { %12987 = vst [vmem:[#allocation189_spill] sm:$0xff] %v9476_v7  ;;  %3151 = vst.msk [vmem:[%s9047_s14 + $0x78] sm:$0xff] %vm2877_vm0, %v9463_v37  ;;  %3610 = vrot.lane.b32.xlu1 %v9460_v19, %s12646_s24  ;;  %5978 = vmatmul.mubr.f32.gmra.mrb[76].mxu0 %v1767_v49  ;;  %v2917_v47 = vsel %vm2911_vm2, %v2900_v61, 0.0  ;;  %v4486_v53 = vsel %vm2911_vm2, %v4470_v22, 0.0  ;;  %v1901_v24 = vpop.f32.mrb[64].mxu1  ;;  %v9524_v40 = vadd.f32 %v12992_v59, %v8991_v17 }
 0x4c4   : > { %5786 = vst.msk [vmem:[%s9047_s14 + $0x178] sm:$0xff] %vm2877_vm0, %v9476_v7  ;;  %4305 = vrot.lane.b32.xlu0 %v9497_v12, %s12646_s24  ;;  %1965 = vmatprep.mubr.f32.mxu1 %v12823_v33  ;;  %2933 = vst [vmem:[%s9058_s30 + $0xa0] sm:$0xff] %v2917_v47  ;;  %v9513_v18 = vadd.f32 %v1901_v24, %v9467_v4  ;;  %v9515_v50 = vpop.f32.mrb[65].mxu1 }
 0x4c5   : > { %4502 = vst [vmem:[%s9058_s30 + $0xb0] sm:$0xff] %v4486_v53  ;;  %v9517_v61 = vpop.permute.xlu1 %2779  ;;  %12993 = vst [vmem:[#allocation191_spill] sm:$0xff] %v9524_v40 }
 0x4c6   : > { %12990 = vst [vmem:[#allocation182_spill] sm:$0xff] %v9513_v18  ;;  %12991 = vst [vmem:[#allocation198_spill] sm:$0xff] %v9517_v61  ;;  %1966 = vmatmul.mubr.f32.gmra.mrb[86].mxu1 %v1765_v29  ;;  %v9535_v29 = vadd.f32 %v9399_v60, %v9508_v44  ;;  %v2885_v24 = vsel %vm2877_vm0, %v9338_v52, %v9517_v61  ;;  %v4456_v23 = vsel %vm2877_vm0, %v9524_v40, %v9517_v61  ;;  %v13026_v18 = vld [vmem:[#allocation39_spill] sm:$0xff] }
 0x4c7   : > { %3614 = vrot.lane.b32.xlu1 %v9504_v38, %s12646_s24  ;;  %1971 = vmatprep.mubr.f32.mxu1 %v12823_v33  ;;  %v1907_v22 = vpop.f32.mrb[66].mxu1 }
 0x4c8   : > { %4309 = vrot.lane.b32.xlu0 %v9529_v10, %s12646_s24  ;;  %12994 = vst [vmem:[#allocation199_spill] sm:$0xff] %v9535_v29  ;;  %v9538_v47 = vadd.f32 %v1907_v22, %v9467_v4  ;;  %v9540_v53 = vpop.f32.mrb[67].mxu1 }
 0x4c9   : > { %12996 = vst [vmem:[#allocation201_spill] sm:$0xff] %v9540_v53  ;;  %v9548_v59 = vpop.permute.xlu1 %2843 }
 0x4ca   : > { %12995 = vst [vmem:[#allocation200_spill] sm:$0xff] %v9538_v47  ;;  %12997 = vst [vmem:[#allocation202_spill] sm:$0xff] %v9548_v59  ;;  %1972 = vmatmul.mubr.f32.gmra.mrb[88].mxu1 %v1766_v56  ;;  %v2902_v60 = vsel %vm2894_vm1, %v2885_v24, %v9548_v59  ;;  %v4472_v22 = vsel %vm2894_vm1, %v4456_v23, %v9548_v59  ;;  %v12998_v56 = vld [vmem:[#allocation35_spill] sm:$0xff]  ;;  %v9576_v23 = vadd.f32 %v8696_v16, %v8991_v17 }
 0x4cb   : > { %3970 = vrot.lane.b32.xlu1 %v9085_v45, %s12646_s24  ;;  %1977 = vmatprep.mubr.f32.mxu1 %v12823_v33  ;;  %v2919_v52 = vsel %vm2911_vm2, %v2902_v60, 0.0  ;;  %v4488_v7 = vsel %vm2911_vm2, %v4472_v22, 0.0  ;;  %v2542_v24 = vmul.f32 %v12998_v56, %v9535_v29 }
 0x4cc   : > { %4313 = vrot.lane.b32.xlu0 %v9562_v5, %s12646_s24  ;;  %2935 = vst [vmem:[%s9058_s30 + $0xe0] sm:$0xff] %v2919_v52  ;;  %4504 = vst [vmem:[%s9058_s30 + $0xf0] sm:$0xff] %v4488_v7  ;;  %v9581_v7 = vld [vmem:[%s12431_s2 + $0x30] sm:$0xff] }
 0x4cd   : > { %v9570_v45 = vpop.permute.xlu1 %2783  ;;  %13000 = vst [vmem:[#allocation203_spill] sm:$0xff] %v9576_v23 }
 0x4ce   : > { %12999 = vst [vmem:[#allocation35_spill] sm:$0xff] %v9570_v45  ;;  %1978 = vmatmul.mubr.f32.gmra.mrb[90].mxu1 %v1767_v49  ;;  %v2654_v49 = vmul.f32 %v9097_v51, %v9535_v29  ;;  %v2887_v60 = vsel %vm2877_vm0, %v9360_v9, %v9570_v45  ;;  %v4458_v16 = vsel %vm2877_vm0, %v9576_v23, %v9570_v45  ;;  %v9605_v9 = vld [vmem:[%s12431_s2 + $0x40] sm:$0xff] }
 0x4cf   : > { %2575 = vrot.lane.b32.xlu1 %v2542_v24, %s6653_s22  ;;  %1983 = vmatprep.mubr.f32.mxu1 %v12823_v33 }
 0x4d0   : > { %4317 = vrot.lane.b32.xlu0 %v9581_v7, %s12646_s24 }
 0x4d1   : > { %v9593_v22 = vpop.permute.xlu1 %2847 }
 0x4d2   : > { %13001 = vst [vmem:[#allocation204_spill] sm:$0xff] %v9593_v22  ;;  %v2904_v52 = vsel %vm2894_vm1, %v2887_v60, %v9593_v22  ;;  %v4474_v56 = vsel %vm2894_vm1, %v4458_v16, %v9593_v22  ;;  %v13002_v60 = vld [vmem:[#allocation87_spill] sm:$0xff] }
 0x4d3   : > { %2687 = vrot.lane.b32.xlu1 %v2654_v49, %s6648_s28  ;;  %v2921_v51 = vsel %vm2911_vm2, %v2904_v52, 0.0  ;;  %v4490_v24 = vsel %vm2911_vm2, %v4474_v56, 0.0  ;;  %v3265_v23 = vmul.f32 %v13002_v60, %v9535_v29  ;;  %v9618_v49 = vadd.f32 %v8774_v48, %v8991_v17  ;;  %v9623_v52 = vld [vmem:[%s12431_s2 + $0x50] sm:$0xff] }
 0x4d4   : > { %4321 = vrot.lane.b32.xlu0 %v9605_v9, %s12646_s24  ;;  %2937 = vst [vmem:[%s9058_s30 + $0x120] sm:$0xff] %v2921_v51  ;;  %4506 = vst [vmem:[%s9058_s30 + $0x130] sm:$0xff] %v4490_v24  ;;  %v13005_v56 = vld [vmem:[#allocation136_spill] sm:$0xff] }
 0x4d5   : > { %v9613_v16 = vpop.permute.xlu1 %2787  ;;  %13004 = vst [vmem:[#allocation205_spill] sm:$0xff] %v9618_v49  ;;  %v3473_v51 = vmul.f32 %v13005_v56, %v9535_v29 }
 0x4d6   : > { %13003 = vst [vmem:[#allocation87_spill] sm:$0xff] %v9613_v16  ;;  %v4460_v48 = vsel %vm2877_vm0, %v9618_v49, %v9613_v16 }
 0x4d7   : > { %3298 = vrot.lane.b32.xlu1 %v3265_v23, %s6653_s22  ;;  %v2889_v23 = vsel %vm2877_vm0, %v9424_v27, %v9613_v16  ;;  %v9647_v27 = vld [vmem:[%s12431_s2 + $0x60] sm:$0xff] }
 0x4d8   : > { %4325 = vrot.lane.b32.xlu0 %v9623_v52, %s12646_s24  ;;  %13007 = vst [vmem:[#allocation206_spill] sm:$0xff] %v9647_v27 }
 0x4d9   : > { %v9635_v24 = vpop.permute.xlu1 %2851 }
 0x4da   : > { %13006 = vst [vmem:[#allocation136_spill] sm:$0xff] %v9635_v24  ;;  %v2906_v60 = vsel %vm2894_vm1, %v2889_v23, %v9635_v24  ;;  %v4476_v40 = vsel %vm2894_vm1, %v4460_v48, %v9635_v24  ;;  %v13008_v23 = vld [vmem:[#allocation23_spill] sm:$0xff] }
 0x4db   : > { %3506 = vrot.lane.b32.xlu1 %v3473_v51, %s6648_s28  ;;  %v2923_v56 = vsel %vm2911_vm2, %v2906_v60, 0.0  ;;  %v4492_v3 = vsel %vm2911_vm2, %v4476_v40, 0.0  ;;  %v4146_v49 = vmul.f32 %v13008_v23, %v9535_v29  ;;  %v9660_v40 = vadd.f32 %v8861_v21, %v8991_v17  ;;  %v6410_v51 = vld [vmem:[%s12431_s2 + $0x70] sm:$0xff] }
 0x4dc   : > { %4329 = vrot.lane.b32.xlu0 %v9647_v27, %s12646_s24  ;;  %2939 = vst [vmem:[%s9058_s30 + $0x160] sm:$0xff] %v2923_v56  ;;  %4508 = vst [vmem:[%s9058_s30 + $0x170] sm:$0xff] %v4492_v3  ;;  %v1698_v3 = vmul.f32 0.0078125, %v9313_v0 }
 0x4dd   : > { %v9655_v48 = vpop.permute.xlu1 %2791  ;;  %13010 = vst [vmem:[#allocation207_spill] sm:$0xff] %v9660_v40 }
 0x4de   : > { %13009 = vst [vmem:[#allocation23_spill] sm:$0xff] %v9655_v48  ;;  %v2891_v60 = vsel %vm2877_vm0, %v9460_v19, %v9655_v48  ;;  %v13012_v19 = vld [vmem:[#allocation171_spill] sm:$0xff]  ;;  %v1714_v20 = vadd.f32 1.1920929e-07, %v1698_v3 }
 0x4df   : > { %4179 = vrot.lane.b32.xlu1 %v4146_v49, %s6653_s22  ;;  %v4462_v49 = vsel %vm2877_vm0, %v9660_v40, %v9655_v48  ;;  %v1208_v40 = vadd.f32 %v13012_v19, %v8988_v35 }
 0x4e0   : > { %4333 = vrot.lane.b32.xlu0 %v6410_v51, %s12646_s24  ;;  %6361 = vrsqrt.f32 %v1714_v20 }
 0x4e1   : > { %v9673_v56 = vpop.permute.xlu1 %2855 }
 0x4e2   : > { %13011 = vst [vmem:[#allocation208_spill] sm:$0xff] %v9673_v56  ;;  %v2908_v21 = vsel %vm2894_vm1, %v2891_v60, %v9673_v56  ;;  %v4478_v23 = vsel %vm2894_vm1, %v4462_v49, %v9673_v56  ;;  %v9693_v49 = vadd.f32 %v9026_v42, %v8991_v17 }
 0x4e3   : > { %3974 = vrot.lane.b32.xlu1 %v9137_v57, %s12646_s24  ;;  %v2925_v0 = vsel %vm2911_vm2, %v2908_v21, 0.0  ;;  %v4494_v51 = vsel %vm2911_vm2, %v4478_v23, 0.0 }
 0x4e4   : > { %3584 = vrot.lane.b32.xlu0 %v9324_v34, %s12646_s24  ;;  %2941 = vst [vmem:[%s9058_s30 + $0x1a0] sm:$0xff] %v2925_v0  ;;  %4510 = vst [vmem:[%s9058_s30 + $0x1b0] sm:$0xff] %v4494_v51  ;;  %v13015_v34 = vld [vmem:[#allocation179_spill] sm:$0xff] }
 0x4e5   : > { %v9689_v60 = vpop.permute.xlu1 %2795  ;;  %13014 = vst [vmem:[#allocation209_spill] sm:$0xff] %v9693_v49  ;;  %v1220_v21 = vadd.f32 %v13015_v34, %v8988_v35 }
 0x4e6   : > { %13013 = vst [vmem:[#allocation171_spill] sm:$0xff] %v9689_v60  ;;  %v1680_v53 = vpop.xlane.xlu0 %1679  ;;  %v2893_v3 = vsel %vm2877_vm0, %v9504_v38, %v9689_v60  ;;  %v4464_v23 = vsel %vm2877_vm0, %v9693_v49, %v9689_v60 }
 0x4e7   : > { %v1697_v57 = vmul.f32 0.0078125, %v1680_v53 }
 0x4e8   : > { %3588 = vrot.lane.b32.xlu0 %v1208_v40, %s12646_s24 }
 0x4e9   : > { %v1713_v0 = vadd.f32 1.1920929e-07, %v1697_v57  ;;  %v9704_v42 = vpop.permute.xlu1 %2859  ;;  %v13018_v57 = vld [vmem:[#allocation172_spill] sm:$0xff] }
 0x4ea   : > { %13016 = vst [vmem:[#allocation179_spill] sm:$0xff] %v9704_v42  ;;  %v2910_v53 = vsel %vm2894_vm1, %v2893_v3, %v9704_v42  ;;  %v4480_v51 = vsel %vm2894_vm1, %v4464_v23, %v9704_v42  ;;  %v9710_v19 = vpop.permute.xlu0 %2769  ;;  %v9719_v34 = vadd.f32 %v13018_v57, %v8991_v17  ;;  %v13020_v3 = vld [vmem:[#allocation187_spill] sm:$0xff]  ;;  %v6362_v27 = vpop.eup %6361 }
 0x4eb   : > { %13017 = vst [vmem:[#allocation210_spill] sm:$0xff] %v9710_v19  ;;  %6363 = vrsqrt.f32 %v1713_v0  ;;  %v2927_v20 = vsel %vm2911_vm2, %v2910_v53, 0.0  ;;  %v4496_v38 = vsel %vm2911_vm2, %v4480_v51, 0.0  ;;  %v9723_v49 = vadd.f32 %v13020_v3, %v8988_v35 }
 0x4ec   : > { %3592 = vrot.lane.b32.xlu0 %v1220_v21, %s12646_s24  ;;  %2943 = vst [vmem:[%s9058_s30 + $0x1e0] sm:$0xff] %v2927_v20  ;;  %4512 = vst [vmem:[%s9058_s30 + $0x1f0] sm:$0xff] %v4496_v38  ;;  %v2880_v20 = vsel %vm2877_vm0, %v1208_v40, %v9710_v19  ;;  %v4451_v38 = vsel %vm2877_vm0, %v9719_v34, %v9710_v19 }
 0x4ed   : > { %13019 = vst [vmem:[#allocation172_spill] sm:$0xff] %v9719_v34  ;;  %v9725_v23 = vpop.permute.xlu1 %4247  ;;  %v1913_v29 = vpop.f32.mrb[68].mxu1 }
 0x4ee   : > { %13021 = vst [vmem:[#allocation187_spill] sm:$0xff] %v9725_v23  ;;  %v9728_v0 = vadd.f32 %v1913_v29, %v9467_v4  ;;  %v9730_v53 = vpop.f32.mrb[69].mxu1  ;;  %v5964_v51 = vpop.f32.mrb[66].mxu0 }
 0x4ef   : > { %13023 = vst [vmem:[#allocation212_spill] sm:$0xff] %v9730_v53  ;;  %v9738_v57 = vadd.f32 %v5964_v51, %v9508_v44  ;;  %v9740_v3 = vpop.permute.xlu0 %2833  ;;  %v9744_v29 = vpop.f32.mrb[67].mxu0  ;;  %v9752_v53 = vadd.f32 %v8687_v2, %v8988_v35 }
 0x4f0   : > { %13022 = vst [vmem:[#allocation211_spill] sm:$0xff] %v9728_v0  ;;  %13024 = vst [vmem:[#allocation213_spill] sm:$0xff] %v9740_v3  ;;  %3596 = vrot.lane.b32.xlu0 %v9723_v49, %s12646_s24  ;;  %v2897_v23 = vsel %vm2894_vm1, %v2880_v20, %v9740_v3  ;;  %v4467_v40 = vsel %vm2894_vm1, %v4451_v38, %v9740_v3 }
 0x4f1   : > { %v2914_v51 = vsel %vm2911_vm2, %v2897_v23, 0.0  ;;  %v4483_v34 = vsel %vm2911_vm2, %v4467_v40, 0.0  ;;  %v9756_v0 = vpop.permute.xlu1 %4251  ;;  %v1919_v47 = vpop.f32.mrb[70].mxu1  ;;  %v2544_v37 = vmul.f32 %v13026_v18, %v9738_v57  ;;  %v13030_v40 = vld [vmem:[#allocation180_spill] sm:$0xff]  ;;  %v9778_v18 = vadd.f32 %v8768_v39, %v8988_v35 }
 0x4f2   : > { %13025 = vst [vmem:[#allocation214_spill] sm:$0xff] %v9756_v0  ;;  %2930 = vst [vmem:[%s9058_s30 + $0x40] sm:$0xff] %v2914_v51  ;;  %v9763_v20 = vadd.f32 %v1919_v47, %v9467_v4  ;;  %v9765_v38 = vpop.f32.mrb[71].mxu1  ;;  %v9774_v0 = vadd.f32 %v13030_v40, %v8991_v17 }
 0x4f3   : > { %4499 = vst [vmem:[%s9058_s30 + $0x50] sm:$0xff] %v4483_v34  ;;  %13028 = vst [vmem:[#allocation215_spill] sm:$0xff] %v9765_v38  ;;  %v9767_v2 = vpop.permute.xlu0 %2773  ;;  %2579 = vrot.lane.b32.xlu1 %v2544_v37, %s6653_s22  ;;  %v2656_v34 = vmul.f32 %v9126_v6, %v9738_v57  ;;  %v1746_v38 = vmul.f32 %v6362_v27, %v8799_v31  ;;  %v6411_v6 = vld [vmem:[%s12439_s10] ss:$0 sm:$0xff] }
 0x4f4   : > { %13027 = vst [vmem:[#allocation39_spill] sm:$0xff] %v9763_v20  ;;  %13029 = vst [vmem:[#allocation216_spill] sm:$0xff] %v9767_v2  ;;  %3600 = vrot.lane.b32.xlu0 %v9752_v53, %s12646_s24  ;;  %v2882_v37 = vsel %vm2877_vm0, %v1220_v21, %v9767_v2  ;;  %v4453_v40 = vsel %vm2877_vm0, %v9774_v0, %v9767_v2  ;;  %v9805_v21 = vadd.f32 %v8850_v13, %v8988_v35  ;;  %v13037_v13 = vld [vmem:[#allocation188_spill] sm:$0xff] }
 0x4f5   : > { %v6364_v23 = vpop.eup %6363  ;;  %13031 = vst [vmem:[#allocation180_spill] sm:$0xff] %v9774_v0  ;;  %v9780_v47 = vpop.permute.xlu1 %4255 }
 0x4f6   : > { %13032 = vst [vmem:[#allocation217_spill] sm:$0xff] %v9780_v47  ;;  %v1745_v51 = vmul.f32 %v6364_v23, %v8890_v41 }
 0x4f7   : > { %v9791_v39 = vpop.permute.xlu0 %2837  ;;  %2691 = vrot.lane.b32.xlu1 %v2656_v34, %s6648_s28 }
 0x4f8   : > { %13033 = vst [vmem:[#allocation218_spill] sm:$0xff] %v9791_v39  ;;  %3604 = vrot.lane.b32.xlu0 %v9778_v18, %s12646_s24  ;;  %v2899_v41 = vsel %vm2894_vm1, %v2882_v37, %v9791_v39  ;;  %v4469_v31 = vsel %vm2894_vm1, %v4453_v40, %v9791_v39  ;;  %v1768_v27 = vmul.f32 %v6411_v6, %v1745_v51  ;;  %v13035_v37 = vld [vmem:[#allocation89_spill] sm:$0xff] }
 0x4f9   : > { %v2916_v23 = vsel %vm2911_vm2, %v2899_v41, 0.0  ;;  %v4485_v0 = vsel %vm2911_vm2, %v4469_v31, 0.0  ;;  %v9809_v34 = vpop.permute.xlu1 %4259  ;;  %v3267_v47 = vmul.f32 %v13035_v37, %v9738_v57  ;;  %v1769_v40 = vmul.f32 %v6411_v6, %v1746_v38  ;;  %v13040_v41 = vld [vmem:[#allocation138_spill] sm:$0xff]  ;;  %v13043_v37 = vld [vmem:[#allocation24_spill] sm:$0xff] }
 0x4fa   : > { %13034 = vst [vmem:[#allocation219_spill] sm:$0xff] %v9809_v34  ;;  %2932 = vst [vmem:[%s9058_s30 + $0x80] sm:$0xff] %v2916_v23  ;;  %1984 = vmatmul.mubr.f32.gmra.mrb[92].mxu1 %v1768_v27  ;;  %5980 = vmatprep.mubr.f32.mxu0 %v1768_v27  ;;  %v9823_v51 = vadd.f32 %v13037_v13, %v8991_v17  ;;  %v3475_v31 = vmul.f32 %v13040_v41, %v9738_v57 }
 0x4fb   : > { %4501 = vst [vmem:[%s9058_s30 + $0x90] sm:$0xff] %v4485_v0  ;;  %v9815_v20 = vpop.permute.xlu0 %2777  ;;  %3302 = vrot.lane.b32.xlu1 %v3267_v47, %s6653_s22  ;;  %5981 = vmatmul.mubr.f32.gmra.mrb[78].mxu0 %v1769_v40  ;;  %v9827_v0 = vadd.f32 %v8985_v46, %v8988_v35  ;;  %v9863_v41 = vadd.f32 %v8690_v14, %v8991_v17 }
 0x4fc   : > { %13036 = vst [vmem:[#allocation89_spill] sm:$0xff] %v9815_v20  ;;  %3608 = vrot.lane.b32.xlu0 %v9805_v21, %s12646_s24  ;;  %1989 = vmatprep.mubr.f32.mxu1 %v12823_v33  ;;  %13038 = vst [vmem:[#allocation188_spill] sm:$0xff] %v9823_v51  ;;  %v2884_v33 = vsel %vm2877_vm0, %v9723_v49, %v9815_v20  ;;  %v4455_v47 = vsel %vm2877_vm0, %v9823_v51, %v9815_v20 }
 0x4fd   : > { %v9829_v38 = vpop.permute.xlu1 %4263  ;;  %13045 = vst [vmem:[#allocation222_spill] sm:$0xff] %v9863_v41 }
 0x4fe   : > { %13039 = vst [vmem:[#allocation220_spill] sm:$0xff] %v9829_v38  ;;  %1990 = vmatmul.mubr.f32.gmra.mrb[94].mxu1 %v1769_v40  ;;  %v4148_v40 = vmul.f32 %v13043_v37, %v9738_v57  ;;  %v13076_v38 = vld [vmem:[#allocation41_spill] sm:$0xff] }
 0x4ff   : > { %v9839_v6 = vpop.permute.xlu0 %2841  ;;  %3510 = vrot.lane.b32.xlu1 %v3475_v31, %s6648_s28  ;;  %v9867_v31 = vadd.f32 %v9411_v28, %v9508_v44 }
 0x500   : > { %13041 = vst [vmem:[#allocation138_spill] sm:$0xff] %v9839_v6  ;;  %3612 = vrot.lane.b32.xlu0 %v9827_v0, %s12646_s24  ;;  %v2901_v46 = vsel %vm2894_vm1, %v2884_v33, %v9839_v6  ;;  %v4471_v35 = vsel %vm2894_vm1, %v4455_v47, %v9839_v6 }
 0x501   : > { %v2918_v27 = vsel %vm2911_vm2, %v2901_v46, 0.0  ;;  %v4487_v49 = vsel %vm2911_vm2, %v4471_v35, 0.0  ;;  %v9850_v23 = vpop.permute.xlu1 %4267  ;;  %13046 = vst [vmem:[#allocation223_spill] sm:$0xff] %v9867_v31 }
 0x502   : > { %13042 = vst [vmem:[#allocation221_spill] sm:$0xff] %v9850_v23  ;;  %2934 = vst [vmem:[%s9058_s30 + $0xc0] sm:$0xff] %v2918_v27 }
 0x503   : > { %4503 = vst [vmem:[%s9058_s30 + $0xd0] sm:$0xff] %v4487_v49  ;;  %v9856_v13 = vpop.permute.xlu0 %2781  ;;  %4183 = vrot.lane.b32.xlu1 %v4148_v40, %s6653_s22  ;;  %v13050_v49 = vld [vmem:[#allocation31_spill] sm:$0xff] }
 0x504   : > { %13044 = vst [vmem:[#allocation24_spill] sm:$0xff] %v9856_v13  ;;  %3968 = vrot.lane.b32.xlu0 %v9065_v58, %s12646_s24  ;;  %v2886_v47 = vsel %vm2877_vm0, %v9752_v53, %v9856_v13  ;;  %v4457_v46 = vsel %vm2877_vm0, %v9863_v41, %v9856_v13  ;;  %v2541_v37 = vmul.f32 %v13050_v49, %v9867_v31 }
 0x505   : > { %v9869_v33 = vpop.permute.xlu1 %4271 }
 0x506   : > { %13047 = vst [vmem:[#allocation224_spill] sm:$0xff] %v9869_v33 }
 0x507   : > { %v9877_v58 = vpop.permute.xlu0 %2845  ;;  %3978 = vrot.lane.b32.xlu1 %v9185_v11, %s12646_s24 }
 0x508   : > { %13048 = vst [vmem:[#allocation225_spill] sm:$0xff] %v9877_v58  ;;  %3972 = vrot.lane.b32.xlu0 %v9114_v32, %s12646_s24  ;;  %v2903_v14 = vsel %vm2894_vm1, %v2886_v47, %v9877_v58  ;;  %v4473_v28 = vsel %vm2894_vm1, %v4457_v46, %v9877_v58  ;;  %v9900_v32 = vadd.f32 %v8770_v43, %v8991_v17 }
 0x509   : > { %v2920_v53 = vsel %vm2911_vm2, %v2903_v14, 0.0  ;;  %v4489_v35 = vsel %vm2911_vm2, %v4473_v28, 0.0  ;;  %v9889_v27 = vpop.permute.xlu1 %4307  ;;  %v2653_v47 = vmul.f32 %v9497_v12, %v9867_v31 }
 0x50a   : > { %13049 = vst [vmem:[#allocation226_spill] sm:$0xff] %v9889_v27  ;;  %2936 = vst [vmem:[%s9058_s30 + $0x100] sm:$0xff] %v2920_v53 }
 0x50b   : > { %4505 = vst [vmem:[%s9058_s30 + $0x110] sm:$0xff] %v4489_v35  ;;  %v9895_v11 = vpop.permute.xlu0 %2785  ;;  %13052 = vst [vmem:[#allocation227_spill] sm:$0xff] %v9900_v32 }
 0x50c   : > { %13051 = vst [vmem:[#allocation31_spill] sm:$0xff] %v9895_v11  ;;  %2573 = vrot.lane.b32.xlu0 %v2541_v37, %s6653_s22  ;;  %v2888_v46 = vsel %vm2877_vm0, %v9778_v18, %v9895_v11  ;;  %v4459_v14 = vsel %vm2877_vm0, %v9900_v32, %v9895_v11  ;;  %v13056_v18 = vld [vmem:[#allocation75_spill] sm:$0xff] }
 0x50d   : > { %v9902_v40 = vpop.permute.xlu1 %4311  ;;  %v3264_v37 = vmul.f32 %v13056_v18, %v9867_v31 }
 0x50e   : > { %13053 = vst [vmem:[#allocation228_spill] sm:$0xff] %v9902_v40 }
 0x50f   : > { %v9912_v28 = vpop.permute.xlu0 %2849 }
 0x510   : > { %13054 = vst [vmem:[#allocation229_spill] sm:$0xff] %v9912_v28  ;;  %2685 = vrot.lane.b32.xlu0 %v2653_v47, %s6648_s28  ;;  %v2905_v43 = vsel %vm2894_vm1, %v2888_v46, %v9912_v28  ;;  %v4475_v53 = vsel %vm2894_vm1, %v4459_v14, %v9912_v28  ;;  %v9932_v47 = vadd.f32 %v8853_v15, %v8991_v17  ;;  %v13060_v14 = vld [vmem:[#allocation114_spill] sm:$0xff] }
 0x511   : > { %v2922_v12 = vsel %vm2911_vm2, %v2905_v43, 0.0  ;;  %v4491_v35 = vsel %vm2911_vm2, %v4475_v53, 0.0  ;;  %v9921_v49 = vpop.permute.xlu1 %4315  ;;  %v3472_v43 = vmul.f32 %v13060_v14, %v9867_v31 }
 0x512   : > { %13055 = vst [vmem:[#allocation230_spill] sm:$0xff] %v9921_v49  ;;  %2938 = vst [vmem:[%s9058_s30 + $0x140] sm:$0xff] %v2922_v12 }
 0x513   : > { %4507 = vst [vmem:[%s9058_s30 + $0x150] sm:$0xff] %v4491_v35  ;;  %v9927_v32 = vpop.permute.xlu0 %2789  ;;  %13058 = vst [vmem:[#allocation231_spill] sm:$0xff] %v9932_v47 }
 0x514   : > { %13057 = vst [vmem:[#allocation75_spill] sm:$0xff] %v9927_v32  ;;  %3296 = vrot.lane.b32.xlu0 %v3264_v37, %s6653_s22  ;;  %v2890_v53 = vsel %vm2877_vm0, %v9805_v21, %v9927_v32  ;;  %v4461_v12 = vsel %vm2877_vm0, %v9932_v47, %v9927_v32  ;;  %v13063_v21 = vld [vmem:[#allocation155_spill] sm:$0xff] }
 0x515   : > { %v9934_v46 = vpop.permute.xlu1 %4319  ;;  %v4145_v47 = vmul.f32 %v13063_v21, %v9867_v31 }
 0x516   : > { %13059 = vst [vmem:[#allocation232_spill] sm:$0xff] %v9934_v46 }
 0x517   : > { %v9944_v35 = vpop.permute.xlu0 %2853 }
 0x518   : > { %13061 = vst [vmem:[#allocation114_spill] sm:$0xff] %v9944_v35  ;;  %3504 = vrot.lane.b32.xlu0 %v3472_v43, %s6648_s28  ;;  %v2907_v15 = vsel %vm2894_vm1, %v2890_v53, %v9944_v35  ;;  %v4477_v18 = vsel %vm2894_vm1, %v4461_v12, %v9944_v35  ;;  %v9964_v53 = vadd.f32 %v8995_v1, %v8991_v17 }
 0x519   : > { %v2924_v37 = vsel %vm2911_vm2, %v2907_v15, 0.0  ;;  %v4493_v14 = vsel %vm2911_vm2, %v4477_v18, 0.0  ;;  %v9953_v41 = vpop.permute.xlu1 %4323 }
 0x51a   : > { %13062 = vst [vmem:[#allocation233_spill] sm:$0xff] %v9953_v41  ;;  %2940 = vst [vmem:[%s9058_s30 + $0x180] sm:$0xff] %v2924_v37 }
 0x51b   : > { %4509 = vst [vmem:[%s9058_s30 + $0x190] sm:$0xff] %v4493_v14  ;;  %v9959_v43 = vpop.permute.xlu0 %2793  ;;  %13065 = vst [vmem:[#allocation234_spill] sm:$0xff] %v9964_v53 }
 0x51c   : > { %13064 = vst [vmem:[#allocation155_spill] sm:$0xff] %v9959_v43  ;;  %4177 = vrot.lane.b32.xlu0 %v4145_v47, %s6653_s22  ;;  %v2892_v15 = vsel %vm2877_vm0, %v9827_v0, %v9959_v43  ;;  %v4463_v18 = vsel %vm2877_vm0, %v9964_v53, %v9959_v43 }
 0x51d   : > { %v9966_v12 = vpop.permute.xlu1 %4327 }
 0x51e   : > { %13066 = vst [vmem:[#allocation235_spill] sm:$0xff] %v9966_v12 }
 0x51f   : > { %v9974_v37 = vpop.permute.xlu0 %2857 }
 0x520   : > { %13067 = vst [vmem:[#allocation236_spill] sm:$0xff] %v9974_v37  ;;  %v2909_v14 = vsel %vm2894_vm1, %v2892_v15, %v9974_v37  ;;  %v4479_v47 = vsel %vm2894_vm1, %v4463_v18, %v9974_v37 }
 0x521   : > { %v2926_v17 = vsel %vm2911_vm2, %v2909_v14, 0.0  ;;  %v4495_v1 = vsel %vm2911_vm2, %v4479_v47, 0.0  ;;  %v9982_v21 = vpop.permute.xlu1 %4331 }
 0x522   : > { %13068 = vst [vmem:[#allocation237_spill] sm:$0xff] %v9982_v21  ;;  %2942 = vst [vmem:[%s9058_s30 + $0x1c0] sm:$0xff] %v2926_v17  ;;  %v1925_v0 = vpop.f32.mrb[72].mxu1 }
 0x523   : > { %4511 = vst [vmem:[%s9058_s30 + $0x1d0] sm:$0xff] %v4495_v1  ;;  %v9987_v51 = vadd.f32 %v1925_v0, %v9467_v4  ;;  %v9989_v53 = vpop.permute.xlu0 %4245  ;;  %v9991_v33 = vpop.f32.mrb[73].mxu1 }
 0x524   : > { %13070 = vst [vmem:[#allocation239_spill] sm:$0xff] %v9989_v53  ;;  %13071 = vst [vmem:[#allocation240_spill] sm:$0xff] %v9991_v33  ;;  %v5967_v15 = vpop.f32.mrb[68].mxu0  ;;  %v13077_v53 = vld [vmem:[#allocation190_spill] sm:$0xff] }
 0x525   : > { %13069 = vst [vmem:[#allocation238_spill] sm:$0xff] %v9987_v51  ;;  %v9994_v18 = vadd.f32 %v5967_v15, %v9508_v44  ;;  %v9996_v14 = vpop.f32.mrb[69].mxu0  ;;  %v9998_v47 = vpop.permute.xlu1 %4335 }
 0x526   : > { %13072 = vst [vmem:[#allocation241_spill] sm:$0xff] %v9998_v47  ;;  %v1931_v23 = vpop.f32.mrb[74].mxu1 }
 0x527   : > { %v10001_v17 = vadd.f32 %v1931_v23, %v9467_v4  ;;  %v10003_v1 = vpop.permute.xlu0 %4249  ;;  %v10005_v0 = vpop.f32.mrb[75].mxu1  ;;  %v2546_v34 = vmul.f32 %v13076_v38, %v9994_v18  ;;  %v13079_v23 = vld [vmem:[#allocation184_spill] sm:$0xff] }
 0x528   : > { %13074 = vst [vmem:[#allocation243_spill] sm:$0xff] %v10003_v1  ;;  %13075 = vst [vmem:[#allocation244_spill] sm:$0xff] %v10005_v0  ;;  %v2658_v1 = vmul.f32 %v13079_v23, %v9994_v18 }
 0x529   : > { %13073 = vst [vmem:[#allocation242_spill] sm:$0xff] %v10001_v17  ;;  %2583 = vrot.lane.b32.xlu1 %v2546_v34, %s6653_s22  ;;  %v3587_v15 = vpop.permute.xlu1 %3586 }
 0x52a   : > { %v3633_v33 = vsel %vm2877_vm0, %v3587_v15, %v8993_v30 }
 0x52b   : > { %v3649_v47 = vsel %vm2894_vm1, %v3633_v33, %v13077_v53  ;;  %v10014_v21 = vpop.permute.xlu0 %4253  ;;  %v13081_v33 = vld [vmem:[#allocation91_spill] sm:$0xff] }
 0x52c   : > { %13078 = vst [vmem:[#allocation41_spill] sm:$0xff] %v10014_v21  ;;  %v3665_v0 = vsel %vm2911_vm2, %v3649_v47, 0.0  ;;  %v3269_v53 = vmul.f32 %v13081_v33, %v9994_v18 }
 0x52d   : > { %3681 = vst [vmem:[%s9058_s30 + $0x28] sm:$0xff] %v3665_v0  ;;  %2695 = vrot.lane.b32.xlu1 %v2658_v1, %s6648_s28  ;;  %v3591_v38 = vpop.permute.xlu1 %3590 }
 0x52e   : > { %v3635_v34 = vsel %vm2877_vm0, %v3591_v38, %v9349_v62 }
 0x52f   : > { %v3651_v15 = vsel %vm2894_vm1, %v3635_v34, %v9397_v26  ;;  %v10025_v30 = vpop.permute.xlu0 %4257  ;;  %v13083_v34 = vld [vmem:[#allocation140_spill] sm:$0xff] }
 0x530   : > { %13080 = vst [vmem:[#allocation184_spill] sm:$0xff] %v10025_v30  ;;  %v3667_v23 = vsel %vm2911_vm2, %v3651_v15, 0.0  ;;  %v3477_v26 = vmul.f32 %v13083_v34, %v9994_v18  ;;  %v13107_v30 = vld [vmem:[#allocation126_spill] sm:$0xff] }
 0x531   : > { %3683 = vst [vmem:[%s9058_s30 + $0x68] sm:$0xff] %v3667_v23  ;;  %3306 = vrot.lane.b32.xlu1 %v3269_v53, %s6653_s22  ;;  %v3595_v47 = vpop.permute.xlu1 %3594 }
 0x532   : > { %v3637_v1 = vsel %vm2877_vm0, %v3595_v47, %v9436_v55 }
 0x533   : > { %v3653_v0 = vsel %vm2894_vm1, %v3637_v1, %v9478_v54  ;;  %v10036_v38 = vpop.permute.xlu0 %4261  ;;  %v13085_v1 = vld [vmem:[#allocation25_spill] sm:$0xff] }
 0x534   : > { %13082 = vst [vmem:[#allocation91_spill] sm:$0xff] %v10036_v38  ;;  %v3669_v33 = vsel %vm2911_vm2, %v3653_v0, 0.0  ;;  %v4150_v54 = vmul.f32 %v13085_v1, %v9994_v18  ;;  %v13106_v38 = vld [vmem:[#allocation33_spill] sm:$0xff] }
 0x535   : > { %3685 = vst [vmem:[%s9058_s30 + $0xa8] sm:$0xff] %v3669_v33  ;;  %3514 = vrot.lane.b32.xlu1 %v3477_v26, %s6648_s28  ;;  %v3599_v15 = vpop.permute.xlu1 %3598 }
 0x536   : > { %v3639_v53 = vsel %vm2877_vm0, %v3599_v15, %v9517_v61  ;;  %v13101_v61 = vld [vmem:[#allocation43_spill] sm:$0xff] }
 0x537   : > { %v3655_v23 = vsel %vm2894_vm1, %v3639_v53, %v9548_v59  ;;  %v10047_v47 = vpop.permute.xlu0 %4265 }
 0x538   : > { %13084 = vst [vmem:[#allocation140_spill] sm:$0xff] %v10047_v47  ;;  %v3671_v34 = vsel %vm2911_vm2, %v3655_v23, 0.0 }
 0x539   : > { %3687 = vst [vmem:[%s9058_s30 + $0xe8] sm:$0xff] %v3671_v34  ;;  %4187 = vrot.lane.b32.xlu1 %v4150_v54, %s6653_s22  ;;  %v3603_v0 = vpop.permute.xlu1 %3602 }
 0x53a   : > { %v3641_v26 = vsel %vm2877_vm0, %v3603_v0, %v9570_v45 }
 0x53b   : > { %v3657_v33 = vsel %vm2894_vm1, %v3641_v26, %v9593_v22  ;;  %v10058_v15 = vpop.permute.xlu0 %4269 }
 0x53c   : > { %13086 = vst [vmem:[#allocation25_spill] sm:$0xff] %v10058_v15  ;;  %v3673_v53 = vsel %vm2911_vm2, %v3657_v33, 0.0 }
 0x53d   : > { %3689 = vst [vmem:[%s9058_s30 + $0x128] sm:$0xff] %v3673_v53  ;;  %3982 = vrot.lane.b32.xlu1 %v9231_v36, %s12646_s24  ;;  %v3607_v23 = vpop.permute.xlu1 %3606 }
 0x53e   : > { %v3643_v54 = vsel %vm2877_vm0, %v3607_v23, %v9613_v16 }
 0x53f   : > { %v3659_v1 = vsel %vm2894_vm1, %v3643_v54, %v9635_v24  ;;  %v4306_v34 = vpop.permute.xlu0 %4305  ;;  %v10080_v54 = vadd.f32 %v9744_v29, %v9508_v44  ;;  %v13090_v29 = vld [vmem:[#allocation37_spill] sm:$0xff] }
 0x540   : > { %v3675_v0 = vsel %vm2911_vm2, %v3659_v1, 0.0  ;;  %v4353_v26 = vmul.f32 %v4306_v34, %v9867_v31  ;;  %v13097_v24 = vld [vmem:[#allocation157_spill] sm:$0xff] }
 0x541   : > { %3691 = vst [vmem:[%s9058_s30 + $0x168] sm:$0xff] %v3675_v0  ;;  %v3611_v33 = vpop.permute.xlu1 %3610  ;;  %v4147_v16 = vmul.f32 %v13097_v24, %v10080_v54  ;;  %v10141_v24 = vadd.f32 %v9996_v14, %v9508_v44 }
 0x542   : > { %v3645_v53 = vsel %vm2877_vm0, %v3611_v33, %v9655_v48  ;;  %4385 = vrot.lane.b32.xlu0 %v4353_v26, %s6648_s28  ;;  %v13088_v33 = vld [vmem:[#allocation134_spill] sm:$0xff]  ;;  %v2543_v48 = vmul.f32 %v13090_v29, %v10080_v54 }
 0x543   : > { %v3661_v36 = vsel %vm2894_vm1, %v3645_v53, %v9673_v56  ;;  %v10076_v23 = vpop.permute.xlu0 %4309 }
 0x544   : > { %13087 = vst [vmem:[#allocation245_spill] sm:$0xff] %v10076_v23  ;;  %v3677_v1 = vsel %vm2911_vm2, %v3661_v36, 0.0 }
 0x545   : > { %3693 = vst [vmem:[%s9058_s30 + $0x1a8] sm:$0xff] %v3677_v1  ;;  %v3615_v34 = vpop.permute.xlu1 %3614 }
 0x546   : > { %v3647_v0 = vsel %vm2877_vm0, %v3615_v34, %v9689_v60  ;;  %3976 = vrot.lane.b32.xlu0 %v13088_v33, %s12646_s24  ;;  %v2655_v34 = vmul.f32 %v9529_v10, %v10080_v54 }
 0x547   : > { %v3663_v26 = vsel %vm2894_vm1, %v3647_v0, %v9704_v42  ;;  %v10090_v53 = vpop.permute.xlu0 %4313 }
 0x548   : > { %13089 = vst [vmem:[#allocation134_spill] sm:$0xff] %v10090_v53  ;;  %v3679_v56 = vsel %vm2911_vm2, %v3663_v26, 0.0  ;;  %v13093_v26 = vld [vmem:[#allocation76_spill] sm:$0xff] }
 0x549   : > { %3695 = vst [vmem:[%s9058_s30 + $0x1e8] sm:$0xff] %v3679_v56  ;;  %v3971_v36 = vpop.permute.xlu1 %3970  ;;  %v3266_v29 = vmul.f32 %v13093_v26, %v10080_v54 }
 0x54a   : > { %5756 = vst.msk [vmem:[%s9047_s14 + $0x88] sm:$0xff] %vm2877_vm0, %v3971_v36  ;;  %2577 = vrot.lane.b32.xlu0 %v2543_v48, %s6653_s22  ;;  %v13095_v48 = vld [vmem:[#allocation116_spill] sm:$0xff] }
 0x54b   : > { %v10099_v1 = vpop.permute.xlu0 %4317  ;;  %v3474_v42 = vmul.f32 %v13095_v48, %v10080_v54 }
 0x54c   : > { %13091 = vst [vmem:[#allocation37_spill] sm:$0xff] %v10099_v1 }
 0x54d   : > { %v10103_v33 = vpop.permute.xlu1 %2575 }
 0x54e   : > { %2689 = vrot.lane.b32.xlu0 %v2655_v34, %s6648_s28 }
 0x54f   : > { %v10106_v0 = vpop.permute.xlu0 %4321 }
 0x550   : > { %13092 = vst [vmem:[#allocation246_spill] sm:$0xff] %v10106_v0 }
 0x551   : > { %v10110_v56 = vpop.permute.xlu1 %2687 }
 0x552   : > { %3300 = vrot.lane.b32.xlu0 %v3266_v29, %s6653_s22 }
 0x553   : > { %v10113_v36 = vpop.permute.xlu0 %4325 }
 0x554   : > { %13094 = vst [vmem:[#allocation76_spill] sm:$0xff] %v10113_v36 }
 0x555   : > { %v10117_v60 = vpop.permute.xlu1 %3298 }
 0x556   : > { %3508 = vrot.lane.b32.xlu0 %v3474_v42, %s6648_s28 }
 0x557   : > { %v10120_v10 = vpop.permute.xlu0 %4329  ;;  %v1937_v34 = vpop.f32.mrb[76].mxu1 }
 0x558   : > { %13096 = vst [vmem:[#allocation116_spill] sm:$0xff] %v10120_v10  ;;  %v10125_v26 = vadd.f32 %v1937_v34, %v9467_v4  ;;  %v10127_v22 = vpop.f32.mrb[77].mxu1  ;;  %v5970_v29 = vpop.f32.mrb[70].mxu0 }
 0x559   : > { %13099 = vst [vmem:[#allocation247_spill] sm:$0xff] %v10127_v22  ;;  %v10130_v45 = vadd.f32 %v5970_v29, %v9508_v44  ;;  %v10132_v48 = vpop.permute.xlu1 %3506  ;;  %v10134_v59 = vpop.f32.mrb[71].mxu0 }
 0x55a   : > { %13098 = vst [vmem:[#allocation157_spill] sm:$0xff] %v10125_v26  ;;  %4181 = vrot.lane.b32.xlu0 %v4147_v16, %s6653_s22  ;;  %v13105_v16 = vld [vmem:[#allocation28_spill] sm:$0xff] }
 0x55b   : > { %v10137_v42 = vpop.permute.xlu0 %4333  ;;  %v1943_v34 = vpop.f32.mrb[78].mxu1  ;;  %v2548_v55 = vmul.f32 %v13101_v61, %v10130_v45  ;;  %v6412_v61 = vld [vmem:[%s12431_s2 + $0x38] sm:$0xff] }
 0x55c   : > { %13100 = vst [vmem:[#allocation248_spill] sm:$0xff] %v10137_v42  ;;  %v10146_v29 = vadd.f32 %v1943_v34, %v9467_v4  ;;  %v10148_v62 = vpop.f32.mrb[79].mxu1  ;;  %v2660_v34 = vmul.f32 %v6412_v61, %v10130_v45 }
 0x55d   : > { %13103 = vst [vmem:[#allocation249_spill] sm:$0xff] %v10148_v62  ;;  %v10150_v15 = vpop.permute.xlu1 %4179  ;;  %2587 = vrot.lane.b32.xlu1 %v2548_v55, %s6653_s22  ;;  %v2545_v62 = vmul.f32 %v13106_v38, %v10141_v24  ;;  %v13108_v38 = vld [vmem:[#allocation93_spill] sm:$0xff] }
 0x55e   : > { %13102 = vst [vmem:[#allocation43_spill] sm:$0xff] %v10146_v29  ;;  %13104 = vst [vmem:[#allocation250_spill] sm:$0xff] %v10150_v15  ;;  %3980 = vrot.lane.b32.xlu0 %v13105_v16, %s12646_s24 }
 0x55f   : > { %v3585_v14 = vpop.permute.xlu0 %3584 }
 0x560   : > { %v3632_v47 = vsel %vm2877_vm0, %v3585_v14, %v9315_v8  ;;  %v3271_v8 = vmul.f32 %v13108_v38, %v10130_v45  ;;  %v13110_v38 = vld [vmem:[#allocation78_spill] sm:$0xff] }
 0x561   : > { %v3648_v22 = vsel %vm2894_vm1, %v3632_v47, %v13107_v30  ;;  %v3975_v16 = vpop.permute.xlu1 %3974  ;;  %2699 = vrot.lane.b32.xlu1 %v2660_v34, %s6648_s28  ;;  %v2657_v47 = vmul.f32 %v9562_v5, %v10141_v24 }
 0x562   : > { %v3664_v55 = vsel %vm2911_vm2, %v3648_v22, 0.0  ;;  %2581 = vrot.lane.b32.xlu0 %v2545_v62, %s6653_s22  ;;  %5758 = vst.msk [vmem:[%s9047_s14 + $0x98] sm:$0xff] %vm2877_vm0, %v3975_v16 }
 0x563   : > { %3680 = vst [vmem:[%s9058_s30 + $0x8] sm:$0xff] %v3664_v55  ;;  %v3589_v14 = vpop.permute.xlu0 %3588 }
 0x564   : > { %v3634_v61 = vsel %vm2877_vm0, %v3589_v14, %v9710_v19  ;;  %v13109_v14 = vld [vmem:[#allocation142_spill] sm:$0xff]  ;;  %v3268_v19 = vmul.f32 %v13110_v38, %v10141_v24  ;;  %v13112_v38 = vld [vmem:[#allocation119_spill] sm:$0xff] }
 0x565   : > { %v3650_v22 = vsel %vm2894_vm1, %v3634_v61, %v9740_v3  ;;  %v10180_v62 = vpop.permute.xlu1 %2579  ;;  %3310 = vrot.lane.b32.xlu1 %v3271_v8, %s6653_s22  ;;  %v3479_v5 = vmul.f32 %v13109_v14, %v10130_v45  ;;  %v13133_v3 = vld [vmem:[#allocation82_spill] sm:$0xff] }
 0x566   : > { %v3666_v34 = vsel %vm2911_vm2, %v3650_v22, 0.0  ;;  %2693 = vrot.lane.b32.xlu0 %v2657_v47, %s6648_s28 }
 0x567   : > { %3682 = vst [vmem:[%s9058_s30 + $0x48] sm:$0xff] %v3666_v34  ;;  %v3593_v55 = vpop.permute.xlu0 %3592 }
 0x568   : > { %v3636_v16 = vsel %vm2877_vm0, %v3593_v55, %v9767_v2  ;;  %v13111_v55 = vld [vmem:[#allocation26_spill] sm:$0xff] }
 0x569   : > { %v3652_v61 = vsel %vm2894_vm1, %v3636_v16, %v9791_v39  ;;  %v10194_v8 = vpop.permute.xlu1 %2691  ;;  %3518 = vrot.lane.b32.xlu1 %v3479_v5, %s6648_s28  ;;  %v4152_v14 = vmul.f32 %v13111_v55, %v10130_v45  ;;  %v3476_v16 = vmul.f32 %v13112_v38, %v10141_v24 }
 0x56a   : > { %v3668_v22 = vsel %vm2911_vm2, %v3652_v61, 0.0  ;;  %3304 = vrot.lane.b32.xlu0 %v3268_v19, %s6653_s22 }
 0x56b   : > { %3684 = vst [vmem:[%s9058_s30 + $0x88] sm:$0xff] %v3668_v22  ;;  %v3597_v47 = vpop.permute.xlu0 %3596 }
 0x56c   : > { %v3638_v34 = vsel %vm2877_vm0, %v3597_v47, %v9815_v20  ;;  %v13113_v47 = vld [vmem:[#allocation159_spill] sm:$0xff] }
 0x56d   : > { %v3654_v61 = vsel %vm2894_vm1, %v3638_v34, %v9839_v6  ;;  %v10208_v5 = vpop.permute.xlu1 %3302  ;;  %4191 = vrot.lane.b32.xlu1 %v4152_v14, %s6653_s22  ;;  %v4149_v55 = vmul.f32 %v13113_v47, %v10141_v24  ;;  %v13114_v14 = vld [vmem:[#allocation94_spill] sm:$0xff] }
 0x56e   : > { %v3670_v39 = vsel %vm2911_vm2, %v3654_v61, 0.0  ;;  %3512 = vrot.lane.b32.xlu0 %v3476_v16, %s6648_s28  ;;  %v10228_v16 = vadd.f32 %v10134_v59, %v9508_v44 }
 0x56f   : > { %3686 = vst [vmem:[%s9058_s30 + $0xc8] sm:$0xff] %v3670_v39  ;;  %v3601_v19 = vpop.permute.xlu0 %3600 }
 0x570   : > { %v3640_v22 = vsel %vm2877_vm0, %v3601_v19, %v9856_v13 }
 0x571   : > { %v3656_v34 = vsel %vm2894_vm1, %v3640_v22, %v9877_v58  ;;  %v10220_v61 = vpop.permute.xlu1 %3510  ;;  %3986 = vrot.lane.b32.xlu1 %v13114_v14, %s12646_s24  ;;  %v13117_v14 = vld [vmem:[#allocation34_spill] sm:$0xff] }
 0x572   : > { %v3672_v38 = vsel %vm2911_vm2, %v3656_v34, 0.0  ;;  %4185 = vrot.lane.b32.xlu0 %v4149_v55, %s6653_s22  ;;  %v13116_v55 = vld [vmem:[#allocation113_spill] sm:$0xff] }
 0x573   : > { %3688 = vst [vmem:[%s9058_s30 + $0x108] sm:$0xff] %v3672_v38  ;;  %v3605_v39 = vpop.permute.xlu0 %3604 }
 0x574   : > { %v3642_v19 = vsel %vm2877_vm0, %v3605_v39, %v9895_v11  ;;  %v2547_v39 = vmul.f32 %v13117_v14, %v10228_v16  ;;  %v6413_v11 = vld [vmem:[%s12431_s2 + $0x48] sm:$0xff] }
 0x575   : > { %v3658_v22 = vsel %vm2894_vm1, %v3642_v19, %v9912_v28  ;;  %v10235_v34 = vpop.permute.xlu1 %4183 }
 0x576   : > { %v3674_v47 = vsel %vm2911_vm2, %v3658_v22, 0.0  ;;  %13115 = vst [vmem:[#allocation28_spill] sm:$0xff] %v10235_v34  ;;  %3984 = vrot.lane.b32.xlu0 %v13116_v55, %s12646_s24 }
 0x577   : > { %3690 = vst [vmem:[%s9058_s30 + $0x148] sm:$0xff] %v3674_v47  ;;  %v3609_v38 = vpop.permute.xlu0 %3608 }
 0x578   : > { %v3644_v59 = vsel %vm2877_vm0, %v3609_v38, %v9927_v32  ;;  %v2659_v38 = vmul.f32 %v9581_v7, %v10228_v16  ;;  %v13119_v7 = vld [vmem:[#allocation122_spill] sm:$0xff] }
 0x579   : > { %v3660_v19 = vsel %vm2894_vm1, %v3644_v59, %v9944_v35  ;;  %v3979_v28 = vpop.permute.xlu1 %3978 }
 0x57a   : > { %v3676_v22 = vsel %vm2911_vm2, %v3660_v19, 0.0  ;;  %2585 = vrot.lane.b32.xlu0 %v2547_v39, %s6653_s22  ;;  %5760 = vst.msk [vmem:[%s9047_s14 + $0xa8] sm:$0xff] %vm2877_vm0, %v3979_v28  ;;  %v13118_v28 = vld [vmem:[#allocation80_spill] sm:$0xff] }
 0x57b   : > { %3692 = vst [vmem:[%s9058_s30 + $0x188] sm:$0xff] %v3676_v22  ;;  %v3613_v47 = vpop.permute.xlu0 %3612  ;;  %v3270_v39 = vmul.f32 %v13118_v28, %v10228_v16 }
 0x57c   : > { %v3646_v55 = vsel %vm2877_vm0, %v3613_v47, %v9959_v43  ;;  %v3478_v47 = vmul.f32 %v13119_v7, %v10228_v16 }
 0x57d   : > { %v3662_v14 = vsel %vm2894_vm1, %v3646_v55, %v9974_v37  ;;  %v13120_v55 = vld [vmem:[#allocation161_spill] sm:$0xff] }
 0x57e   : > { %v3678_v59 = vsel %vm2911_vm2, %v3662_v14, 0.0  ;;  %2697 = vrot.lane.b32.xlu0 %v2659_v38, %s6648_s28  ;;  %v4151_v38 = vmul.f32 %v13120_v55, %v10228_v16 }
 0x57f   : > { %3694 = vst [vmem:[%s9058_s30 + $0x1c8] sm:$0xff] %v3678_v59  ;;  %v3969_v19 = vpop.permute.xlu0 %3968 }
 0x580   : > { %5755 = vst.msk [vmem:[%s9047_s14 + $0x80] sm:$0xff] %vm2877_vm0, %v3969_v19 }
 0x582   : > { %3308 = vrot.lane.b32.xlu0 %v3270_v39, %s6653_s22 }
 0x583   : > { %v3973_v22 = vpop.permute.xlu0 %3972 }
 0x584   : > { %5757 = vst.msk [vmem:[%s9047_s14 + $0x90] sm:$0xff] %vm2877_vm0, %v3973_v22  ;;  %v13123_v22 = vld [vmem:[#allocation169_spill] sm:$0xff] }
 0x586   : > { %3516 = vrot.lane.b32.xlu0 %v3478_v47, %s6648_s28 }
 0x58a   : > { %4189 = vrot.lane.b32.xlu0 %v4151_v38, %s6653_s22  ;;  %v13124_v38 = vld [vmem:[#allocation45_spill] sm:$0xff] }
 0x58d   : > { %v1949_v14 = vpop.f32.mrb[80].mxu1 }
 0x58e   : > { %v10274_v59 = vadd.f32 %v1949_v14, %v9467_v4  ;;  %v10276_v19 = vpop.f32.mrb[81].mxu1  ;;  %v5973_v28 = vpop.f32.mrb[72].mxu0  ;;  %3988 = vrot.lane.b32.xlu0 %v13123_v22, %s12646_s24 }
 0x58f   : > { %13122 = vst [vmem:[#allocation93_spill] sm:$0xff] %v10276_v19  ;;  %v10279_v39 = vadd.f32 %v5973_v28, %v9508_v44  ;;  %v2102_v7 = vpop.f32.mrb[73].mxu0  ;;  %v13127_v28 = vld [vmem:[#allocation36_spill] sm:$0xff]  ;;  %v13138_v19 = vld [vmem:[#allocation193_spill] sm:$0xff] }
 0x590   : > { %13121 = vst [vmem:[#allocation33_spill] sm:$0xff] %v10274_v59  ;;  %v10284_v47 = vadd.f32 %v2102_v7, %v9508_v44 }
 0x591   : > { %v1955_v55 = vpop.f32.mrb[82].mxu1  ;;  %v2550_v37 = vmul.f32 %v13124_v38, %v10279_v39  ;;  %v2662_v38 = vmul.f32 %v6413_v11, %v10279_v39  ;;  %v13130_v11 = vld [vmem:[#allocation96_spill] sm:$0xff] }
 0x592   : > { %v10289_v14 = vadd.f32 %v1955_v55, %v9467_v4  ;;  %v10291_v43 = vpop.f32.mrb[83].mxu1  ;;  %v5976_v35 = vpop.f32.mrb[74].mxu0  ;;  %v2549_v32 = vmul.f32 %v13127_v28, %v10284_v47 }
 0x593   : > { %13126 = vst [vmem:[#allocation78_spill] sm:$0xff] %v10291_v43  ;;  %2591 = vrot.lane.b32.xlu1 %v2550_v37, %s6653_s22  ;;  %v2112_v22 = vpop.f32.mrb[75].mxu0  ;;  %v2661_v37 = vmul.f32 %v9605_v9, %v10284_v47  ;;  %v10313_v28 = vpop.permute.xlu0 %2573  ;;  %v3272_v9 = vmul.f32 %v13133_v3, %v10284_v47 }
 0x594   : > { %13125 = vst [vmem:[#allocation142_spill] sm:$0xff] %v10289_v14  ;;  %2589 = vrot.lane.b32.xlu0 %v2549_v32, %s6653_s22 }
 0x595   : > { %v1961_v7 = vpop.f32.mrb[84].mxu1 }
 0x596   : > { %v10302_v55 = vadd.f32 %v1961_v7, %v9467_v4  ;;  %v10304_v58 = vpop.f32.mrb[85].mxu1  ;;  %v10306_v13 = vpop.f32.mrb[76].mxu0  ;;  %v3273_v7 = vmul.f32 %v13130_v11, %v10279_v39 }
 0x597   : > { %13129 = vst [vmem:[#allocation119_spill] sm:$0xff] %v10304_v58  ;;  %2703 = vrot.lane.b32.xlu1 %v2662_v38, %s6648_s28  ;;  %v10311_v32 = vpop.f32.mrb[77].mxu0  ;;  %v10331_v58 = vpop.permute.xlu0 %2685 }
 0x598   : > { %13128 = vst [vmem:[#allocation26_spill] sm:$0xff] %v10302_v55  ;;  %2701 = vrot.lane.b32.xlu0 %v2661_v37, %s6648_s28  ;;  %v13134_v37 = vld [vmem:[#allocation144_spill] sm:$0xff] }
 0x599   : > { %v1967_v6 = vpop.f32.mrb[86].mxu1  ;;  %v3481_v43 = vmul.f32 %v13134_v37, %v10279_v39  ;;  %v4154_v37 = vmul.f32 %v13138_v19, %v10279_v39  ;;  %v10363_v19 = vadd.f32 %v2112_v22, %v9508_v44 }
 0x59a   : > { %v10319_v20 = vadd.f32 %v1967_v6, %v9467_v4  ;;  %v10321_v2 = vpop.f32.mrb[87].mxu1 }
 0x59b   : > { %13132 = vst [vmem:[#allocation94_spill] sm:$0xff] %v10321_v2  ;;  %3314 = vrot.lane.b32.xlu1 %v3273_v7, %s6653_s22  ;;  %v10326_v38 = vpop.permute.xlu1 %2583  ;;  %v13137_v2 = vld [vmem:[#allocation127_spill] sm:$0xff] }
 0x59c   : > { %13131 = vst [vmem:[#allocation159_spill] sm:$0xff] %v10319_v20  ;;  %3312 = vrot.lane.b32.xlu0 %v3272_v9, %s6653_s22  ;;  %v3480_v3 = vmul.f32 %v13137_v2, %v10284_v47  ;;  %v10354_v2 = vpop.permute.xlu0 %3296 }
 0x59d   : > { %v1973_v30 = vpop.f32.mrb[88].mxu1 }
 0x59e   : > { %v10334_v6 = vadd.f32 %v1973_v30, %v9467_v4  ;;  %v10336_v11 = vpop.f32.mrb[89].mxu1 }
 0x59f   : > { %13136 = vst [vmem:[#allocation34_spill] sm:$0xff] %v10336_v11  ;;  %3522 = vrot.lane.b32.xlu1 %v3481_v43, %s6648_s28  ;;  %v10341_v7 = vpop.permute.xlu1 %2695  ;;  %v13141_v11 = vld [vmem:[#allocation195_spill] sm:$0xff] }
 0x5a0   : > { %13135 = vst [vmem:[#allocation113_spill] sm:$0xff] %v10334_v6  ;;  %3520 = vrot.lane.b32.xlu0 %v3480_v3, %s6648_s28  ;;  %v4153_v34 = vmul.f32 %v13141_v11, %v10284_v47  ;;  %v10360_v3 = vadd.f32 %v5976_v35, %v9508_v44  ;;  %v13143_v11 = vld [vmem:[#allocation121_spill] sm:$0xff]  ;;  %v10373_v42 = vpop.permute.xlu0 %3504  ;;  %v13145_v35 = vld [vmem:[#allocation38_spill] sm:$0xff] }
 0x5a1   : > { %v1979_v9 = vpop.f32.mrb[90].mxu1 }
 0x5a2   : > { %v10347_v21 = vadd.f32 %v1979_v9, %v9467_v4  ;;  %v10349_v30 = vpop.f32.mrb[91].mxu1  ;;  %v13142_v9 = vld [vmem:[#allocation125_spill] sm:$0xff] }
 0x5a3   : > { %13140 = vst [vmem:[#allocation122_spill] sm:$0xff] %v10349_v30  ;;  %4195 = vrot.lane.b32.xlu1 %v4154_v37, %s6653_s22  ;;  %v10356_v43 = vpop.permute.xlu1 %3306  ;;  %v13144_v37 = vld [vmem:[#allocation47_spill] sm:$0xff] }
 0x5a4   : > { %13139 = vst [vmem:[#allocation80_spill] sm:$0xff] %v10347_v21  ;;  %4193 = vrot.lane.b32.xlu0 %v4153_v34, %s6653_s22  ;;  %v2552_v15 = vmul.f32 %v13144_v37, %v10360_v3  ;;  %v2551_v34 = vmul.f32 %v13145_v35, %v10363_v19  ;;  %v2663_v37 = vmul.f32 %v9623_v52, %v10363_v19  ;;  %v4178_v12 = vpop.permute.xlu0 %4177  ;;  %v13147_v35 = vld [vmem:[#allocation100_spill] sm:$0xff]  ;;  %v13150_v52 = vld [vmem:[#allocation99_spill] sm:$0xff] }
 0x5a7   : > { %3990 = vrot.lane.b32.xlu1 %v13142_v9, %s12646_s24  ;;  %v10367_v30 = vpop.permute.xlu1 %3514  ;;  %v6414_v9 = vld [vmem:[%s12431_s2 + $0x58] sm:$0xff] }
 0x5a8   : > { %3992 = vrot.lane.b32.xlu0 %v13143_v11, %s12646_s24  ;;  %v2664_v11 = vmul.f32 %v6414_v9, %v10360_v3  ;;  %v3275_v9 = vmul.f32 %v13150_v52, %v10360_v3 }
 0x5ab   : > { %2595 = vrot.lane.b32.xlu1 %v2552_v15, %s6653_s22  ;;  %v10378_v22 = vpop.permute.xlu1 %4187  ;;  %v6415_v15 = vld [vmem:[%s12985_s12] sm:$0x7] }
 0x5ac   : > { %13146 = vst [vmem:[#allocation161_spill] sm:$0xff] %v10378_v22  ;;  %2593 = vrot.lane.b32.xlu0 %v2551_v34, %s6653_s22  ;;  %v10393_v34 = vrot.slane %v6415_v15, %v13147_v35  ;;  %v13149_v22 = vld [vmem:[#allocation139_spill] sm:$0xff]  ;;  %v13154_v35 = vld [vmem:[#allocation146_spill] sm:$0xff] }
 0x5ad   : > { %v4081_v41 = vmul.f32 %v13149_v22, %v9867_v31  ;;  %v3483_v52 = vmul.f32 %v13154_v35, %v10360_v3  ;;  %v10442_v35 = vadd.f32 %v10311_v32, %v9508_v44 }
 0x5ae   : > { %13148 = vst [vmem:[#allocation169_spill] sm:$0xff] %v10393_v34  ;;  %v10409_v22 = vadd.f32 %v9515_v50, %v10393_v34 }
 0x5af   : > { %2707 = vrot.lane.b32.xlu1 %v2664_v11, %s6648_s28  ;;  %v3983_v10 = vpop.permute.xlu1 %3982  ;;  %v13151_v11 = vld [vmem:[#allocation84_spill] sm:$0xff]  ;;  %v4225_v46 = vsub.f32 %v4081_v41, %v4178_v12  ;;  %v13155_v41 = vld [vmem:[#allocation131_spill] sm:$0xff]  ;;  %13159 = vst [vmem:[#allocation96_spill] sm:$0xff] %v10442_v35 }
 0x5b0   : > { %2705 = vrot.lane.b32.xlu0 %v2663_v37, %s6648_s28  ;;  %5762 = vst.msk [vmem:[%s9047_s14 + $0xb8] sm:$0xff] %vm2877_vm0, %v3983_v10  ;;  %v3274_v36 = vmul.f32 %v13151_v11, %v10363_v19  ;;  %v13152_v37 = vld [vmem:[#allocation29_spill] sm:$0xff]  ;;  %13153 = vst [vmem:[#allocation45_spill] sm:$0xff] %v10409_v22  ;;  %v3482_v12 = vmul.f32 %v13155_v41, %v10363_v19 }
 0x5b1   : > { %v4289_v15 = vmul.f32 %v13152_v37, %v9867_v31  ;;  %v13156_v37 = vld [vmem:[#allocation194_spill] sm:$0xff] }
 0x5b2   : > { %v4156_v34 = vmul.f32 %v13156_v37, %v10360_v3 }
 0x5b3   : > { %3318 = vrot.lane.b32.xlu1 %v3275_v9, %s6653_s22  ;;  %v4513_v9 = vsel %vm2877_vm0, %v10409_v22, %v4225_v46  ;;  %v13157_v46 = vld [vmem:[#allocation196_spill] sm:$0xff] }
 0x5b4   : > { %3316 = vrot.lane.b32.xlu0 %v3274_v36, %s6653_s22  ;;  %v4386_v10 = vpop.permute.xlu0 %4385 }
 0x5b5   : > { %v4433_v0 = vadd.f32 %v4386_v10, %v4289_v15  ;;  %v4155_v15 = vmul.f32 %v13157_v46, %v10363_v19  ;;  %v13164_v46 = vld [vmem:[#allocation86_spill] sm:$0xff] }
 0x5b7   : > { %3526 = vrot.lane.b32.xlu1 %v3483_v52, %s6648_s28  ;;  %v4529_v36 = vsel %vm2894_vm1, %v4513_v9, %v4433_v0  ;;  %v10436_v0 = vadd.f32 %v10306_v13, %v9508_v44  ;;  %v13161_v13 = vld [vmem:[#allocation40_spill] sm:$0xff]  ;;  %v13162_v9 = vld [vmem:[#allocation206_spill] sm:$0xff] }
 0x5b8   : > { %3524 = vrot.lane.b32.xlu0 %v3482_v12, %s6648_s28  ;;  %v4545_v50 = vsel %vm2911_vm2, %v4529_v36, 0.0  ;;  %v3977_v11 = vpop.permute.xlu0 %3976  ;;  %v2553_v12 = vmul.f32 %v13161_v13, %v10442_v35  ;;  %v2665_v36 = vmul.f32 %v13162_v9, %v10442_v35 }
 0x5b9   : > { %4561 = vst [vmem:[%s10425_s20 + $0x10] sm:$0xff] %v4545_v50  ;;  %5759 = vst.msk [vmem:[%s9047_s14 + $0xa0] sm:$0xff] %vm2877_vm0, %v3977_v11  ;;  %v13163_v11 = vld [vmem:[#allocation102_spill] sm:$0xff] }
 0x5ba   : > { %13158 = vst [vmem:[#allocation36_spill] sm:$0xff] %v10436_v0  ;;  %v3277_v37 = vmul.f32 %v13163_v11, %v10436_v0 }
 0x5bb   : > { %4199 = vrot.lane.b32.xlu1 %v4156_v34, %s6653_s22  ;;  %v13160_v34 = vld [vmem:[#allocation49_spill] sm:$0xff] }
 0x5bc   : > { %4197 = vrot.lane.b32.xlu0 %v4155_v15, %s6653_s22  ;;  %v10438_v10 = vpop.permute.xlu0 %2577  ;;  %v2554_v41 = vmul.f32 %v13160_v34, %v10436_v0  ;;  %v3276_v15 = vmul.f32 %v13164_v46, %v10442_v35 }
 0x5bf   : > { %3994 = vrot.lane.b32.xlu1 %v9387_v63, %s12646_s24  ;;  %v6416_v63 = vld [vmem:[%s12431_s2 + $0x68] sm:$0xff] }
 0x5c0   : > { %3996 = vrot.lane.b32.xlu0 %v9429_v25, %s12646_s24  ;;  %v10448_v52 = vpop.permute.xlu0 %2689  ;;  %v2666_v25 = vmul.f32 %v6416_v63, %v10436_v0  ;;  %v13167_v63 = vld [vmem:[#allocation135_spill] sm:$0xff] }
 0x5c3   : > { %2599 = vrot.lane.b32.xlu1 %v2554_v41, %s6653_s22  ;;  %v13166_v41 = vld [vmem:[#allocation148_spill] sm:$0xff] }
 0x5c4   : > { %2597 = vrot.lane.b32.xlu0 %v2553_v12, %s6653_s22  ;;  %v10456_v32 = vpop.permute.xlu0 %3300  ;;  %v3485_v13 = vmul.f32 %v13166_v41, %v10436_v0 }
 0x5c7   : > { %2711 = vrot.lane.b32.xlu1 %v2666_v25, %s6648_s28  ;;  %v3484_v25 = vmul.f32 %v13167_v63, %v10442_v35  ;;  %v13171_v63 = vld [vmem:[#allocation197_spill] sm:$0xff] }
 0x5c8   : > { %2709 = vrot.lane.b32.xlu0 %v2665_v36, %s6648_s28  ;;  %v10466_v50 = vpop.permute.xlu0 %3508  ;;  %v4157_v49 = vmul.f32 %v13171_v63, %v10442_v35 }
 0x5cb   : > { %3322 = vrot.lane.b32.xlu1 %v3277_v37, %s6653_s22 }
 0x5cc   : > { %3320 = vrot.lane.b32.xlu0 %v3276_v15, %s6653_s22  ;;  %v10474_v34 = vpop.permute.xlu0 %4181  ;;  %v13170_v15 = vld [vmem:[#allocation103_spill] sm:$0xff] }
 0x5cd   : > { %13165 = vst [vmem:[#allocation82_spill] sm:$0xff] %v10474_v34  ;;  %v1985_v12 = vpop.f32.mrb[92].mxu1  ;;  %v4158_v41 = vmul.f32 %v13170_v15, %v10436_v0 }
 0x5ce   : > { %v10481_v9 = vadd.f32 %v1985_v12, %v9467_v4  ;;  %v10484_v36 = vpop.f32.mrb[93].mxu1  ;;  %v5982_v11 = vpop.f32.mrb[78].mxu0 }
 0x5cf   : > { %3530 = vrot.lane.b32.xlu1 %v3485_v13, %s6648_s28  ;;  %13169 = vst [vmem:[#allocation127_spill] sm:$0xff] %v10484_v36  ;;  %v10487_v37 = vpop.permute.xlu1 %2587  ;;  %v2132_v46 = vpop.f32.mrb[79].mxu0 }
 0x5d0   : > { %13168 = vst [vmem:[#allocation144_spill] sm:$0xff] %v10481_v9  ;;  %3528 = vrot.lane.b32.xlu0 %v3484_v25, %s6648_s28  ;;  %v3981_v22 = vpop.permute.xlu0 %3980  ;;  %v10503_v25 = vadd.f32 %v5982_v11, %v9508_v44  ;;  %v10508_v36 = vadd.f32 %v2132_v46, %v9508_v44  ;;  %v6417_v46 = vld [vmem:[%s12431_s2 + $0x78] sm:$0xff] }
 0x5d1   : > { %v1991_v34 = vpop.f32.mrb[94].mxu1  ;;  %5761 = vst.msk [vmem:[%s9047_s14 + $0xb0] sm:$0xff] %vm2877_vm0, %v3981_v22  ;;  %v13174_v22 = vld [vmem:[#allocation165_spill] sm:$0xff] }
 0x5d2   : > { %v10496_v13 = vadd.f32 %v1991_v34, %v9467_v4  ;;  %v10499_v12 = vpop.f32.mrb[95].mxu1  ;;  %v13175_v4 = vld [vmem:[#allocation182_spill] sm:$0xff] }
 0x5d3   : > { %4203 = vrot.lane.b32.xlu1 %v4158_v41, %s6653_s22  ;;  %13173 = vst [vmem:[#allocation195_spill] sm:$0xff] %v10499_v12  ;;  %v10505_v15 = vpop.permute.xlu1 %2699  ;;  %v13177_v12 = vld [vmem:[#allocation42_spill] sm:$0xff] }
 0x5d4   : > { %13172 = vst [vmem:[#allocation193_spill] sm:$0xff] %v10496_v13  ;;  %4201 = vrot.lane.b32.xlu0 %v4157_v49, %s6653_s22  ;;  %v10510_v63 = vpop.permute.xlu0 %2581  ;;  %v13176_v49 = vld [vmem:[#allocation51_spill] sm:$0xff]  ;;  %v2555_v1 = vmul.f32 %v13177_v12, %v10508_v36 }
 0x5d5   : > { %v2556_v41 = vmul.f32 %v13176_v49, %v10503_v25  ;;  %v6418_v49 = vld [vmem:[%s12431_s2 + $0x70] sm:$0xff] }
 0x5d6   : > { %v2667_v12 = vmul.f32 %v6418_v49, %v10508_v36 }
 0x5d7   : > { %3998 = vrot.lane.b32.xlu1 %v13174_v22, %s12646_s24  ;;  %v10516_v34 = vpop.permute.xlu1 %3310  ;;  %v2668_v22 = vmul.f32 %v6417_v46, %v10503_v25  ;;  %v13180_v46 = vld [vmem:[#allocation88_spill] sm:$0xff] }
 0x5d8   : > { %3712 = vrot.lane.b32.xlu0 %v13175_v4, %s12646_s24  ;;  %v10520_v11 = vpop.permute.xlu0 %2693  ;;  %v3278_v23 = vmul.f32 %v13180_v46, %v10508_v36  ;;  %v13184_v46 = vld [vmem:[#allocation110_spill] sm:$0xff] }
 0x5db   : > { %2603 = vrot.lane.b32.xlu1 %v2556_v41, %s6653_s22  ;;  %v10526_v44 = vpop.permute.xlu1 %3518  ;;  %v13179_v41 = vld [vmem:[#allocation106_spill] sm:$0xff] }
 0x5dc   : > { %2601 = vrot.lane.b32.xlu0 %v2555_v1, %s6653_s22  ;;  %v10532_v40 = vpop.permute.xlu0 %3304  ;;  %v3279_v53 = vmul.f32 %v13179_v41, %v10503_v25 }
 0x5df   : > { %2715 = vrot.lane.b32.xlu1 %v2668_v22, %s6648_s28  ;;  %v10540_v1 = vpop.permute.xlu1 %4191  ;;  %v13181_v22 = vld [vmem:[#allocation150_spill] sm:$0xff] }
 0x5e0   : > { %2713 = vrot.lane.b32.xlu0 %v2667_v12, %s6648_s28  ;;  %13178 = vst [vmem:[#allocation125_spill] sm:$0xff] %v10540_v1  ;;  %v10544_v27 = vpop.permute.xlu0 %3512  ;;  %v3487_v4 = vmul.f32 %v13181_v22, %v10503_v25  ;;  %v13183_v1 = vld [vmem:[#allocation137_spill] sm:$0xff] }
 0x5e1   : > { %v3486_v41 = vmul.f32 %v13183_v1, %v10508_v36  ;;  %v13186_v1 = vld [vmem:[#allocation200_spill] sm:$0xff] }
 0x5e3   : > { %3326 = vrot.lane.b32.xlu1 %v3279_v53, %s6653_s22  ;;  %v3987_v49 = vpop.permute.xlu1 %3986  ;;  %v4160_v53 = vmul.f32 %v13184_v46, %v10503_v25 }
 0x5e4   : > { %3324 = vrot.lane.b32.xlu0 %v3278_v23, %s6653_s22  ;;  %5764 = vst.msk [vmem:[%s9047_s14 + $0xc8] sm:$0xff] %vm2877_vm0, %v3987_v49  ;;  %v10554_v12 = vpop.permute.xlu0 %4185  ;;  %v13185_v23 = vld [vmem:[#allocation192_spill] sm:$0xff] }
 0x5e5   : > { %13182 = vst [vmem:[#allocation121_spill] sm:$0xff] %v10554_v12  ;;  %v4159_v35 = vmul.f32 %v13185_v23, %v10508_v36 }
 0x5e7   : > { %3534 = vrot.lane.b32.xlu1 %v3487_v4, %s6648_s28  ;;  %v13187_v4 = vld [vmem:[#allocation211_spill] sm:$0xff] }
 0x5e8   : > { %3532 = vrot.lane.b32.xlu0 %v3486_v41, %s6648_s28  ;;  %v3985_v0 = vpop.permute.xlu0 %3984  ;;  %v13188_v41 = vld [vmem:[#allocation39_spill] sm:$0xff] }
 0x5e9   : > { %5763 = vst.msk [vmem:[%s9047_s14 + $0xc0] sm:$0xff] %vm2877_vm0, %v3985_v0 }
 0x5eb   : > { %4207 = vrot.lane.b32.xlu1 %v4160_v53, %s6653_s22 }
 0x5ec   : > { %4205 = vrot.lane.b32.xlu0 %v4159_v35, %s6653_s22  ;;  %v10568_v49 = vpop.permute.xlu0 %2585 }
 0x5ef   : > { %3714 = vrot.lane.b32.xlu1 %v13186_v1, %s12646_s24 }
 0x5f0   : > { %3716 = vrot.lane.b32.xlu0 %v13187_v4, %s12646_s24  ;;  %v10574_v22 = vpop.permute.xlu0 %2697 }
 0x5f3   : > { %3718 = vrot.lane.b32.xlu1 %v13188_v41, %s12646_s24 }
 0x5f4   : > { %3720 = vrot.lane.b32.xlu0 %v9987_v51, %s12646_s24  ;;  %v10580_v0 = vpop.permute.xlu0 %3308 }
 0x5f7   : > { %3722 = vrot.lane.b32.xlu1 %v10001_v17, %s12646_s24  ;;  %v13194_v17 = vld [vmem:[#allocation53_spill] sm:$0xff] }
 0x5f8   : > { %3724 = vrot.lane.b32.xlu0 %v10125_v26, %s12646_s24  ;;  %v10586_v35 = vpop.permute.xlu0 %3516 }
 0x5fb   : > { %3726 = vrot.lane.b32.xlu1 %v10146_v29, %s12646_s24  ;;  %v13193_v29 = vld [vmem:[#allocation44_spill] sm:$0xff] }
 0x5fc   : > { %3728 = vrot.lane.b32.xlu0 %v10274_v59, %s12646_s24  ;;  %v10592_v46 = vpop.permute.xlu0 %4189 }
 0x5fd   : > { %13189 = vst [vmem:[#allocation47_spill] sm:$0xff] %v10592_v46  ;;  %v10613_v46 = vld [vmem:[%s12670_s1] sm:$0xff] }
 0x5fe   : > { %13190 = vst [vmem:[#allocation38_spill] sm:$0xff] %v10613_v46 }
 0x5ff   : > { %3730 = vrot.lane.b32.xlu1 %v10289_v14, %s12646_s24  ;;  %v13192_v14 = vld [vmem:[#allocation199_spill] sm:$0xff] }
 0x600   : > { %3732 = vrot.lane.b32.xlu0 %v10302_v55, %s12646_s24  ;;  %v3989_v53 = vpop.permute.xlu0 %3988  ;;  %v2638_v51 = vmul.f32 %v13194_v17, %v13192_v14  ;;  %v13197_v17 = vld [vmem:[#allocation90_spill] sm:$0xff] }
 0x601   : > { %5765 = vst.msk [vmem:[%s9047_s14 + $0xd0] sm:$0xff] %vm2877_vm0, %v3989_v53  ;;  %v2525_v53 = vmul.f32 %v10613_v46, %v9867_v31 }
 0x603   : > { %3734 = vrot.lane.b32.xlu1 %v10319_v20, %s12646_s24 }
 0x604   : > { %3736 = vrot.lane.b32.xlu0 %v10334_v6, %s12646_s24  ;;  %v2621_v6 = vsub.f32 %v2525_v53, %v10313_v28 }
 0x605   : > { %v10604_v23 = vpop.permute.xlu1 %2591 }
 0x606   : > { %v10606_v12 = vpop.permute.xlu0 %2589 }
 0x607   : > { %3738 = vrot.lane.b32.xlu1 %v10347_v21, %s12646_s24  ;;  %v10627_v21 = vld [vmem:[%s12670_s1 + $0x8] sm:$0xff] }
 0x608   : > { %3740 = vrot.lane.b32.xlu0 %v10481_v9, %s12646_s24  ;;  %13191 = vst [vmem:[#allocation100_spill] sm:$0xff] %v10627_v21  ;;  %v2526_v59 = vmul.f32 %v10627_v21, %v13192_v14  ;;  %v2637_v9 = vmul.f32 %v13193_v29, %v9867_v31  ;;  %v2734_v29 = vadd.f32 %v10110_v56, %v2638_v51 }
 0x609   : > { %v10619_v20 = vpop.permute.xlu1 %2703 }
 0x60a   : > { %v10622_v55 = vpop.permute.xlu0 %2701  ;;  %v2622_v28 = vsub.f32 %v2526_v59, %v10103_v33  ;;  %v2733_v26 = vadd.f32 %v10331_v58, %v2637_v9  ;;  %v13196_v58 = vld [vmem:[#allocation69_spill] sm:$0xff] }
 0x60b   : > { %3742 = vrot.lane.b32.xlu1 %v10496_v13, %s12646_s24  ;;  %v13195_v13 = vld [vmem:[#allocation60_spill] sm:$0xff]  ;;  %v3201_v9 = vmul.f32 %v13196_v58, %v13192_v14 }
 0x60c   : > { %2960 = vrot.lane.b32.xlu0 %v2621_v6, %s12646_s24  ;;  %v3200_v21 = vmul.f32 %v13195_v13, %v9867_v31 }
 0x60d   : > { %v10637_v53 = vpop.permute.xlu1 %3314 }
 0x60e   : > { %v10640_v46 = vpop.permute.xlu0 %3312  ;;  %v3344_v33 = vsub.f32 %v3200_v21, %v10354_v2  ;;  %v13200_v2 = vld [vmem:[#allocation108_spill] sm:$0xff] }
 0x60f   : > { %2962 = vrot.lane.b32.xlu1 %v2622_v28, %s12646_s24  ;;  %v3408_v28 = vmul.f32 %v13197_v17, %v9867_v31  ;;  %v3409_v13 = vmul.f32 %v13200_v2, %v13192_v14  ;;  %v10684_v17 = vld [vmem:[%s12670_s1 + $0x18] sm:$0xff] }
 0x610   : > { %3024 = vrot.lane.b32.xlu0 %v2733_v26, %s12646_s24  ;;  %v3345_v26 = vsub.f32 %v3201_v9, %v10117_v60 }
 0x611   : > { %v10649_v6 = vpop.permute.xlu1 %3522  ;;  %v3552_v21 = vadd.f32 %v10373_v42, %v3408_v28  ;;  %v2528_v28 = vmul.f32 %v10684_v17, %v9738_v57 }
 0x612   : > { %v10652_v59 = vpop.permute.xlu0 %3520 }
 0x613   : > { %3026 = vrot.lane.b32.xlu1 %v2734_v29, %s12646_s24  ;;  %v10672_v29 = vld [vmem:[%s12670_s1 + $0x10] sm:$0xff] }
 0x614   : > { %3776 = vrot.lane.b32.xlu0 %v3344_v33, %s12644_s23  ;;  %v2527_v60 = vmul.f32 %v10672_v29, %v10080_v54  ;;  %v3553_v33 = vadd.f32 %v10132_v48, %v3409_v13  ;;  %v13201_v48 = vld [vmem:[#allocation46_spill] sm:$0xff] }
 0x615   : > { %v10661_v51 = vpop.permute.xlu1 %4195 }
 0x616   : > { %13198 = vst [vmem:[#allocation139_spill] sm:$0xff] %v10661_v51  ;;  %v10664_v56 = vpop.permute.xlu0 %4193  ;;  %v2623_v58 = vsub.f32 %v2527_v60, %v10438_v10  ;;  %v2624_v10 = vsub.f32 %v2528_v28, %v10180_v62  ;;  %v13202_v60 = vld [vmem:[#allocation55_spill] sm:$0xff] }
 0x617   : > { %13199 = vst [vmem:[#allocation99_spill] sm:$0xff] %v10664_v56  ;;  %3778 = vrot.lane.b32.xlu1 %v3345_v26, %s12644_s23  ;;  %v2639_v26 = vmul.f32 %v13201_v48, %v10080_v54 }
 0x618   : > { %3840 = vrot.lane.b32.xlu0 %v3552_v21, %s12644_s23 }
 0x619   : > { %v3991_v42 = vpop.permute.xlu1 %3990  ;;  %v2735_v2 = vadd.f32 %v10448_v52, %v2639_v26  ;;  %v13204_v52 = vld [vmem:[#allocation72_spill] sm:$0xff] }
 0x61a   : > { %5766 = vst.msk [vmem:[%s9047_s14 + $0xd8] sm:$0xff] %vm2877_vm0, %v3991_v42  ;;  %v3993_v9 = vpop.permute.xlu0 %3992  ;;  %v2640_v42 = vmul.f32 %v13202_v60, %v9738_v57  ;;  %v3203_v26 = vmul.f32 %v13204_v52, %v9738_v57 }
 0x61b   : > { %5767 = vst.msk [vmem:[%s9047_s14 + $0xe0] sm:$0xff] %vm2877_vm0, %v3993_v9  ;;  %3842 = vrot.lane.b32.xlu1 %v3553_v33, %s12644_s23  ;;  %v13203_v33 = vld [vmem:[#allocation62_spill] sm:$0xff] }
 0x61c   : > { %2964 = vrot.lane.b32.xlu0 %v2623_v58, %s12646_s24  ;;  %v3202_v9 = vmul.f32 %v13203_v33, %v10080_v54  ;;  %v2736_v58 = vadd.f32 %v10194_v8, %v2640_v42 }
 0x61d   : > { %v10695_v21 = vpop.permute.xlu1 %2595 }
 0x61e   : > { %v10698_v13 = vpop.permute.xlu0 %2593  ;;  %v3346_v62 = vsub.f32 %v3202_v9, %v10456_v32  ;;  %v13206_v32 = vld [vmem:[#allocation112_spill] sm:$0xff] }
 0x61f   : > { %2966 = vrot.lane.b32.xlu1 %v2624_v10, %s12646_s24  ;;  %v13205_v10 = vld [vmem:[#allocation92_spill] sm:$0xff]  ;;  %v3411_v9 = vmul.f32 %v13206_v32, %v9738_v57 }
 0x620   : > { %3028 = vrot.lane.b32.xlu0 %v2735_v2, %s12646_s24  ;;  %v3410_v60 = vmul.f32 %v13205_v10, %v10080_v54  ;;  %v3347_v2 = vsub.f32 %v3203_v26, %v10208_v5  ;;  %v10744_v10 = vld [vmem:[%s12670_s1 + $0x28] sm:$0xff] }
 0x621   : > { %v10707_v48 = vpop.permute.xlu1 %2707  ;;  %v3555_v5 = vadd.f32 %v10220_v61, %v3411_v9 }
 0x622   : > { %v10710_v28 = vpop.permute.xlu0 %2705  ;;  %v3554_v8 = vadd.f32 %v10466_v50, %v3410_v60  ;;  %v2530_v60 = vmul.f32 %v10744_v10, %v9994_v18 }
 0x623   : > { %3030 = vrot.lane.b32.xlu1 %v2736_v58, %s12646_s24  ;;  %v10730_v58 = vld [vmem:[%s12670_s1 + $0x20] sm:$0xff] }
 0x624   : > { %3780 = vrot.lane.b32.xlu0 %v3346_v62, %s12644_s23  ;;  %v2529_v62 = vmul.f32 %v10730_v58, %v10141_v24 }
 0x625   : > { %v10719_v33 = vpop.permute.xlu1 %3318 }
 0x626   : > { %v10722_v42 = vpop.permute.xlu0 %3316  ;;  %v2625_v52 = vsub.f32 %v2529_v62, %v10510_v63  ;;  %v2626_v63 = vsub.f32 %v2530_v60, %v10326_v38  ;;  %v13210_v62 = vld [vmem:[#allocation57_spill] sm:$0xff]  ;;  %v13212_v60 = vld [vmem:[#allocation74_spill] sm:$0xff] }
 0x627   : > { %3782 = vrot.lane.b32.xlu1 %v3347_v2, %s12644_s23  ;;  %v13207_v2 = vld [vmem:[#allocation48_spill] sm:$0xff]  ;;  %v2642_v31 = vmul.f32 %v13210_v62, %v9994_v18 }
 0x628   : > { %3844 = vrot.lane.b32.xlu0 %v3554_v8, %s12644_s23  ;;  %v2641_v61 = vmul.f32 %v13207_v2, %v10141_v24 }
 0x629   : > { %v10736_v50 = vpop.permute.xlu1 %3526 }
 0x62a   : > { %v10739_v26 = vpop.permute.xlu0 %3524  ;;  %v2737_v32 = vadd.f32 %v10520_v11, %v2641_v61  ;;  %v3205_v61 = vmul.f32 %v13212_v60, %v9994_v18  ;;  %v10802_v60 = vld [vmem:[%s12670_s1 + $0x38] sm:$0xff] }
 0x62b   : > { %3846 = vrot.lane.b32.xlu1 %v3555_v5, %s12644_s23  ;;  %v13211_v5 = vld [vmem:[#allocation64_spill] sm:$0xff] }
 0x62c   : > { %2968 = vrot.lane.b32.xlu0 %v2625_v52, %s12646_s24  ;;  %v3204_v51 = vmul.f32 %v13211_v5, %v10141_v24  ;;  %v2738_v52 = vadd.f32 %v10341_v7, %v2642_v31  ;;  %v3349_v31 = vsub.f32 %v3205_v61, %v10356_v43  ;;  %v2532_v61 = vmul.f32 %v10802_v60, %v10130_v45 }
 0x62d   : > { %v10753_v8 = vpop.permute.xlu1 %4199 }
 0x62e   : > { %13208 = vst [vmem:[#allocation84_spill] sm:$0xff] %v10753_v8  ;;  %v10756_v9 = vpop.permute.xlu0 %4197  ;;  %v3348_v38 = vsub.f32 %v3204_v51, %v10532_v40 }
 0x62f   : > { %13209 = vst [vmem:[#allocation29_spill] sm:$0xff] %v10756_v9  ;;  %2970 = vrot.lane.b32.xlu1 %v2626_v63, %s12646_s24  ;;  %v13213_v63 = vld [vmem:[#allocation95_spill] sm:$0xff] }
 0x630   : > { %3032 = vrot.lane.b32.xlu0 %v2737_v32, %s12646_s24  ;;  %v3412_v62 = vmul.f32 %v13213_v63, %v10141_v24  ;;  %v13214_v32 = vld [vmem:[#allocation115_spill] sm:$0xff]  ;;  %v13215_v63 = vld [vmem:[#allocation50_spill] sm:$0xff] }
 0x631   : > { %v3995_v2 = vpop.permute.xlu1 %3994  ;;  %v3413_v5 = vmul.f32 %v13214_v32, %v9994_v18  ;;  %v13216_v32 = vld [vmem:[#allocation59_spill] sm:$0xff] }
 0x632   : > { %5768 = vst.msk [vmem:[%s9047_s14 + $0xe8] sm:$0xff] %vm2877_vm0, %v3995_v2  ;;  %v3997_v11 = vpop.permute.xlu0 %3996  ;;  %v3556_v40 = vadd.f32 %v10544_v27, %v3412_v62  ;;  %v2643_v62 = vmul.f32 %v13215_v63, %v10228_v16 }
 0x633   : > { %5769 = vst.msk [vmem:[%s9047_s14 + $0xf0] sm:$0xff] %vm2877_vm0, %v3997_v11  ;;  %3034 = vrot.lane.b32.xlu1 %v2738_v52, %s12646_s24  ;;  %v10788_v52 = vld [vmem:[%s12670_s1 + $0x30] sm:$0xff]  ;;  %v3557_v43 = vadd.f32 %v10367_v30, %v3413_v5  ;;  %v2628_v30 = vsub.f32 %v2532_v61, %v10487_v37  ;;  %v2644_v5 = vmul.f32 %v13216_v32, %v10130_v45 }
 0x634   : > { %3784 = vrot.lane.b32.xlu0 %v3348_v38, %s12644_s23  ;;  %v2531_v2 = vmul.f32 %v10788_v52, %v10228_v16 }
 0x635   : > { %v10777_v7 = vpop.permute.xlu1 %2599 }
 0x636   : > { %v10780_v51 = vpop.permute.xlu0 %2597  ;;  %v2627_v38 = vsub.f32 %v2531_v2, %v10568_v49  ;;  %v13217_v2 = vld [vmem:[#allocation66_spill] sm:$0xff] }
 0x637   : > { %3786 = vrot.lane.b32.xlu1 %v3349_v31, %s12644_s23  ;;  %v2739_v31 = vadd.f32 %v10574_v22, %v2643_v62  ;;  %v13218_v22 = vld [vmem:[#allocation77_spill] sm:$0xff] }
 0x638   : > { %3848 = vrot.lane.b32.xlu0 %v3556_v40, %s12644_s23  ;;  %v3207_v62 = vmul.f32 %v13218_v22, %v10130_v45 }
 0x639   : > { %v10794_v27 = vpop.permute.xlu1 %2711 }
 0x63a   : > { %v10797_v11 = vpop.permute.xlu0 %2709 }
 0x63b   : > { %3850 = vrot.lane.b32.xlu1 %v3557_v43, %s12644_s23  ;;  %v3206_v43 = vmul.f32 %v13217_v2, %v10228_v16  ;;  %v13222_v2 = vld [vmem:[#allocation118_spill] sm:$0xff] }
 0x63c   : > { %2972 = vrot.lane.b32.xlu0 %v2627_v38, %s12646_s24  ;;  %v2740_v38 = vadd.f32 %v10505_v15, %v2644_v5 }
 0x63d   : > { %v10811_v49 = vpop.permute.xlu1 %3322  ;;  %v3350_v37 = vsub.f32 %v3206_v43, %v10580_v0  ;;  %v3415_v43 = vmul.f32 %v13222_v2, %v10130_v45 }
 0x63e   : > { %v10814_v40 = vpop.permute.xlu0 %3320 }
 0x63f   : > { %2974 = vrot.lane.b32.xlu1 %v2628_v30, %s12646_s24  ;;  %v13219_v30 = vld [vmem:[#allocation98_spill] sm:$0xff] }
 0x640   : > { %3036 = vrot.lane.b32.xlu0 %v2739_v31, %s12646_s24  ;;  %v3414_v32 = vmul.f32 %v13219_v30, %v10228_v16  ;;  %v3351_v31 = vsub.f32 %v3207_v62, %v10516_v34  ;;  %v3559_v34 = vadd.f32 %v10526_v44, %v3415_v43  ;;  %v10860_v30 = vld [vmem:[%s12670_s1 + $0x48] sm:$0xff] }
 0x641   : > { %v10823_v63 = vpop.permute.xlu1 %3530 }
 0x642   : > { %v10826_v61 = vpop.permute.xlu0 %3528  ;;  %v3558_v5 = vadd.f32 %v10586_v35, %v3414_v32  ;;  %v2534_v32 = vmul.f32 %v10860_v30, %v10279_v39 }
 0x643   : > { %3038 = vrot.lane.b32.xlu1 %v2740_v38, %s12646_s24  ;;  %v10846_v38 = vld [vmem:[%s12670_s1 + $0x40] sm:$0xff] }
 0x644   : > { %3788 = vrot.lane.b32.xlu0 %v3350_v37, %s12644_s23  ;;  %v2533_v37 = vmul.f32 %v10846_v38, %v10284_v47 }
 0x645   : > { %v10835_v15 = vpop.permute.xlu1 %4203 }
 0x646   : > { %13220 = vst [vmem:[#allocation146_spill] sm:$0xff] %v10835_v15  ;;  %v10838_v0 = vpop.permute.xlu0 %4201  ;;  %v2629_v22 = vsub.f32 %v2533_v37, %v10606_v12  ;;  %v2630_v12 = vsub.f32 %v2534_v32, %v10604_v23  ;;  %v13224_v37 = vld [vmem:[#allocation61_spill] sm:$0xff] }
 0x647   : > { %13221 = vst [vmem:[#allocation131_spill] sm:$0xff] %v10838_v0  ;;  %3790 = vrot.lane.b32.xlu1 %v3351_v31, %s12644_s23  ;;  %v13223_v31 = vld [vmem:[#allocation52_spill] sm:$0xff] }
 0x648   : > { %3852 = vrot.lane.b32.xlu0 %v3558_v5, %s12644_s23  ;;  %v2645_v44 = vmul.f32 %v13223_v31, %v10284_v47 }
 0x649   : > { %v3999_v35 = vpop.permute.xlu1 %3998 }
 0x64a   : > { %5770 = vst.msk [vmem:[%s9047_s14 + $0xf8] sm:$0xff] %vm2877_vm0, %v3999_v35  ;;  %v10855_v62 = vpop.permute.xlu0 %3712  ;;  %v2741_v2 = vadd.f32 %v10622_v55, %v2645_v44  ;;  %v2646_v35 = vmul.f32 %v13224_v37, %v10279_v39  ;;  %v13226_v55 = vld [vmem:[#allocation79_spill] sm:$0xff] }
 0x64b   : > { %3854 = vrot.lane.b32.xlu1 %v3559_v34, %s12644_s23  ;;  %v13225_v34 = vld [vmem:[#allocation68_spill] sm:$0xff]  ;;  %v3209_v44 = vmul.f32 %v13226_v55, %v10279_v39 }
 0x64c   : > { %2976 = vrot.lane.b32.xlu0 %v2629_v22, %s12646_s24  ;;  %v3208_v15 = vmul.f32 %v13225_v34, %v10284_v47  ;;  %v2742_v22 = vadd.f32 %v10619_v20, %v2646_v35 }
 0x64d   : > { %v10869_v5 = vpop.permute.xlu1 %2603 }
 0x64e   : > { %v10872_v43 = vpop.permute.xlu0 %2601  ;;  %v3352_v23 = vsub.f32 %v3208_v15, %v10640_v46  ;;  %v13228_v46 = vld [vmem:[#allocation120_spill] sm:$0xff] }
 0x64f   : > { %2978 = vrot.lane.b32.xlu1 %v2630_v12, %s12646_s24  ;;  %v13227_v12 = vld [vmem:[#allocation101_spill] sm:$0xff]  ;;  %v3417_v15 = vmul.f32 %v13228_v46, %v10279_v39 }
 0x650   : > { %3040 = vrot.lane.b32.xlu0 %v2741_v2, %s12646_s24  ;;  %v3416_v37 = vmul.f32 %v13227_v12, %v10284_v47  ;;  %v3353_v2 = vsub.f32 %v3209_v44, %v10637_v53  ;;  %v10918_v12 = vld [vmem:[%s12670_s1 + $0x58] sm:$0xff] }
 0x651   : > { %v10881_v31 = vpop.permute.xlu1 %2715  ;;  %v3561_v53 = vadd.f32 %v10649_v6, %v3417_v15 }
 0x652   : > { %v10884_v32 = vpop.permute.xlu0 %2713  ;;  %v3560_v20 = vadd.f32 %v10652_v59, %v3416_v37  ;;  %v2536_v37 = vmul.f32 %v10918_v12, %v10360_v3 }
 0x653   : > { %3042 = vrot.lane.b32.xlu1 %v2742_v22, %s12646_s24  ;;  %v10904_v22 = vld [vmem:[%s12670_s1 + $0x50] sm:$0xff] }
 0x654   : > { %3792 = vrot.lane.b32.xlu0 %v3352_v23, %s12644_s23  ;;  %v2535_v23 = vmul.f32 %v10904_v22, %v10363_v19  ;;  %v2632_v6 = vsub.f32 %v2536_v37, %v10695_v21 }
 0x655   : > { %v10893_v34 = vpop.permute.xlu1 %3326 }
 0x656   : > { %v10896_v35 = vpop.permute.xlu0 %3324  ;;  %v2631_v55 = vsub.f32 %v2535_v23, %v10698_v13  ;;  %v13232_v23 = vld [vmem:[#allocation63_spill] sm:$0xff] }
 0x657   : > { %3794 = vrot.lane.b32.xlu1 %v3353_v2, %s12644_s23  ;;  %v13229_v2 = vld [vmem:[#allocation54_spill] sm:$0xff]  ;;  %v2648_v8 = vmul.f32 %v13232_v23, %v10360_v3 }
 0x658   : > { %3856 = vrot.lane.b32.xlu0 %v3560_v20, %s12644_s23  ;;  %v2647_v20 = vmul.f32 %v13229_v2, %v10363_v19 }
 0x659   : > { %v10910_v59 = vpop.permute.xlu1 %3534 }
 0x65a   : > { %v10913_v44 = vpop.permute.xlu0 %3532  ;;  %v2743_v46 = vadd.f32 %v10710_v28, %v2647_v20  ;;  %v13234_v28 = vld [vmem:[#allocation81_spill] sm:$0xff] }
 0x65b   : > { %3858 = vrot.lane.b32.xlu1 %v3561_v53, %s12644_s23  ;;  %v13233_v53 = vld [vmem:[#allocation70_spill] sm:$0xff]  ;;  %v3211_v20 = vmul.f32 %v13234_v28, %v10360_v3  ;;  %v13237_v28 = vld [vmem:[#allocation96_spill] sm:$0xff] }
 0x65c   : > { %2980 = vrot.lane.b32.xlu0 %v2631_v55, %s12646_s24  ;;  %v3210_v0 = vmul.f32 %v13233_v53, %v10363_v19  ;;  %v2744_v55 = vadd.f32 %v10707_v48, %v2648_v8 }
 0x65d   : > { %v10927_v13 = vpop.permute.xlu1 %4207 }
 0x65e   : > { %13230 = vst [vmem:[#allocation194_spill] sm:$0xff] %v10927_v13  ;;  %v10930_v15 = vpop.permute.xlu0 %4205  ;;  %v3354_v21 = vsub.f32 %v3210_v0, %v10722_v42  ;;  %v13236_v42 = vld [vmem:[#allocation124_spill] sm:$0xff] }
 0x65f   : > { %13231 = vst [vmem:[#allocation196_spill] sm:$0xff] %v10930_v15  ;;  %2982 = vrot.lane.b32.xlu1 %v2632_v6, %s12646_s24  ;;  %v13235_v6 = vld [vmem:[#allocation104_spill] sm:$0xff]  ;;  %v3419_v0 = vmul.f32 %v13236_v42, %v10360_v3  ;;  %v13240_v15 = vld [vmem:[#allocation65_spill] sm:$0xff] }
 0x660   : > { %3044 = vrot.lane.b32.xlu0 %v2743_v46, %s12646_s24  ;;  %v3418_v23 = vmul.f32 %v13235_v6, %v10363_v19  ;;  %v3355_v46 = vsub.f32 %v3211_v20, %v10719_v33 }
 0x661   : > { %v10939_v2 = vpop.permute.xlu1 %3714  ;;  %v3563_v33 = vadd.f32 %v10736_v50, %v3419_v0 }
 0x662   : > { %v10942_v37 = vpop.permute.xlu0 %3716  ;;  %v3562_v48 = vadd.f32 %v10739_v26, %v3418_v23  ;;  %v10976_v23 = vld [vmem:[%s12670_s1 + $0x68] sm:$0xff] }
 0x663   : > { %3046 = vrot.lane.b32.xlu1 %v2744_v55, %s12646_s24  ;;  %v10962_v55 = vld [vmem:[%s12670_s1 + $0x60] sm:$0xff] }
 0x664   : > { %3796 = vrot.lane.b32.xlu0 %v3354_v21, %s12644_s23  ;;  %v2537_v21 = vmul.f32 %v10962_v55, %v13237_v28 }
 0x665   : > { %v10951_v53 = vpop.permute.xlu1 %3718 }
 0x666   : > { %v10954_v8 = vpop.permute.xlu0 %3720  ;;  %v2633_v20 = vsub.f32 %v2537_v21, %v10780_v51 }
 0x667   : > { %3798 = vrot.lane.b32.xlu1 %v3355_v46, %s12644_s23  ;;  %v13238_v46 = vld [vmem:[#allocation36_spill] sm:$0xff] }
 0x668   : > { %3860 = vrot.lane.b32.xlu0 %v3562_v48, %s12644_s23  ;;  %v2538_v42 = vmul.f32 %v10976_v23, %v13238_v46  ;;  %v13239_v48 = vld [vmem:[#allocation56_spill] sm:$0xff]  ;;  %v2650_v9 = vmul.f32 %v13240_v15, %v13238_v46  ;;  %v13243_v15 = vld [vmem:[#allocation107_spill] sm:$0xff] }
 0x669   : > { %v10968_v26 = vpop.permute.xlu1 %3722  ;;  %v2649_v13 = vmul.f32 %v13239_v48, %v13237_v28 }
 0x66a   : > { %v10971_v6 = vpop.permute.xlu0 %3724  ;;  %v2634_v50 = vsub.f32 %v2538_v42, %v10777_v7 }
 0x66b   : > { %3862 = vrot.lane.b32.xlu1 %v3563_v33, %s12644_s23  ;;  %v2745_v0 = vadd.f32 %v10797_v11, %v2649_v13  ;;  %v13241_v33 = vld [vmem:[#allocation71_spill] sm:$0xff] }
 0x66c   : > { %2984 = vrot.lane.b32.xlu0 %v2633_v20, %s12646_s24  ;;  %v3212_v56 = vmul.f32 %v13241_v33, %v13237_v28  ;;  %v2746_v20 = vadd.f32 %v10794_v27, %v2650_v9  ;;  %v13242_v11 = vld [vmem:[#allocation83_spill] sm:$0xff] }
 0x66d   : > { %v10985_v51 = vpop.permute.xlu1 %3726  ;;  %v3213_v13 = vmul.f32 %v13242_v11, %v13238_v46 }
 0x66e   : > { %v10988_v21 = vpop.permute.xlu0 %3728  ;;  %v3356_v7 = vsub.f32 %v3212_v56, %v10814_v40  ;;  %v13244_v56 = vld [vmem:[#allocation128_spill] sm:$0xff] }
 0x66f   : > { %2986 = vrot.lane.b32.xlu1 %v2634_v50, %s12646_s24  ;;  %v3420_v50 = vmul.f32 %v13243_v15, %v13237_v28  ;;  %v3421_v40 = vmul.f32 %v13244_v56, %v13238_v46  ;;  %v11034_v15 = vld [vmem:[%s12670_s1 + $0x78] sm:$0xff] }
 0x670   : > { %3048 = vrot.lane.b32.xlu0 %v2745_v0, %s12646_s24  ;;  %v3357_v0 = vsub.f32 %v3213_v13, %v10811_v49 }
 0x671   : > { %v10997_v48 = vpop.permute.xlu1 %3730  ;;  %v3564_v9 = vadd.f32 %v10826_v61, %v3420_v50  ;;  %v3565_v49 = vadd.f32 %v10823_v63, %v3421_v40  ;;  %v2540_v50 = vmul.f32 %v11034_v15, %v10503_v25 }
 0x672   : > { %v11000_v42 = vpop.permute.xlu0 %3732 }
 0x673   : > { %3050 = vrot.lane.b32.xlu1 %v2746_v20, %s12646_s24  ;;  %v11020_v20 = vld [vmem:[%s12670_s1 + $0x70] sm:$0xff]  ;;  %v2636_v63 = vsub.f32 %v2540_v50, %v10869_v5  ;;  %v13251_v50 = vld [vmem:[#allocation182_spill] sm:$0xff] }
 0x674   : > { %3800 = vrot.lane.b32.xlu0 %v3356_v7, %s12644_s23  ;;  %v2539_v7 = vmul.f32 %v11020_v20, %v10508_v36 }
 0x675   : > { %v11009_v33 = vpop.permute.xlu1 %3734 }
 0x676   : > { %v11012_v27 = vpop.permute.xlu0 %3736  ;;  %v2635_v11 = vsub.f32 %v2539_v7, %v10872_v43  ;;  %v13249_v7 = vld [vmem:[#allocation67_spill] sm:$0xff] }
 0x677   : > { %3802 = vrot.lane.b32.xlu1 %v3357_v0, %s12644_s23  ;;  %v13247_v0 = vld [vmem:[#allocation58_spill] sm:$0xff] }
 0x678   : > { %3864 = vrot.lane.b32.xlu0 %v3564_v9, %s12644_s23  ;;  %v2651_v9 = vmul.f32 %v13247_v0, %v10508_v36 }
 0x679   : > { %v11026_v61 = vpop.permute.xlu1 %3738 }
 0x67a   : > { %13245 = vst [vmem:[#allocation49_spill] sm:$0xff] %v11026_v61  ;;  %v11029_v13 = vpop.permute.xlu0 %3740  ;;  %v2747_v56 = vadd.f32 %v10884_v32, %v2651_v9  ;;  %v13250_v61 = vld [vmem:[#allocation73_spill] sm:$0xff] }
 0x67b   : > { %13246 = vst [vmem:[#allocation40_spill] sm:$0xff] %v11029_v13  ;;  %3866 = vrot.lane.b32.xlu1 %v3565_v49, %s12644_s23  ;;  %v2652_v13 = vmul.f32 %v13249_v7, %v10503_v25  ;;  %v3214_v49 = vmul.f32 %v13250_v61, %v10508_v36  ;;  %v13253_v61 = vld [vmem:[#allocation111_spill] sm:$0xff] }
 0x67c   : > { %2988 = vrot.lane.b32.xlu0 %v2635_v11, %s12646_s24 }
 0x67d   : > { %v11043_v43 = vpop.permute.xlu1 %3742  ;;  %v2748_v11 = vadd.f32 %v10881_v31, %v2652_v13  ;;  %v3358_v5 = vsub.f32 %v3214_v49, %v10896_v35 }
 0x67e   : > { %13248 = vst [vmem:[#allocation206_spill] sm:$0xff] %v11043_v43  ;;  %v2961_v40 = vpop.permute.xlu0 %2960  ;;  %v13252_v43 = vld [vmem:[#allocation85_spill] sm:$0xff] }
 0x67f   : > { %2990 = vrot.lane.b32.xlu1 %v2636_v63, %s12646_s24  ;;  %v3072_v32 = vsel %vm2877_vm0, %v13251_v50, %v2961_v40  ;;  %v3215_v7 = vmul.f32 %v13252_v43, %v10503_v25 }
 0x680   : > { %3052 = vrot.lane.b32.xlu0 %v2747_v56, %s12646_s24  ;;  %v3422_v56 = vmul.f32 %v13253_v61, %v10508_v36 }
 0x681   : > { %v2963_v0 = vpop.permute.xlu1 %2962  ;;  %v3359_v35 = vsub.f32 %v3215_v7, %v10893_v34 }
 0x682   : > { %v3025_v9 = vpop.permute.xlu0 %3024  ;;  %v3073_v13 = vsel %vm2877_vm0, %v13186_v1, %v2963_v0  ;;  %v3566_v43 = vadd.f32 %v10913_v44, %v3422_v56  ;;  %v13255_v0 = vld [vmem:[#allocation245_spill] sm:$0xff]  ;;  %v13256_v56 = vld [vmem:[#allocation226_spill] sm:$0xff] }
 0x683   : > { %v3088_v63 = vsel %vm2894_vm1, %v3072_v32, %v3025_v9  ;;  %3054 = vrot.lane.b32.xlu1 %v2748_v11, %s12646_s24  ;;  %v13254_v11 = vld [vmem:[#allocation133_spill] sm:$0xff]  ;;  %v4355_v44 = vmul.f32 %v13255_v0, %v10080_v54 }
 0x684   : > { %v3104_v31 = vsel %vm2911_vm2, %v3088_v63, 0.0  ;;  %3804 = vrot.lane.b32.xlu0 %v3358_v5, %s12644_s23  ;;  %v3423_v32 = vmul.f32 %v13254_v11, %v10503_v25 }
 0x685   : > { %3120 = vst [vmem:[%s10425_s20] sm:$0xff] %v3104_v31  ;;  %v3027_v40 = vpop.permute.xlu1 %3026 }
 0x686   : > { %v3089_v49 = vsel %vm2894_vm1, %v3073_v13, %v3027_v40  ;;  %v3777_v50 = vpop.permute.xlu0 %3776  ;;  %v3567_v1 = vadd.f32 %v10910_v59, %v3423_v32  ;;  %v4354_v59 = vmul.f32 %v13256_v56, %v13192_v14  ;;  %v13257_v13 = vld [vmem:[#allocation134_spill] sm:$0xff] }
 0x687   : > { %v3105_v9 = vsel %vm2911_vm2, %v3089_v49, 0.0  ;;  %3806 = vrot.lane.b32.xlu1 %v3359_v35, %s12644_s23  ;;  %v3888_v5 = vsel %vm2877_vm0, %v10855_v62, %v3777_v50  ;;  %v4357_v62 = vmul.f32 %v13257_v13, %v10141_v24  ;;  %v13258_v50 = vld [vmem:[#allocation228_spill] sm:$0xff] }
 0x688   : > { %3121 = vst [vmem:[%s10425_s20 + $0x20] sm:$0xff] %v3105_v9  ;;  %3868 = vrot.lane.b32.xlu0 %v3566_v43, %s12644_s23  ;;  %v4356_v11 = vmul.f32 %v13258_v50, %v9738_v57  ;;  %v13262_v13 = vld [vmem:[#allocation232_spill] sm:$0xff] }
 0x689   : > { %v3779_v34 = vpop.permute.xlu1 %3778 }
 0x68a   : > { %v3841_v7 = vpop.permute.xlu0 %3840  ;;  %v3889_v31 = vsel %vm2877_vm0, %v10939_v2, %v3779_v34 }
 0x68b   : > { %v3904_v63 = vsel %vm2894_vm1, %v3888_v5, %v3841_v7  ;;  %3870 = vrot.lane.b32.xlu1 %v3567_v1, %s12644_s23  ;;  %v13259_v1 = vld [vmem:[#allocation37_spill] sm:$0xff]  ;;  %s13462_s23 = sld [smem:[#allocation255_spill]] }
 0x68c   : > { %v3920_v61 = vsel %vm2911_vm2, %v3904_v63, 0.0  ;;  %4389 = vrot.lane.b32.xlu0 %v4355_v44, %s6648_s28  ;;  %v4359_v34 = vmul.f32 %v13259_v1, %v10228_v16 }
 0x68d   : > { %3936 = vst [vmem:[%s10425_s20 + $0x8] sm:$0xff] %v3920_v61  ;;  %v3843_v35 = vpop.permute.xlu1 %3842 }
 0x68e   : > { %v3905_v40 = vsel %vm2894_vm1, %v3889_v31, %v3843_v35  ;;  %v2965_v43 = vpop.permute.xlu0 %2964 }
 0x68f   : > { %v3921_v49 = vsel %vm2911_vm2, %v3905_v40, 0.0  ;;  %4387 = vrot.lane.b32.xlu1 %v4354_v59, %s6648_s28  ;;  %v3074_v32 = vsel %vm2877_vm0, %v13187_v4, %v2965_v43  ;;  %v13260_v4 = vld [vmem:[#allocation230_spill] sm:$0xff] }
 0x690   : > { %3937 = vst [vmem:[%s10425_s20 + $0x28] sm:$0xff] %v3921_v49  ;;  %4393 = vrot.lane.b32.xlu0 %v4357_v62, %s6648_s28  ;;  %v4358_v63 = vmul.f32 %v13260_v4, %v9994_v18  ;;  %v13261_v59 = vld [vmem:[#allocation246_spill] sm:$0xff]  ;;  %v4360_v62 = vmul.f32 %v13262_v13, %v10130_v45  ;;  %v13263_v49 = vld [vmem:[#allocation76_spill] sm:$0xff]  ;;  %v13266_v4 = vld [vmem:[#allocation235_spill] sm:$0xff] }
 0x691   : > { %v2967_v2 = vpop.permute.xlu1 %2966  ;;  %v4361_v31 = vmul.f32 %v13261_v59, %v10284_v47  ;;  %v4363_v50 = vmul.f32 %v13263_v49, %v10363_v19  ;;  %v13270_v49 = vld [vmem:[#allocation237_spill] sm:$0xff]  ;;  %s13463_s24 = smov %s13462_s23 }
 0x692   : > { %v3029_v9 = vpop.permute.xlu0 %3028  ;;  %v3075_v5 = vsel %vm2877_vm0, %v13188_v41, %v2967_v2 }
 0x693   : > { %v3090_v0 = vsel %vm2894_vm1, %v3074_v32, %v3029_v9  ;;  %4391 = vrot.lane.b32.xlu1 %v4356_v11, %s6648_s28 }
 0x694   : > { %v3106_v44 = vsel %vm2911_vm2, %v3090_v0, 0.0  ;;  %4397 = vrot.lane.b32.xlu0 %v4359_v34, %s6648_s28 }
 0x695   : > { %3122 = vst [vmem:[%s10425_s20 + $0x40] sm:$0xff] %v3106_v44  ;;  %v3031_v7 = vpop.permute.xlu1 %3030  ;;  %v13265_v44 = vld [vmem:[#allocation116_spill] sm:$0xff] }
 0x696   : > { %v3091_v61 = vsel %vm2894_vm1, %v3075_v5, %v3031_v7  ;;  %v3781_v56 = vpop.permute.xlu0 %3780  ;;  %v4365_v5 = vmul.f32 %v13265_v44, %v13237_v28 }
 0x697   : > { %v3107_v35 = vsel %vm2911_vm2, %v3091_v61, 0.0  ;;  %4395 = vrot.lane.b32.xlu1 %v4358_v63, %s6648_s28  ;;  %v3890_v40 = vsel %vm2877_vm0, %v10942_v37, %v3781_v56  ;;  %v13264_v37 = vld [vmem:[#allocation233_spill] sm:$0xff]  ;;  %v4364_v63 = vmul.f32 %v13266_v4, %v10360_v3  ;;  %v13267_v61 = vld [vmem:[#allocation238_spill] sm:$0xff] }
 0x698   : > { %3123 = vst [vmem:[%s10425_s20 + $0x60] sm:$0xff] %v3107_v35  ;;  %4401 = vrot.lane.b32.xlu0 %v4361_v31, %s6648_s28  ;;  %v4362_v1 = vmul.f32 %v13264_v37, %v10279_v39  ;;  %v13268_v31 = vld [vmem:[#allocation248_spill] sm:$0xff] }
 0x699   : > { %v3783_v41 = vpop.permute.xlu1 %3782  ;;  %v4367_v35 = vmul.f32 %v13268_v31, %v10508_v36 }
 0x69a   : > { %v3845_v43 = vpop.permute.xlu0 %3844  ;;  %v3891_v32 = vsel %vm2877_vm0, %v10951_v53, %v3783_v41 }
 0x69b   : > { %v3906_v11 = vsel %vm2894_vm1, %v3890_v40, %v3845_v43  ;;  %4399 = vrot.lane.b32.xlu1 %v4360_v62, %s6648_s28  ;;  %v13269_v62 = vld [vmem:[#allocation242_spill] sm:$0xff] }
 0x69c   : > { %v3922_v2 = vsel %vm2911_vm2, %v3906_v11, 0.0  ;;  %4405 = vrot.lane.b32.xlu0 %v4363_v50, %s6648_s28  ;;  %v4366_v50 = vmul.f32 %v13270_v49, %v13238_v46 }
 0x69d   : > { %3938 = vst [vmem:[%s10425_s20 + $0x48] sm:$0xff] %v3922_v2  ;;  %v3847_v9 = vpop.permute.xlu1 %3846 }
 0x69e   : > { %v3907_v34 = vsel %vm2894_vm1, %v3891_v32, %v3847_v9  ;;  %v2969_v0 = vpop.permute.xlu0 %2968  ;;  %v13271_v9 = vld [vmem:[#allocation38_spill] sm:$0xff] }
 0x69f   : > { %v3923_v7 = vsel %vm2911_vm2, %v3907_v34, 0.0  ;;  %4403 = vrot.lane.b32.xlu1 %v4362_v1, %s6648_s28  ;;  %v3076_v56 = vsel %vm2877_vm0, %v13267_v61, %v2969_v0  ;;  %v13272_v1 = vld [vmem:[#allocation241_spill] sm:$0xff] }
 0x6a0   : > { %3939 = vst [vmem:[%s10425_s20 + $0x68] sm:$0xff] %v3923_v7  ;;  %4409 = vrot.lane.b32.xlu0 %v4365_v5, %s6648_s28  ;;  %v4368_v34 = vmul.f32 %v13272_v1, %v10503_v25 }
 0x6a1   : > { %v2971_v53 = vpop.permute.xlu1 %2970 }
 0x6a2   : > { %v3033_v59 = vpop.permute.xlu0 %3032  ;;  %v3077_v40 = vsel %vm2877_vm0, %v13269_v62, %v2971_v53 }
 0x6a3   : > { %v3092_v41 = vsel %vm2894_vm1, %v3076_v56, %v3033_v59  ;;  %4407 = vrot.lane.b32.xlu1 %v4364_v63, %s6648_s28  ;;  %v13273_v56 = vld [vmem:[#allocation100_spill] sm:$0xff]  ;;  %v13274_v59 = vld [vmem:[#allocation157_spill] sm:$0xff] }
 0x6a4   : > { %v3108_v13 = vsel %vm2911_vm2, %v3092_v41, 0.0  ;;  %4413 = vrot.lane.b32.xlu0 %v4367_v35, %s6648_s28 }
 0x6a5   : > { %3124 = vst [vmem:[%s10425_s20 + $0x80] sm:$0xff] %v3108_v13  ;;  %v3035_v43 = vpop.permute.xlu1 %3034  ;;  %v13275_v13 = vld [vmem:[#allocation43_spill] sm:$0xff] }
 0x6a6   : > { %v3093_v11 = vsel %vm2894_vm1, %v3077_v40, %v3035_v43  ;;  %v3785_v2 = vpop.permute.xlu0 %3784 }
 0x6a7   : > { %v3109_v32 = vsel %vm2911_vm2, %v3093_v11, 0.0  ;;  %4411 = vrot.lane.b32.xlu1 %v4366_v50, %s6648_s28  ;;  %v3892_v0 = vsel %vm2877_vm0, %v10954_v8, %v3785_v2 }
 0x6a8   : > { %3125 = vst [vmem:[%s10425_s20 + $0xa0] sm:$0xff] %v3109_v32  ;;  %4594 = vrot.lane.b32.xlu0 %v13271_v9, %s6655_s29 }
 0x6a9   : > { %v3787_v37 = vpop.permute.xlu1 %3786 }
 0x6aa   : > { %v3849_v44 = vpop.permute.xlu0 %3848  ;;  %v3893_v53 = vsel %vm2877_vm0, %v10968_v26, %v3787_v37 }
 0x6ab   : > { %v3908_v5 = vsel %vm2894_vm1, %v3892_v0, %v3849_v44  ;;  %4415 = vrot.lane.b32.xlu1 %v4368_v34, %s6648_s28 }
 0x6ac   : > { %v3924_v7 = vsel %vm2911_vm2, %v3908_v5, 0.0  ;;  %4598 = vrot.lane.b32.xlu0 %v10672_v29, %s6655_s29 }
 0x6ad   : > { %3940 = vst [vmem:[%s10425_s20 + $0x88] sm:$0xff] %v3924_v7  ;;  %v3851_v4 = vpop.permute.xlu1 %3850 }
 0x6ae   : > { %v3909_v63 = vsel %vm2894_vm1, %v3893_v53, %v3851_v4  ;;  %v2973_v61 = vpop.permute.xlu0 %2972 }
 0x6af   : > { %v3925_v8 = vsel %vm2911_vm2, %v3909_v63, 0.0  ;;  %4596 = vrot.lane.b32.xlu1 %v13273_v56, %s6655_s29  ;;  %v3078_v26 = vsel %vm2877_vm0, %v13274_v59, %v2973_v61  ;;  %v11249_v61 = vld [vmem:[%s12431_s2 + $0x10] sm:$0xff] }
 0x6b0   : > { %3941 = vst [vmem:[%s10425_s20 + $0xa8] sm:$0xff] %v3925_v8  ;;  %4602 = vrot.lane.b32.xlu0 %v10730_v58, %s6655_s29 }
 0x6b1   : > { %v2975_v29 = vpop.permute.xlu1 %2974 }
 0x6b2   : > { %v3037_v31 = vpop.permute.xlu0 %3036  ;;  %v3079_v62 = vsel %vm2877_vm0, %v13275_v13, %v2975_v29 }
 0x6b3   : > { %v3094_v35 = vsel %vm2894_vm1, %v3078_v26, %v3037_v31  ;;  %4600 = vrot.lane.b32.xlu1 %v10684_v17, %s6655_s29  ;;  %v11261_v26 = vld [vmem:[%s12431_s2 + $0x8] sm:$0xff] }
 0x6b4   : > { %v3110_v41 = vsel %vm2911_vm2, %v3094_v35, 0.0  ;;  %4606 = vrot.lane.b32.xlu0 %v10788_v52, %s6655_s29  ;;  %v13278_v35 = vld [vmem:[#allocation26_spill] sm:$0xff] }
 0x6b5   : > { %3126 = vst [vmem:[%s10425_s20 + $0xc0] sm:$0xff] %v3110_v41  ;;  %v3039_v58 = vpop.permute.xlu1 %3038 }
 0x6b6   : > { %v3095_v40 = vsel %vm2894_vm1, %v3079_v62, %v3039_v58  ;;  %v3789_v43 = vpop.permute.xlu0 %3788  ;;  %v11279_v58 = vld [vmem:[%s12431_s2 + $0x18] sm:$0xff] }
 0x6b7   : > { %v3111_v49 = vsel %vm2911_vm2, %v3095_v40, 0.0  ;;  %4604 = vrot.lane.b32.xlu1 %v10744_v10, %s6655_s29  ;;  %v3894_v52 = vsel %vm2877_vm0, %v10971_v6, %v3789_v43  ;;  %v11287_v43 = vld [vmem:[%s12431_s2 + $0x30] sm:$0xff] }
 0x6b8   : > { %3127 = vst [vmem:[%s10425_s20 + $0xe0] sm:$0xff] %v3111_v49  ;;  %4610 = vrot.lane.b32.xlu0 %v10846_v38, %s6655_s29  ;;  %v13279_v49 = vld [vmem:[#allocation159_spill] sm:$0xff] }
 0x6b9   : > { %v3791_v17 = vpop.permute.xlu1 %3790 }
 0x6ba   : > { %v3853_v50 = vpop.permute.xlu0 %3852  ;;  %v3895_v10 = vsel %vm2877_vm0, %v10985_v51, %v3791_v17 }
 0x6bb   : > { %v3910_v11 = vsel %vm2894_vm1, %v3894_v52, %v3853_v50  ;;  %4608 = vrot.lane.b32.xlu1 %v10802_v60, %s6655_s29 }
 0x6bc   : > { %v3926_v2 = vsel %vm2911_vm2, %v3910_v11, 0.0  ;;  %4614 = vrot.lane.b32.xlu0 %v10904_v22, %s6655_s29  ;;  %v13276_v22 = vld [vmem:[#allocation33_spill] sm:$0xff] }
 0x6bd   : > { %3942 = vst [vmem:[%s10425_s20 + $0xc8] sm:$0xff] %v3926_v2  ;;  %v3855_v38 = vpop.permute.xlu1 %3854 }
 0x6be   : > { %v3911_v32 = vsel %vm2894_vm1, %v3895_v10, %v3855_v38  ;;  %v2977_v6 = vpop.permute.xlu0 %2976  ;;  %v11299_v10 = vld [vmem:[%s12431_s2 + $0x28] sm:$0xff]  ;;  %v11307_v38 = vld [vmem:[%s12431_s2 + $0x40] sm:$0xff] }
 0x6bf   : > { %v3927_v9 = vsel %vm2911_vm2, %v3911_v32, 0.0  ;;  %4612 = vrot.lane.b32.xlu1 %v10860_v30, %s6655_s29  ;;  %v3080_v51 = vsel %vm2877_vm0, %v13276_v22, %v2977_v6  ;;  %v13277_v30 = vld [vmem:[#allocation142_spill] sm:$0xff]  ;;  %v11317_v22 = vld [vmem:[%s12431_s2 + $0x38] sm:$0xff] }
 0x6c0   : > { %3943 = vst [vmem:[%s10425_s20 + $0xe8] sm:$0xff] %v3927_v9  ;;  %4618 = vrot.lane.b32.xlu0 %v10962_v55, %s6655_s29 }
 0x6c1   : > { %v2979_v60 = vpop.permute.xlu1 %2978 }
 0x6c2   : > { %v3041_v37 = vpop.permute.xlu0 %3040  ;;  %v3081_v0 = vsel %vm2877_vm0, %v13277_v30, %v2979_v60 }
 0x6c3   : > { %v3096_v1 = vsel %vm2894_vm1, %v3080_v51, %v3041_v37  ;;  %4616 = vrot.lane.b32.xlu1 %v10918_v12, %s6655_s29  ;;  %v11236_v12 = vld [vmem:[%s12431_s2] sm:$0xff]  ;;  %v11325_v37 = vld [vmem:[%s12431_s2 + $0x50] sm:$0xff] }
 0x6c4   : > { %v3112_v34 = vsel %vm2911_vm2, %v3096_v1, 0.0  ;;  %4622 = vrot.lane.b32.xlu0 %v11020_v20, %s6655_s29 }
 0x6c5   : > { %3128 = vst [vmem:[%s10425_s20 + $0x100] sm:$0xff] %v3112_v34  ;;  %v3043_v55 = vpop.permute.xlu1 %3042 }
 0x6c6   : > { %v3097_v44 = vsel %vm2894_vm1, %v3081_v0, %v3043_v55  ;;  %v3793_v5 = vpop.permute.xlu0 %3792  ;;  %v11337_v55 = vld [vmem:[%s12431_s2 + $0x48] sm:$0xff] }
 0x6c7   : > { %v3113_v7 = vsel %vm2911_vm2, %v3097_v44, 0.0  ;;  %4620 = vrot.lane.b32.xlu1 %v10976_v23, %s6655_s29  ;;  %v3896_v53 = vsel %vm2877_vm0, %v10988_v21, %v3793_v5  ;;  %v13280_v5 = vld [vmem:[#allocation113_spill] sm:$0xff] }
 0x6c8   : > { %3129 = vst [vmem:[%s10425_s20 + $0x120] sm:$0xff] %v3113_v7  ;;  %4658 = vrot.lane.b32.xlu0 %v11236_v12, %s6653_s22 }
 0x6c9   : > { %v3795_v20 = vpop.permute.xlu1 %3794 }
 0x6ca   : > { %v3857_v4 = vpop.permute.xlu0 %3856  ;;  %v3897_v8 = vsel %vm2877_vm0, %v10997_v48, %v3795_v20  ;;  %v11269_v48 = vld [vmem:[%s12431_s2 + $0x20] sm:$0xff] }
 0x6cb   : > { %v3912_v63 = vsel %vm2894_vm1, %v3896_v53, %v3857_v4  ;;  %4624 = vrot.lane.b32.xlu1 %v11034_v15, %s6655_s29  ;;  %v11355_v4 = vld [vmem:[%s12431_s2 + $0x58] sm:$0xff] }
 0x6cc   : > { %v3928_v23 = vsel %vm2911_vm2, %v3912_v63, 0.0  ;;  %4662 = vrot.lane.b32.xlu0 %v11249_v61, %s6653_s22 }
 0x6cd   : > { %3944 = vst [vmem:[%s10425_s20 + $0x108] sm:$0xff] %v3928_v23  ;;  %v3859_v21 = vpop.permute.xlu1 %3858  ;;  %v11363_v23 = vld [vmem:[%s12431_s2 + $0x70] sm:$0xff] }
 0x6ce   : > { %v3913_v56 = vsel %vm2894_vm1, %v3897_v8, %v3859_v21  ;;  %v2981_v29 = vpop.permute.xlu0 %2980  ;;  %v13281_v8 = vld [vmem:[#allocation80_spill] sm:$0xff] }
 0x6cf   : > { %v3929_v59 = vsel %vm2911_vm2, %v3913_v56, 0.0  ;;  %4660 = vrot.lane.b32.xlu1 %v11261_v26, %s6653_s22  ;;  %v3082_v41 = vsel %vm2877_vm0, %v13278_v35, %v2981_v29  ;;  %v11375_v35 = vld [vmem:[%s12431_s2 + $0x68] sm:$0xff] }
 0x6d0   : > { %3945 = vst [vmem:[%s10425_s20 + $0x128] sm:$0xff] %v3929_v59  ;;  %4666 = vrot.lane.b32.xlu0 %v11269_v48, %s6653_s22 }
 0x6d1   : > { %v2983_v31 = vpop.permute.xlu1 %2982 }
 0x6d2   : > { %v3045_v13 = vpop.permute.xlu0 %3044  ;;  %v3083_v17 = vsel %vm2877_vm0, %v13279_v49, %v2983_v31  ;;  %v11386_v49 = vld [vmem:[%s12431_s2 + $0x78] sm:$0xff] }
 0x6d3   : > { %v3098_v62 = vsel %vm2894_vm1, %v3082_v41, %v3045_v13  ;;  %4664 = vrot.lane.b32.xlu1 %v11279_v58, %s6653_s22 }
 0x6d4   : > { %v3114_v40 = vsel %vm2911_vm2, %v3098_v62, 0.0  ;;  %4670 = vrot.lane.b32.xlu0 %v11287_v43, %s6653_s22 }
 0x6d5   : > { %3130 = vst [vmem:[%s10425_s20 + $0x140] sm:$0xff] %v3114_v40  ;;  %v3047_v52 = vpop.permute.xlu1 %3046 }
 0x6d6   : > { %v3099_v50 = vsel %vm2894_vm1, %v3083_v17, %v3047_v52  ;;  %v3797_v11 = vpop.permute.xlu0 %3796  ;;  %v13282_v52 = vld [vmem:[#allocation49_spill] sm:$0xff] }
 0x6d7   : > { %v3115_v2 = vsel %vm2911_vm2, %v3099_v50, 0.0  ;;  %4668 = vrot.lane.b32.xlu1 %v11299_v10, %s6653_s22  ;;  %v3898_v6 = vsel %vm2877_vm0, %v11000_v42, %v3797_v11 }
 0x6d8   : > { %3131 = vst [vmem:[%s10425_s20 + $0x160] sm:$0xff] %v3115_v2  ;;  %4674 = vrot.lane.b32.xlu0 %v11307_v38, %s6653_s22 }
 0x6d9   : > { %v3799_v32 = vpop.permute.xlu1 %3798 }
 0x6da   : > { %v3861_v9 = vpop.permute.xlu0 %3860  ;;  %v3899_v42 = vsel %vm2877_vm0, %v11009_v33, %v3799_v32  ;;  %v11345_v33 = vld [vmem:[%s12431_s2 + $0x60] sm:$0xff] }
 0x6db   : > { %v3914_v60 = vsel %vm2894_vm1, %v3898_v6, %v3861_v9  ;;  %4672 = vrot.lane.b32.xlu1 %v11317_v22, %s6653_s22  ;;  %v13283_v9 = vld [vmem:[#allocation144_spill] sm:$0xff] }
 0x6dc   : > { %v3930_v51 = vsel %vm2911_vm2, %v3914_v60, 0.0  ;;  %4678 = vrot.lane.b32.xlu0 %v11325_v37, %s6653_s22 }
 0x6dd   : > { %3946 = vst [vmem:[%s10425_s20 + $0x148] sm:$0xff] %v3930_v51  ;;  %v3863_v1 = vpop.permute.xlu1 %3862 }
 0x6de   : > { %v3915_v34 = vsel %vm2894_vm1, %v3899_v42, %v3863_v1  ;;  %v2985_v30 = vpop.permute.xlu0 %2984 }
 0x6df   : > { %v3931_v0 = vsel %vm2911_vm2, %v3915_v34, 0.0  ;;  %4676 = vrot.lane.b32.xlu1 %v11337_v55, %s6653_s22  ;;  %v3084_v7 = vsel %vm2877_vm0, %v13280_v5, %v2985_v30  ;;  %v13284_v34 = vld [vmem:[#allocation193_spill] sm:$0xff] }
 0x6e0   : > { %3947 = vst [vmem:[%s10425_s20 + $0x168] sm:$0xff] %v3931_v0  ;;  %4682 = vrot.lane.b32.xlu0 %v11345_v33, %s6653_s22 }
 0x6e1   : > { %v2987_v44 = vpop.permute.xlu1 %2986 }
 0x6e2   : > { %v3049_v20 = vpop.permute.xlu0 %3048  ;;  %v3085_v21 = vsel %vm2877_vm0, %v13281_v8, %v2987_v44  ;;  %v13286_v8 = vld [vmem:[#allocation40_spill] sm:$0xff] }
 0x6e3   : > { %v3100_v53 = vsel %vm2894_vm1, %v3084_v7, %v3049_v20  ;;  %4680 = vrot.lane.b32.xlu1 %v11355_v4, %s6653_s22 }
 0x6e4   : > { %v3116_v63 = vsel %vm2911_vm2, %v3100_v53, 0.0  ;;  %4686 = vrot.lane.b32.xlu0 %v11363_v23, %s6653_s22  ;;  %v13285_v53 = vld [vmem:[#allocation141_spill] sm:$0xff] }
 0x6e5   : > { %3132 = vst [vmem:[%s10425_s20 + $0x180] sm:$0xff] %v3116_v63  ;;  %v3051_v56 = vpop.permute.xlu1 %3050  ;;  %v4083_v63 = vmul.f32 %v13285_v53, %v10080_v54  ;;  %v13297_v53 = vld [vmem:[#allocation201_spill] sm:$0xff] }
 0x6e6   : > { %v3101_v29 = vsel %vm2894_vm1, %v3085_v21, %v3051_v56  ;;  %v3801_v59 = vpop.permute.xlu0 %3800 }
 0x6e7   : > { %v3117_v31 = vsel %vm2911_vm2, %v3101_v29, 0.0  ;;  %4684 = vrot.lane.b32.xlu1 %v11375_v35, %s6653_s22  ;;  %v3900_v13 = vsel %vm2877_vm0, %v11012_v27, %v3801_v59  ;;  %v13287_v59 = vld [vmem:[#allocation82_spill] sm:$0xff] }
 0x6e8   : > { %3133 = vst [vmem:[%s10425_s20 + $0x1a0] sm:$0xff] %v3117_v31  ;;  %v4227_v31 = vsub.f32 %v4083_v63, %v13287_v59 }
 0x6e9   : > { %v3803_v41 = vpop.permute.xlu1 %3802 }
 0x6ea   : > { %v3865_v62 = vpop.permute.xlu0 %3864  ;;  %v3901_v50 = vsel %vm2877_vm0, %v13282_v52, %v3803_v41  ;;  %v13290_v52 = vld [vmem:[#allocation206_spill] sm:$0xff] }
 0x6eb   : > { %v3916_v40 = vsel %vm2894_vm1, %v3900_v13, %v3865_v62  ;;  %4688 = vrot.lane.b32.xlu1 %v11386_v49, %s6653_s22  ;;  %v13288_v13 = vld [vmem:[#allocation239_spill] sm:$0xff] }
 0x6ec   : > { %v3932_v17 = vsel %vm2911_vm2, %v3916_v40, 0.0  ;;  %v4291_v62 = vmul.f32 %v13288_v13, %v10080_v54  ;;  %v13289_v40 = vld [vmem:[#allocation152_spill] sm:$0xff] }
 0x6ed   : > { %3948 = vst [vmem:[%s10425_s20 + $0x188] sm:$0xff] %v3932_v17  ;;  %v3867_v11 = vpop.permute.xlu1 %3866  ;;  %v4082_v17 = vmul.f32 %v13289_v40, %v13192_v14 }
 0x6ee   : > { %v3917_v27 = vsel %vm2894_vm1, %v3901_v50, %v3867_v11  ;;  %v2989_v2 = vpop.permute.xlu0 %2988 }
 0x6ef   : > { %v3933_v32 = vsel %vm2911_vm2, %v3917_v27, 0.0  ;;  %v3086_v60 = vsel %vm2877_vm0, %v13283_v9, %v2989_v2  ;;  %v13291_v27 = vld [vmem:[#allocation169_spill] sm:$0xff]  ;;  %v13292_v2 = vld [vmem:[#allocation212_spill] sm:$0xff] }
 0x6f0   : > { %3949 = vst [vmem:[%s10425_s20 + $0x1a8] sm:$0xff] %v3933_v32  ;;  %v11423_v32 = vadd.f32 %v13292_v2, %v13291_v27  ;;  %v11438_v63 = vadd.f32 %v13297_v53, %v13291_v27 }
 0x6f1   : > { %v2991_v6 = vpop.permute.xlu1 %2990 }
 0x6f2   : > { %v3053_v51 = vpop.permute.xlu0 %3052  ;;  %v3087_v30 = vsel %vm2877_vm0, %v13284_v34, %v2991_v6  ;;  %v13293_v6 = vld [vmem:[#allocation143_spill] sm:$0xff] }
 0x6f3   : > { %v3102_v42 = vsel %vm2894_vm1, %v3086_v60, %v3053_v51  ;;  %v4085_v9 = vmul.f32 %v13293_v6, %v10141_v24 }
 0x6f4   : > { %v3118_v1 = vsel %vm2911_vm2, %v3102_v42, 0.0  ;;  %v13294_v42 = vld [vmem:[#allocation250_spill] sm:$0xff] }
 0x6f5   : > { %3134 = vst [vmem:[%s10425_s20 + $0x1c0] sm:$0xff] %v3118_v1  ;;  %v3055_v0 = vpop.permute.xlu1 %3054  ;;  %v4226_v1 = vsub.f32 %v4082_v17, %v13294_v42 }
 0x6f6   : > { %v3103_v44 = vsel %vm2894_vm1, %v3087_v30, %v3055_v0  ;;  %v3805_v5 = vpop.permute.xlu0 %3804  ;;  %v4515_v0 = vsel %vm2877_vm0, %v11423_v32, %v4227_v31 }
 0x6f7   : > { %v3119_v7 = vsel %vm2911_vm2, %v3103_v44, 0.0  ;;  %v3902_v21 = vsel %vm2877_vm0, %v13286_v8, %v3805_v5  ;;  %v13295_v44 = vld [vmem:[#allocation121_spill] sm:$0xff]  ;;  %v13298_v8 = vld [vmem:[#allocation243_spill] sm:$0xff]  ;;  %v4514_v6 = vsel %vm2877_vm0, %v11438_v63, %v4226_v1 }
 0x6f8   : > { %3135 = vst [vmem:[%s10425_s20 + $0x1e0] sm:$0xff] %v3119_v7  ;;  %v4229_v5 = vsub.f32 %v4085_v9, %v13295_v44  ;;  %v13296_v7 = vld [vmem:[#allocation130_spill] sm:$0xff]  ;;  %v13303_v9 = vld [vmem:[#allocation28_spill] sm:$0xff]  ;;  %v13305_v44 = vld [vmem:[#allocation187_spill] sm:$0xff] }
 0x6f9   : > { %v3807_v20 = vpop.permute.xlu1 %3806 }
 0x6fa   : > { %v3869_v56 = vpop.permute.xlu0 %3868  ;;  %v3903_v50 = vsel %vm2877_vm0, %v13290_v52, %v3807_v20  ;;  %v4290_v20 = vmul.f32 %v13296_v7, %v13192_v14  ;;  %v4292_v7 = vmul.f32 %v13305_v44, %v9738_v57 }
 0x6fb   : > { %v3918_v29 = vsel %vm2894_vm1, %v3902_v21, %v3869_v56  ;;  %v4293_v21 = vmul.f32 %v13298_v8, %v10141_v24  ;;  %v13299_v56 = vld [vmem:[#allocation154_spill] sm:$0xff] }
 0x6fc   : > { %v3934_v41 = vsel %vm2911_vm2, %v3918_v29, 0.0  ;;  %v4084_v29 = vmul.f32 %v13299_v56, %v9738_v57 }
 0x6fd   : > { %3950 = vst [vmem:[%s10425_s20 + $0x1c8] sm:$0xff] %v3934_v41  ;;  %v3871_v11 = vpop.permute.xlu1 %3870  ;;  %v13300_v41 = vld [vmem:[#allocation240_spill] sm:$0xff] }
 0x6fe   : > { %v3919_v60 = vsel %vm2894_vm1, %v3903_v50, %v3871_v11  ;;  %v4390_v51 = vpop.permute.xlu0 %4389  ;;  %v11447_v13 = vadd.f32 %v13300_v41, %v13291_v27  ;;  %v13302_v11 = vld [vmem:[#allocation215_spill] sm:$0xff] }
 0x6ff   : > { %v3935_v34 = vsel %vm2911_vm2, %v3919_v60, 0.0  ;;  %v4435_v30 = vadd.f32 %v4390_v51, %v4291_v62  ;;  %v13301_v62 = vld [vmem:[#allocation145_spill] sm:$0xff]  ;;  %v11454_v2 = vadd.f32 %v13302_v11, %v13291_v27  ;;  %v4228_v60 = vsub.f32 %v4084_v29, %v13303_v9 }
 0x700   : > { %3951 = vst [vmem:[%s10425_s20 + $0x1e8] sm:$0xff] %v3935_v34  ;;  %v4087_v40 = vmul.f32 %v13301_v62, %v10228_v16  ;;  %v4517_v42 = vsel %vm2877_vm0, %v11447_v13, %v4229_v5  ;;  %v13304_v34 = vld [vmem:[#allocation47_spill] sm:$0xff] }
 0x701   : > { %v4531_v59 = vsel %vm2894_vm1, %v4515_v0, %v4435_v30  ;;  %v4388_v31 = vpop.permute.xlu1 %4387  ;;  %v13308_v5 = vld [vmem:[#allocation247_spill] sm:$0xff]  ;;  %v4516_v11 = vsel %vm2877_vm0, %v11454_v2, %v4228_v60 }
 0x702   : > { %v4547_v17 = vsel %vm2911_vm2, %v4531_v59, 0.0  ;;  %v4434_v52 = vadd.f32 %v4388_v31, %v4290_v20  ;;  %v4394_v50 = vpop.permute.xlu0 %4393  ;;  %v4231_v30 = vsub.f32 %v4087_v40, %v13304_v34  ;;  %v13306_v20 = vld [vmem:[#allocation156_spill] sm:$0xff]  ;;  %v11474_v59 = vadd.f32 %v13308_v5, %v13291_v27  ;;  %v13309_v31 = vld [vmem:[#allocation147_spill] sm:$0xff] }
 0x703   : > { %4563 = vst [vmem:[%s10425_s20 + $0x50] sm:$0xff] %v4547_v17  ;;  %v4437_v51 = vadd.f32 %v4394_v50, %v4293_v21  ;;  %v4086_v53 = vmul.f32 %v13306_v20, %v9994_v18  ;;  %v13307_v21 = vld [vmem:[#allocation41_spill] sm:$0xff]  ;;  %v4089_v41 = vmul.f32 %v13309_v31, %v10284_v47  ;;  %v13312_v34 = vld [vmem:[#allocation99_spill] sm:$0xff] }
 0x704   : > { %v4530_v0 = vsel %vm2894_vm1, %v4514_v6, %v4434_v52  ;;  %v4295_v29 = vmul.f32 %v13307_v21, %v10228_v16  ;;  %v13310_v52 = vld [vmem:[#allocation244_spill] sm:$0xff]  ;;  %v13311_v6 = vld [vmem:[#allocation161_spill] sm:$0xff] }
 0x705   : > { %v4546_v1 = vsel %vm2911_vm2, %v4530_v0, 0.0  ;;  %v4533_v8 = vsel %vm2894_vm1, %v4517_v42, %v4437_v51  ;;  %v4392_v56 = vpop.permute.xlu1 %4391  ;;  %v11482_v50 = vadd.f32 %v13310_v52, %v13291_v27  ;;  %v4230_v9 = vsub.f32 %v4086_v53, %v13311_v6  ;;  %v13315_v21 = vld [vmem:[#allocation184_spill] sm:$0xff]  ;;  %v13317_v31 = vld [vmem:[#allocation149_spill] sm:$0xff] }
 0x706   : > { %4562 = vst [vmem:[%s10425_s20 + $0x30] sm:$0xff] %v4546_v1  ;;  %v4549_v62 = vsel %vm2911_vm2, %v4533_v8, 0.0  ;;  %v4436_v40 = vadd.f32 %v4392_v56, %v4292_v7  ;;  %v4398_v17 = vpop.permute.xlu0 %4397  ;;  %v4519_v42 = vsel %vm2877_vm0, %v11474_v59, %v4231_v30  ;;  %v4233_v0 = vsub.f32 %v4089_v41, %v13312_v34  ;;  %v13313_v7 = vld [vmem:[#allocation214_spill] sm:$0xff]  ;;  %v13316_v30 = vld [vmem:[#allocation93_spill] sm:$0xff] }
 0x707   : > { %4565 = vst [vmem:[%s10425_s20 + $0x90] sm:$0xff] %v4549_v62  ;;  %v4439_v51 = vadd.f32 %v4398_v17, %v4295_v29  ;;  %v4294_v20 = vmul.f32 %v13313_v7, %v9994_v18  ;;  %v13314_v1 = vld [vmem:[#allocation158_spill] sm:$0xff]  ;;  %v4297_v29 = vmul.f32 %v13315_v21, %v10284_v47  ;;  %v11502_v5 = vadd.f32 %v13316_v30, %v13291_v27  ;;  %v13318_v52 = vld [vmem:[#allocation249_spill] sm:$0xff] }
 0x708   : > { %v4532_v44 = vsel %vm2894_vm1, %v4516_v11, %v4436_v40  ;;  %v4088_v8 = vmul.f32 %v13314_v1, %v10130_v45  ;;  %v4091_v41 = vmul.f32 %v13317_v31, %v10363_v19  ;;  %v11510_v11 = vadd.f32 %v13318_v52, %v13291_v27  ;;  %v13320_v7 = vld [vmem:[#allocation29_spill] sm:$0xff] }
 0x709   : > { %v4548_v60 = vsel %vm2911_vm2, %v4532_v44, 0.0  ;;  %v4535_v53 = vsel %vm2894_vm1, %v4519_v42, %v4439_v51  ;;  %v4396_v56 = vpop.permute.xlu1 %4395  ;;  %v4518_v6 = vsel %vm2877_vm0, %v11482_v50, %v4230_v9  ;;  %v13319_v51 = vld [vmem:[#allocation125_spill] sm:$0xff]  ;;  %v4521_v44 = vsel %vm2877_vm0, %v11502_v5, %v4233_v0  ;;  %v13324_v0 = vld [vmem:[#allocation119_spill] sm:$0xff] }
 0x70a   : > { %4564 = vst [vmem:[%s10425_s20 + $0x70] sm:$0xff] %v4548_v60  ;;  %v4551_v62 = vsel %vm2911_vm2, %v4535_v53, 0.0  ;;  %v4438_v40 = vadd.f32 %v4396_v56, %v4294_v20  ;;  %v4402_v17 = vpop.permute.xlu0 %4401  ;;  %v4232_v42 = vsub.f32 %v4088_v8, %v13319_v51  ;;  %v4235_v1 = vsub.f32 %v4091_v41, %v13320_v7  ;;  %v13321_v60 = vld [vmem:[#allocation217_spill] sm:$0xff]  ;;  %v13322_v56 = vld [vmem:[#allocation160_spill] sm:$0xff]  ;;  %v13327_v51 = vld [vmem:[#allocation78_spill] sm:$0xff] }
 0x70b   : > { %4567 = vst [vmem:[%s10425_s20 + $0xd0] sm:$0xff] %v4551_v62  ;;  %v4441_v34 = vadd.f32 %v4402_v17, %v4297_v29  ;;  %v4296_v53 = vmul.f32 %v13321_v60, %v10130_v45  ;;  %v4090_v21 = vmul.f32 %v13322_v56, %v10279_v39  ;;  %v13323_v29 = vld [vmem:[#allocation91_spill] sm:$0xff]  ;;  %v11530_v41 = vadd.f32 %v13324_v0, %v13291_v27  ;;  %v13331_v0 = vld [vmem:[#allocation162_spill] sm:$0xff] }
 0x70c   : > { %v4534_v20 = vsel %vm2894_vm1, %v4518_v6, %v4438_v40  ;;  %v4299_v31 = vmul.f32 %v13323_v29, %v10363_v19  ;;  %v13326_v62 = vld [vmem:[#allocation151_spill] sm:$0xff]  ;;  %v11538_v7 = vadd.f32 %v13327_v51, %v13291_v27 }
 0x70d   : > { %v4550_v9 = vsel %vm2911_vm2, %v4534_v20, 0.0  ;;  %v4537_v8 = vsel %vm2894_vm1, %v4521_v44, %v4441_v34  ;;  %v4400_v30 = vpop.permute.xlu1 %4399  ;;  %13325 = vst [vmem:[#allocation102_spill] sm:$0xff] %v11530_v41  ;;  %v4093_v40 = vmul.f32 %v13326_v62, %v13237_v28  ;;  %v4520_v34 = vsel %vm2877_vm0, %v11510_v11, %v4232_v42  ;;  %v13328_v44 = vld [vmem:[#allocation139_spill] sm:$0xff] }
 0x70e   : > { %4566 = vst [vmem:[%s10425_s20 + $0xb0] sm:$0xff] %v4550_v9  ;;  %v4553_v17 = vsel %vm2911_vm2, %v4537_v8, 0.0  ;;  %v4440_v52 = vadd.f32 %v4400_v30, %v4296_v53  ;;  %v4406_v6 = vpop.permute.xlu0 %4405  ;;  %v4234_v20 = vsub.f32 %v4090_v21, %v13328_v44  ;;  %v4523_v56 = vsel %vm2877_vm0, %v11530_v41, %v4235_v1  ;;  %v13329_v9 = vld [vmem:[#allocation131_spill] sm:$0xff]  ;;  %v13333_v1 = vld [vmem:[#allocation34_spill] sm:$0xff] }
 0x70f   : > { %4569 = vst [vmem:[%s10425_s20 + $0x110] sm:$0xff] %v4553_v17  ;;  %v4443_v60 = vadd.f32 %v4406_v6, %v4299_v31  ;;  %v4237_v29 = vsub.f32 %v4093_v40, %v13329_v9  ;;  %v13330_v8 = vld [vmem:[#allocation219_spill] sm:$0xff]  ;;  %v4092_v62 = vmul.f32 %v13331_v0, %v10360_v3  ;;  %v13332_v31 = vld [vmem:[#allocation140_spill] sm:$0xff]  ;;  %v11558_v40 = vadd.f32 %v13333_v1, %v13291_v27 }
 0x710   : > { %v4536_v53 = vsel %vm2894_vm1, %v4520_v34, %v4440_v52  ;;  %v4298_v30 = vmul.f32 %v13330_v8, %v10279_v39  ;;  %v4301_v6 = vmul.f32 %v13332_v31, %v13237_v28  ;;  %v13334_v52 = vld [vmem:[#allocation153_spill] sm:$0xff]  ;;  %v13336_v8 = vld [vmem:[#allocation84_spill] sm:$0xff] }
 0x711   : > { %v4552_v42 = vsel %vm2911_vm2, %v4536_v53, 0.0  ;;  %v4539_v21 = vsel %vm2894_vm1, %v4523_v56, %v4443_v60  ;;  %v4404_v17 = vpop.permute.xlu1 %4403  ;;  %v4095_v51 = vmul.f32 %v13334_v52, %v10508_v36  ;;  %v13335_v53 = vld [vmem:[#allocation94_spill] sm:$0xff]  ;;  %v4522_v56 = vsel %vm2877_vm0, %v11538_v7, %v4234_v20 }
 0x712   : > { %4568 = vst [vmem:[%s10425_s20 + $0xf0] sm:$0xff] %v4552_v42  ;;  %v4555_v34 = vsel %vm2911_vm2, %v4539_v21, 0.0  ;;  %v4442_v44 = vadd.f32 %v4404_v17, %v4298_v30  ;;  %v4410_v9 = vpop.permute.xlu0 %4409  ;;  %v11566_v60 = vadd.f32 %v13335_v53, %v13291_v27  ;;  %v4236_v0 = vsub.f32 %v4092_v62, %v13336_v8  ;;  %v13337_v42 = vld [vmem:[#allocation196_spill] sm:$0xff]  ;;  %v13339_v53 = vld [vmem:[#allocation163_spill] sm:$0xff] }
 0x713   : > { %4571 = vst [vmem:[%s10425_s20 + $0x150] sm:$0xff] %v4555_v34  ;;  %v4445_v31 = vadd.f32 %v4410_v9, %v4301_v6  ;;  %v4525_v1 = vsel %vm2877_vm0, %v11558_v40, %v4237_v29  ;;  %v4239_v21 = vsub.f32 %v4095_v51, %v13337_v42  ;;  %v13338_v17 = vld [vmem:[#allocation220_spill] sm:$0xff]  ;;  %v4094_v41 = vmul.f32 %v13339_v53, %v13238_v46  ;;  %v13340_v6 = vld [vmem:[#allocation25_spill] sm:$0xff]  ;;  %v13341_v29 = vld [vmem:[#allocation127_spill] sm:$0xff] }
 0x714   : > { %v4538_v30 = vsel %vm2894_vm1, %v4522_v56, %v4442_v44  ;;  %v4300_v52 = vmul.f32 %v13338_v17, %v10360_v3  ;;  %v4303_v9 = vmul.f32 %v13340_v6, %v10508_v36  ;;  %v11586_v8 = vadd.f32 %v13341_v29, %v13291_v27 }
 0x715   : > { %v4554_v20 = vsel %vm2911_vm2, %v4538_v30, 0.0  ;;  %v4541_v62 = vsel %vm2894_vm1, %v4525_v1, %v4445_v31  ;;  %v4408_v34 = vpop.permute.xlu1 %4407  ;;  %v4524_v42 = vsel %vm2877_vm0, %v11566_v60, %v4236_v0  ;;  %v13342_v30 = vld [vmem:[#allocation146_spill] sm:$0xff] }
 0x716   : > { %4570 = vst [vmem:[%s10425_s20 + $0x130] sm:$0xff] %v4554_v20  ;;  %v4557_v51 = vsel %vm2911_vm2, %v4541_v62, 0.0  ;;  %v4444_v44 = vadd.f32 %v4408_v34, %v4300_v52  ;;  %v4414_v56 = vpop.permute.xlu0 %4413  ;;  %v4238_v17 = vsub.f32 %v4094_v41, %v13342_v30  ;;  %v4527_v1 = vsel %vm2877_vm0, %v11586_v8, %v4239_v21  ;;  %v13343_v20 = vld [vmem:[#allocation221_spill] sm:$0xff]  ;;  %v13344_v62 = vld [vmem:[#allocation122_spill] sm:$0xff] }
 0x717   : > { %4573 = vst [vmem:[%s10425_s20 + $0x190] sm:$0xff] %v4557_v51  ;;  %v4447_v31 = vadd.f32 %v4414_v56, %v4303_v9  ;;  %v4302_v6 = vmul.f32 %v13343_v20, %v13238_v46  ;;  %v11601_v52 = vadd.f32 %v13344_v62, %v13291_v27  ;;  %v13345_v34 = vld [vmem:[#allocation22_spill] sm:$0xff] }
 0x718   : > { %v4540_v53 = vsel %vm2894_vm1, %v4524_v42, %v4444_v44  ;;  %v4096_v0 = vmul.f32 %v13345_v34, %v10503_v25  ;;  %v13346_v42 = vld [vmem:[#allocation194_spill] sm:$0xff] }
 0x719   : > { %v4556_v41 = vsel %vm2911_vm2, %v4540_v53, 0.0  ;;  %v4543_v9 = vsel %vm2894_vm1, %v4527_v1, %v4447_v31  ;;  %v4412_v29 = vpop.permute.xlu1 %4411  ;;  %v4526_v56 = vsel %vm2877_vm0, %v11601_v52, %v4238_v17  ;;  %v13347_v53 = vld [vmem:[#allocation224_spill] sm:$0xff]  ;;  %v13348_v31 = vld [vmem:[#allocation195_spill] sm:$0xff] }
 0x71a   : > { %4572 = vst [vmem:[%s10425_s20 + $0x170] sm:$0xff] %v4556_v41  ;;  %v4559_v21 = vsel %vm2911_vm2, %v4543_v9, 0.0  ;;  %v4446_v51 = vadd.f32 %v4412_v29, %v4302_v6  ;;  %v11609_v44 = vpop.permute.xlu0 %4594  ;;  %v4240_v30 = vsub.f32 %v4096_v0, %v13346_v42  ;;  %v4304_v62 = vmul.f32 %v13347_v53, %v10503_v25 }
 0x71b   : > { %4575 = vst [vmem:[%s10425_s20 + $0x1d0] sm:$0xff] %v4559_v21  ;;  %v11620_v1 = vadd.f32 %v13348_v31, %v13291_v27 }
 0x71c   : > { %v4542_v20 = vsel %vm2894_vm1, %v4526_v56, %v4446_v51 }
 0x71d   : > { %v4558_v6 = vsel %vm2911_vm2, %v4542_v20, 0.0  ;;  %v4416_v34 = vpop.permute.xlu1 %4415  ;;  %v4528_v17 = vsel %vm2877_vm0, %v11620_v1, %v4240_v30 }
 0x71e   : > { %4574 = vst [vmem:[%s10425_s20 + $0x1b0] sm:$0xff] %v4558_v6  ;;  %v4448_v41 = vadd.f32 %v4416_v34, %v4304_v62  ;;  %v11624_v9 = vpop.permute.xlu0 %4598 }
 0x720   : > { %v4544_v0 = vsel %vm2894_vm1, %v4528_v17, %v4448_v41 }
 0x721   : > { %v4560_v29 = vsel %vm2911_vm2, %v4544_v0, 0.0  ;;  %v11630_v21 = vpop.permute.xlu1 %4596  ;;  %v13357_v0 = vld [vmem:[#allocation223_spill] sm:$0xff] }
 0x722   : > { %4576 = vst [vmem:[%s10425_s20 + $0x1f0] sm:$0xff] %v4560_v29  ;;  %v11633_v51 = vpop.permute.xlu0 %4602 }
 0x725   : > { %v11635_v27 = vpop.permute.xlu1 %4600 }
 0x726   : > { %v11637_v56 = vpop.permute.xlu0 %4606 }
 0x729   : > { %v11639_v42 = vpop.permute.xlu1 %4604 }
 0x72a   : > { %13349 = vst [vmem:[#allocation86_spill] sm:$0xff] %v11639_v42  ;;  %v11641_v20 = vpop.permute.xlu0 %4610 }
 0x72b   : > { %13350 = vst [vmem:[#allocation148_spill] sm:$0xff] %v11641_v20 }
 0x72d   : > { %v11643_v53 = vpop.permute.xlu1 %4608 }
 0x72e   : > { %13351 = vst [vmem:[#allocation135_spill] sm:$0xff] %v11643_v53  ;;  %v11645_v30 = vpop.permute.xlu0 %4614 }
 0x72f   : > { %13352 = vst [vmem:[#allocation103_spill] sm:$0xff] %v11645_v30 }
 0x731   : > { %v11647_v62 = vpop.permute.xlu1 %4612 }
 0x732   : > { %v11649_v31 = vpop.permute.xlu0 %4618 }
 0x733   : > { %13353 = vst [vmem:[#allocation197_spill] sm:$0xff] %v11649_v31 }
 0x735   : > { %v11651_v6 = vpop.permute.xlu1 %4616 }
 0x736   : > { %13354 = vst [vmem:[#allocation165_spill] sm:$0xff] %v11651_v6  ;;  %v11653_v34 = vpop.permute.xlu0 %4622 }
 0x737   : > { %13355 = vst [vmem:[#allocation51_spill] sm:$0xff] %v11653_v34 }
 0x739   : > { %v11655_v41 = vpop.permute.xlu1 %4620 }
 0x73a   : > { %13356 = vst [vmem:[#allocation42_spill] sm:$0xff] %v11655_v41  ;;  %v4659_v17 = vpop.permute.xlu0 %4658 }
 0x73b   : > { %v4706_v29 = vmul.f32 %v4659_v17, %v13357_v0 }
 0x73d   : > { %v11658_v42 = vpop.permute.xlu1 %4624  ;;  %4738 = vrot.lane.b32.xlu0 %v4706_v29, %s6653_s22 }
 0x73e   : > { %13358 = vst [vmem:[#allocation106_spill] sm:$0xff] %v11658_v42  ;;  %v4663_v53 = vpop.permute.xlu0 %4662 }
 0x73f   : > { %v4708_v30 = vmul.f32 %v4663_v53, %v10080_v54 }
 0x741   : > { %v4661_v20 = vpop.permute.xlu1 %4660  ;;  %4742 = vrot.lane.b32.xlu0 %v4708_v30, %s6653_s22 }
 0x742   : > { %v4707_v31 = vmul.f32 %v4661_v20, %v13192_v14  ;;  %v4667_v6 = vpop.permute.xlu0 %4666 }
 0x743   : > { %v4710_v34 = vmul.f32 %v4667_v6, %v10141_v24 }
 0x744   : > { %4740 = vrot.lane.b32.xlu1 %v4707_v31, %s6653_s22 }
 0x745   : > { %v4665_v41 = vpop.permute.xlu1 %4664  ;;  %4746 = vrot.lane.b32.xlu0 %v4710_v34, %s6653_s22 }
 0x746   : > { %v4709_v17 = vmul.f32 %v4665_v41, %v9738_v57  ;;  %v4671_v42 = vpop.permute.xlu0 %4670 }
 0x747   : > { %v4712_v29 = vmul.f32 %v4671_v42, %v10228_v16 }
 0x748   : > { %4744 = vrot.lane.b32.xlu1 %v4709_v17, %s6653_s22 }
 0x749   : > { %v4669_v53 = vpop.permute.xlu1 %4668  ;;  %4750 = vrot.lane.b32.xlu0 %v4712_v29, %s6653_s22 }
 0x74a   : > { %v4711_v20 = vmul.f32 %v4669_v53, %v9994_v18  ;;  %v4675_v30 = vpop.permute.xlu0 %4674 }
 0x74b   : > { %v4714_v6 = vmul.f32 %v4675_v30, %v10284_v47 }
 0x74c   : > { %4748 = vrot.lane.b32.xlu1 %v4711_v20, %s6653_s22 }
 0x74d   : > { %v4673_v31 = vpop.permute.xlu1 %4672  ;;  %4754 = vrot.lane.b32.xlu0 %v4714_v6, %s6653_s22 }
 0x74e   : > { %v4713_v34 = vmul.f32 %v4673_v31, %v10130_v45  ;;  %v4679_v41 = vpop.permute.xlu0 %4678 }
 0x74f   : > { %v4716_v42 = vmul.f32 %v4679_v41, %v10363_v19 }
 0x750   : > { %4752 = vrot.lane.b32.xlu1 %v4713_v34, %s6653_s22 }
 0x751   : > { %v4677_v17 = vpop.permute.xlu1 %4676  ;;  %4758 = vrot.lane.b32.xlu0 %v4716_v42, %s6653_s22 }
 0x752   : > { %v4715_v29 = vmul.f32 %v4677_v17, %v10279_v39  ;;  %v4683_v53 = vpop.permute.xlu0 %4682 }
 0x753   : > { %v4718_v30 = vmul.f32 %v4683_v53, %v13237_v28 }
 0x754   : > { %4756 = vrot.lane.b32.xlu1 %v4715_v29, %s6653_s22  ;;  %v6451_v29 = vld [vmem:[%s12670_s1] sm:$0xff] }
 0x755   : > { %v4681_v20 = vpop.permute.xlu1 %4680  ;;  %4762 = vrot.lane.b32.xlu0 %v4718_v30, %s6653_s22  ;;  %v6452_v30 = vld [vmem:[%s12670_s1 + $0x10] sm:$0xff] }
 0x756   : > { %v4717_v6 = vmul.f32 %v4681_v20, %v10360_v3  ;;  %v4687_v31 = vpop.permute.xlu0 %4686  ;;  %v6453_v20 = vld [vmem:[%s12670_s1 + $0x8] sm:$0xff] }
 0x757   : > { %v4720_v41 = vmul.f32 %v4687_v31, %v10508_v36  ;;  %v6455_v31 = vld [vmem:[%s12670_s1 + $0x18] sm:$0xff] }
 0x758   : > { %4760 = vrot.lane.b32.xlu1 %v4717_v6, %s6653_s22  ;;  %v6454_v6 = vld [vmem:[%s12670_s1 + $0x20] sm:$0xff] }
 0x759   : > { %v4685_v34 = vpop.permute.xlu1 %4684  ;;  %4766 = vrot.lane.b32.xlu0 %v4720_v41, %s6653_s22  ;;  %v6456_v41 = vld [vmem:[%s12670_s1 + $0x30] sm:$0xff] }
 0x75a   : > { %v4719_v42 = vmul.f32 %v4685_v34, %v13238_v46  ;;  %v6457_v34 = vld [vmem:[%s12670_s1 + $0x28] sm:$0xff] }
 0x75c   : > { %4764 = vrot.lane.b32.xlu1 %v4719_v42, %s6653_s22  ;;  %v6458_v42 = vld [vmem:[%s12670_s1 + $0x40] sm:$0xff] }
 0x75d   : > { %v4689_v17 = vpop.permute.xlu1 %4688  ;;  %4802 = vrot.lane.b32.xlu0 %v6451_v29, %s6653_s22  ;;  %v6460_v29 = vld [vmem:[%s12670_s1 + $0x50] sm:$0xff] }
 0x75e   : > { %v4721_v53 = vmul.f32 %v4689_v17, %v10503_v25  ;;  %v6459_v17 = vld [vmem:[%s12670_s1 + $0x38] sm:$0xff] }
 0x760   : > { %4768 = vrot.lane.b32.xlu1 %v4721_v53, %s6653_s22  ;;  %v6461_v53 = vld [vmem:[%s12670_s1 + $0x48] sm:$0xff] }
 0x761   : > { %4806 = vrot.lane.b32.xlu0 %v6452_v30, %s6653_s22  ;;  %v6462_v30 = vld [vmem:[%s12670_s1 + $0x60] sm:$0xff] }
 0x764   : > { %4804 = vrot.lane.b32.xlu1 %v6453_v20, %s6653_s22  ;;  %v6463_v20 = vld [vmem:[%s12670_s1 + $0x58] sm:$0xff] }
 0x765   : > { %4810 = vrot.lane.b32.xlu0 %v6454_v6, %s6653_s22  ;;  %v6464_v6 = vld [vmem:[%s12670_s1 + $0x70] sm:$0xff] }
 0x768   : > { %4808 = vrot.lane.b32.xlu1 %v6455_v31, %s6653_s22  ;;  %v6465_v31 = vld [vmem:[%s12670_s1 + $0x68] sm:$0xff] }
 0x769   : > { %4814 = vrot.lane.b32.xlu0 %v6456_v41, %s6653_s22 }
 0x76c   : > { %4812 = vrot.lane.b32.xlu1 %v6457_v34, %s6653_s22 }
 0x76d   : > { %4818 = vrot.lane.b32.xlu0 %v6458_v42, %s6653_s22 }
 0x770   : > { %4816 = vrot.lane.b32.xlu1 %v6459_v17, %s6653_s22 }
 0x771   : > { %4822 = vrot.lane.b32.xlu0 %v6460_v29, %s6653_s22 }
 0x774   : > { %4820 = vrot.lane.b32.xlu1 %v6461_v53, %s6653_s22 }
 0x775   : > { %4826 = vrot.lane.b32.xlu0 %v6462_v30, %s6653_s22 }
 0x778   : > { %4824 = vrot.lane.b32.xlu1 %v6463_v20, %s6653_s22 }
 0x779   : > { %4830 = vrot.lane.b32.xlu0 %v6464_v6, %s6653_s22 }
 0x77c   : > { %4828 = vrot.lane.b32.xlu1 %v6465_v31, %s6653_s22 }
 0x77d   : > { %4866 = vrot.lane.b32.xlu0 %v11236_v12, %s6655_s29 }
 0x780   : > { %4832 = vrot.lane.b32.xlu1 %v11034_v15, %s6653_s22  ;;  %s13374_s22 = smov 64  }
 0x781   : > { %4870 = vrot.lane.b32.xlu0 %v11249_v61, %s6655_s29 }
 0x784   : > { %4868 = vrot.lane.b32.xlu1 %v11261_v26, %s6655_s29 }
 0x785   : > { %4874 = vrot.lane.b32.xlu0 %v11269_v48, %s6655_s29 }
 0x788   : > { %4872 = vrot.lane.b32.xlu1 %v11279_v58, %s6655_s29 }
 0x789   : > { %4878 = vrot.lane.b32.xlu0 %v11287_v43, %s6655_s29 }
 0x78c   : > { %4876 = vrot.lane.b32.xlu1 %v11299_v10, %s6655_s29 }
 0x78d   : > { %4882 = vrot.lane.b32.xlu0 %v11307_v38, %s6655_s29 }
 0x790   : > { %4880 = vrot.lane.b32.xlu1 %v11317_v22, %s6655_s29 }
 0x791   : > { %4886 = vrot.lane.b32.xlu0 %v11325_v37, %s6655_s29 }
 0x794   : > { %4884 = vrot.lane.b32.xlu1 %v11337_v55, %s6655_s29 }
 0x795   : > { %4890 = vrot.lane.b32.xlu0 %v11345_v33, %s6655_s29 }
 0x798   : > { %4888 = vrot.lane.b32.xlu1 %v11355_v4, %s6655_s29 }
 0x799   : > { %4894 = vrot.lane.b32.xlu0 %v11363_v23, %s6655_s29 }
 0x79c   : > { %4892 = vrot.lane.b32.xlu1 %v11375_v35, %s6655_s29 }
 0x7a0   : > { %4896 = vrot.lane.b32.xlu1 %v11386_v49, %s6655_s29 }
 0x7af   : > { %v11785_v15 = vpop.permute.xlu0 %4738 }
 0x7b3   : > { %v11787_v12 = vpop.permute.xlu0 %4742 }
 0x7b6   : > { %v11789_v61 = vpop.permute.xlu1 %4740 }
 0x7b7   : > { %v11791_v26 = vpop.permute.xlu0 %4746 }
 0x7ba   : > { %v11793_v48 = vpop.permute.xlu1 %4744 }
 0x7bb   : > { %v11795_v58 = vpop.permute.xlu0 %4750 }
 0x7be   : > { %v11797_v43 = vpop.permute.xlu1 %4748 }
 0x7bf   : > { %v11799_v10 = vpop.permute.xlu0 %4754 }
 0x7c2   : > { %v11801_v38 = vpop.permute.xlu1 %4752 }
 0x7c3   : > { %v11803_v22 = vpop.permute.xlu0 %4758 }
 0x7c6   : > { %v11805_v37 = vpop.permute.xlu1 %4756 }
 0x7c7   : > { %v11807_v55 = vpop.permute.xlu0 %4762 }
 0x7ca   : > { %v11809_v33 = vpop.permute.xlu1 %4760 }
 0x7cb   : > { %v11811_v4 = vpop.permute.xlu0 %4766 }
 0x7ce   : > { %v11813_v23 = vpop.permute.xlu1 %4764 }
 0x7cf   : > { %v11815_v35 = vpop.permute.xlu0 %4802 }
 0x7d2   : > { %v11817_v49 = vpop.permute.xlu1 %4768 }
 0x7d3   : > { %13359 = vst [vmem:[#allocation88_spill] sm:$0xff] %v11817_v49  ;;  %v11819_v41 = vpop.permute.xlu0 %4806 }
 0x7d4   : > { %13360 = vst [vmem:[#allocation150_spill] sm:$0xff] %v11819_v41 }
 0x7d6   : > { %v11821_v34 = vpop.permute.xlu1 %4804 }
 0x7d7   : > { %13361 = vst [vmem:[#allocation137_spill] sm:$0xff] %v11821_v34  ;;  %v11823_v42 = vpop.permute.xlu0 %4810 }
 0x7d8   : > { %13362 = vst [vmem:[#allocation110_spill] sm:$0xff] %v11823_v42 }
 0x7da   : > { %v11825_v17 = vpop.permute.xlu1 %4808 }
 0x7db   : > { %13363 = vst [vmem:[#allocation192_spill] sm:$0xff] %v11825_v17  ;;  %v11827_v29 = vpop.permute.xlu0 %4814 }
 0x7dc   : > { %13364 = vst [vmem:[#allocation200_spill] sm:$0xff] %v11827_v29 }
 0x7de   : > { %v11829_v53 = vpop.permute.xlu1 %4812 }
 0x7df   : > { %13365 = vst [vmem:[#allocation211_spill] sm:$0xff] %v11829_v53  ;;  %v11831_v30 = vpop.permute.xlu0 %4818 }
 0x7e0   : > { %13366 = vst [vmem:[#allocation39_spill] sm:$0xff] %v11831_v30 }
 0x7e2   : > { %v11833_v20 = vpop.permute.xlu1 %4816 }
 0x7e3   : > { %13367 = vst [vmem:[#allocation199_spill] sm:$0xff] %v11833_v20  ;;  %v11835_v6 = vpop.permute.xlu0 %4822 }
 0x7e4   : > { %13368 = vst [vmem:[#allocation44_spill] sm:$0xff] %v11835_v6 }
 0x7e6   : > { %v11837_v31 = vpop.permute.xlu1 %4820 }
 0x7e7   : > { %v11839_v49 = vpop.permute.xlu0 %4826 }
 0x7e8   : > { %13369 = vst [vmem:[#allocation53_spill] sm:$0xff] %v11839_v49 }
 0x7ea   : > { %v11841_v41 = vpop.permute.xlu1 %4824 }
 0x7eb   : > { %13370 = vst [vmem:[#allocation60_spill] sm:$0xff] %v11841_v41  ;;  %v11843_v34 = vpop.permute.xlu0 %4830 }
 0x7ec   : > { %13371 = vst [vmem:[#allocation69_spill] sm:$0xff] %v11843_v34 }
 0x7ee   : > { %v11845_v42 = vpop.permute.xlu1 %4828 }
 0x7ef   : > { %13372 = vst [vmem:[#allocation90_spill] sm:$0xff] %v11845_v42  ;;  %v4867_v17 = vpop.permute.xlu0 %4866 }
 0x7f0   : > { %v4914_v29 = vmul.f32 %v4867_v17, %v13357_v0 }
 0x7f2   : > { %v11848_v53 = vpop.permute.xlu1 %4832  ;;  %4946 = vrot.lane.b32.xlu0 %v4914_v29, %s6648_s28 }
 0x7f3   : > { %13373 = vst [vmem:[#allocation108_spill] sm:$0xff] %v11848_v53  ;;  %v4871_v20 = vpop.permute.xlu0 %4870 }
 0x7f4   : > { %v4916_v6 = vmul.f32 %v4871_v20, %v10080_v54 }
 0x7f6   : > { %v4869_v30 = vpop.permute.xlu1 %4868  ;;  %4950 = vrot.lane.b32.xlu0 %v4916_v6, %s6648_s28 }
 0x7f7   : > { %v4915_v49 = vmul.f32 %v4869_v30, %v13192_v14  ;;  %v4875_v41 = vpop.permute.xlu0 %4874 }
 0x7f8   : > { %v4918_v34 = vmul.f32 %v4875_v41, %v10141_v24 }
 0x7f9   : > { %4948 = vrot.lane.b32.xlu1 %v4915_v49, %s6648_s28 }
 0x7fa   : > { %v4873_v42 = vpop.permute.xlu1 %4872  ;;  %4954 = vrot.lane.b32.xlu0 %v4918_v34, %s6648_s28 }
 0x7fb   : > { %v4917_v17 = vmul.f32 %v4873_v42, %v9738_v57  ;;  %v4879_v53 = vpop.permute.xlu0 %4878 }
 0x7fc   : > { %v4920_v29 = vmul.f32 %v4879_v53, %v10228_v16 }
 0x7fd   : > { %4952 = vrot.lane.b32.xlu1 %v4917_v17, %s6648_s28 }
 0x7fe   : > { %v4877_v20 = vpop.permute.xlu1 %4876  ;;  %4958 = vrot.lane.b32.xlu0 %v4920_v29, %s6648_s28 }
 0x7ff   : > { %v4919_v30 = vmul.f32 %v4877_v20, %v9994_v18  ;;  %v4883_v6 = vpop.permute.xlu0 %4882 }
 0x800   : > { %v4922_v41 = vmul.f32 %v4883_v6, %v10284_v47 }
 0x801   : > { %4956 = vrot.lane.b32.xlu1 %v4919_v30, %s6648_s28 }
 0x802   : > { %v4881_v49 = vpop.permute.xlu1 %4880  ;;  %4962 = vrot.lane.b32.xlu0 %v4922_v41, %s6648_s28 }
 0x803   : > { %v4921_v34 = vmul.f32 %v4881_v49, %v10130_v45  ;;  %v4887_v42 = vpop.permute.xlu0 %4886 }
 0x804   : > { %v4924_v53 = vmul.f32 %v4887_v42, %v10363_v19 }
 0x805   : > { %4960 = vrot.lane.b32.xlu1 %v4921_v34, %s6648_s28 }
 0x806   : > { %v4885_v17 = vpop.permute.xlu1 %4884  ;;  %4966 = vrot.lane.b32.xlu0 %v4924_v53, %s6648_s28 }
 0x807   : > { %v4923_v29 = vmul.f32 %v4885_v17, %v10279_v39  ;;  %v4891_v20 = vpop.permute.xlu0 %4890 }
 0x808   : > { %v4926_v6 = vmul.f32 %v4891_v20, %v13237_v28 }
 0x809   : > { %4964 = vrot.lane.b32.xlu1 %v4923_v29, %s6648_s28  ;;  %v13375_v29 = vld [vmem:[#allocation168_spill] sm:$0xff] }
 0x80a   : > { %v4889_v30 = vpop.permute.xlu1 %4888  ;;  %4970 = vrot.lane.b32.xlu0 %v4926_v6, %s6648_s28  ;;  %v13376_v6 = vld [vmem:[#allocation172_spill] sm:$0xff] }
 0x80b   : > { %v4925_v41 = vmul.f32 %v4889_v30, %v10360_v3  ;;  %v4895_v49 = vpop.permute.xlu0 %4894  ;;  %v13377_v30 = vld [vmem:[#allocation123_spill] sm:$0xff] }
 0x80c   : > { %v4928_v42 = vmul.f32 %v4895_v49, %v10508_v36  ;;  %v13379_v49 = vld [vmem:[#allocation185_spill] sm:$0xff] }
 0x80d   : > { %4968 = vrot.lane.b32.xlu1 %v4925_v41, %s6648_s28  ;;  %v13378_v41 = vld [vmem:[#allocation180_spill] sm:$0xff] }
 0x80e   : > { %v4893_v34 = vpop.permute.xlu1 %4892  ;;  %4974 = vrot.lane.b32.xlu0 %v4928_v42, %s6648_s28  ;;  %v13380_v42 = vld [vmem:[#allocation188_spill] sm:$0xff] }
 0x80f   : > { %v4927_v53 = vmul.f32 %v4893_v34, %v13238_v46  ;;  %v13381_v34 = vld [vmem:[#allocation164_spill] sm:$0xff] }
 0x811   : > { %4972 = vrot.lane.b32.xlu1 %v4927_v53, %s6648_s28  ;;  %v13382_v53 = vld [vmem:[#allocation222_spill] sm:$0xff] }
 0x812   : > { %v4897_v17 = vpop.permute.xlu1 %4896  ;;  %5026 = vrot.lane.b32.xlu0 %v13375_v29, %s13374_s22  ;;  %v13384_v29 = vld [vmem:[#allocation227_spill] sm:$0xff] }
 0x813   : > { %v4929_v20 = vmul.f32 %v4897_v17, %v10503_v25  ;;  %v13383_v17 = vld [vmem:[#allocation191_spill] sm:$0xff] }
 0x815   : > { %4976 = vrot.lane.b32.xlu1 %v4929_v20, %s6648_s28  ;;  %v13385_v20 = vld [vmem:[#allocation203_spill] sm:$0xff]  ;;  %s13460_s28 = sld [smem:[#allocation19_spill]] }
 0x816   : > { %5030 = vrot.lane.b32.xlu0 %v13376_v6, %s13374_s22  ;;  %v13386_v6 = vld [vmem:[#allocation231_spill] sm:$0xff] }
 0x819   : > { %5028 = vrot.lane.b32.xlu1 %v13377_v30, %s13374_s22  ;;  %v13387_v30 = vld [vmem:[#allocation205_spill] sm:$0xff] }
 0x81a   : > { %5034 = vrot.lane.b32.xlu0 %v13378_v41, %s13374_s22  ;;  %v13388_v41 = vld [vmem:[#allocation234_spill] sm:$0xff] }
 0x81b   : > { %p13466_p8 = scmp.ne.s32.totalorder %s13460_s28, 0 }
 0x81d   : > { %5032 = vrot.lane.b32.xlu1 %v13379_v49, %s13374_s22  ;;  %v13389_v49 = vld [vmem:[#allocation207_spill] sm:$0xff]  ;;  %p6524_p10 = pnand %p6523_p4, %p13466_p8 }
 0x81e   : > { %5038 = vrot.lane.b32.xlu0 %v13380_v42, %s13374_s22  ;;  %v13390_v42 = vld [vmem:[#allocation45_spill] sm:$0xff] }
 0x81f   : > { %p6525_p11 = pneg %p6524_p10 }
 0x821   : > { %5036 = vrot.lane.b32.xlu1 %v13381_v34, %s13374_s22  ;;  %v13391_v34 = vld [vmem:[#allocation209_spill] sm:$0xff] }
 0x822   : > { %5042 = vrot.lane.b32.xlu0 %v13382_v53, %s13374_s22 }
 0x825   : > { %5040 = vrot.lane.b32.xlu1 %v13383_v17, %s13374_s22 }
 0x826   : > { %5046 = vrot.lane.b32.xlu0 %v13384_v29, %s13374_s22 }
 0x829   : > { %5044 = vrot.lane.b32.xlu1 %v13385_v20, %s13374_s22 }
 0x82a   : > { %5050 = vrot.lane.b32.xlu0 %v13386_v6, %s13374_s22 }
 0x82d   : > { %5048 = vrot.lane.b32.xlu1 %v13387_v30, %s13374_s22 }
 0x82e   : > { %5054 = vrot.lane.b32.xlu0 %v13388_v41, %s13374_s22 }
 0x831   : > { %5052 = vrot.lane.b32.xlu1 %v13389_v49, %s13374_s22 }
 0x832   : > { %5154 = vrot.lane.b32.xlu0 %v13390_v42, %s13374_s22 }
 0x835   : > { %5056 = vrot.lane.b32.xlu1 %v13391_v34, %s13374_s22  ;;  %v4850_v34 = vmul.f32 %v11815_v35, %v13357_v0 }
 0x836   : > { %5158 = vrot.lane.b32.xlu0 %v11423_v32, %s13374_s22  ;;  %v13392_v32 = vld [vmem:[#allocation102_spill] sm:$0xff] }
 0x839   : > { %5156 = vrot.lane.b32.xlu1 %v11438_v63, %s13374_s22  ;;  %v4642_v63 = vmul.f32 %v11609_v44, %v13357_v0  ;;  %v13393_v44 = vld [vmem:[#allocation86_spill] sm:$0xff] }
 0x83a   : > { %5162 = vrot.lane.b32.xlu0 %v11447_v13, %s13374_s22 }
 0x83b   : > { %v4786_v13 = vsub.f32 %v4642_v63, %v11785_v15 }
 0x83d   : > { %5160 = vrot.lane.b32.xlu1 %v11454_v2, %s13374_s22  ;;  %v4644_v2 = vmul.f32 %v11624_v9, %v10080_v54  ;;  %v13394_v9 = vld [vmem:[#allocation148_spill] sm:$0xff] }
 0x83e   : > { %5166 = vrot.lane.b32.xlu0 %v11474_v59, %s13374_s22 }
 0x83f   : > { %v4788_v59 = vsub.f32 %v4644_v2, %v11787_v12  ;;  %v13396_v12 = vld [vmem:[#allocation103_spill] sm:$0xff] }
 0x841   : > { %5164 = vrot.lane.b32.xlu1 %v11482_v50, %s13374_s22  ;;  %v4643_v50 = vmul.f32 %v11630_v21, %v13192_v14  ;;  %v4650_v21 = vmul.f32 %v13394_v9, %v10284_v47  ;;  %v13406_v9 = vld [vmem:[#allocation192_spill] sm:$0xff] }
 0x842   : > { %5170 = vrot.lane.b32.xlu0 %v11502_v5, %s13374_s22  ;;  %v4646_v5 = vmul.f32 %v11633_v51, %v10141_v24 }
 0x845   : > { %5168 = vrot.lane.b32.xlu1 %v11510_v11, %s13374_s22  ;;  %v4787_v11 = vsub.f32 %v4643_v50, %v11789_v61  ;;  %v4652_v61 = vmul.f32 %v13396_v12, %v10363_v19  ;;  %v13408_v12 = vld [vmem:[#allocation211_spill] sm:$0xff] }
 0x846   : > { %5174 = vrot.lane.b32.xlu0 %v13392_v32, %s13374_s22 }
 0x849   : > { %5172 = vrot.lane.b32.xlu1 %v11538_v7, %s13374_s22  ;;  %v4790_v7 = vsub.f32 %v4646_v5, %v11791_v26  ;;  %v13403_v5 = vld [vmem:[#allocation88_spill] sm:$0xff] }
 0x84a   : > { %5178 = vrot.lane.b32.xlu0 %v11558_v40, %s13374_s22  ;;  %v4645_v40 = vmul.f32 %v11635_v27, %v9738_v57  ;;  %v4794_v27 = vsub.f32 %v4650_v21, %v11799_v10  ;;  %v13397_v10 = vld [vmem:[#allocation197_spill] sm:$0xff]  ;;  %v4853_v21 = vmul.f32 %v13406_v9, %v9738_v57  ;;  %v13424_v9 = vld [vmem:[#allocation178_spill] sm:$0xff] }
 0x84b   : > { %v4654_v53 = vmul.f32 %v13397_v10, %v13237_v28  ;;  %v13410_v10 = vld [vmem:[#allocation199_spill] sm:$0xff] }
 0x84d   : > { %5176 = vrot.lane.b32.xlu1 %v11566_v60, %s13374_s22  ;;  %v4648_v60 = vmul.f32 %v11637_v56, %v10228_v16  ;;  %v13395_v56 = vld [vmem:[#allocation135_spill] sm:$0xff]  ;;  %v4798_v29 = vsub.f32 %v4654_v53, %v11807_v55  ;;  %v4857_v53 = vmul.f32 %v13410_v10, %v10130_v45 }
 0x84e   : > { %5182 = vrot.lane.b32.xlu0 %v11586_v8, %s13374_s22  ;;  %v4789_v8 = vsub.f32 %v4645_v40, %v11793_v48  ;;  %v4649_v15 = vmul.f32 %v13395_v56, %v10130_v45  ;;  %v4796_v48 = vsub.f32 %v4652_v61, %v11803_v22  ;;  %v13399_v22 = vld [vmem:[#allocation51_spill] sm:$0xff]  ;;  %v4855_v61 = vmul.f32 %v13408_v12, %v9994_v18  ;;  %v13413_v45 = vld [vmem:[#allocation53_spill] sm:$0xff] }
 0x850   : > { %v4793_v26 = vsub.f32 %v4649_v15, %v11801_v38  ;;  %v13398_v38 = vld [vmem:[#allocation165_spill] sm:$0xff] }
 0x851   : > { %5180 = vrot.lane.b32.xlu1 %v11601_v52, %s13374_s22  ;;  %v4792_v52 = vsub.f32 %v4648_v60, %v11795_v58  ;;  %v4653_v6 = vmul.f32 %v13398_v38, %v10360_v3  ;;  %v13405_v60 = vld [vmem:[#allocation110_spill] sm:$0xff] }
 0x852   : > { %5218 = vrot.lane.b32.xlu0 %v4786_v13, %s6655_s29 }
 0x853   : > { %v4797_v30 = vsub.f32 %v4653_v6, %v11809_v33  ;;  %v13401_v33 = vld [vmem:[#allocation106_spill] sm:$0xff]  ;;  %v4859_v6 = vmul.f32 %v11837_v31, %v10279_v39  ;;  %v13415_v31 = vld [vmem:[#allocation60_spill] sm:$0xff] }
 0x855   : > { %5184 = vrot.lane.b32.xlu1 %v11620_v1, %s13374_s22  ;;  %v4647_v1 = vmul.f32 %v13393_v44, %v9994_v18 }
 0x856   : > { %5222 = vrot.lane.b32.xlu0 %v4788_v59, %s6655_s29  ;;  %v4657_v59 = vmul.f32 %v13401_v33, %v10503_v25 }
 0x857   : > { %v4791_v51 = vsub.f32 %v4647_v1, %v11797_v43  ;;  %v4651_v43 = vmul.f32 %v11647_v62, %v10279_v39  ;;  %v4656_v62 = vmul.f32 %v13399_v22, %v10508_v36  ;;  %v13412_v22 = vld [vmem:[#allocation167_spill] sm:$0xff] }
 0x859   : > { %5220 = vrot.lane.b32.xlu1 %v4787_v11, %s6655_s29  ;;  %v4795_v17 = vsub.f32 %v4651_v43, %v11805_v37  ;;  %v4800_v49 = vsub.f32 %v4656_v62, %v11811_v4  ;;  %v13400_v37 = vld [vmem:[#allocation42_spill] sm:$0xff]  ;;  %v4801_v11 = vsub.f32 %v4657_v59, %v13403_v5 }
 0x85a   : > { %5226 = vrot.lane.b32.xlu0 %v4790_v7, %s6655_s29  ;;  %v4655_v55 = vmul.f32 %v13400_v37, %v13238_v46  ;;  %v13402_v4 = vld [vmem:[#allocation150_spill] sm:$0xff] }
 0x85b   : > { %v4852_v50 = vmul.f32 %v13402_v4, %v10080_v54  ;;  %v13419_v5 = vld [vmem:[#allocation166_spill] sm:$0xff] }
 0x85c   : > { %v4799_v32 = vsub.f32 %v4655_v55, %v11813_v23  ;;  %v13404_v23 = vld [vmem:[#allocation137_spill] sm:$0xff] }
 0x85d   : > { %5224 = vrot.lane.b32.xlu1 %v4789_v8, %s6655_s29  ;;  %v4851_v40 = vmul.f32 %v13404_v23, %v13192_v14  ;;  %v4854_v8 = vmul.f32 %v13405_v60, %v10141_v24 }
 0x85e   : > { %5230 = vrot.lane.b32.xlu0 %v4792_v52, %s6655_s29 }
 0x861   : > { %5228 = vrot.lane.b32.xlu1 %v4791_v51, %s6655_s29  ;;  %v13407_v51 = vld [vmem:[#allocation200_spill] sm:$0xff] }
 0x862   : > { %5234 = vrot.lane.b32.xlu0 %v4794_v27, %s6655_s29  ;;  %v4856_v27 = vmul.f32 %v13407_v51, %v10228_v16 }
 0x864   : > { %v4947_v58 = vpop.permute.xlu0 %4946 }
 0x865   : > { %5232 = vrot.lane.b32.xlu1 %v4793_v26, %s6655_s29  ;;  %v4994_v13 = vadd.f32 %v4947_v58, %v4850_v34  ;;  %v13409_v26 = vld [vmem:[#allocation39_spill] sm:$0xff]  ;;  %v4861_v34 = vmul.f32 %v13415_v31, %v10360_v3 }
 0x866   : > { %5238 = vrot.lane.b32.xlu0 %v4796_v48, %s6655_s29  ;;  %v4858_v48 = vmul.f32 %v13409_v26, %v10284_v47  ;;  %v13428_v26 = vld [vmem:[#allocation138_spill] sm:$0xff] }
 0x868   : > { %v4951_v20 = vpop.permute.xlu0 %4950 }
 0x869   : > { %5236 = vrot.lane.b32.xlu1 %v4795_v17, %s6655_s29  ;;  %v4996_v35 = vadd.f32 %v4951_v20, %v4852_v50  ;;  %v13411_v17 = vld [vmem:[#allocation44_spill] sm:$0xff] }
 0x86a   : > { %5242 = vrot.lane.b32.xlu0 %v4798_v29, %s6655_s29  ;;  %v4860_v29 = vmul.f32 %v13411_v17, %v10363_v19  ;;  %v13431_v17 = vld [vmem:[#allocation174_spill] sm:$0xff] }
 0x86b   : > { %v4949_v41 = vpop.permute.xlu1 %4948 }
 0x86c   : > { %v4955_v42 = vpop.permute.xlu0 %4954  ;;  %v4995_v52 = vadd.f32 %v4949_v41, %v4851_v40  ;;  %v13414_v41 = vld [vmem:[#allocation126_spill] sm:$0xff]  ;;  %v13422_v40 = vld [vmem:[#allocation216_spill] sm:$0xff] }
 0x86d   : > { %5240 = vrot.lane.b32.xlu1 %v4797_v30, %s6655_s29  ;;  %v4998_v54 = vadd.f32 %v4955_v42, %v4854_v8  ;;  %v4862_v30 = vmul.f32 %v13413_v45, %v13237_v28  ;;  %v13417_v28 = vld [vmem:[#allocation69_spill] sm:$0xff] }
 0x86e   : > { %5246 = vrot.lane.b32.xlu0 %v4800_v49, %s6655_s29 }
 0x86f   : > { %v4953_v63 = vpop.permute.xlu1 %4952 }
 0x870   : > { %v4959_v2 = vpop.permute.xlu0 %4958  ;;  %v4997_v14 = vadd.f32 %v4953_v63, %v4853_v21 }
 0x871   : > { %5244 = vrot.lane.b32.xlu1 %v4799_v32, %s6655_s29  ;;  %v5000_v15 = vadd.f32 %v4959_v2, %v4856_v27  ;;  %v13416_v32 = vld [vmem:[#allocation210_spill] sm:$0xff]  ;;  %v13418_v2 = vld [vmem:[#allocation213_spill] sm:$0xff]  ;;  %v13425_v27 = vld [vmem:[#allocation108_spill] sm:$0xff] }
 0x872   : > { %5282 = vrot.lane.b32.xlu0 %v4994_v13, %s6655_s29  ;;  %v4864_v13 = vmul.f32 %v13417_v28, %v10508_v36 }
 0x873   : > { %v4957_v0 = vpop.permute.xlu1 %4956 }
 0x874   : > { %v4963_v7 = vpop.permute.xlu0 %4962  ;;  %v4999_v57 = vadd.f32 %v4957_v0, %v4855_v61 }
 0x875   : > { %5248 = vrot.lane.b32.xlu1 %v4801_v11, %s6655_s29  ;;  %v5002_v43 = vadd.f32 %v4963_v7, %v4858_v48  ;;  %v13421_v7 = vld [vmem:[#allocation190_spill] sm:$0xff] }
 0x876   : > { %5286 = vrot.lane.b32.xlu0 %v4996_v35, %s6655_s29  ;;  %v13420_v35 = vld [vmem:[#allocation90_spill] sm:$0xff] }
 0x877   : > { %v4961_v44 = vpop.permute.xlu1 %4960  ;;  %v4863_v36 = vmul.f32 %v13420_v35, %v13238_v46  ;;  %v13445_v35 = vld [vmem:[#allocation114_spill] sm:$0xff] }
 0x878   : > { %v4967_v1 = vpop.permute.xlu0 %4966  ;;  %v5001_v18 = vadd.f32 %v4961_v44, %v4857_v53 }
 0x879   : > { %5284 = vrot.lane.b32.xlu1 %v4995_v52, %s6655_s29  ;;  %v5004_v47 = vadd.f32 %v4967_v1, %v4860_v29  ;;  %v13423_v52 = vld [vmem:[#allocation218_spill] sm:$0xff] }
 0x87a   : > { %5290 = vrot.lane.b32.xlu0 %v4998_v54, %s6655_s29 }
 0x87b   : > { %v4965_v56 = vpop.permute.xlu1 %4964 }
 0x87c   : > { %v4971_v24 = vpop.permute.xlu0 %4970  ;;  %v5003_v49 = vadd.f32 %v4965_v56, %v4859_v6  ;;  %v13426_v56 = vld [vmem:[#allocation132_spill] sm:$0xff] }
 0x87d   : > { %5288 = vrot.lane.b32.xlu1 %v4997_v14, %s6655_s29  ;;  %v5006_v55 = vadd.f32 %v4971_v24, %v4862_v30  ;;  %v4865_v14 = vmul.f32 %v13425_v27, %v10503_v25  ;;  %v13427_v24 = vld [vmem:[#allocation89_spill] sm:$0xff]  ;;  %v13435_v30 = vld [vmem:[#allocation198_spill] sm:$0xff] }
 0x87e   : > { %5294 = vrot.lane.b32.xlu0 %v5000_v15, %s6655_s29 }
 0x87f   : > { %v4969_v58 = vpop.permute.xlu1 %4968 }
 0x880   : > { %v4975_v16 = vpop.permute.xlu0 %4974  ;;  %v5005_v59 = vadd.f32 %v4969_v58, %v4861_v34  ;;  %v13439_v34 = vld [vmem:[#allocation229_spill] sm:$0xff] }
 0x881   : > { %5292 = vrot.lane.b32.xlu1 %v4999_v57, %s6655_s29  ;;  %v5008_v3 = vadd.f32 %v4975_v16, %v4864_v13  ;;  %v13429_v57 = vld [vmem:[#allocation175_spill] sm:$0xff]  ;;  %v13430_v16 = vld [vmem:[#allocation181_spill] sm:$0xff] }
 0x882   : > { %5298 = vrot.lane.b32.xlu0 %v5002_v43, %s6655_s29 }
 0x883   : > { %v4973_v20 = vpop.permute.xlu1 %4972 }
 0x884   : > { %v5027_v38 = vpop.permute.xlu0 %5026  ;;  %v5007_v54 = vadd.f32 %v4973_v20, %v4863_v36 }
 0x885   : > { %v5074_v62 = vsel %vm2877_vm0, %v5027_v38, %v13412_v22  ;;  %5296 = vrot.lane.b32.xlu1 %v5001_v18, %s6655_s29  ;;  %v13432_v18 = vld [vmem:[#allocation24_spill] sm:$0xff]  ;;  %v13433_v38 = vld [vmem:[#allocation225_spill] sm:$0xff] }
 0x886   : > { %v5090_v19 = vsel %vm2894_vm1, %v5074_v62, %v13414_v41  ;;  %5302 = vrot.lane.b32.xlu0 %v5004_v47, %s6655_s29  ;;  %v13434_v22 = vld [vmem:[#allocation129_spill] sm:$0xff] }
 0x887   : > { %v5106_v42 = vsel %vm2911_vm2, %v5090_v19, 0.0  ;;  %v4977_v37 = vpop.permute.xlu1 %4976 }
 0x888   : > { %5122 = vst [vmem:[%s9058_s30 + $0x18] sm:$0xff] %v5106_v42  ;;  %v5031_v39 = vpop.permute.xlu0 %5030  ;;  %v5009_v58 = vadd.f32 %v4977_v37, %v4865_v14  ;;  %v13437_v37 = vld [vmem:[#allocation31_spill] sm:$0xff]  ;;  %v13452_v14 = vld [vmem:[#allocation97_spill] sm:$0xff] }
 0x889   : > { %v5076_v63 = vsel %vm2877_vm0, %v5031_v39, %v13416_v32  ;;  %5300 = vrot.lane.b32.xlu1 %v5003_v49, %s6655_s29  ;;  %v13436_v49 = vld [vmem:[#allocation202_spill] sm:$0xff]  ;;  %v13438_v39 = vld [vmem:[#allocation176_spill] sm:$0xff] }
 0x88a   : > { %v5092_v33 = vsel %vm2894_vm1, %v5076_v63, %v13418_v2  ;;  %5306 = vrot.lane.b32.xlu0 %v5006_v55, %s6655_s29  ;;  %v13440_v63 = vld [vmem:[#allocation105_spill] sm:$0xff]  ;;  %v13441_v2 = vld [vmem:[#allocation35_spill] sm:$0xff] }
 0x88b   : > { %v5108_v4 = vsel %vm2911_vm2, %v5092_v33, 0.0  ;;  %v5029_v50 = vpop.permute.xlu1 %5028 }
 0x88c   : > { %5124 = vst [vmem:[%s9058_s30 + $0x58] sm:$0xff] %v5108_v4  ;;  %v5075_v11 = vsel %vm2877_vm0, %v5029_v50, %v13419_v5  ;;  %v5035_v0 = vpop.permute.xlu0 %5034  ;;  %v13442_v4 = vld [vmem:[#allocation204_spill] sm:$0xff] }
 0x88d   : > { %v5091_v23 = vsel %vm2894_vm1, %v5075_v11, %v13421_v7  ;;  %v5078_v60 = vsel %vm2877_vm0, %v5035_v0, %v13422_v40  ;;  %5304 = vrot.lane.b32.xlu1 %v5005_v59, %s6655_s29  ;;  %v13444_v11 = vld [vmem:[#allocation183_spill] sm:$0xff]  ;;  %v13446_v7 = vld [vmem:[#allocation109_spill] sm:$0xff] }
 0x88e   : > { %v5107_v8 = vsel %vm2911_vm2, %v5091_v23, 0.0  ;;  %v5094_v44 = vsel %vm2894_vm1, %v5078_v60, %v13423_v52  ;;  %5310 = vrot.lane.b32.xlu0 %v5008_v3, %s6655_s29  ;;  %v13443_v3 = vld [vmem:[#allocation75_spill] sm:$0xff] }
 0x88f   : > { %5123 = vst [vmem:[%s9058_s30 + $0x38] sm:$0xff] %v5107_v8  ;;  %v5110_v46 = vsel %vm2911_vm2, %v5094_v44, 0.0  ;;  %v5033_v1 = vpop.permute.xlu1 %5032  ;;  %v13447_v60 = vld [vmem:[#allocation87_spill] sm:$0xff]  ;;  %v13448_v44 = vld [vmem:[#allocation136_spill] sm:$0xff] }
 0x890   : > { %5126 = vst [vmem:[%s9058_s30 + $0x98] sm:$0xff] %v5110_v46  ;;  %v5077_v21 = vsel %vm2877_vm0, %v5033_v1, %v13424_v9  ;;  %v5039_v51 = vpop.permute.xlu0 %5038  ;;  %v13449_v46 = vld [vmem:[#allocation155_spill] sm:$0xff] }
 0x891   : > { %v5093_v15 = vsel %vm2894_vm1, %v5077_v21, %v13426_v56  ;;  %v5080_v12 = vsel %vm2877_vm0, %v5039_v51, %v13427_v24  ;;  %5308 = vrot.lane.b32.xlu1 %v5007_v54, %s6655_s29  ;;  %v13450_v9 = vld [vmem:[#allocation27_spill] sm:$0xff]  ;;  %v13451_v51 = vld [vmem:[#allocation236_spill] sm:$0xff] }
 0x892   : > { %v5109_v61 = vsel %vm2911_vm2, %v5093_v15, 0.0  ;;  %v5096_v48 = vsel %vm2894_vm1, %v5080_v12, %v13428_v26  ;;  %5410 = vrot.lane.b32.xlu0 %v13429_v57, %s13374_s22  ;;  %v13453_v24 = vld [vmem:[#allocation23_spill] sm:$0xff]  ;;  %v13454_v26 = vld [vmem:[#allocation208_spill] sm:$0xff]  ;;  %v13455_v57 = vld [vmem:[#allocation30_spill] sm:$0xff] }
 0x893   : > { %5125 = vst [vmem:[%s9058_s30 + $0x78] sm:$0xff] %v5109_v61  ;;  %v5112_v25 = vsel %vm2911_vm2, %v5096_v48, 0.0  ;;  %v5037_v43 = vpop.permute.xlu1 %5036 }
 0x894   : > { %5128 = vst [vmem:[%s9058_s30 + $0xd8] sm:$0xff] %v5112_v25  ;;  %v5079_v10 = vsel %vm2877_vm0, %v5037_v43, %v13430_v16  ;;  %v5043_v53 = vpop.permute.xlu0 %5042  ;;  %v13456_v25 = vld [vmem:[#allocation170_spill] sm:$0xff]  ;;  %v13457_v16 = vld [vmem:[#allocation171_spill] sm:$0xff] }
 0x895   : > { %v5095_v29 = vsel %vm2894_vm1, %v5079_v10, %v13431_v17  ;;  %v5082_v20 = vsel %vm2877_vm0, %v5043_v53, %v13432_v18  ;;  %5312 = vrot.lane.b32.xlu1 %v5009_v58, %s6655_s29  ;;  %v13458_v17 = vld [vmem:[#allocation179_spill] sm:$0xff]  ;;  %v13459_v18 = vld [vmem:[#allocation32_spill] sm:$0xff]  ;;  %s12648_s29 = sshll.u32 %s6632_s21, 13 }
 0x896   : > { %v5111_v47 = vsel %vm2911_vm2, %v5095_v29, 0.0  ;;  %v5098_v6 = vsel %vm2894_vm1, %v5082_v20, %v13433_v38  ;;  %5414 = vrot.lane.b32.xlu0 %v13434_v22, %s13374_s22  ;;  %s12191_s18 = scalar_lea.hbm %s13462_s23, %s12648_s29  ;;  %v13464_v22 = vld [vmem:[#allocation117_spill] sm:$0xff] }
 0x897   : > { %5127 = vst [vmem:[%s9058_s30 + $0xb8] sm:$0xff] %v5111_v47  ;;  %v5114_v62 = vsel %vm2911_vm2, %v5098_v6, 0.0  ;;  %v5041_v45 = vpop.permute.xlu1 %5040  ;;  %v13461_v47 = vld [vmem:[#allocation177_spill] sm:$0xff] }
 0x898   : > { %5130 = vst [vmem:[%s9058_s30 + $0x118] sm:$0xff] %v5114_v62  ;;  %v5081_v41 = vsel %vm2877_vm0, %v5041_v45, %v13435_v30  ;;  %v5047_v19 = vpop.permute.xlu0 %5046  ;;  %v13465_v62 = vld [vmem:[#allocation173_spill] sm:$0xff] }
 0x899   : > { %v5097_v42 = vsel %vm2894_vm1, %v5081_v41, %v13436_v49  ;;  %v5084_v55 = vsel %vm2877_vm0, %v5047_v19, %v13437_v37  ;;  %5412 = vrot.lane.b32.xlu1 %v13438_v39, %s13374_s22 }
 0x89a   : > { %v5113_v31 = vsel %vm2911_vm2, %v5097_v42, 0.0  ;;  %v5100_v32 = vsel %vm2894_vm1, %v5084_v55, %v13439_v34  ;;  %5418 = vrot.lane.b32.xlu0 %v13440_v63, %s13374_s22 }
 0x89b   : > { %5129 = vst [vmem:[%s9058_s30 + $0xf8] sm:$0xff] %v5113_v31  ;;  %v5116_v28 = vsel %vm2911_vm2, %v5100_v32, 0.0  ;;  %v5045_v13 = vpop.permute.xlu1 %5044 }
 0x89c   : > { %5132 = vst [vmem:[%s9058_s30 + $0x158] sm:$0xff] %v5116_v28  ;;  %v5083_v33 = vsel %vm2877_vm0, %v5045_v13, %v13441_v2  ;;  %v5051_v59 = vpop.permute.xlu0 %5050 }
 0x89d   : > { %v5099_v50 = vsel %vm2894_vm1, %v5083_v33, %v13442_v4  ;;  %v5086_v5 = vsel %vm2877_vm0, %v5051_v59, %v13443_v3  ;;  %5416 = vrot.lane.b32.xlu1 %v13444_v11, %s13374_s22 }
 0x89e   : > { %v5115_v0 = vsel %vm2911_vm2, %v5099_v50, 0.0  ;;  %v5102_v36 = vsel %vm2894_vm1, %v5086_v5, %v13445_v35  ;;  %5422 = vrot.lane.b32.xlu0 %v13446_v7, %s13374_s22 }
 0x89f   : > { %5131 = vst [vmem:[%s9058_s30 + $0x138] sm:$0xff] %v5115_v0  ;;  %v5118_v23 = vsel %vm2911_vm2, %v5102_v36, 0.0  ;;  %v5049_v40 = vpop.permute.xlu1 %5048 }
 0x8a0   : > { %5134 = vst [vmem:[%s9058_s30 + $0x198] sm:$0xff] %v5118_v23  ;;  %v5085_v8 = vsel %vm2877_vm0, %v5049_v40, %v13447_v60  ;;  %v5055_v52 = vpop.permute.xlu0 %5054 }
 0x8a1   : > { %v5101_v54 = vsel %vm2894_vm1, %v5085_v8, %v13448_v44  ;;  %v5088_v1 = vsel %vm2877_vm0, %v5055_v52, %v13449_v46  ;;  %5420 = vrot.lane.b32.xlu1 %v13450_v9, %s13374_s22 }
 0x8a2   : > { %v5117_v21 = vsel %vm2911_vm2, %v5101_v54, 0.0  ;;  %v5104_v27 = vsel %vm2894_vm1, %v5088_v1, %v13451_v51  ;;  %5426 = vrot.lane.b32.xlu0 %v13452_v14, %s13374_s22 }
 0x8a3   : > { %5133 = vst [vmem:[%s9058_s30 + $0x178] sm:$0xff] %v5117_v21  ;;  %v5120_v56 = vsel %vm2911_vm2, %v5104_v27, 0.0  ;;  %v5053_v15 = vpop.permute.xlu1 %5052 }
 0x8a4   : > { %5136 = vst [vmem:[%s9058_s30 + $0x1d8] sm:$0xff] %v5120_v56  ;;  %v5087_v12 = vsel %vm2877_vm0, %v5053_v15, %v13453_v24  ;;  %v12159_v61 = vpop.permute.xlu0 %5154 }
 0x8a5   : > { %v5103_v48 = vsel %vm2894_vm1, %v5087_v12, %v13454_v26  ;;  %5424 = vrot.lane.b32.xlu1 %v13455_v57, %s13374_s22 }
 0x8a6   : > { %v5119_v58 = vsel %vm2911_vm2, %v5103_v48, 0.0  ;;  %5430 = vrot.lane.b32.xlu0 %v13456_v25, %s13374_s22 }
 0x8a7   : > { %5135 = vst [vmem:[%s9058_s30 + $0x1b8] sm:$0xff] %v5119_v58  ;;  %v5057_v43 = vpop.permute.xlu1 %5056 }
 0x8a8   : > { %v5089_v10 = vsel %vm2877_vm0, %v5057_v43, %v13457_v16  ;;  %v12171_v53 = vpop.permute.xlu0 %5158 }
 0x8a9   : > { %v5105_v29 = vsel %vm2894_vm1, %v5089_v10, %v13458_v17  ;;  %5428 = vrot.lane.b32.xlu1 %v13459_v18, %s13374_s22 }
 0x8aa   : > { %v5121_v20 = vsel %vm2911_vm2, %v5105_v29, 0.0  ;;  %5434 = vrot.lane.b32.xlu0 %v13461_v47, %s13374_s22 }
 0x8ab   : > { %5137 = vst [vmem:[%s9058_s30 + $0x1f8] sm:$0xff] %v5121_v20  ;;  %v12182_v38 = vpop.permute.xlu1 %5156  ;;  %s6656_s30 = smov [#allocation8]  }
 0x8ac   : > { %v12184_v6 = vpop.permute.xlu0 %5162  ;;  %s6526_s17 = sshll.u32 %s6656_s30, 4  ;;  %s6527_s17 = int_to_ptr.vmem [resolvable:$false] %s6526_s17 }
 0x8ad   : > { %5432 = vrot.lane.b32.xlu1 %v13464_v22, %s13374_s22  ;;  %s6528_s25 = scalar_lea.vmem %s6527_s17, 16384  ;;  %p6529_p2 = scmp.lt.s32.totalorder %s12196_s16, %s6527_s17 }
 0x8ae   : > { %5438 = vrot.lane.b32.xlu0 %v13465_v62, %s13374_s22  ;;  %p6530_p3 = scmp.lt.s32.totalorder %s6528_s25, %s6522_s27 }
 0x8af   : > { %v12200_v45 = vpop.permute.xlu1 %5160 }
 0x8b0   : > { %p6531_p5 = por %p6530_p3, %p6529_p2 }
 0x8b2   : > { %p6532_p6 = pnand %p6531_p5, %p6525_p11 }
 0x8b4   : > { %6535 = shalt.err (!%p6532_p6)
}
 0x8b5   : > { %s6536_s23 = scalar_lea.hbm %s12191_s18, 8192  ;;  %s6540_s30 = scalar_lea.hbm %s13463_s24, 16384 }
 0x8b6   : > { %p6537_p7 = scmp.ne.s32.totalorder %s12191_s18, %s6536_s23  ;;  %p6541_p0 = scmp.lt.u32.totalorder %s12191_s18, %s13463_s24 }
 0x8b7   : > { %p6542_p1 = scmp.lt.u32.totalorder %s6540_s30, %s6536_s23  ;;  %p6544_p4 = scmp.lt.u32.totalorder %s6536_s23, %s12191_s18 }
 0x8b8   : > { %p6538_p9 = pnand %p6537_p7, %p13466_p8 }
 0x8b9   : > { %p6543_p13 = por %p6542_p1, %p6541_p0 }
 0x8ba   : > { %p6539_p12 = pneg %p6538_p9 }
 0x8bb   : > { %p6545_p10 = por %p6544_p4, %p6543_p13 }
 0x8bd   : > { %p6546_p11 = pnand %p6545_p10, %p6539_p12 }
 0x8bf   : > { %6549 = shalt.err (!%p6546_p11)
}
 0x8c0   : > { %s6657_s27 = smov 512   ;;  %s13467_s25 = smov 32   ;;  %v5167_v30 = vpop.permute.xlu0 %5166  ;;  %v13469_v41 = vld [vmem:[#allocation186_spill] sm:$0xff]  ;;  %v5165_v19 = vpop.permute.xlu1 %5164  ;;  %v13470_v42 = vld [vmem:[#allocation189_spill] sm:$0xff] }
 0x8c1   : > { %s13468_s1 = scalar_lea.sflag [#allocation9], %s8975_s13  ;;  %5436 = vrot.lane.b32.xlu1 %v13469_v41, %s13374_s22  ;;  %s5506_s0 = sshll.u32 %s10425_s20, 4  ;;  %s12346_s0 = int_to_ptr.vmem [resolvable:$true] %s5506_s0 }
 0x8c2   : > { %6216 = dma.vmem_to_hbm [thread:$0]  (%p13466_p8), %s12196_s16, 8192, %s12191_s18, %s13468_s1, %s6657_s27, %s6657_s27, %s13467_s25  }
 0x8c3   : > { %s13471_s1 = sshll.u32 %s6632_s21, 13  ;;  %s13472_s18 = sld [smem:[#allocation254_spill]] }
 0x8c4   : > { %v5171_v49 = vpop.permute.xlu0 %5170  ;;  %v12233_v37 = vpop.permute.xlu1 %5168  ;;  %s5476_s23 = scalar_lea.sflag [#allocation4], %s8975_s13  ;;  %s6550_s30 = scalar_lea.vmem %s12346_s0, 8192 }
 0x8c5   : > { %5440 = vrot.lane.b32.xlu1 %v13470_v42, %s13374_s22  ;;  %p6551_p2 = scmp.ne.s32.totalorder %s12346_s0, %s6550_s30  ;;  %s6658_s21 = smov [#allocation7]  }
 0x8c6   : > { %s6554_s17 = sshll.u32 %s6658_s21, 4  ;;  %s6555_s17 = int_to_ptr.vmem [resolvable:$false] %s6554_s17 }
 0x8c7   : > { %p6552_p3 = pnand %p6551_p2, %p13466_p8  ;;  %p6557_p6 = scmp.lt.s32.totalorder %s12346_s0, %s6555_s17 }
 0x8c8   : > { %v12235_v55 = vpop.permute.xlu0 %5174  ;;  %v12237_v39 = vpop.permute.xlu1 %5172 }
 0x8c9   : > { %s13473_s16 = smov %s13472_s18  ;;  %s12344_s26 = scalar_lea.hbm %s13472_s18, %s13471_s1 }
 0x8ca   : > { %p6553_p5 = pneg %p6552_p3  ;;  %s6556_s1 = scalar_lea.vmem %s6555_s17, 16384 }
 0x8cb   : > { %p6558_p7 = scmp.lt.s32.totalorder %s6556_s1, %s6550_s30 }
 0x8cc   : > { %v12239_v31 = vpop.permute.xlu0 %5178  ;;  %v12241_v34 = vpop.permute.xlu1 %5176 }
 0x8cd   : > { %p6559_p9 = por %p6558_p7, %p6557_p6 }
 0x8cf   : > { %p6560_p12 = pnand %p6559_p9, %p6553_p5 }
 0x8d0   : > { %v12243_v32 = vpop.permute.xlu0 %5182  ;;  %v12245_v63 = vpop.permute.xlu1 %5180 }
 0x8d4   : > { %v5219_v28 = vpop.permute.xlu0 %5218  ;;  %v12247_v13 = vpop.permute.xlu1 %5184 }
 0x8d5   : > { %v5330_v60 = vsel %vm2877_vm0, %v12159_v61, %v5219_v28 }
 0x8d8   : > { %v5223_v2 = vpop.permute.xlu0 %5222  ;;  %v5221_v33 = vpop.permute.xlu1 %5220 }
 0x8d9   : > { %v5332_v46 = vsel %vm2877_vm0, %v12171_v53, %v5223_v2  ;;  %v5331_v51 = vsel %vm2877_vm0, %v12182_v38, %v5221_v33 }
 0x8dc   : > { %v5227_v59 = vpop.permute.xlu0 %5226  ;;  %v5225_v4 = vpop.permute.xlu1 %5224 }
 0x8dd   : > { %v5334_v14 = vsel %vm2877_vm0, %v12184_v6, %v5227_v59  ;;  %v5333_v26 = vsel %vm2877_vm0, %v12200_v45, %v5225_v4 }
 0x8e0   : > { %v5231_v50 = vpop.permute.xlu0 %5230  ;;  %v5229_v3 = vpop.permute.xlu1 %5228 }
 0x8e1   : > { %v5336_v57 = vsel %vm2877_vm0, %v5167_v30, %v5231_v50  ;;  %v5335_v53 = vsel %vm2877_vm0, %v5165_v19, %v5229_v3 }
 0x8e4   : > { %v5235_v5 = vpop.permute.xlu0 %5234  ;;  %v5233_v11 = vpop.permute.xlu1 %5232 }
 0x8e5   : > { %v5338_v29 = vsel %vm2877_vm0, %v5171_v49, %v5235_v5  ;;  %v5337_v22 = vsel %vm2877_vm0, %v12233_v37, %v5233_v11 }
 0x8e8   : > { %v5239_v0 = vpop.permute.xlu0 %5238  ;;  %v5237_v35 = vpop.permute.xlu1 %5236 }
 0x8e9   : > { %v5340_v45 = vsel %vm2877_vm0, %v12235_v55, %v5239_v0  ;;  %v5339_v37 = vsel %vm2877_vm0, %v12237_v39, %v5237_v35 }
 0x8ec   : > { %v5243_v36 = vpop.permute.xlu0 %5242  ;;  %v12249_v7 = vpop.permute.xlu1 %5240 }
 0x8ed   : > { %v5342_v55 = vsel %vm2877_vm0, %v12239_v31, %v5243_v36  ;;  %v5341_v39 = vsel %vm2877_vm0, %v12241_v34, %v12249_v7 }
 0x8f0   : > { %v12251_v23 = vpop.permute.xlu0 %5246  ;;  %v12253_v40 = vpop.permute.xlu1 %5244 }
 0x8f1   : > { %v5344_v31 = vsel %vm2877_vm0, %v12243_v32, %v12251_v23  ;;  %v5343_v36 = vsel %vm2877_vm0, %v12245_v63, %v12253_v40 }
 0x8f4   : > { %v5283_v8 = vpop.permute.xlu0 %5282  ;;  %v12260_v54 = vpop.permute.xlu1 %5248 }
 0x8f5   : > { %v5346_v52 = vsel %vm2894_vm1, %v5330_v60, %v5283_v8  ;;  %v5345_v8 = vsel %vm2877_vm0, %v12247_v13, %v12260_v54 }
 0x8f6   : > { %v5362_v44 = vsel %vm2911_vm2, %v5346_v52, 0.0 }
 0x8f7   : > { %5378 = vst [vmem:[%s10425_s20 + $0x18] sm:$0xff] %v5362_v44 }
 0x8f8   : > { %v5287_v1 = vpop.permute.xlu0 %5286  ;;  %v5285_v27 = vpop.permute.xlu1 %5284 }
 0x8f9   : > { %v5348_v9 = vsel %vm2894_vm1, %v5332_v46, %v5287_v1  ;;  %v5347_v56 = vsel %vm2894_vm1, %v5331_v51, %v5285_v27 }
 0x8fa   : > { %v5364_v21 = vsel %vm2911_vm2, %v5348_v9, 0.0  ;;  %v5363_v24 = vsel %vm2911_vm2, %v5347_v56, 0.0 }
 0x8fb   : > { %5380 = vst [vmem:[%s10425_s20 + $0x58] sm:$0xff] %v5364_v21  ;;  %5379 = vst [vmem:[%s10425_s20 + $0x38] sm:$0xff] %v5363_v24 }
 0x8fc   : > { %v5291_v15 = vpop.permute.xlu0 %5290  ;;  %v5289_v48 = vpop.permute.xlu1 %5288 }
 0x8fd   : > { %v5350_v12 = vsel %vm2894_vm1, %v5334_v14, %v5291_v15  ;;  %v5349_v58 = vsel %vm2894_vm1, %v5333_v26, %v5289_v48 }
 0x8fe   : > { %v5366_v61 = vsel %vm2911_vm2, %v5350_v12, 0.0  ;;  %v5365_v43 = vsel %vm2911_vm2, %v5349_v58, 0.0 }
 0x8ff   : > { %5382 = vst [vmem:[%s10425_s20 + $0x98] sm:$0xff] %v5366_v61  ;;  %5381 = vst [vmem:[%s10425_s20 + $0x78] sm:$0xff] %v5365_v43 }
 0x900   : > { %v5295_v25 = vpop.permute.xlu0 %5294  ;;  %v5293_v17 = vpop.permute.xlu1 %5292 }
 0x901   : > { %v5352_v16 = vsel %vm2894_vm1, %v5336_v57, %v5295_v25  ;;  %v5351_v18 = vsel %vm2894_vm1, %v5335_v53, %v5293_v17 }
 0x902   : > { %v5368_v10 = vsel %vm2911_vm2, %v5352_v16, 0.0  ;;  %v5367_v47 = vsel %vm2911_vm2, %v5351_v18, 0.0 }
 0x903   : > { %5384 = vst [vmem:[%s10425_s20 + $0xd8] sm:$0xff] %v5368_v10  ;;  %5383 = vst [vmem:[%s10425_s20 + $0xb8] sm:$0xff] %v5367_v47 }
 0x904   : > { %v5299_v20 = vpop.permute.xlu0 %5298  ;;  %v5297_v62 = vpop.permute.xlu1 %5296 }
 0x905   : > { %v5354_v38 = vsel %vm2894_vm1, %v5338_v29, %v5299_v20  ;;  %v5353_v30 = vsel %vm2894_vm1, %v5337_v22, %v5297_v62 }
 0x906   : > { %v5370_v6 = vsel %vm2911_vm2, %v5354_v38, 0.0  ;;  %v5369_v19 = vsel %vm2911_vm2, %v5353_v30, 0.0 }
 0x907   : > { %5386 = vst [vmem:[%s10425_s20 + $0x118] sm:$0xff] %v5370_v6  ;;  %5385 = vst [vmem:[%s10425_s20 + $0xf8] sm:$0xff] %v5369_v19 }
 0x908   : > { %v5303_v41 = vpop.permute.xlu0 %5302  ;;  %v5301_v28 = vpop.permute.xlu1 %5300 }
 0x909   : > { %v5356_v49 = vsel %vm2894_vm1, %v5340_v45, %v5303_v41  ;;  %v5355_v2 = vsel %vm2894_vm1, %v5339_v37, %v5301_v28 }
 0x90a   : > { %v5372_v42 = vsel %vm2911_vm2, %v5356_v49, 0.0  ;;  %v5371_v59 = vsel %vm2911_vm2, %v5355_v2, 0.0 }
 0x90b   : > { %5388 = vst [vmem:[%s10425_s20 + $0x158] sm:$0xff] %v5372_v42  ;;  %5387 = vst [vmem:[%s10425_s20 + $0x138] sm:$0xff] %v5371_v59 }
 0x90c   : > { %v5307_v33 = vpop.permute.xlu0 %5306  ;;  %v5305_v3 = vpop.permute.xlu1 %5304 }
 0x90d   : > { %v5358_v4 = vsel %vm2894_vm1, %v5342_v55, %v5307_v33  ;;  %v5357_v5 = vsel %vm2894_vm1, %v5341_v39, %v5305_v3 }
 0x90e   : > { %v5374_v50 = vsel %vm2911_vm2, %v5358_v4, 0.0  ;;  %v5373_v0 = vsel %vm2911_vm2, %v5357_v5, 0.0 }
 0x90f   : > { %5390 = vst [vmem:[%s10425_s20 + $0x198] sm:$0xff] %v5374_v50  ;;  %5389 = vst [vmem:[%s10425_s20 + $0x178] sm:$0xff] %v5373_v0 }
 0x910   : > { %v5311_v11 = vpop.permute.xlu0 %5310  ;;  %v5309_v7 = vpop.permute.xlu1 %5308 }
 0x911   : > { %v5360_v35 = vsel %vm2894_vm1, %v5344_v31, %v5311_v11  ;;  %v5359_v32 = vsel %vm2894_vm1, %v5343_v36, %v5309_v7 }
 0x912   : > { %v5376_v34 = vsel %vm2911_vm2, %v5360_v35, 0.0  ;;  %v5375_v60 = vsel %vm2911_vm2, %v5359_v32, 0.0 }
 0x913   : > { %5392 = vst [vmem:[%s10425_s20 + $0x1d8] sm:$0xff] %v5376_v34  ;;  %5391 = vst [vmem:[%s10425_s20 + $0x1b8] sm:$0xff] %v5375_v60 }
 0x914   : > { %v5411_v23 = vpop.permute.xlu0 %5410  ;;  %v5313_v63 = vpop.permute.xlu1 %5312 }
 0x915   : > { %5787 = vst.msk [vmem:[%s9047_s14 + $0x180] sm:$0xff] %vm2877_vm0, %v5411_v23  ;;  %v5361_v40 = vsel %vm2894_vm1, %v5345_v8, %v5313_v63 }
 0x916   : > { %v5377_v44 = vsel %vm2911_vm2, %v5361_v40, 0.0 }
 0x917   : > { %5393 = vst [vmem:[%s10425_s20 + $0x1f8] sm:$0xff] %v5377_v44 }
 0x918   : > { %v5415_v52 = vpop.permute.xlu0 %5414  ;;  %v5413_v13 = vpop.permute.xlu1 %5412 }
 0x919   : > { %5789 = vst.msk [vmem:[%s9047_s14 + $0x190] sm:$0xff] %vm2877_vm0, %v5415_v52 }
 0x91a   : > { %6563 = shalt.err (!%p6560_p12)
}
 0x91b   : > { %s6564_s20 = scalar_lea.hbm %s12344_s26, 8192  ;;  %s6568_s18 = scalar_lea.hbm %s13473_s16, 16384 }
 0x91c   : > { %p6565_p0 = scmp.ne.s32.totalorder %s12344_s26, %s6564_s20  ;;  %p6569_p4 = scmp.lt.u32.totalorder %s12344_s26, %s13473_s16 }
 0x91d   : > { %p6570_p10 = scmp.lt.u32.totalorder %s6568_s18, %s6564_s20  ;;  %p6572_p2 = scmp.lt.u32.totalorder %s6564_s20, %s12344_s26 }
 0x91e   : > { %p6566_p1 = pnand %p6565_p0, %p13466_p8 }
 0x91f   : > { %p6571_p11 = por %p6570_p10, %p6569_p4 }
 0x920   : > { %p6567_p13 = pneg %p6566_p1 }
 0x921   : > { %p6573_p3 = por %p6572_p2, %p6571_p11 }
 0x923   : > { %p6574_p5 = pnand %p6573_p3, %p6567_p13 }
 0x925   : > { %6577 = shalt.err (!%p6574_p5)
}
 0x926   : > { %6215 = dma.vmem_to_hbm [thread:$0]  (%p13466_p8), %s12346_s0, 8192, %s12344_s26, %s5476_s23, %s6657_s27, %s6657_s27, %s13467_s25   ;;  %v5419_v54 = vpop.permute.xlu0 %5418  ;;  %v5417_v46 = vpop.permute.xlu1 %5416 }
 0x927   : > { %5788 = vst.msk [vmem:[%s9047_s14 + $0x188] sm:$0xff] %vm2877_vm0, %v5413_v13  ;;  %5791 = vst.msk [vmem:[%s9047_s14 + $0x1a0] sm:$0xff] %vm2877_vm0, %v5419_v54 }
 0x928   : > { %5790 = vst.msk [vmem:[%s9047_s14 + $0x198] sm:$0xff] %vm2877_vm0, %v5417_v46 }
 0x92a   : > { %v5423_v1 = vpop.permute.xlu0 %5422  ;;  %v5421_v9 = vpop.permute.xlu1 %5420 }
 0x92b   : > { %5793 = vst.msk [vmem:[%s9047_s14 + $0x1b0] sm:$0xff] %vm2877_vm0, %v5423_v1  ;;  %5792 = vst.msk [vmem:[%s9047_s14 + $0x1a8] sm:$0xff] %vm2877_vm0, %v5421_v9 }
 0x92e   : > { %v5427_v21 = vpop.permute.xlu0 %5426  ;;  %v5425_v51 = vpop.permute.xlu1 %5424 }
 0x92f   : > { %5795 = vst.msk [vmem:[%s9047_s14 + $0x1c0] sm:$0xff] %vm2877_vm0, %v5427_v21  ;;  %5794 = vst.msk [vmem:[%s9047_s14 + $0x1b8] sm:$0xff] %vm2877_vm0, %v5425_v51 }
 0x932   : > { %v5431_v27 = vpop.permute.xlu0 %5430  ;;  %v5429_v14 = vpop.permute.xlu1 %5428 }
 0x933   : > { %5797 = vst.msk [vmem:[%s9047_s14 + $0x1d0] sm:$0xff] %vm2877_vm0, %v5431_v27  ;;  %5796 = vst.msk [vmem:[%s9047_s14 + $0x1c8] sm:$0xff] %vm2877_vm0, %v5429_v14 }
 0x936   : > { %v5435_v56 = vpop.permute.xlu0 %5434  ;;  %v5433_v15 = vpop.permute.xlu1 %5432 }
 0x937   : > { %5799 = vst.msk [vmem:[%s9047_s14 + $0x1e0] sm:$0xff] %vm2877_vm0, %v5435_v56  ;;  %5798 = vst.msk [vmem:[%s9047_s14 + $0x1d8] sm:$0xff] %vm2877_vm0, %v5433_v15 }
 0x93a   : > { %v5439_v24 = vpop.permute.xlu0 %5438  ;;  %v5437_v12 = vpop.permute.xlu1 %5436 }
 0x93b   : > { %5801 = vst.msk [vmem:[%s9047_s14 + $0x1f0] sm:$0xff] %vm2877_vm0, %v5439_v24  ;;  %5800 = vst.msk [vmem:[%s9047_s14 + $0x1e8] sm:$0xff] %vm2877_vm0, %v5437_v12 }
 0x93e   : > { %v5441_v61 = vpop.permute.xlu1 %5440 }
 0x93f   : > { %5802 = vst.msk [vmem:[%s9047_s14 + $0x1f8] sm:$0xff] %vm2877_vm0, %v5441_v61 }
 0x940 PF: > { %s13474_s13 = sld [smem:[#allocation17_spill]]  ;;  %s13475_s28 = sld [smem:[#allocation14_spill]] }
 0x941   : > { %s13476_s27 = sld [smem:[#allocation20_spill]] }
 0x946   : > { %p6237_p8 = scmp.ge.s32.totalorder %s13474_s13, 2  ;;  %s5544_s25 = sand.u32 1, %s13475_s28  }
 0x947   : > { %p13477_p6 = scmp.ne.s32.totalorder %s13476_s27, 0  ;;  %s5545_s0 = scalar_lea.sflag [#allocation4], %s5544_s25 }
 0x949   : > { %p6227_p7 = pnand %p6237_p8, %p13477_p6 }
 0x94b   : > { %6611 = dma.done.wait (!%p6227_p7), %s5545_s0, 8192  }
 0x94c   : > { %6613 = vsyncadd (!%p6227_p7), %s5545_s0, 4294959104  ;;  %s5554_s26 = scalar_lea.sflag [#allocation9], %s5544_s25 }
 0x94d   : > { %6615 = dma.done.wait (!%p6227_p7), %s5554_s26, 8192  }
 0x94e   : > { %6617 = vsyncadd (!%p6227_p7), %s5554_s26, 4294959104  ;;  %s34_s23 = sadd.s32 1, %s13474_s13   ;;  %s13478_s30 = sld [smem:[#allocation15_spill]] }
 0x94f   : > { %p31_p9 = scmp.ge.s32.totalorder %s34_s23, 4   ;;  %s13479_s20 = sld [smem:[#allocation21_spill]] }
 0x950   : > { %s13480_s21 = sld [smem:[#allocation16_spill]]  ;;  %s13481_s22 = sld [smem:[#allocation18_spill]] }
 0x951   : > { %s13482_s18 = smov %s6624_s19  ;;  %33 = sbr.rel (!%p31_p9) target bundleno = 14 (0xe), region = 154 }
 0x954   : > { %s13483_s19 = smov %s13478_s30 }
 0x958   :  { %5571 = vsyncpa [#allocation3], 1 }
 0x959   :  { %5573 = vsyncpa [#allocation3 + $0x1], 1 }
 0x95a   :  { %5574 = vsyncpa [#allocation6], 1 }
 0x95b   :  { %5575 = vsyncpa [#allocation4], 1 }
 0x95c   :  { %5577 = vsyncpa [#allocation4 + $0x1], 1 }
 0x95d   :  { %5578 = vsyncpa [#allocation9], 1 }
 0x95e   :  { %5580 = vsyncpa [#allocation9 + $0x1], 1 }

</bundles_post_ra>
